<compile_context>
chip_gen: v5e
topology: v5e:2x2
jax: 0.10.0
libtpu: 0.0.40
codegen_flags: <defaults>
</compile_context>

<pallas_src>
import functools
import math

import jax
import jax.numpy as jnp
from jax.experimental import pallas as pl
from jax.experimental.pallas import tpu as pltpu


CFG = dict(
    vocab=128, d_model=32, n_heads=4, head_dim=8, ffn=64,
    enc_layers=2, dec_layers=2, max_pos=16,
    pad_token_id=1, bos_token_id=0, decoder_start_token_id=2,
)

_LN_EPS = 1e-5
_SQRT_HALF = 0.7071067811865476
_MXU_DTYPE = jnp.bfloat16   # MXU operand dtype; accumulation & statistics stay f32.


# ----------------------------- in-kernel helpers -----------------------------

def _mm(a, b):
    """MXU matmul: bf16 operands, f32 accumulation."""
    return jnp.dot(a.astype(_MXU_DTYPE), b.astype(_MXU_DTYPE),
                   preferred_element_type=jnp.float32)


def _erf_approx(x):
    # Abramowitz & Stegun 7.1.26 (max abs err ~1.5e-7), exp/mul/add only; the divide
    # goes to the EUP via pl.reciprocal(approx=True).
    a1, a2, a3, a4, a5 = 0.254829592, -0.284496736, 1.421413741, -1.453152027, 1.061405429
    p = 0.3275911
    ax = jnp.abs(x)
    t = pl.reciprocal(1.0 + p * ax, approx=True)
    poly = ((((a5 * t + a4) * t + a3) * t + a2) * t + a1) * t
    y = 1.0 - poly * jnp.exp(-ax * ax)
    return jnp.where(x >= 0, y, -y)


def _gelu_exact(x):
    return 0.5 * x * (1.0 + _erf_approx(x * _SQRT_HALF))


def _layer_norm(y, g, b):
    mu = jnp.mean(y, axis=-1, keepdims=True)
    var = jnp.mean((y - mu) ** 2, axis=-1, keepdims=True)
    return (y - mu) * jax.lax.rsqrt(var + _LN_EPS) * g + b


def _split_heads(x, n_heads, head_dim):
    # (S, D) -> (H, S, dh)
    s = x.shape[0]
    return jnp.transpose(x.reshape(s, n_heads, head_dim), (1, 0, 2))


def _merge_heads(x):
    # (H, S, dh) -> (S, H*dh)
    h, s, dh = x.shape
    return jnp.transpose(x, (1, 0, 2)).reshape(s, h * dh)


def _attention(q, k, v, n_heads, head_dim, causal):
    """Batched-over-heads attention.  q: (Sq, D), k/v: (Skv, D) in f32."""
    scale = head_dim ** -0.5
    qh = _split_heads(q, n_heads, head_dim).astype(_MXU_DTYPE)
    kh = _split_heads(k, n_heads, head_dim).astype(_MXU_DTYPE)
    vh = _split_heads(v, n_heads, head_dim).astype(_MXU_DTYPE)
    # One MXU pass over all heads for QK^T and for PV (no per-head 8-lane slices).
    s = jnp.einsum('hqd,hkd->hqk', qh, kh,
                   preferred_element_type=jnp.float32) * scale      # (H, Sq, Skv) f32
    if causal:
        row = jax.lax.broadcasted_iota(jnp.int32, s.shape, 1)
        col = jax.lax.broadcasted_iota(jnp.int32, s.shape, 2)
        s = jnp.where(row >= col, s, -1e9)
    s = s - jnp.max(s, axis=-1, keepdims=True)
    p = jnp.exp(s)
    p = p * pl.reciprocal(jnp.sum(p, axis=-1, keepdims=True), approx=True)
    ctx = jnp.einsum('hqk,hkd->hqd', p.astype(_MXU_DTYPE), vh,
                     preferred_element_type=jnp.float32)            # (H, Sq, dh) f32
    return _merge_heads(ctx)                                        # (Sq, D) f32


# ----------------------------- Pallas kernels --------------------------------

def _encoder_kernel(x_ref, pos_ref, eg_ref, eb_ref,
                    wqkv_ref, bqkv_ref, wo_ref, bo_ref, ln1g_ref, ln1b_ref,
                    w1_ref, b1_ref, w2_ref, b2_ref, ln2g_ref, ln2b_ref,
                    o_ref, *, n_layers, n_heads, head_dim):
    """Whole encoder for one batch element: embed add + LN, then all layers."""
    d = n_heads * head_dim
    h = _layer_norm(x_ref[...] + pos_ref[...], eg_ref[...], eb_ref[...])
    for l in range(n_layers):                       # statically unrolled over layers
        qkv = _mm(h, wqkv_ref[l]) + bqkv_ref[l]
        attn = _attention(qkv[:, :d], qkv[:, d:2 * d], qkv[:, 2 * d:],
                          n_heads, head_dim, causal=False)
        attn = _mm(attn, wo_ref[l]) + bo_ref[l]
        h = _layer_norm(h + attn, ln1g_ref[l], ln1b_ref[l])

        f = _gelu_exact(_mm(h, w1_ref[l]) + b1_ref[l])
        f = _mm(f, w2_ref[l]) + b2_ref[l]
        h = _layer_norm(h + f, ln2g_ref[l], ln2b_ref[l])
    o_ref[...] = h


def _decoder_kernel(tok_ref, pos_ref, eg_ref, eb_ref, enc_ref,
                    s_wqkv_ref, s_bqkv_ref, s_wo_ref, s_bo_ref, ln1g_ref, ln1b_ref,
                    c_wq_ref, c_bq_ref, c_wkv_ref, c_bkv_ref, c_wo_ref, c_bo_ref,
                    ln2g_ref, ln2b_ref,
                    w1_ref, b1_ref, w2_ref, b2_ref, ln3g_ref, ln3b_ref,
                    emb_ref, lbias_ref,
                    logits_ref, h_ref, *, n_layers, n_heads, head_dim):
    """Whole decoder + tied LM head for one batch element."""
    d = n_heads * head_dim
    h = _layer_norm(tok_ref[...] + pos_ref[...], eg_ref[...], eb_ref[...])
    enc_h = enc_ref[...]
    for l in range(n_layers):
        # Causal self-attention (fused QKV projection).
        qkv = _mm(h, s_wqkv_ref[l]) + s_bqkv_ref[l]
        attn = _attention(qkv[:, :d], qkv[:, d:2 * d], qkv[:, 2 * d:],
                          n_heads, head_dim, causal=True)
        attn = _mm(attn, s_wo_ref[l]) + s_bo_ref[l]
        h = _layer_norm(h + attn, ln1g_ref[l], ln1b_ref[l])

        # Cross-attention (Q from decoder, fused KV from encoder output).
        q = _mm(h, c_wq_ref[l]) + c_bq_ref[l]
        kv = _mm(enc_h, c_wkv_ref[l]) + c_bkv_ref[l]
        attn = _attention(q, kv[:, :d], kv[:, d:], n_heads, head_dim, causal=False)
        attn = _mm(attn, c_wo_ref[l]) + c_bo_ref[l]
        h = _layer_norm(h + attn, ln2g_ref[l], ln2b_ref[l])

        # FFN.
        f = _gelu_exact(_mm(h, w1_ref[l]) + b1_ref[l])
        f = _mm(f, w2_ref[l]) + b2_ref[l]
        h = _layer_norm(h + f, ln3g_ref[l], ln3b_ref[l])

    h_ref[...] = h
    # Tied LM head: contract last dims of (S,D) x (V,D) -> (S,V); no weight transpose,
    # lane-dense V=128 store.
    logits_ref[...] = jax.lax.dot_general(
        h.astype(_MXU_DTYPE), emb_ref[...].astype(_MXU_DTYPE),
        dimension_numbers=(((1,), (1,)), ((), ())),
        preferred_element_type=jnp.float32) + lbias_ref[...]


# ------------------------------ call wrappers ---------------------------------

def _const_spec(a):
    """Full-array block, constant index map (weight stays VMEM-resident)."""
    if a.ndim == 2:
        return pl.BlockSpec(a.shape, lambda i: (0, 0))
    return pl.BlockSpec(a.shape, lambda i: (0, 0, 0))


def _nbytes(*arrs):
    return int(sum(math.prod(a.shape) * jnp.dtype(a.dtype).itemsize for a in arrs))


def encode(params, inputs_embeds):
    B, S, D = inputs_embeds.shape
    e = params["enc"]
    L, H, dh, F = CFG["enc_layers"], CFG["n_heads"], CFG["head_dim"], CFG["ffn"]
    pos = params["embed_positions"][2:2 + S]          # HF BART position offset of 2
    weights = [e[k] for k in ("wqkv", "bqkv", "wo", "bo", "ln1_g", "ln1_b",
                              "w1", "b1", "w2", "b2", "ln2_g", "ln2_b")]
    args = [inputs_embeds, pos, params["ln_emb_g"], params["ln_emb_b"], *weights]

    flops = 2 * B * L * (S * D * 3 * D + 2 * H * S * S * dh + S * D * D + 2 * S * D * F)
    transcendentals = B * L * (H * S * S + S * F)
    bytes_accessed = _nbytes(*args) + 4 * B * S * D

    kern = functools.partial(_encoder_kernel, n_layers=L, n_heads=H, head_dim=dh)
    return pl.pallas_call(
        kern,
        grid=(B,),
        in_specs=[pl.BlockSpec((None, S, D), lambda i: (i, 0, 0)),
                  _const_spec(pos),
                  _const_spec(params["ln_emb_g"]),
                  _const_spec(params["ln_emb_b"])]
                 + [_const_spec(w) for w in weights],
        out_specs=pl.BlockSpec((None, S, D), lambda i: (i, 0, 0)),
        out_shape=jax.ShapeDtypeStruct((B, S, D), jnp.float32),
        compiler_params=pltpu.CompilerParams(dimension_semantics=("parallel",)),
        cost_estimate=pl.CostEstimate(flops=flops, transcendentals=transcendentals,
                                      bytes_accessed=bytes_accessed),
    )(*args)


def decode_and_lm_head(params, tok_embeds, enc_h):
    B, S, D = tok_embeds.shape
    S_enc = enc_h.shape[1]
    dprm = params["dec"]
    L, H, dh, F = CFG["dec_layers"], CFG["n_heads"], CFG["head_dim"], CFG["ffn"]
    V = params["embed_tokens"].shape[0]
    pos = params["embed_positions"][2:2 + S]
    weights = [dprm[k] for k in (
        "self_wqkv", "self_bqkv", "self_wo", "self_bo", "ln1_g", "ln1_b",
        "cross_wq", "cross_bq", "cross_wkv", "cross_bkv", "cross_wo", "cross_bo",
        "ln2_g", "ln2_b",
        "w1", "b1", "w2", "b2", "ln3_g", "ln3_b")]
    args = [tok_embeds, pos, params["dec_ln_emb_g"], params["dec_ln_emb_b"], enc_h,
            *weights, params["embed_tokens"], params["final_logits_bias"]]

    per_layer = (S * D * 3 * D + 2 * H * S * S * dh + S * D * D          # self-attn
                 + S * D * D + S_enc * D * 2 * D + 2 * H * S * S_enc * dh + S * D * D
                 + 2 * S * D * F)                                        # ffn
    flops = 2 * B * (L * per_layer + S * D * V)
    transcendentals = B * L * (H * S * (S + S_enc) + S * F)
    bytes_accessed = _nbytes(*args) + 4 * B * S * (V + D)

    kern = functools.partial(_decoder_kernel, n_layers=L, n_heads=H, head_dim=dh)
    return pl.pallas_call(
        kern,
        grid=(B,),
        in_specs=[pl.BlockSpec((None, S, D), lambda i: (i, 0, 0)),
                  _const_spec(pos),
                  _const_spec(params["dec_ln_emb_g"]),
                  _const_spec(params["dec_ln_emb_b"]),
                  pl.BlockSpec((None, S_enc, D), lambda i: (i, 0, 0))]
                 + [_const_spec(w) for w in weights]
                 + [_const_spec(params["embed_tokens"]),
                    _const_spec(params["final_logits_bias"])],
        out_specs=[pl.BlockSpec((None, S, V), lambda i: (i, 0, 0)),
                   pl.BlockSpec((None, S, D), lambda i: (i, 0, 0))],
        out_shape=(jax.ShapeDtypeStruct((B, S, V), jnp.float32),
                   jax.ShapeDtypeStruct((B, S, D), jnp.float32)),
        compiler_params=pltpu.CompilerParams(dimension_semantics=("parallel",)),
        cost_estimate=pl.CostEstimate(flops=flops, transcendentals=transcendentals,
                                      bytes_accessed=bytes_accessed),
    )(*args)


# ------------------------------ model forward ---------------------------------

def shift_tokens_right(input_ids, pad_token_id, decoder_start_token_id):
    start = jnp.full((input_ids.shape[0], 1), decoder_start_token_id, input_ids.dtype)
    shifted = jnp.concatenate([start, input_ids[:, :-1]], axis=1)
    return jnp.where(shifted == -100, pad_token_id, shifted)


def bart_forward(params, inputs_embeds, labels):
    """Mirrors BART.forward: encoder on inputs_embeds, label shift, decoder, LM head."""
    enc_h = encode(params, inputs_embeds)
    decoder_targets = jnp.where(labels == CFG["pad_token_id"], -100, labels)
    decoder_input_ids = shift_tokens_right(
        decoder_targets, CFG["pad_token_id"], CFG["decoder_start_token_id"])
    # TODO(synk): at real vocab sizes fold this gather into the decoder kernel via
    # PrefetchScalarGridSpec + Element-indexed BlockSpec on embed_tokens.
    tok = jnp.take(params["embed_tokens"], decoder_input_ids, axis=0)
    logits, dec_h = decode_and_lm_head(params, tok, enc_h)
    # TODO(synk): the PyTorch module returns outputs['decoder_hidden_states'] which is
    # None (output_hidden_states unset); we return the decoder last hidden state instead.
    return logits, dec_h


# ------------------------------ parameter init -------------------------------

def _dense(key, shape, dtype=_MXU_DTYPE):
    return (jax.random.normal(key, shape, jnp.float32) * 0.02).astype(dtype)


def init_params(key):
    D, F, V = CFG["d_model"], CFG["ffn"], CFG["vocab"]
    Le, Ld = CFG["enc_layers"], CFG["dec_layers"]
    k_tok, k_pos, k_enc, k_dec = jax.random.split(key, 4)

    ek = jax.random.split(k_enc, 4)
    enc = dict(
        wqkv=_dense(ek[0], (Le, D, 3 * D)), bqkv=jnp.zeros((Le, 1, 3 * D), jnp.float32),
        wo=_dense(ek[1], (Le, D, D)), bo=jnp.zeros((Le, 1, D), jnp.float32),
        ln1_g=jnp.ones((Le, 1, D), jnp.float32), ln1_b=jnp.zeros((Le, 1, D), jnp.float32),
        w1=_dense(ek[2], (Le, D, F)), b1=jnp.zeros((Le, 1, F), jnp.float32),
        w2=_dense(ek[3], (Le, F, D)), b2=jnp.zeros((Le, 1, D), jnp.float32),
        ln2_g=jnp.ones((Le, 1, D), jnp.float32), ln2_b=jnp.zeros((Le, 1, D), jnp.float32),
    )

    dk = jax.random.split(k_dec, 7)
    dec = dict(
        self_wqkv=_dense(dk[0], (Ld, D, 3 * D)),
        self_bqkv=jnp.zeros((Ld, 1, 3 * D), jnp.float32),
        self_wo=_dense(dk[1], (Ld, D, D)), self_bo=jnp.zeros((Ld, 1, D), jnp.float32),
        ln1_g=jnp.ones((Ld, 1, D), jnp.float32), ln1_b=jnp.zeros((Ld, 1, D), jnp.float32),
        cross_wq=_dense(dk[2], (Ld, D, D)), cross_bq=jnp.zeros((Ld, 1, D), jnp.float32),
        cross_wkv=_dense(dk[3], (Ld, D, 2 * D)),
        cross_bkv=jnp.zeros((Ld, 1, 2 * D), jnp.float32),
        cross_wo=_dense(dk[4], (Ld, D, D)), cross_bo=jnp.zeros((Ld, 1, D), jnp.float32),
        ln2_g=jnp.ones((Ld, 1, D), jnp.float32), ln2_b=jnp.zeros((Ld, 1, D), jnp.float32),
        w1=_dense(dk[5], (Ld, D, F)), b1=jnp.zeros((Ld, 1, F), jnp.float32),
        w2=_dense(dk[6], (Ld, F, D)), b2=jnp.zeros((Ld, 1, D), jnp.float32),
        ln3_g=jnp.ones((Ld, 1, D), jnp.float32), ln3_b=jnp.zeros((Ld, 1, D), jnp.float32),
    )

    return dict(
        embed_tokens=jax.random.normal(k_tok, (V, D), jnp.float32) * 0.02,
        embed_positions=jax.random.normal(k_pos, (CFG["max_pos"] + 2, D), jnp.float32) * 0.02,
        ln_emb_g=jnp.ones((1, D), jnp.float32), ln_emb_b=jnp.zeros((1, D), jnp.float32),
        dec_ln_emb_g=jnp.ones((1, D), jnp.float32), dec_ln_emb_b=jnp.zeros((1, D), jnp.float32),
        final_logits_bias=jnp.zeros((1, V), jnp.float32),
        enc=enc, dec=dec,
    )


# ----------------------------------- main -------------------------------------

if __name__ == "__main__":
    key = jax.random.PRNGKey(0)
    k_param, k_emb, k_lbl = jax.random.split(key, 3)

    B, S_enc, S_dec = 2, 8, 8
    D, V = CFG["d_model"], CFG["vocab"]

    params = init_params(k_param)
    inputs_embeds = jax.random.normal(k_emb, (B, S_enc, D), jnp.float32)
    labels = jax.random.randint(k_lbl, (B, S_dec), 3, V, dtype=jnp.int32)
    labels = labels.at[:, -2:].set(CFG["pad_token_id"])   # exercise the pad-masking path

    fwd = jax.jit(bart_forward)
    logits, dec_hidden = fwd(params, inputs_embeds, labels)
    jax.block_until_ready((logits, dec_hidden))

    assert logits.shape == (B, S_dec, V)
    assert dec_hidden.shape == (B, S_dec, D)
    assert bool(jnp.all(jnp.isfinite(logits)))
    print("KERNEL_OK")
</pallas_src>

<mosaic_0001>
module attributes {stable_mosaic.version = 11 : i64} {
  func.func @_encoder_kernel(%arg0: i32, %arg1: memref<1x8x32xf32, #tpu.memory_space<vmem>>, %arg2: memref<8x32xf32, #tpu.memory_space<vmem>>, %arg3: memref<1x32xf32, #tpu.memory_space<vmem>>, %arg4: memref<1x32xf32, #tpu.memory_space<vmem>>, %arg5: memref<2x32x96xbf16, #tpu.memory_space<vmem>>, %arg6: memref<2x1x96xf32, #tpu.memory_space<vmem>>, %arg7: memref<2x32x32xbf16, #tpu.memory_space<vmem>>, %arg8: memref<2x1x32xf32, #tpu.memory_space<vmem>>, %arg9: memref<2x1x32xf32, #tpu.memory_space<vmem>>, %arg10: memref<2x1x32xf32, #tpu.memory_space<vmem>>, %arg11: memref<2x32x64xbf16, #tpu.memory_space<vmem>>, %arg12: memref<2x1x64xf32, #tpu.memory_space<vmem>>, %arg13: memref<2x64x32xbf16, #tpu.memory_space<vmem>>, %arg14: memref<2x1x32xf32, #tpu.memory_space<vmem>>, %arg15: memref<2x1x32xf32, #tpu.memory_space<vmem>>, %arg16: memref<2x1x32xf32, #tpu.memory_space<vmem>>, %arg17: memref<1x8x32xf32, #tpu.memory_space<vmem>>) attributes {dimension_semantics = [#tpu.dimension_semantics<parallel>], iteration_bounds = array<i64: 2>, scalar_prefetch = 0 : i64, scratch_operands = 0 : i64, tpu.core_type = #tpu.core_type<tc>, window_params = [{transform_indices = @transform_0, window_bounds = array<i64: 1, 8, 32>}, {pipeline_mode = #tpu.pipeline_mode<synchronous>, transform_indices = @transform_1, window_bounds = array<i64: 8, 32>}, {pipeline_mode = #tpu.pipeline_mode<synchronous>, transform_indices = @transform_2, window_bounds = array<i64: 1, 32>}, {pipeline_mode = #tpu.pipeline_mode<synchronous>, transform_indices = @transform_3, window_bounds = array<i64: 1, 32>}, {pipeline_mode = #tpu.pipeline_mode<synchronous>, transform_indices = @transform_4, window_bounds = array<i64: 2, 32, 96>}, {pipeline_mode = #tpu.pipeline_mode<synchronous>, transform_indices = @transform_5, window_bounds = array<i64: 2, 1, 96>}, {pipeline_mode = #tpu.pipeline_mode<synchronous>, transform_indices = @transform_6, window_bounds = array<i64: 2, 32, 32>}, {pipeline_mode = #tpu.pipeline_mode<synchronous>, transform_indices = @transform_7, window_bounds = array<i64: 2, 1, 32>}, {pipeline_mode = #tpu.pipeline_mode<synchronous>, transform_indices = @transform_8, window_bounds = array<i64: 2, 1, 32>}, {pipeline_mode = #tpu.pipeline_mode<synchronous>, transform_indices = @transform_9, window_bounds = array<i64: 2, 1, 32>}, {pipeline_mode = #tpu.pipeline_mode<synchronous>, transform_indices = @transform_10, window_bounds = array<i64: 2, 32, 64>}, {pipeline_mode = #tpu.pipeline_mode<synchronous>, transform_indices = @transform_11, window_bounds = array<i64: 2, 1, 64>}, {pipeline_mode = #tpu.pipeline_mode<synchronous>, transform_indices = @transform_12, window_bounds = array<i64: 2, 64, 32>}, {pipeline_mode = #tpu.pipeline_mode<synchronous>, transform_indices = @transform_13, window_bounds = array<i64: 2, 1, 32>}, {pipeline_mode = #tpu.pipeline_mode<synchronous>, transform_indices = @transform_14, window_bounds = array<i64: 2, 1, 32>}, {pipeline_mode = #tpu.pipeline_mode<synchronous>, transform_indices = @transform_15, window_bounds = array<i64: 2, 1, 32>}, {transform_indices = @transform_16, window_bounds = array<i64: 1, 8, 32>}]} {
    %c0 = arith.constant 0 : index
    %c0_0 = arith.constant 0 : index
    %c0_1 = arith.constant 0 : index
    %0 = vector.load %arg1[%c0, %c0_0, %c0_1] : memref<1x8x32xf32, #tpu.memory_space<vmem>>, vector<1x8x32xf32>
    %1 = vector.shape_cast %0 : vector<1x8x32xf32> to vector<8x32xf32>
    %c0_2 = arith.constant 0 : index
    %c0_3 = arith.constant 0 : index
    %2 = vector.load %arg2[%c0_2, %c0_3] : memref<8x32xf32, #tpu.memory_space<vmem>>, vector<8x32xf32>
    %3 = arith.addf %1, %2 : vector<8x32xf32>
    %c0_4 = arith.constant 0 : index
    %c0_5 = arith.constant 0 : index
    %4 = vector.load %arg3[%c0_4, %c0_5] : memref<1x32xf32, #tpu.memory_space<vmem>>, vector<1x32xf32>
    %c0_6 = arith.constant 0 : index
    %c0_7 = arith.constant 0 : index
    %5 = vector.load %arg4[%c0_6, %c0_7] : memref<1x32xf32, #tpu.memory_space<vmem>>, vector<1x32xf32>
    %cst = arith.constant dense<0.000000e+00> : vector<8xf32>
    %6 = vector.multi_reduction <add>, %3, %cst [1] : vector<8x32xf32> to vector<8xf32>
    %7 = vector.shape_cast %6 : vector<8xf32> to vector<8x1xf32>
    %cst_8 = arith.constant 3.200000e+01 : f32
    %8 = vector.broadcast %cst_8 : f32 to vector<8x1xf32>
    %9 = arith.divf %7, %8 : vector<8x1xf32>
    %10 = vector.broadcast %9 : vector<8x1xf32> to vector<8x32xf32>
    %11 = arith.subf %3, %10 : vector<8x32xf32>
    %12 = arith.mulf %11, %11 : vector<8x32xf32>
    %cst_9 = arith.constant dense<0.000000e+00> : vector<8xf32>
    %13 = vector.multi_reduction <add>, %12, %cst_9 [1] : vector<8x32xf32> to vector<8xf32>
    %14 = vector.shape_cast %13 : vector<8xf32> to vector<8x1xf32>
    %cst_10 = arith.constant 3.200000e+01 : f32
    %15 = vector.broadcast %cst_10 : f32 to vector<8x1xf32>
    %16 = arith.divf %14, %15 : vector<8x1xf32>
    %17 = vector.broadcast %9 : vector<8x1xf32> to vector<8x32xf32>
    %18 = arith.subf %3, %17 : vector<8x32xf32>
    %cst_11 = arith.constant 9.99999974E-6 : f32
    %19 = vector.broadcast %cst_11 : f32 to vector<8x1xf32>
    %20 = arith.addf %16, %19 : vector<8x1xf32>
    %21 = math.rsqrt %20 : vector<8x1xf32>
    %22 = vector.broadcast %21 : vector<8x1xf32> to vector<8x32xf32>
    %23 = arith.mulf %18, %22 : vector<8x32xf32>
    %24 = vector.broadcast %4 : vector<1x32xf32> to vector<8x32xf32>
    %25 = arith.mulf %23, %24 : vector<8x32xf32>
    %26 = vector.broadcast %5 : vector<1x32xf32> to vector<8x32xf32>
    %27 = arith.addf %25, %26 : vector<8x32xf32>
    %c0_12 = arith.constant 0 : index
    %c0_13 = arith.constant 0 : index
    %c0_14 = arith.constant 0 : index
    %28 = vector.load %arg5[%c0_12, %c0_13, %c0_14] : memref<2x32x96xbf16, #tpu.memory_space<vmem>>, vector<1x32x96xbf16>
    %29 = vector.shape_cast %28 : vector<1x32x96xbf16> to vector<32x96xbf16>
    %30 = arith.truncf %27 : vector<8x32xf32> to vector<8x32xbf16>
    %cst_15 = arith.constant dense<0.000000e+00> : vector<8x96xf32>
    %31 = tpu.matmul %30, %29, %cst_15 {dimension_numbers = #tpu.dot_dimension_numbers<[1], [0], [0], [1], [0, 0, 1, 1], [], []>} : vector<8x32xbf16>, vector<32x96xbf16>, vector<8x96xf32> -> vector<8x96xf32>
    %c0_16 = arith.constant 0 : index
    %c0_17 = arith.constant 0 : index
    %c0_18 = arith.constant 0 : index
    %32 = vector.load %arg6[%c0_16, %c0_17, %c0_18] : memref<2x1x96xf32, #tpu.memory_space<vmem>>, vector<1x1x96xf32>
    %33 = vector.shape_cast %32 : vector<1x1x96xf32> to vector<1x96xf32>
    %34 = vector.broadcast %33 : vector<1x96xf32> to vector<8x96xf32>
    %35 = arith.addf %31, %34 : vector<8x96xf32>
    %36 = vector.extract_strided_slice %35 {offsets = [0, 0], sizes = [8, 32], strides = [1, 1]} : vector<8x96xf32> to vector<8x32xf32>
    %37 = vector.extract_strided_slice %35 {offsets = [0, 32], sizes = [8, 32], strides = [1, 1]} : vector<8x96xf32> to vector<8x32xf32>
    %38 = vector.extract_strided_slice %35 {offsets = [0, 64], sizes = [8, 32], strides = [1, 1]} : vector<8x96xf32> to vector<8x32xf32>
    %39 = vector.shape_cast %36 : vector<8x32xf32> to vector<8x4x8xf32>
    %40 = tpu.transpose %39, [1, 0, 2] : vector<8x4x8xf32> -> vector<4x8x8xf32>
    %41 = arith.truncf %40 : vector<4x8x8xf32> to vector<4x8x8xbf16>
    %42 = vector.shape_cast %37 : vector<8x32xf32> to vector<8x4x8xf32>
    %43 = tpu.transpose %42, [1, 0, 2] : vector<8x4x8xf32> -> vector<4x8x8xf32>
    %44 = arith.truncf %43 : vector<4x8x8xf32> to vector<4x8x8xbf16>
    %45 = vector.shape_cast %38 : vector<8x32xf32> to vector<8x4x8xf32>
    %46 = tpu.transpose %45, [1, 0, 2] : vector<8x4x8xf32> -> vector<4x8x8xf32>
    %47 = arith.truncf %46 : vector<4x8x8xf32> to vector<4x8x8xbf16>
    "tpu.trace_start"() <{level = 10 : i32, message = "hqd,hkd->hqk"}> : () -> ()
    %cst_19 = arith.constant dense<0.000000e+00> : vector<4x8x8xf32>
    %48 = tpu.matmul %41, %44, %cst_19 {dimension_numbers = #tpu.dot_dimension_numbers<[2], [2], [1], [1], [0, 0, 0, 1, 1, 1], [0], [0]>} : vector<4x8x8xbf16>, vector<4x8x8xbf16>, vector<4x8x8xf32> -> vector<4x8x8xf32>
    "tpu.trace_stop"() : () -> ()
    %cst_20 = arith.constant 0.353553385 : f32
    %49 = vector.broadcast %cst_20 : f32 to vector<4x8x8xf32>
    %50 = arith.mulf %48, %49 : vector<4x8x8xf32>
    %cst_21 = arith.constant dense<0xFF800000> : vector<4x8xf32>
    %51 = vector.multi_reduction <maximumf>, %50, %cst_21 [2] : vector<4x8x8xf32> to vector<4x8xf32>
    %52 = vector.shape_cast %51 : vector<4x8xf32> to vector<4x8x1xf32>
    %53 = vector.broadcast %52 : vector<4x8x1xf32> to vector<4x8x8xf32>
    %54 = arith.subf %50, %53 : vector<4x8x8xf32>
    %55 = math.exp %54 : vector<4x8x8xf32>
    %cst_22 = arith.constant dense<0.000000e+00> : vector<4x8xf32>
    %56 = vector.multi_reduction <add>, %55, %cst_22 [2] : vector<4x8x8xf32> to vector<4x8xf32>
    %57 = vector.shape_cast %56 : vector<4x8xf32> to vector<4x8x1xf32>
    %58 = tpu.reciprocal %57 {approx = true} : vector<4x8x1xf32> -> vector<4x8x1xf32>
    %59 = vector.broadcast %58 : vector<4x8x1xf32> to vector<4x8x8xf32>
    %60 = arith.mulf %55, %59 : vector<4x8x8xf32>
    %61 = arith.truncf %60 : vector<4x8x8xf32> to vector<4x8x8xbf16>
    "tpu.trace_start"() <{level = 10 : i32, message = "hqk,hkd->hqd"}> : () -> ()
    %cst_23 = arith.constant dense<0.000000e+00> : vector<4x8x8xf32>
    %62 = tpu.matmul %61, %47, %cst_23 {dimension_numbers = #tpu.dot_dimension_numbers<[2], [1], [1], [2], [0, 0, 0, 1, 1, 2], [0], [0]>} : vector<4x8x8xbf16>, vector<4x8x8xbf16>, vector<4x8x8xf32> -> vector<4x8x8xf32>
    "tpu.trace_stop"() : () -> ()
    %63 = tpu.transpose %62, [1, 0, 2] : vector<4x8x8xf32> -> vector<8x4x8xf32>
    %64 = vector.shape_cast %63 : vector<8x4x8xf32> to vector<8x32xf32>
    %c0_24 = arith.constant 0 : index
    %c0_25 = arith.constant 0 : index
    %c0_26 = arith.constant 0 : index
    %65 = vector.load %arg7[%c0_24, %c0_25, %c0_26] : memref<2x32x32xbf16, #tpu.memory_space<vmem>>, vector<1x32x32xbf16>
    %66 = vector.shape_cast %65 : vector<1x32x32xbf16> to vector<32x32xbf16>
    %67 = arith.truncf %64 : vector<8x32xf32> to vector<8x32xbf16>
    %cst_27 = arith.constant dense<0.000000e+00> : vector<8x32xf32>
    %68 = tpu.matmul %67, %66, %cst_27 {dimension_numbers = #tpu.dot_dimension_numbers<[1], [0], [0], [1], [0, 0, 1, 1], [], []>} : vector<8x32xbf16>, vector<32x32xbf16>, vector<8x32xf32> -> vector<8x32xf32>
    %c0_28 = arith.constant 0 : index
    %c0_29 = arith.constant 0 : index
    %c0_30 = arith.constant 0 : index
    %69 = vector.load %arg8[%c0_28, %c0_29, %c0_30] : memref<2x1x32xf32, #tpu.memory_space<vmem>>, vector<1x1x32xf32>
    %70 = vector.shape_cast %69 : vector<1x1x32xf32> to vector<1x32xf32>
    %71 = vector.broadcast %70 : vector<1x32xf32> to vector<8x32xf32>
    %72 = arith.addf %68, %71 : vector<8x32xf32>
    %73 = arith.addf %27, %72 : vector<8x32xf32>
    %c0_31 = arith.constant 0 : index
    %c0_32 = arith.constant 0 : index
    %c0_33 = arith.constant 0 : index
    %74 = vector.load %arg9[%c0_31, %c0_32, %c0_33] : memref<2x1x32xf32, #tpu.memory_space<vmem>>, vector<1x1x32xf32>
    %75 = vector.shape_cast %74 : vector<1x1x32xf32> to vector<1x32xf32>
    %c0_34 = arith.constant 0 : index
    %c0_35 = arith.constant 0 : index
    %c0_36 = arith.constant 0 : index
    %76 = vector.load %arg10[%c0_34, %c0_35, %c0_36] : memref<2x1x32xf32, #tpu.memory_space<vmem>>, vector<1x1x32xf32>
    %77 = vector.shape_cast %76 : vector<1x1x32xf32> to vector<1x32xf32>
    %cst_37 = arith.constant dense<0.000000e+00> : vector<8xf32>
    %78 = vector.multi_reduction <add>, %73, %cst_37 [1] : vector<8x32xf32> to vector<8xf32>
    %79 = vector.shape_cast %78 : vector<8xf32> to vector<8x1xf32>
    %cst_38 = arith.constant 3.200000e+01 : f32
    %80 = vector.broadcast %cst_38 : f32 to vector<8x1xf32>
    %81 = arith.divf %79, %80 : vector<8x1xf32>
    %82 = vector.broadcast %81 : vector<8x1xf32> to vector<8x32xf32>
    %83 = arith.subf %73, %82 : vector<8x32xf32>
    %84 = arith.mulf %83, %83 : vector<8x32xf32>
    %cst_39 = arith.constant dense<0.000000e+00> : vector<8xf32>
    %85 = vector.multi_reduction <add>, %84, %cst_39 [1] : vector<8x32xf32> to vector<8xf32>
    %86 = vector.shape_cast %85 : vector<8xf32> to vector<8x1xf32>
    %cst_40 = arith.constant 3.200000e+01 : f32
    %87 = vector.broadcast %cst_40 : f32 to vector<8x1xf32>
    %88 = arith.divf %86, %87 : vector<8x1xf32>
    %89 = vector.broadcast %81 : vector<8x1xf32> to vector<8x32xf32>
    %90 = arith.subf %73, %89 : vector<8x32xf32>
    %cst_41 = arith.constant 9.99999974E-6 : f32
    %91 = vector.broadcast %cst_41 : f32 to vector<8x1xf32>
    %92 = arith.addf %88, %91 : vector<8x1xf32>
    %93 = math.rsqrt %92 : vector<8x1xf32>
    %94 = vector.broadcast %93 : vector<8x1xf32> to vector<8x32xf32>
    %95 = arith.mulf %90, %94 : vector<8x32xf32>
    %96 = vector.broadcast %75 : vector<1x32xf32> to vector<8x32xf32>
    %97 = arith.mulf %95, %96 : vector<8x32xf32>
    %98 = vector.broadcast %77 : vector<1x32xf32> to vector<8x32xf32>
    %99 = arith.addf %97, %98 : vector<8x32xf32>
    %c0_42 = arith.constant 0 : index
    %c0_43 = arith.constant 0 : index
    %c0_44 = arith.constant 0 : index
    %100 = vector.load %arg11[%c0_42, %c0_43, %c0_44] : memref<2x32x64xbf16, #tpu.memory_space<vmem>>, vector<1x32x64xbf16>
    %101 = vector.shape_cast %100 : vector<1x32x64xbf16> to vector<32x64xbf16>
    %102 = arith.truncf %99 : vector<8x32xf32> to vector<8x32xbf16>
    %cst_45 = arith.constant dense<0.000000e+00> : vector<8x64xf32>
    %103 = tpu.matmul %102, %101, %cst_45 {dimension_numbers = #tpu.dot_dimension_numbers<[1], [0], [0], [1], [0, 0, 1, 1], [], []>} : vector<8x32xbf16>, vector<32x64xbf16>, vector<8x64xf32> -> vector<8x64xf32>
    %c0_46 = arith.constant 0 : index
    %c0_47 = arith.constant 0 : index
    %c0_48 = arith.constant 0 : index
    %104 = vector.load %arg12[%c0_46, %c0_47, %c0_48] : memref<2x1x64xf32, #tpu.memory_space<vmem>>, vector<1x1x64xf32>
    %105 = vector.shape_cast %104 : vector<1x1x64xf32> to vector<1x64xf32>
    %106 = vector.broadcast %105 : vector<1x64xf32> to vector<8x64xf32>
    %107 = arith.addf %103, %106 : vector<8x64xf32>
    %cst_49 = arith.constant 5.000000e-01 : f32
    %108 = vector.broadcast %cst_49 : f32 to vector<8x64xf32>
    %109 = arith.mulf %108, %107 : vector<8x64xf32>
    %cst_50 = arith.constant 0.707106769 : f32
    %110 = vector.broadcast %cst_50 : f32 to vector<8x64xf32>
    %111 = arith.mulf %107, %110 : vector<8x64xf32>
    %112 = math.absf %111 : vector<8x64xf32>
    %cst_51 = arith.constant 0.327591091 : f32
    %113 = vector.broadcast %cst_51 : f32 to vector<8x64xf32>
    %114 = arith.mulf %113, %112 : vector<8x64xf32>
    %cst_52 = arith.constant 1.000000e+00 : f32
    %115 = vector.broadcast %cst_52 : f32 to vector<8x64xf32>
    %116 = arith.addf %115, %114 : vector<8x64xf32>
    %117 = tpu.reciprocal %116 {approx = true} : vector<8x64xf32> -> vector<8x64xf32>
    %cst_53 = arith.constant 1.06140542 : f32
    %118 = vector.broadcast %cst_53 : f32 to vector<8x64xf32>
    %119 = arith.mulf %118, %117 : vector<8x64xf32>
    %cst_54 = arith.constant -1.45315206 : f32
    %120 = vector.broadcast %cst_54 : f32 to vector<8x64xf32>
    %121 = arith.addf %119, %120 : vector<8x64xf32>
    %122 = arith.mulf %121, %117 : vector<8x64xf32>
    %cst_55 = arith.constant 1.42141378 : f32
    %123 = vector.broadcast %cst_55 : f32 to vector<8x64xf32>
    %124 = arith.addf %122, %123 : vector<8x64xf32>
    %125 = arith.mulf %124, %117 : vector<8x64xf32>
    %cst_56 = arith.constant -0.284496725 : f32
    %126 = vector.broadcast %cst_56 : f32 to vector<8x64xf32>
    %127 = arith.addf %125, %126 : vector<8x64xf32>
    %128 = arith.mulf %127, %117 : vector<8x64xf32>
    %cst_57 = arith.constant 0.254829586 : f32
    %129 = vector.broadcast %cst_57 : f32 to vector<8x64xf32>
    %130 = arith.addf %128, %129 : vector<8x64xf32>
    %131 = arith.mulf %130, %117 : vector<8x64xf32>
    %cst_58 = arith.constant 0.000000e+00 : f32
    %132 = vector.broadcast %cst_58 : f32 to vector<8x64xf32>
    %133 = arith.subf %132, %112 : vector<8x64xf32>
    %134 = arith.mulf %133, %112 : vector<8x64xf32>
    %135 = math.exp %134 : vector<8x64xf32>
    %136 = arith.mulf %131, %135 : vector<8x64xf32>
    %cst_59 = arith.constant 1.000000e+00 : f32
    %137 = vector.broadcast %cst_59 : f32 to vector<8x64xf32>
    %138 = arith.subf %137, %136 : vector<8x64xf32>
    %cst_60 = arith.constant 0.000000e+00 : f32
    %139 = vector.broadcast %cst_60 : f32 to vector<8x64xf32>
    %140 = arith.cmpf oge, %111, %139 : vector<8x64xf32>
    %cst_61 = arith.constant 0.000000e+00 : f32
    %141 = vector.broadcast %cst_61 : f32 to vector<8x64xf32>
    %142 = arith.subf %141, %138 : vector<8x64xf32>
    %143 = arith.select %140, %138, %142 : vector<8x64xi1>, vector<8x64xf32>
    %cst_62 = arith.constant 1.000000e+00 : f32
    %144 = vector.broadcast %cst_62 : f32 to vector<8x64xf32>
    %145 = arith.addf %144, %143 : vector<8x64xf32>
    %146 = arith.mulf %109, %145 : vector<8x64xf32>
    %c0_63 = arith.constant 0 : index
    %c0_64 = arith.constant 0 : index
    %c0_65 = arith.constant 0 : index
    %147 = vector.load %arg13[%c0_63, %c0_64, %c0_65] : memref<2x64x32xbf16, #tpu.memory_space<vmem>>, vector<1x64x32xbf16>
    %148 = vector.shape_cast %147 : vector<1x64x32xbf16> to vector<64x32xbf16>
    %149 = arith.truncf %146 : vector<8x64xf32> to vector<8x64xbf16>
    %cst_66 = arith.constant dense<0.000000e+00> : vector<8x32xf32>
    %150 = tpu.matmul %149, %148, %cst_66 {dimension_numbers = #tpu.dot_dimension_numbers<[1], [0], [0], [1], [0, 0, 1, 1], [], []>} : vector<8x64xbf16>, vector<64x32xbf16>, vector<8x32xf32> -> vector<8x32xf32>
    %c0_67 = arith.constant 0 : index
    %c0_68 = arith.constant 0 : index
    %c0_69 = arith.constant 0 : index
    %151 = vector.load %arg14[%c0_67, %c0_68, %c0_69] : memref<2x1x32xf32, #tpu.memory_space<vmem>>, vector<1x1x32xf32>
    %152 = vector.shape_cast %151 : vector<1x1x32xf32> to vector<1x32xf32>
    %153 = vector.broadcast %152 : vector<1x32xf32> to vector<8x32xf32>
    %154 = arith.addf %150, %153 : vector<8x32xf32>
    %155 = arith.addf %99, %154 : vector<8x32xf32>
    %c0_70 = arith.constant 0 : index
    %c0_71 = arith.constant 0 : index
    %c0_72 = arith.constant 0 : index
    %156 = vector.load %arg15[%c0_70, %c0_71, %c0_72] : memref<2x1x32xf32, #tpu.memory_space<vmem>>, vector<1x1x32xf32>
    %157 = vector.shape_cast %156 : vector<1x1x32xf32> to vector<1x32xf32>
    %c0_73 = arith.constant 0 : index
    %c0_74 = arith.constant 0 : index
    %c0_75 = arith.constant 0 : index
    %158 = vector.load %arg16[%c0_73, %c0_74, %c0_75] : memref<2x1x32xf32, #tpu.memory_space<vmem>>, vector<1x1x32xf32>
    %159 = vector.shape_cast %158 : vector<1x1x32xf32> to vector<1x32xf32>
    %cst_76 = arith.constant dense<0.000000e+00> : vector<8xf32>
    %160 = vector.multi_reduction <add>, %155, %cst_76 [1] : vector<8x32xf32> to vector<8xf32>
    %161 = vector.shape_cast %160 : vector<8xf32> to vector<8x1xf32>
    %cst_77 = arith.constant 3.200000e+01 : f32
    %162 = vector.broadcast %cst_77 : f32 to vector<8x1xf32>
    %163 = arith.divf %161, %162 : vector<8x1xf32>
    %164 = vector.broadcast %163 : vector<8x1xf32> to vector<8x32xf32>
    %165 = arith.subf %155, %164 : vector<8x32xf32>
    %166 = arith.mulf %165, %165 : vector<8x32xf32>
    %cst_78 = arith.constant dense<0.000000e+00> : vector<8xf32>
    %167 = vector.multi_reduction <add>, %166, %cst_78 [1] : vector<8x32xf32> to vector<8xf32>
    %168 = vector.shape_cast %167 : vector<8xf32> to vector<8x1xf32>
    %cst_79 = arith.constant 3.200000e+01 : f32
    %169 = vector.broadcast %cst_79 : f32 to vector<8x1xf32>
    %170 = arith.divf %168, %169 : vector<8x1xf32>
    %171 = vector.broadcast %163 : vector<8x1xf32> to vector<8x32xf32>
    %172 = arith.subf %155, %171 : vector<8x32xf32>
    %cst_80 = arith.constant 9.99999974E-6 : f32
    %173 = vector.broadcast %cst_80 : f32 to vector<8x1xf32>
    %174 = arith.addf %170, %173 : vector<8x1xf32>
    %175 = math.rsqrt %174 : vector<8x1xf32>
    %176 = vector.broadcast %175 : vector<8x1xf32> to vector<8x32xf32>
    %177 = arith.mulf %172, %176 : vector<8x32xf32>
    %178 = vector.broadcast %157 : vector<1x32xf32> to vector<8x32xf32>
    %179 = arith.mulf %177, %178 : vector<8x32xf32>
    %180 = vector.broadcast %159 : vector<1x32xf32> to vector<8x32xf32>
    %181 = arith.addf %179, %180 : vector<8x32xf32>
    %c1 = arith.constant 1 : index
    %c0_81 = arith.constant 0 : index
    %c0_82 = arith.constant 0 : index
    %182 = vector.load %arg5[%c1, %c0_81, %c0_82] : memref<2x32x96xbf16, #tpu.memory_space<vmem>>, vector<1x32x96xbf16>
    %183 = vector.shape_cast %182 : vector<1x32x96xbf16> to vector<32x96xbf16>
    %184 = arith.truncf %181 : vector<8x32xf32> to vector<8x32xbf16>
    %cst_83 = arith.constant dense<0.000000e+00> : vector<8x96xf32>
    %185 = tpu.matmul %184, %183, %cst_83 {dimension_numbers = #tpu.dot_dimension_numbers<[1], [0], [0], [1], [0, 0, 1, 1], [], []>} : vector<8x32xbf16>, vector<32x96xbf16>, vector<8x96xf32> -> vector<8x96xf32>
    %c1_84 = arith.constant 1 : index
    %c0_85 = arith.constant 0 : index
    %c0_86 = arith.constant 0 : index
    %186 = vector.load %arg6[%c1_84, %c0_85, %c0_86] : memref<2x1x96xf32, #tpu.memory_space<vmem>>, vector<1x1x96xf32>
    %187 = vector.shape_cast %186 : vector<1x1x96xf32> to vector<1x96xf32>
    %188 = vector.broadcast %187 : vector<1x96xf32> to vector<8x96xf32>
    %189 = arith.addf %185, %188 : vector<8x96xf32>
    %190 = vector.extract_strided_slice %189 {offsets = [0, 0], sizes = [8, 32], strides = [1, 1]} : vector<8x96xf32> to vector<8x32xf32>
    %191 = vector.extract_strided_slice %189 {offsets = [0, 32], sizes = [8, 32], strides = [1, 1]} : vector<8x96xf32> to vector<8x32xf32>
    %192 = vector.extract_strided_slice %189 {offsets = [0, 64], sizes = [8, 32], strides = [1, 1]} : vector<8x96xf32> to vector<8x32xf32>
    %193 = vector.shape_cast %190 : vector<8x32xf32> to vector<8x4x8xf32>
    %194 = tpu.transpose %193, [1, 0, 2] : vector<8x4x8xf32> -> vector<4x8x8xf32>
    %195 = arith.truncf %194 : vector<4x8x8xf32> to vector<4x8x8xbf16>
    %196 = vector.shape_cast %191 : vector<8x32xf32> to vector<8x4x8xf32>
    %197 = tpu.transpose %196, [1, 0, 2] : vector<8x4x8xf32> -> vector<4x8x8xf32>
    %198 = arith.truncf %197 : vector<4x8x8xf32> to vector<4x8x8xbf16>
    %199 = vector.shape_cast %192 : vector<8x32xf32> to vector<8x4x8xf32>
    %200 = tpu.transpose %199, [1, 0, 2] : vector<8x4x8xf32> -> vector<4x8x8xf32>
    %201 = arith.truncf %200 : vector<4x8x8xf32> to vector<4x8x8xbf16>
    "tpu.trace_start"() <{level = 10 : i32, message = "hqd,hkd->hqk"}> : () -> ()
    %cst_87 = arith.constant dense<0.000000e+00> : vector<4x8x8xf32>
    %202 = tpu.matmul %195, %198, %cst_87 {dimension_numbers = #tpu.dot_dimension_numbers<[2], [2], [1], [1], [0, 0, 0, 1, 1, 1], [0], [0]>} : vector<4x8x8xbf16>, vector<4x8x8xbf16>, vector<4x8x8xf32> -> vector<4x8x8xf32>
    "tpu.trace_stop"() : () -> ()
    %cst_88 = arith.constant 0.353553385 : f32
    %203 = vector.broadcast %cst_88 : f32 to vector<4x8x8xf32>
    %204 = arith.mulf %202, %203 : vector<4x8x8xf32>
    %cst_89 = arith.constant dense<0xFF800000> : vector<4x8xf32>
    %205 = vector.multi_reduction <maximumf>, %204, %cst_89 [2] : vector<4x8x8xf32> to vector<4x8xf32>
    %206 = vector.shape_cast %205 : vector<4x8xf32> to vector<4x8x1xf32>
    %207 = vector.broadcast %206 : vector<4x8x1xf32> to vector<4x8x8xf32>
    %208 = arith.subf %204, %207 : vector<4x8x8xf32>
    %209 = math.exp %208 : vector<4x8x8xf32>
    %cst_90 = arith.constant dense<0.000000e+00> : vector<4x8xf32>
    %210 = vector.multi_reduction <add>, %209, %cst_90 [2] : vector<4x8x8xf32> to vector<4x8xf32>
    %211 = vector.shape_cast %210 : vector<4x8xf32> to vector<4x8x1xf32>
    %212 = tpu.reciprocal %211 {approx = true} : vector<4x8x1xf32> -> vector<4x8x1xf32>
    %213 = vector.broadcast %212 : vector<4x8x1xf32> to vector<4x8x8xf32>
    %214 = arith.mulf %209, %213 : vector<4x8x8xf32>
    %215 = arith.truncf %214 : vector<4x8x8xf32> to vector<4x8x8xbf16>
    "tpu.trace_start"() <{level = 10 : i32, message = "hqk,hkd->hqd"}> : () -> ()
    %cst_91 = arith.constant dense<0.000000e+00> : vector<4x8x8xf32>
    %216 = tpu.matmul %215, %201, %cst_91 {dimension_numbers = #tpu.dot_dimension_numbers<[2], [1], [1], [2], [0, 0, 0, 1, 1, 2], [0], [0]>} : vector<4x8x8xbf16>, vector<4x8x8xbf16>, vector<4x8x8xf32> -> vector<4x8x8xf32>
    "tpu.trace_stop"() : () -> ()
    %217 = tpu.transpose %216, [1, 0, 2] : vector<4x8x8xf32> -> vector<8x4x8xf32>
    %218 = vector.shape_cast %217 : vector<8x4x8xf32> to vector<8x32xf32>
    %c1_92 = arith.constant 1 : index
    %c0_93 = arith.constant 0 : index
    %c0_94 = arith.constant 0 : index
    %219 = vector.load %arg7[%c1_92, %c0_93, %c0_94] : memref<2x32x32xbf16, #tpu.memory_space<vmem>>, vector<1x32x32xbf16>
    %220 = vector.shape_cast %219 : vector<1x32x32xbf16> to vector<32x32xbf16>
    %221 = arith.truncf %218 : vector<8x32xf32> to vector<8x32xbf16>
    %cst_95 = arith.constant dense<0.000000e+00> : vector<8x32xf32>
    %222 = tpu.matmul %221, %220, %cst_95 {dimension_numbers = #tpu.dot_dimension_numbers<[1], [0], [0], [1], [0, 0, 1, 1], [], []>} : vector<8x32xbf16>, vector<32x32xbf16>, vector<8x32xf32> -> vector<8x32xf32>
    %c1_96 = arith.constant 1 : index
    %c0_97 = arith.constant 0 : index
    %c0_98 = arith.constant 0 : index
    %223 = vector.load %arg8[%c1_96, %c0_97, %c0_98] : memref<2x1x32xf32, #tpu.memory_space<vmem>>, vector<1x1x32xf32>
    %224 = vector.shape_cast %223 : vector<1x1x32xf32> to vector<1x32xf32>
    %225 = vector.broadcast %224 : vector<1x32xf32> to vector<8x32xf32>
    %226 = arith.addf %222, %225 : vector<8x32xf32>
    %227 = arith.addf %181, %226 : vector<8x32xf32>
    %c1_99 = arith.constant 1 : index
    %c0_100 = arith.constant 0 : index
    %c0_101 = arith.constant 0 : index
    %228 = vector.load %arg9[%c1_99, %c0_100, %c0_101] : memref<2x1x32xf32, #tpu.memory_space<vmem>>, vector<1x1x32xf32>
    %229 = vector.shape_cast %228 : vector<1x1x32xf32> to vector<1x32xf32>
    %c1_102 = arith.constant 1 : index
    %c0_103 = arith.constant 0 : index
    %c0_104 = arith.constant 0 : index
    %230 = vector.load %arg10[%c1_102, %c0_103, %c0_104] : memref<2x1x32xf32, #tpu.memory_space<vmem>>, vector<1x1x32xf32>
    %231 = vector.shape_cast %230 : vector<1x1x32xf32> to vector<1x32xf32>
    %cst_105 = arith.constant dense<0.000000e+00> : vector<8xf32>
    %232 = vector.multi_reduction <add>, %227, %cst_105 [1] : vector<8x32xf32> to vector<8xf32>
    %233 = vector.shape_cast %232 : vector<8xf32> to vector<8x1xf32>
    %cst_106 = arith.constant 3.200000e+01 : f32
    %234 = vector.broadcast %cst_106 : f32 to vector<8x1xf32>
    %235 = arith.divf %233, %234 : vector<8x1xf32>
    %236 = vector.broadcast %235 : vector<8x1xf32> to vector<8x32xf32>
    %237 = arith.subf %227, %236 : vector<8x32xf32>
    %238 = arith.mulf %237, %237 : vector<8x32xf32>
    %cst_107 = arith.constant dense<0.000000e+00> : vector<8xf32>
    %239 = vector.multi_reduction <add>, %238, %cst_107 [1] : vector<8x32xf32> to vector<8xf32>
    %240 = vector.shape_cast %239 : vector<8xf32> to vector<8x1xf32>
    %cst_108 = arith.constant 3.200000e+01 : f32
    %241 = vector.broadcast %cst_108 : f32 to vector<8x1xf32>
    %242 = arith.divf %240, %241 : vector<8x1xf32>
    %243 = vector.broadcast %235 : vector<8x1xf32> to vector<8x32xf32>
    %244 = arith.subf %227, %243 : vector<8x32xf32>
    %cst_109 = arith.constant 9.99999974E-6 : f32
    %245 = vector.broadcast %cst_109 : f32 to vector<8x1xf32>
    %246 = arith.addf %242, %245 : vector<8x1xf32>
    %247 = math.rsqrt %246 : vector<8x1xf32>
    %248 = vector.broadcast %247 : vector<8x1xf32> to vector<8x32xf32>
    %249 = arith.mulf %244, %248 : vector<8x32xf32>
    %250 = vector.broadcast %229 : vector<1x32xf32> to vector<8x32xf32>
    %251 = arith.mulf %249, %250 : vector<8x32xf32>
    %252 = vector.broadcast %231 : vector<1x32xf32> to vector<8x32xf32>
    %253 = arith.addf %251, %252 : vector<8x32xf32>
    %c1_110 = arith.constant 1 : index
    %c0_111 = arith.constant 0 : index
    %c0_112 = arith.constant 0 : index
    %254 = vector.load %arg11[%c1_110, %c0_111, %c0_112] : memref<2x32x64xbf16, #tpu.memory_space<vmem>>, vector<1x32x64xbf16>
    %255 = vector.shape_cast %254 : vector<1x32x64xbf16> to vector<32x64xbf16>
    %256 = arith.truncf %253 : vector<8x32xf32> to vector<8x32xbf16>
    %cst_113 = arith.constant dense<0.000000e+00> : vector<8x64xf32>
    %257 = tpu.matmul %256, %255, %cst_113 {dimension_numbers = #tpu.dot_dimension_numbers<[1], [0], [0], [1], [0, 0, 1, 1], [], []>} : vector<8x32xbf16>, vector<32x64xbf16>, vector<8x64xf32> -> vector<8x64xf32>
    %c1_114 = arith.constant 1 : index
    %c0_115 = arith.constant 0 : index
    %c0_116 = arith.constant 0 : index
    %258 = vector.load %arg12[%c1_114, %c0_115, %c0_116] : memref<2x1x64xf32, #tpu.memory_space<vmem>>, vector<1x1x64xf32>
    %259 = vector.shape_cast %258 : vector<1x1x64xf32> to vector<1x64xf32>
    %260 = vector.broadcast %259 : vector<1x64xf32> to vector<8x64xf32>
    %261 = arith.addf %257, %260 : vector<8x64xf32>
    %cst_117 = arith.constant 5.000000e-01 : f32
    %262 = vector.broadcast %cst_117 : f32 to vector<8x64xf32>
    %263 = arith.mulf %262, %261 : vector<8x64xf32>
    %cst_118 = arith.constant 0.707106769 : f32
    %264 = vector.broadcast %cst_118 : f32 to vector<8x64xf32>
    %265 = arith.mulf %261, %264 : vector<8x64xf32>
    %266 = math.absf %265 : vector<8x64xf32>
    %cst_119 = arith.constant 0.327591091 : f32
    %267 = vector.broadcast %cst_119 : f32 to vector<8x64xf32>
    %268 = arith.mulf %267, %266 : vector<8x64xf32>
    %cst_120 = arith.constant 1.000000e+00 : f32
    %269 = vector.broadcast %cst_120 : f32 to vector<8x64xf32>
    %270 = arith.addf %269, %268 : vector<8x64xf32>
    %271 = tpu.reciprocal %270 {approx = true} : vector<8x64xf32> -> vector<8x64xf32>
    %cst_121 = arith.constant 1.06140542 : f32
    %272 = vector.broadcast %cst_121 : f32 to vector<8x64xf32>
    %273 = arith.mulf %272, %271 : vector<8x64xf32>
    %cst_122 = arith.constant -1.45315206 : f32
    %274 = vector.broadcast %cst_122 : f32 to vector<8x64xf32>
    %275 = arith.addf %273, %274 : vector<8x64xf32>
    %276 = arith.mulf %275, %271 : vector<8x64xf32>
    %cst_123 = arith.constant 1.42141378 : f32
    %277 = vector.broadcast %cst_123 : f32 to vector<8x64xf32>
    %278 = arith.addf %276, %277 : vector<8x64xf32>
    %279 = arith.mulf %278, %271 : vector<8x64xf32>
    %cst_124 = arith.constant -0.284496725 : f32
    %280 = vector.broadcast %cst_124 : f32 to vector<8x64xf32>
    %281 = arith.addf %279, %280 : vector<8x64xf32>
    %282 = arith.mulf %281, %271 : vector<8x64xf32>
    %cst_125 = arith.constant 0.254829586 : f32
    %283 = vector.broadcast %cst_125 : f32 to vector<8x64xf32>
    %284 = arith.addf %282, %283 : vector<8x64xf32>
    %285 = arith.mulf %284, %271 : vector<8x64xf32>
    %cst_126 = arith.constant 0.000000e+00 : f32
    %286 = vector.broadcast %cst_126 : f32 to vector<8x64xf32>
    %287 = arith.subf %286, %266 : vector<8x64xf32>
    %288 = arith.mulf %287, %266 : vector<8x64xf32>
    %289 = math.exp %288 : vector<8x64xf32>
    %290 = arith.mulf %285, %289 : vector<8x64xf32>
    %cst_127 = arith.constant 1.000000e+00 : f32
    %291 = vector.broadcast %cst_127 : f32 to vector<8x64xf32>
    %292 = arith.subf %291, %290 : vector<8x64xf32>
    %cst_128 = arith.constant 0.000000e+00 : f32
    %293 = vector.broadcast %cst_128 : f32 to vector<8x64xf32>
    %294 = arith.cmpf oge, %265, %293 : vector<8x64xf32>
    %cst_129 = arith.constant 0.000000e+00 : f32
    %295 = vector.broadcast %cst_129 : f32 to vector<8x64xf32>
    %296 = arith.subf %295, %292 : vector<8x64xf32>
    %297 = arith.select %294, %292, %296 : vector<8x64xi1>, vector<8x64xf32>
    %cst_130 = arith.constant 1.000000e+00 : f32
    %298 = vector.broadcast %cst_130 : f32 to vector<8x64xf32>
    %299 = arith.addf %298, %297 : vector<8x64xf32>
    %300 = arith.mulf %263, %299 : vector<8x64xf32>
    %c1_131 = arith.constant 1 : index
    %c0_132 = arith.constant 0 : index
    %c0_133 = arith.constant 0 : index
    %301 = vector.load %arg13[%c1_131, %c0_132, %c0_133] : memref<2x64x32xbf16, #tpu.memory_space<vmem>>, vector<1x64x32xbf16>
    %302 = vector.shape_cast %301 : vector<1x64x32xbf16> to vector<64x32xbf16>
    %303 = arith.truncf %300 : vector<8x64xf32> to vector<8x64xbf16>
    %cst_134 = arith.constant dense<0.000000e+00> : vector<8x32xf32>
    %304 = tpu.matmul %303, %302, %cst_134 {dimension_numbers = #tpu.dot_dimension_numbers<[1], [0], [0], [1], [0, 0, 1, 1], [], []>} : vector<8x64xbf16>, vector<64x32xbf16>, vector<8x32xf32> -> vector<8x32xf32>
    %c1_135 = arith.constant 1 : index
    %c0_136 = arith.constant 0 : index
    %c0_137 = arith.constant 0 : index
    %305 = vector.load %arg14[%c1_135, %c0_136, %c0_137] : memref<2x1x32xf32, #tpu.memory_space<vmem>>, vector<1x1x32xf32>
    %306 = vector.shape_cast %305 : vector<1x1x32xf32> to vector<1x32xf32>
    %307 = vector.broadcast %306 : vector<1x32xf32> to vector<8x32xf32>
    %308 = arith.addf %304, %307 : vector<8x32xf32>
    %309 = arith.addf %253, %308 : vector<8x32xf32>
    %c1_138 = arith.constant 1 : index
    %c0_139 = arith.constant 0 : index
    %c0_140 = arith.constant 0 : index
    %310 = vector.load %arg15[%c1_138, %c0_139, %c0_140] : memref<2x1x32xf32, #tpu.memory_space<vmem>>, vector<1x1x32xf32>
    %311 = vector.shape_cast %310 : vector<1x1x32xf32> to vector<1x32xf32>
    %c1_141 = arith.constant 1 : index
    %c0_142 = arith.constant 0 : index
    %c0_143 = arith.constant 0 : index
    %312 = vector.load %arg16[%c1_141, %c0_142, %c0_143] : memref<2x1x32xf32, #tpu.memory_space<vmem>>, vector<1x1x32xf32>
    %313 = vector.shape_cast %312 : vector<1x1x32xf32> to vector<1x32xf32>
    %cst_144 = arith.constant dense<0.000000e+00> : vector<8xf32>
    %314 = vector.multi_reduction <add>, %309, %cst_144 [1] : vector<8x32xf32> to vector<8xf32>
    %315 = vector.shape_cast %314 : vector<8xf32> to vector<8x1xf32>
    %cst_145 = arith.constant 3.200000e+01 : f32
    %316 = vector.broadcast %cst_145 : f32 to vector<8x1xf32>
    %317 = arith.divf %315, %316 : vector<8x1xf32>
    %318 = vector.broadcast %317 : vector<8x1xf32> to vector<8x32xf32>
    %319 = arith.subf %309, %318 : vector<8x32xf32>
    %320 = arith.mulf %319, %319 : vector<8x32xf32>
    %cst_146 = arith.constant dense<0.000000e+00> : vector<8xf32>
    %321 = vector.multi_reduction <add>, %320, %cst_146 [1] : vector<8x32xf32> to vector<8xf32>
    %322 = vector.shape_cast %321 : vector<8xf32> to vector<8x1xf32>
    %cst_147 = arith.constant 3.200000e+01 : f32
    %323 = vector.broadcast %cst_147 : f32 to vector<8x1xf32>
    %324 = arith.divf %322, %323 : vector<8x1xf32>
    %325 = vector.broadcast %317 : vector<8x1xf32> to vector<8x32xf32>
    %326 = arith.subf %309, %325 : vector<8x32xf32>
    %cst_148 = arith.constant 9.99999974E-6 : f32
    %327 = vector.broadcast %cst_148 : f32 to vector<8x1xf32>
    %328 = arith.addf %324, %327 : vector<8x1xf32>
    %329 = math.rsqrt %328 : vector<8x1xf32>
    %330 = vector.broadcast %329 : vector<8x1xf32> to vector<8x32xf32>
    %331 = arith.mulf %326, %330 : vector<8x32xf32>
    %332 = vector.broadcast %311 : vector<1x32xf32> to vector<8x32xf32>
    %333 = arith.mulf %331, %332 : vector<8x32xf32>
    %334 = vector.broadcast %313 : vector<1x32xf32> to vector<8x32xf32>
    %335 = arith.addf %333, %334 : vector<8x32xf32>
    %c0_149 = arith.constant 0 : index
    %c0_150 = arith.constant 0 : index
    %c0_151 = arith.constant 0 : index
    %336 = vector.load %arg17[%c0_149, %c0_150, %c0_151] : memref<1x8x32xf32, #tpu.memory_space<vmem>>, vector<1x8x32xf32>
    %337 = vector.shape_cast %336 : vector<1x8x32xf32> to vector<8x32xf32>
    %338 = vector.shape_cast %335 : vector<8x32xf32> to vector<1x8x32xf32>
    tpu.vector_store %arg17[%c0_149, %c0_150, %c0_151], %338 {strides = array<i32>} : memref<1x8x32xf32, #tpu.memory_space<vmem>>, vector<1x8x32xf32>,
    return
  }
  func.func @transform_0(%arg0: i32) -> (i32, i32, i32) {
    %c0_i32 = arith.constant 0 : i32
    %c0_i32_0 = arith.constant 0 : i32
    %c0_i32_1 = arith.constant 0 : i32
    return %arg0, %c0_i32, %c0_i32_0 : i32, i32, i32
  }
  func.func @transform_1(%arg0: i32) -> (i32, i32) {
    %c0_i32 = arith.constant 0 : i32
    %c0_i32_0 = arith.constant 0 : i32
    %c0_i32_1 = arith.constant 0 : i32
    return %c0_i32, %c0_i32_0 : i32, i32
  }
  func.func @transform_2(%arg0: i32) -> (i32, i32) {
    %c0_i32 = arith.constant 0 : i32
    %c0_i32_0 = arith.constant 0 : i32
    %c0_i32_1 = arith.constant 0 : i32
    return %c0_i32, %c0_i32_0 : i32, i32
  }
  func.func @transform_3(%arg0: i32) -> (i32, i32) {
    %c0_i32 = arith.constant 0 : i32
    %c0_i32_0 = arith.constant 0 : i32
    %c0_i32_1 = arith.constant 0 : i32
    return %c0_i32, %c0_i32_0 : i32, i32
  }
  func.func @transform_4(%arg0: i32) -> (i32, i32, i32) {
    %c0_i32 = arith.constant 0 : i32
    %c0_i32_0 = arith.constant 0 : i32
    %c0_i32_1 = arith.constant 0 : i32
    %c0_i32_2 = arith.constant 0 : i32
    return %c0_i32, %c0_i32_0, %c0_i32_1 : i32, i32, i32
  }
  func.func @transform_5(%arg0: i32) -> (i32, i32, i32) {
    %c0_i32 = arith.constant 0 : i32
    %c0_i32_0 = arith.constant 0 : i32
    %c0_i32_1 = arith.constant 0 : i32
    %c0_i32_2 = arith.constant 0 : i32
    return %c0_i32, %c0_i32_0, %c0_i32_1 : i32, i32, i32
  }
  func.func @transform_6(%arg0: i32) -> (i32, i32, i32) {
    %c0_i32 = arith.constant 0 : i32
    %c0_i32_0 = arith.constant 0 : i32
    %c0_i32_1 = arith.constant 0 : i32
    %c0_i32_2 = arith.constant 0 : i32
    return %c0_i32, %c0_i32_0, %c0_i32_1 : i32, i32, i32
  }
  func.func @transform_7(%arg0: i32) -> (i32, i32, i32) {
    %c0_i32 = arith.constant 0 : i32
    %c0_i32_0 = arith.constant 0 : i32
    %c0_i32_1 = arith.constant 0 : i32
    %c0_i32_2 = arith.constant 0 : i32
    return %c0_i32, %c0_i32_0, %c0_i32_1 : i32, i32, i32
  }
  func.func @transform_8(%arg0: i32) -> (i32, i32, i32) {
    %c0_i32 = arith.constant 0 : i32
    %c0_i32_0 = arith.constant 0 : i32
    %c0_i32_1 = arith.constant 0 : i32
    %c0_i32_2 = arith.constant 0 : i32
    return %c0_i32, %c0_i32_0, %c0_i32_1 : i32, i32, i32
  }
  func.func @transform_9(%arg0: i32) -> (i32, i32, i32) {
    %c0_i32 = arith.constant 0 : i32
    %c0_i32_0 = arith.constant 0 : i32
    %c0_i32_1 = arith.constant 0 : i32
    %c0_i32_2 = arith.constant 0 : i32
    return %c0_i32, %c0_i32_0, %c0_i32_1 : i32, i32, i32
  }
  func.func @transform_10(%arg0: i32) -> (i32, i32, i32) {
    %c0_i32 = arith.constant 0 : i32
    %c0_i32_0 = arith.constant 0 : i32
    %c0_i32_1 = arith.constant 0 : i32
    %c0_i32_2 = arith.constant 0 : i32
    return %c0_i32, %c0_i32_0, %c0_i32_1 : i32, i32, i32
  }
  func.func @transform_11(%arg0: i32) -> (i32, i32, i32) {
    %c0_i32 = arith.constant 0 : i32
    %c0_i32_0 = arith.constant 0 : i32
    %c0_i32_1 = arith.constant 0 : i32
    %c0_i32_2 = arith.constant 0 : i32
    return %c0_i32, %c0_i32_0, %c0_i32_1 : i32, i32, i32
  }
  func.func @transform_12(%arg0: i32) -> (i32, i32, i32) {
    %c0_i32 = arith.constant 0 : i32
    %c0_i32_0 = arith.constant 0 : i32
    %c0_i32_1 = arith.constant 0 : i32
    %c0_i32_2 = arith.constant 0 : i32
    return %c0_i32, %c0_i32_0, %c0_i32_1 : i32, i32, i32
  }
  func.func @transform_13(%arg0: i32) -> (i32, i32, i32) {
    %c0_i32 = arith.constant 0 : i32
    %c0_i32_0 = arith.constant 0 : i32
    %c0_i32_1 = arith.constant 0 : i32
    %c0_i32_2 = arith.constant 0 : i32
    return %c0_i32, %c0_i32_0, %c0_i32_1 : i32, i32, i32
  }
  func.func @transform_14(%arg0: i32) -> (i32, i32, i32) {
    %c0_i32 = arith.constant 0 : i32
    %c0_i32_0 = arith.constant 0 : i32
    %c0_i32_1 = arith.constant 0 : i32
    %c0_i32_2 = arith.constant 0 : i32
    return %c0_i32, %c0_i32_0, %c0_i32_1 : i32, i32, i32
  }
  func.func @transform_15(%arg0: i32) -> (i32, i32, i32) {
    %c0_i32 = arith.constant 0 : i32
    %c0_i32_0 = arith.constant 0 : i32
    %c0_i32_1 = arith.constant 0 : i32
    %c0_i32_2 = arith.constant 0 : i32
    return %c0_i32, %c0_i32_0, %c0_i32_1 : i32, i32, i32
  }
  func.func @transform_16(%arg0: i32) -> (i32, i32, i32) {
    %c0_i32 = arith.constant 0 : i32
    %c0_i32_0 = arith.constant 0 : i32
    %c0_i32_1 = arith.constant 0 : i32
    return %arg0, %c0_i32, %c0_i32_0 : i32, i32, i32
  }
}

module attributes {stable_mosaic.version = 11 : i64} {
  func.func @_decoder_kernel(%arg0: i32, %arg1: memref<1x8x32xf32, #tpu.memory_space<vmem>>, %arg2: memref<8x32xf32, #tpu.memory_space<vmem>>, %arg3: memref<1x32xf32, #tpu.memory_space<vmem>>, %arg4: memref<1x32xf32, #tpu.memory_space<vmem>>, %arg5: memref<1x8x32xf32, #tpu.memory_space<vmem>>, %arg6: memref<2x32x96xbf16, #tpu.memory_space<vmem>>, %arg7: memref<2x1x96xf32, #tpu.memory_space<vmem>>, %arg8: memref<2x32x32xbf16, #tpu.memory_space<vmem>>, %arg9: memref<2x1x32xf32, #tpu.memory_space<vmem>>, %arg10: memref<2x1x32xf32, #tpu.memory_space<vmem>>, %arg11: memref<2x1x32xf32, #tpu.memory_space<vmem>>, %arg12: memref<2x32x32xbf16, #tpu.memory_space<vmem>>, %arg13: memref<2x1x32xf32, #tpu.memory_space<vmem>>, %arg14: memref<2x32x64xbf16, #tpu.memory_space<vmem>>, %arg15: memref<2x1x64xf32, #tpu.memory_space<vmem>>, %arg16: memref<2x32x32xbf16, #tpu.memory_space<vmem>>, %arg17: memref<2x1x32xf32, #tpu.memory_space<vmem>>, %arg18: memref<2x1x32xf32, #tpu.memory_space<vmem>>, %arg19: memref<2x1x32xf32, #tpu.memory_space<vmem>>, %arg20: memref<2x32x64xbf16, #tpu.memory_space<vmem>>, %arg21: memref<2x1x64xf32, #tpu.memory_space<vmem>>, %arg22: memref<2x64x32xbf16, #tpu.memory_space<vmem>>, %arg23: memref<2x1x32xf32, #tpu.memory_space<vmem>>, %arg24: memref<2x1x32xf32, #tpu.memory_space<vmem>>, %arg25: memref<2x1x32xf32, #tpu.memory_space<vmem>>, %arg26: memref<128x32xf32, #tpu.memory_space<vmem>>, %arg27: memref<1x128xf32, #tpu.memory_space<vmem>>, %arg28: memref<1x8x128xf32, #tpu.memory_space<vmem>>, %arg29: memref<1x8x32xf32, #tpu.memory_space<vmem>>) attributes {dimension_semantics = [#tpu.dimension_semantics<parallel>], iteration_bounds = array<i64: 2>, scalar_prefetch = 0 : i64, scratch_operands = 0 : i64, tpu.core_type = #tpu.core_type<tc>, window_params = [{transform_indices = @transform_0, window_bounds = array<i64: 1, 8, 32>}, {pipeline_mode = #tpu.pipeline_mode<synchronous>, transform_indices = @transform_1, window_bounds = array<i64: 8, 32>}, {pipeline_mode = #tpu.pipeline_mode<synchronous>, transform_indices = @transform_2, window_bounds = array<i64: 1, 32>}, {pipeline_mode = #tpu.pipeline_mode<synchronous>, transform_indices = @transform_3, window_bounds = array<i64: 1, 32>}, {transform_indices = @transform_4, window_bounds = array<i64: 1, 8, 32>}, {pipeline_mode = #tpu.pipeline_mode<synchronous>, transform_indices = @transform_5, window_bounds = array<i64: 2, 32, 96>}, {pipeline_mode = #tpu.pipeline_mode<synchronous>, transform_indices = @transform_6, window_bounds = array<i64: 2, 1, 96>}, {pipeline_mode = #tpu.pipeline_mode<synchronous>, transform_indices = @transform_7, window_bounds = array<i64: 2, 32, 32>}, {pipeline_mode = #tpu.pipeline_mode<synchronous>, transform_indices = @transform_8, window_bounds = array<i64: 2, 1, 32>}, {pipeline_mode = #tpu.pipeline_mode<synchronous>, transform_indices = @transform_9, window_bounds = array<i64: 2, 1, 32>}, {pipeline_mode = #tpu.pipeline_mode<synchronous>, transform_indices = @transform_10, window_bounds = array<i64: 2, 1, 32>}, {pipeline_mode = #tpu.pipeline_mode<synchronous>, transform_indices = @transform_11, window_bounds = array<i64: 2, 32, 32>}, {pipeline_mode = #tpu.pipeline_mode<synchronous>, transform_indices = @transform_12, window_bounds = array<i64: 2, 1, 32>}, {pipeline_mode = #tpu.pipeline_mode<synchronous>, transform_indices = @transform_13, window_bounds = array<i64: 2, 32, 64>}, {pipeline_mode = #tpu.pipeline_mode<synchronous>, transform_indices = @transform_14, window_bounds = array<i64: 2, 1, 64>}, {pipeline_mode = #tpu.pipeline_mode<synchronous>, transform_indices = @transform_15, window_bounds = array<i64: 2, 32, 32>}, {pipeline_mode = #tpu.pipeline_mode<synchronous>, transform_indices = @transform_16, window_bounds = array<i64: 2, 1, 32>}, {pipeline_mode = #tpu.pipeline_mode<synchronous>, transform_indices = @transform_17, window_bounds = array<i64: 2, 1, 32>}, {pipeline_mode = #tpu.pipeline_mode<synchronous>, transform_indices = @transform_18, window_bounds = array<i64: 2, 1, 32>}, {pipeline_mode = #tpu.pipeline_mode<synchronous>, transform_indices = @transform_19, window_bounds = array<i64: 2, 32, 64>}, {pipeline_mode = #tpu.pipeline_mode<synchronous>, transform_indices = @transform_20, window_bounds = array<i64: 2, 1, 64>}, {pipeline_mode = #tpu.pipeline_mode<synchronous>, transform_indices = @transform_21, window_bounds = array<i64: 2, 64, 32>}, {pipeline_mode = #tpu.pipeline_mode<synchronous>, transform_indices = @transform_22, window_bounds = array<i64: 2, 1, 32>}, {pipeline_mode = #tpu.pipeline_mode<synchronous>, transform_indices = @transform_23, window_bounds = array<i64: 2, 1, 32>}, {pipeline_mode = #tpu.pipeline_mode<synchronous>, transform_indices = @transform_24, window_bounds = array<i64: 2, 1, 32>}, {pipeline_mode = #tpu.pipeline_mode<synchronous>, transform_indices = @transform_25, window_bounds = array<i64: 128, 32>}, {pipeline_mode = #tpu.pipeline_mode<synchronous>, transform_indices = @transform_26, window_bounds = array<i64: 1, 128>}, {transform_indices = @transform_27, window_bounds = array<i64: 1, 8, 128>}, {transform_indices = @transform_28, window_bounds = array<i64: 1, 8, 32>}]} {
    %c0 = arith.constant 0 : index
    %c0_0 = arith.constant 0 : index
    %c0_1 = arith.constant 0 : index
    %0 = vector.load %arg1[%c0, %c0_0, %c0_1] : memref<1x8x32xf32, #tpu.memory_space<vmem>>, vector<1x8x32xf32>
    %1 = vector.shape_cast %0 : vector<1x8x32xf32> to vector<8x32xf32>
    %c0_2 = arith.constant 0 : index
    %c0_3 = arith.constant 0 : index
    %2 = vector.load %arg2[%c0_2, %c0_3] : memref<8x32xf32, #tpu.memory_space<vmem>>, vector<8x32xf32>
    %3 = arith.addf %1, %2 : vector<8x32xf32>
    %c0_4 = arith.constant 0 : index
    %c0_5 = arith.constant 0 : index
    %4 = vector.load %arg3[%c0_4, %c0_5] : memref<1x32xf32, #tpu.memory_space<vmem>>, vector<1x32xf32>
    %c0_6 = arith.constant 0 : index
    %c0_7 = arith.constant 0 : index
    %5 = vector.load %arg4[%c0_6, %c0_7] : memref<1x32xf32, #tpu.memory_space<vmem>>, vector<1x32xf32>
    %cst = arith.constant dense<0.000000e+00> : vector<8xf32>
    %6 = vector.multi_reduction <add>, %3, %cst [1] : vector<8x32xf32> to vector<8xf32>
    %7 = vector.shape_cast %6 : vector<8xf32> to vector<8x1xf32>
    %cst_8 = arith.constant 3.200000e+01 : f32
    %8 = vector.broadcast %cst_8 : f32 to vector<8x1xf32>
    %9 = arith.divf %7, %8 : vector<8x1xf32>
    %10 = vector.broadcast %9 : vector<8x1xf32> to vector<8x32xf32>
    %11 = arith.subf %3, %10 : vector<8x32xf32>
    %12 = arith.mulf %11, %11 : vector<8x32xf32>
    %cst_9 = arith.constant dense<0.000000e+00> : vector<8xf32>
    %13 = vector.multi_reduction <add>, %12, %cst_9 [1] : vector<8x32xf32> to vector<8xf32>
    %14 = vector.shape_cast %13 : vector<8xf32> to vector<8x1xf32>
    %cst_10 = arith.constant 3.200000e+01 : f32
    %15 = vector.broadcast %cst_10 : f32 to vector<8x1xf32>
    %16 = arith.divf %14, %15 : vector<8x1xf32>
    %17 = vector.broadcast %9 : vector<8x1xf32> to vector<8x32xf32>
    %18 = arith.subf %3, %17 : vector<8x32xf32>
    %cst_11 = arith.constant 9.99999974E-6 : f32
    %19 = vector.broadcast %cst_11 : f32 to vector<8x1xf32>
    %20 = arith.addf %16, %19 : vector<8x1xf32>
    %21 = math.rsqrt %20 : vector<8x1xf32>
    %22 = vector.broadcast %21 : vector<8x1xf32> to vector<8x32xf32>
    %23 = arith.mulf %18, %22 : vector<8x32xf32>
    %24 = vector.broadcast %4 : vector<1x32xf32> to vector<8x32xf32>
    %25 = arith.mulf %23, %24 : vector<8x32xf32>
    %26 = vector.broadcast %5 : vector<1x32xf32> to vector<8x32xf32>
    %27 = arith.addf %25, %26 : vector<8x32xf32>
    %c0_12 = arith.constant 0 : index
    %c0_13 = arith.constant 0 : index
    %c0_14 = arith.constant 0 : index
    %28 = vector.load %arg5[%c0_12, %c0_13, %c0_14] : memref<1x8x32xf32, #tpu.memory_space<vmem>>, vector<1x8x32xf32>
    %29 = vector.shape_cast %28 : vector<1x8x32xf32> to vector<8x32xf32>
    %c0_15 = arith.constant 0 : index
    %c0_16 = arith.constant 0 : index
    %c0_17 = arith.constant 0 : index
    %30 = vector.load %arg6[%c0_15, %c0_16, %c0_17] : memref<2x32x96xbf16, #tpu.memory_space<vmem>>, vector<1x32x96xbf16>
    %31 = vector.shape_cast %30 : vector<1x32x96xbf16> to vector<32x96xbf16>
    %32 = arith.truncf %27 : vector<8x32xf32> to vector<8x32xbf16>
    %cst_18 = arith.constant dense<0.000000e+00> : vector<8x96xf32>
    %33 = tpu.matmul %32, %31, %cst_18 {dimension_numbers = #tpu.dot_dimension_numbers<[1], [0], [0], [1], [0, 0, 1, 1], [], []>} : vector<8x32xbf16>, vector<32x96xbf16>, vector<8x96xf32> -> vector<8x96xf32>
    %c0_19 = arith.constant 0 : index
    %c0_20 = arith.constant 0 : index
    %c0_21 = arith.constant 0 : index
    %34 = vector.load %arg7[%c0_19, %c0_20, %c0_21] : memref<2x1x96xf32, #tpu.memory_space<vmem>>, vector<1x1x96xf32>
    %35 = vector.shape_cast %34 : vector<1x1x96xf32> to vector<1x96xf32>
    %36 = vector.broadcast %35 : vector<1x96xf32> to vector<8x96xf32>
    %37 = arith.addf %33, %36 : vector<8x96xf32>
    %38 = vector.extract_strided_slice %37 {offsets = [0, 0], sizes = [8, 32], strides = [1, 1]} : vector<8x96xf32> to vector<8x32xf32>
    %39 = vector.extract_strided_slice %37 {offsets = [0, 32], sizes = [8, 32], strides = [1, 1]} : vector<8x96xf32> to vector<8x32xf32>
    %40 = vector.extract_strided_slice %37 {offsets = [0, 64], sizes = [8, 32], strides = [1, 1]} : vector<8x96xf32> to vector<8x32xf32>
    %41 = vector.shape_cast %38 : vector<8x32xf32> to vector<8x4x8xf32>
    %42 = tpu.transpose %41, [1, 0, 2] : vector<8x4x8xf32> -> vector<4x8x8xf32>
    %43 = arith.truncf %42 : vector<4x8x8xf32> to vector<4x8x8xbf16>
    %44 = vector.shape_cast %39 : vector<8x32xf32> to vector<8x4x8xf32>
    %45 = tpu.transpose %44, [1, 0, 2] : vector<8x4x8xf32> -> vector<4x8x8xf32>
    %46 = arith.truncf %45 : vector<4x8x8xf32> to vector<4x8x8xbf16>
    %47 = vector.shape_cast %40 : vector<8x32xf32> to vector<8x4x8xf32>
    %48 = tpu.transpose %47, [1, 0, 2] : vector<8x4x8xf32> -> vector<4x8x8xf32>
    %49 = arith.truncf %48 : vector<4x8x8xf32> to vector<4x8x8xbf16>
    "tpu.trace_start"() <{level = 10 : i32, message = "hqd,hkd->hqk"}> : () -> ()
    %cst_22 = arith.constant dense<0.000000e+00> : vector<4x8x8xf32>
    %50 = tpu.matmul %43, %46, %cst_22 {dimension_numbers = #tpu.dot_dimension_numbers<[2], [2], [1], [1], [0, 0, 0, 1, 1, 1], [0], [0]>} : vector<4x8x8xbf16>, vector<4x8x8xbf16>, vector<4x8x8xf32> -> vector<4x8x8xf32>
    "tpu.trace_stop"() : () -> ()
    %cst_23 = arith.constant 0.353553385 : f32
    %51 = vector.broadcast %cst_23 : f32 to vector<4x8x8xf32>
    %52 = arith.mulf %50, %51 : vector<4x8x8xf32>
    %53 = tpu.iota {dimensions = array<i32: 1>} : vector<4x8x8xi32>
    %54 = tpu.iota {dimensions = array<i32: 2>} : vector<4x8x8xi32>
    %55 = arith.cmpi sge, %53, %54 : vector<4x8x8xi32>
    %cst_24 = arith.constant -1.000000e+09 : f32
    %56 = vector.broadcast %cst_24 : f32 to vector<4x8x8xf32>
    %57 = arith.select %55, %52, %56 : vector<4x8x8xi1>, vector<4x8x8xf32>
    %cst_25 = arith.constant dense<0xFF800000> : vector<4x8xf32>
    %58 = vector.multi_reduction <maximumf>, %57, %cst_25 [2] : vector<4x8x8xf32> to vector<4x8xf32>
    %59 = vector.shape_cast %58 : vector<4x8xf32> to vector<4x8x1xf32>
    %60 = vector.broadcast %59 : vector<4x8x1xf32> to vector<4x8x8xf32>
    %61 = arith.subf %57, %60 : vector<4x8x8xf32>
    %62 = math.exp %61 : vector<4x8x8xf32>
    %cst_26 = arith.constant dense<0.000000e+00> : vector<4x8xf32>
    %63 = vector.multi_reduction <add>, %62, %cst_26 [2] : vector<4x8x8xf32> to vector<4x8xf32>
    %64 = vector.shape_cast %63 : vector<4x8xf32> to vector<4x8x1xf32>
    %65 = tpu.reciprocal %64 {approx = true} : vector<4x8x1xf32> -> vector<4x8x1xf32>
    %66 = vector.broadcast %65 : vector<4x8x1xf32> to vector<4x8x8xf32>
    %67 = arith.mulf %62, %66 : vector<4x8x8xf32>
    %68 = arith.truncf %67 : vector<4x8x8xf32> to vector<4x8x8xbf16>
    "tpu.trace_start"() <{level = 10 : i32, message = "hqk,hkd->hqd"}> : () -> ()
    %cst_27 = arith.constant dense<0.000000e+00> : vector<4x8x8xf32>
    %69 = tpu.matmul %68, %49, %cst_27 {dimension_numbers = #tpu.dot_dimension_numbers<[2], [1], [1], [2], [0, 0, 0, 1, 1, 2], [0], [0]>} : vector<4x8x8xbf16>, vector<4x8x8xbf16>, vector<4x8x8xf32> -> vector<4x8x8xf32>
    "tpu.trace_stop"() : () -> ()
    %70 = tpu.transpose %69, [1, 0, 2] : vector<4x8x8xf32> -> vector<8x4x8xf32>
    %71 = vector.shape_cast %70 : vector<8x4x8xf32> to vector<8x32xf32>
    %c0_28 = arith.constant 0 : index
    %c0_29 = arith.constant 0 : index
    %c0_30 = arith.constant 0 : index
    %72 = vector.load %arg8[%c0_28, %c0_29, %c0_30] : memref<2x32x32xbf16, #tpu.memory_space<vmem>>, vector<1x32x32xbf16>
    %73 = vector.shape_cast %72 : vector<1x32x32xbf16> to vector<32x32xbf16>
    %74 = arith.truncf %71 : vector<8x32xf32> to vector<8x32xbf16>
    %cst_31 = arith.constant dense<0.000000e+00> : vector<8x32xf32>
    %75 = tpu.matmul %74, %73, %cst_31 {dimension_numbers = #tpu.dot_dimension_numbers<[1], [0], [0], [1], [0, 0, 1, 1], [], []>} : vector<8x32xbf16>, vector<32x32xbf16>, vector<8x32xf32> -> vector<8x32xf32>
    %c0_32 = arith.constant 0 : index
    %c0_33 = arith.constant 0 : index
    %c0_34 = arith.constant 0 : index
    %76 = vector.load %arg9[%c0_32, %c0_33, %c0_34] : memref<2x1x32xf32, #tpu.memory_space<vmem>>, vector<1x1x32xf32>
    %77 = vector.shape_cast %76 : vector<1x1x32xf32> to vector<1x32xf32>
    %78 = vector.broadcast %77 : vector<1x32xf32> to vector<8x32xf32>
    %79 = arith.addf %75, %78 : vector<8x32xf32>
    %80 = arith.addf %27, %79 : vector<8x32xf32>
    %c0_35 = arith.constant 0 : index
    %c0_36 = arith.constant 0 : index
    %c0_37 = arith.constant 0 : index
    %81 = vector.load %arg10[%c0_35, %c0_36, %c0_37] : memref<2x1x32xf32, #tpu.memory_space<vmem>>, vector<1x1x32xf32>
    %82 = vector.shape_cast %81 : vector<1x1x32xf32> to vector<1x32xf32>
    %c0_38 = arith.constant 0 : index
    %c0_39 = arith.constant 0 : index
    %c0_40 = arith.constant 0 : index
    %83 = vector.load %arg11[%c0_38, %c0_39, %c0_40] : memref<2x1x32xf32, #tpu.memory_space<vmem>>, vector<1x1x32xf32>
    %84 = vector.shape_cast %83 : vector<1x1x32xf32> to vector<1x32xf32>
    %cst_41 = arith.constant dense<0.000000e+00> : vector<8xf32>
    %85 = vector.multi_reduction <add>, %80, %cst_41 [1] : vector<8x32xf32> to vector<8xf32>
    %86 = vector.shape_cast %85 : vector<8xf32> to vector<8x1xf32>
    %cst_42 = arith.constant 3.200000e+01 : f32
    %87 = vector.broadcast %cst_42 : f32 to vector<8x1xf32>
    %88 = arith.divf %86, %87 : vector<8x1xf32>
    %89 = vector.broadcast %88 : vector<8x1xf32> to vector<8x32xf32>
    %90 = arith.subf %80, %89 : vector<8x32xf32>
    %91 = arith.mulf %90, %90 : vector<8x32xf32>
    %cst_43 = arith.constant dense<0.000000e+00> : vector<8xf32>
    %92 = vector.multi_reduction <add>, %91, %cst_43 [1] : vector<8x32xf32> to vector<8xf32>
    %93 = vector.shape_cast %92 : vector<8xf32> to vector<8x1xf32>
    %cst_44 = arith.constant 3.200000e+01 : f32
    %94 = vector.broadcast %cst_44 : f32 to vector<8x1xf32>
    %95 = arith.divf %93, %94 : vector<8x1xf32>
    %96 = vector.broadcast %88 : vector<8x1xf32> to vector<8x32xf32>
    %97 = arith.subf %80, %96 : vector<8x32xf32>
    %cst_45 = arith.constant 9.99999974E-6 : f32
    %98 = vector.broadcast %cst_45 : f32 to vector<8x1xf32>
    %99 = arith.addf %95, %98 : vector<8x1xf32>
    %100 = math.rsqrt %99 : vector<8x1xf32>
    %101 = vector.broadcast %100 : vector<8x1xf32> to vector<8x32xf32>
    %102 = arith.mulf %97, %101 : vector<8x32xf32>
    %103 = vector.broadcast %82 : vector<1x32xf32> to vector<8x32xf32>
    %104 = arith.mulf %102, %103 : vector<8x32xf32>
    %105 = vector.broadcast %84 : vector<1x32xf32> to vector<8x32xf32>
    %106 = arith.addf %104, %105 : vector<8x32xf32>
    %c0_46 = arith.constant 0 : index
    %c0_47 = arith.constant 0 : index
    %c0_48 = arith.constant 0 : index
    %107 = vector.load %arg12[%c0_46, %c0_47, %c0_48] : memref<2x32x32xbf16, #tpu.memory_space<vmem>>, vector<1x32x32xbf16>
    %108 = vector.shape_cast %107 : vector<1x32x32xbf16> to vector<32x32xbf16>
    %109 = arith.truncf %106 : vector<8x32xf32> to vector<8x32xbf16>
    %cst_49 = arith.constant dense<0.000000e+00> : vector<8x32xf32>
    %110 = tpu.matmul %109, %108, %cst_49 {dimension_numbers = #tpu.dot_dimension_numbers<[1], [0], [0], [1], [0, 0, 1, 1], [], []>} : vector<8x32xbf16>, vector<32x32xbf16>, vector<8x32xf32> -> vector<8x32xf32>
    %c0_50 = arith.constant 0 : index
    %c0_51 = arith.constant 0 : index
    %c0_52 = arith.constant 0 : index
    %111 = vector.load %arg13[%c0_50, %c0_51, %c0_52] : memref<2x1x32xf32, #tpu.memory_space<vmem>>, vector<1x1x32xf32>
    %112 = vector.shape_cast %111 : vector<1x1x32xf32> to vector<1x32xf32>
    %113 = vector.broadcast %112 : vector<1x32xf32> to vector<8x32xf32>
    %114 = arith.addf %110, %113 : vector<8x32xf32>
    %c0_53 = arith.constant 0 : index
    %c0_54 = arith.constant 0 : index
    %c0_55 = arith.constant 0 : index
    %115 = vector.load %arg14[%c0_53, %c0_54, %c0_55] : memref<2x32x64xbf16, #tpu.memory_space<vmem>>, vector<1x32x64xbf16>
    %116 = vector.shape_cast %115 : vector<1x32x64xbf16> to vector<32x64xbf16>
    %117 = arith.truncf %29 : vector<8x32xf32> to vector<8x32xbf16>
    %cst_56 = arith.constant dense<0.000000e+00> : vector<8x64xf32>
    %118 = tpu.matmul %117, %116, %cst_56 {dimension_numbers = #tpu.dot_dimension_numbers<[1], [0], [0], [1], [0, 0, 1, 1], [], []>} : vector<8x32xbf16>, vector<32x64xbf16>, vector<8x64xf32> -> vector<8x64xf32>
    %c0_57 = arith.constant 0 : index
    %c0_58 = arith.constant 0 : index
    %c0_59 = arith.constant 0 : index
    %119 = vector.load %arg15[%c0_57, %c0_58, %c0_59] : memref<2x1x64xf32, #tpu.memory_space<vmem>>, vector<1x1x64xf32>
    %120 = vector.shape_cast %119 : vector<1x1x64xf32> to vector<1x64xf32>
    %121 = vector.broadcast %120 : vector<1x64xf32> to vector<8x64xf32>
    %122 = arith.addf %118, %121 : vector<8x64xf32>
    %123 = vector.extract_strided_slice %122 {offsets = [0, 0], sizes = [8, 32], strides = [1, 1]} : vector<8x64xf32> to vector<8x32xf32>
    %124 = vector.extract_strided_slice %122 {offsets = [0, 32], sizes = [8, 32], strides = [1, 1]} : vector<8x64xf32> to vector<8x32xf32>
    %125 = vector.shape_cast %114 : vector<8x32xf32> to vector<8x4x8xf32>
    %126 = tpu.transpose %125, [1, 0, 2] : vector<8x4x8xf32> -> vector<4x8x8xf32>
    %127 = arith.truncf %126 : vector<4x8x8xf32> to vector<4x8x8xbf16>
    %128 = vector.shape_cast %123 : vector<8x32xf32> to vector<8x4x8xf32>
    %129 = tpu.transpose %128, [1, 0, 2] : vector<8x4x8xf32> -> vector<4x8x8xf32>
    %130 = arith.truncf %129 : vector<4x8x8xf32> to vector<4x8x8xbf16>
    %131 = vector.shape_cast %124 : vector<8x32xf32> to vector<8x4x8xf32>
    %132 = tpu.transpose %131, [1, 0, 2] : vector<8x4x8xf32> -> vector<4x8x8xf32>
    %133 = arith.truncf %132 : vector<4x8x8xf32> to vector<4x8x8xbf16>
    "tpu.trace_start"() <{level = 10 : i32, message = "hqd,hkd->hqk"}> : () -> ()
    %cst_60 = arith.constant dense<0.000000e+00> : vector<4x8x8xf32>
    %134 = tpu.matmul %127, %130, %cst_60 {dimension_numbers = #tpu.dot_dimension_numbers<[2], [2], [1], [1], [0, 0, 0, 1, 1, 1], [0], [0]>} : vector<4x8x8xbf16>, vector<4x8x8xbf16>, vector<4x8x8xf32> -> vector<4x8x8xf32>
    "tpu.trace_stop"() : () -> ()
    %cst_61 = arith.constant 0.353553385 : f32
    %135 = vector.broadcast %cst_61 : f32 to vector<4x8x8xf32>
    %136 = arith.mulf %134, %135 : vector<4x8x8xf32>
    %cst_62 = arith.constant dense<0xFF800000> : vector<4x8xf32>
    %137 = vector.multi_reduction <maximumf>, %136, %cst_62 [2] : vector<4x8x8xf32> to vector<4x8xf32>
    %138 = vector.shape_cast %137 : vector<4x8xf32> to vector<4x8x1xf32>
    %139 = vector.broadcast %138 : vector<4x8x1xf32> to vector<4x8x8xf32>
    %140 = arith.subf %136, %139 : vector<4x8x8xf32>
    %141 = math.exp %140 : vector<4x8x8xf32>
    %cst_63 = arith.constant dense<0.000000e+00> : vector<4x8xf32>
    %142 = vector.multi_reduction <add>, %141, %cst_63 [2] : vector<4x8x8xf32> to vector<4x8xf32>
    %143 = vector.shape_cast %142 : vector<4x8xf32> to vector<4x8x1xf32>
    %144 = tpu.reciprocal %143 {approx = true} : vector<4x8x1xf32> -> vector<4x8x1xf32>
    %145 = vector.broadcast %144 : vector<4x8x1xf32> to vector<4x8x8xf32>
    %146 = arith.mulf %141, %145 : vector<4x8x8xf32>
    %147 = arith.truncf %146 : vector<4x8x8xf32> to vector<4x8x8xbf16>
    "tpu.trace_start"() <{level = 10 : i32, message = "hqk,hkd->hqd"}> : () -> ()
    %cst_64 = arith.constant dense<0.000000e+00> : vector<4x8x8xf32>
    %148 = tpu.matmul %147, %133, %cst_64 {dimension_numbers = #tpu.dot_dimension_numbers<[2], [1], [1], [2], [0, 0, 0, 1, 1, 2], [0], [0]>} : vector<4x8x8xbf16>, vector<4x8x8xbf16>, vector<4x8x8xf32> -> vector<4x8x8xf32>
    "tpu.trace_stop"() : () -> ()
    %149 = tpu.transpose %148, [1, 0, 2] : vector<4x8x8xf32> -> vector<8x4x8xf32>
    %150 = vector.shape_cast %149 : vector<8x4x8xf32> to vector<8x32xf32>
    %c0_65 = arith.constant 0 : index
    %c0_66 = arith.constant 0 : index
    %c0_67 = arith.constant 0 : index
    %151 = vector.load %arg16[%c0_65, %c0_66, %c0_67] : memref<2x32x32xbf16, #tpu.memory_space<vmem>>, vector<1x32x32xbf16>
    %152 = vector.shape_cast %151 : vector<1x32x32xbf16> to vector<32x32xbf16>
    %153 = arith.truncf %150 : vector<8x32xf32> to vector<8x32xbf16>
    %cst_68 = arith.constant dense<0.000000e+00> : vector<8x32xf32>
    %154 = tpu.matmul %153, %152, %cst_68 {dimension_numbers = #tpu.dot_dimension_numbers<[1], [0], [0], [1], [0, 0, 1, 1], [], []>} : vector<8x32xbf16>, vector<32x32xbf16>, vector<8x32xf32> -> vector<8x32xf32>
    %c0_69 = arith.constant 0 : index
    %c0_70 = arith.constant 0 : index
    %c0_71 = arith.constant 0 : index
    %155 = vector.load %arg17[%c0_69, %c0_70, %c0_71] : memref<2x1x32xf32, #tpu.memory_space<vmem>>, vector<1x1x32xf32>
    %156 = vector.shape_cast %155 : vector<1x1x32xf32> to vector<1x32xf32>
    %157 = vector.broadcast %156 : vector<1x32xf32> to vector<8x32xf32>
    %158 = arith.addf %154, %157 : vector<8x32xf32>
    %159 = arith.addf %106, %158 : vector<8x32xf32>
    %c0_72 = arith.constant 0 : index
    %c0_73 = arith.constant 0 : index
    %c0_74 = arith.constant 0 : index
    %160 = vector.load %arg18[%c0_72, %c0_73, %c0_74] : memref<2x1x32xf32, #tpu.memory_space<vmem>>, vector<1x1x32xf32>
    %161 = vector.shape_cast %160 : vector<1x1x32xf32> to vector<1x32xf32>
    %c0_75 = arith.constant 0 : index
    %c0_76 = arith.constant 0 : index
    %c0_77 = arith.constant 0 : index
    %162 = vector.load %arg19[%c0_75, %c0_76, %c0_77] : memref<2x1x32xf32, #tpu.memory_space<vmem>>, vector<1x1x32xf32>
    %163 = vector.shape_cast %162 : vector<1x1x32xf32> to vector<1x32xf32>
    %cst_78 = arith.constant dense<0.000000e+00> : vector<8xf32>
    %164 = vector.multi_reduction <add>, %159, %cst_78 [1] : vector<8x32xf32> to vector<8xf32>
    %165 = vector.shape_cast %164 : vector<8xf32> to vector<8x1xf32>
    %cst_79 = arith.constant 3.200000e+01 : f32
    %166 = vector.broadcast %cst_79 : f32 to vector<8x1xf32>
    %167 = arith.divf %165, %166 : vector<8x1xf32>
    %168 = vector.broadcast %167 : vector<8x1xf32> to vector<8x32xf32>
    %169 = arith.subf %159, %168 : vector<8x32xf32>
    %170 = arith.mulf %169, %169 : vector<8x32xf32>
    %cst_80 = arith.constant dense<0.000000e+00> : vector<8xf32>
    %171 = vector.multi_reduction <add>, %170, %cst_80 [1] : vector<8x32xf32> to vector<8xf32>
    %172 = vector.shape_cast %171 : vector<8xf32> to vector<8x1xf32>
    %cst_81 = arith.constant 3.200000e+01 : f32
    %173 = vector.broadcast %cst_81 : f32 to vector<8x1xf32>
    %174 = arith.divf %172, %173 : vector<8x1xf32>
    %175 = vector.broadcast %167 : vector<8x1xf32> to vector<8x32xf32>
    %176 = arith.subf %159, %175 : vector<8x32xf32>
    %cst_82 = arith.constant 9.99999974E-6 : f32
    %177 = vector.broadcast %cst_82 : f32 to vector<8x1xf32>
    %178 = arith.addf %174, %177 : vector<8x1xf32>
    %179 = math.rsqrt %178 : vector<8x1xf32>
    %180 = vector.broadcast %179 : vector<8x1xf32> to vector<8x32xf32>
    %181 = arith.mulf %176, %180 : vector<8x32xf32>
    %182 = vector.broadcast %161 : vector<1x32xf32> to vector<8x32xf32>
    %183 = arith.mulf %181, %182 : vector<8x32xf32>
    %184 = vector.broadcast %163 : vector<1x32xf32> to vector<8x32xf32>
    %185 = arith.addf %183, %184 : vector<8x32xf32>
    %c0_83 = arith.constant 0 : index
    %c0_84 = arith.constant 0 : index
    %c0_85 = arith.constant 0 : index
    %186 = vector.load %arg20[%c0_83, %c0_84, %c0_85] : memref<2x32x64xbf16, #tpu.memory_space<vmem>>, vector<1x32x64xbf16>
    %187 = vector.shape_cast %186 : vector<1x32x64xbf16> to vector<32x64xbf16>
    %188 = arith.truncf %185 : vector<8x32xf32> to vector<8x32xbf16>
    %cst_86 = arith.constant dense<0.000000e+00> : vector<8x64xf32>
    %189 = tpu.matmul %188, %187, %cst_86 {dimension_numbers = #tpu.dot_dimension_numbers<[1], [0], [0], [1], [0, 0, 1, 1], [], []>} : vector<8x32xbf16>, vector<32x64xbf16>, vector<8x64xf32> -> vector<8x64xf32>
    %c0_87 = arith.constant 0 : index
    %c0_88 = arith.constant 0 : index
    %c0_89 = arith.constant 0 : index
    %190 = vector.load %arg21[%c0_87, %c0_88, %c0_89] : memref<2x1x64xf32, #tpu.memory_space<vmem>>, vector<1x1x64xf32>
    %191 = vector.shape_cast %190 : vector<1x1x64xf32> to vector<1x64xf32>
    %192 = vector.broadcast %191 : vector<1x64xf32> to vector<8x64xf32>
    %193 = arith.addf %189, %192 : vector<8x64xf32>
    %cst_90 = arith.constant 5.000000e-01 : f32
    %194 = vector.broadcast %cst_90 : f32 to vector<8x64xf32>
    %195 = arith.mulf %194, %193 : vector<8x64xf32>
    %cst_91 = arith.constant 0.707106769 : f32
    %196 = vector.broadcast %cst_91 : f32 to vector<8x64xf32>
    %197 = arith.mulf %193, %196 : vector<8x64xf32>
    %198 = math.absf %197 : vector<8x64xf32>
    %cst_92 = arith.constant 0.327591091 : f32
    %199 = vector.broadcast %cst_92 : f32 to vector<8x64xf32>
    %200 = arith.mulf %199, %198 : vector<8x64xf32>
    %cst_93 = arith.constant 1.000000e+00 : f32
    %201 = vector.broadcast %cst_93 : f32 to vector<8x64xf32>
    %202 = arith.addf %201, %200 : vector<8x64xf32>
    %203 = tpu.reciprocal %202 {approx = true} : vector<8x64xf32> -> vector<8x64xf32>
    %cst_94 = arith.constant 1.06140542 : f32
    %204 = vector.broadcast %cst_94 : f32 to vector<8x64xf32>
    %205 = arith.mulf %204, %203 : vector<8x64xf32>
    %cst_95 = arith.constant -1.45315206 : f32
    %206 = vector.broadcast %cst_95 : f32 to vector<8x64xf32>
    %207 = arith.addf %205, %206 : vector<8x64xf32>
    %208 = arith.mulf %207, %203 : vector<8x64xf32>
    %cst_96 = arith.constant 1.42141378 : f32
    %209 = vector.broadcast %cst_96 : f32 to vector<8x64xf32>
    %210 = arith.addf %208, %209 : vector<8x64xf32>
    %211 = arith.mulf %210, %203 : vector<8x64xf32>
    %cst_97 = arith.constant -0.284496725 : f32
    %212 = vector.broadcast %cst_97 : f32 to vector<8x64xf32>
    %213 = arith.addf %211, %212 : vector<8x64xf32>
    %214 = arith.mulf %213, %203 : vector<8x64xf32>
    %cst_98 = arith.constant 0.254829586 : f32
    %215 = vector.broadcast %cst_98 : f32 to vector<8x64xf32>
    %216 = arith.addf %214, %215 : vector<8x64xf32>
    %217 = arith.mulf %216, %203 : vector<8x64xf32>
    %cst_99 = arith.constant 0.000000e+00 : f32
    %218 = vector.broadcast %cst_99 : f32 to vector<8x64xf32>
    %219 = arith.subf %218, %198 : vector<8x64xf32>
    %220 = arith.mulf %219, %198 : vector<8x64xf32>
    %221 = math.exp %220 : vector<8x64xf32>
    %222 = arith.mulf %217, %221 : vector<8x64xf32>
    %cst_100 = arith.constant 1.000000e+00 : f32
    %223 = vector.broadcast %cst_100 : f32 to vector<8x64xf32>
    %224 = arith.subf %223, %222 : vector<8x64xf32>
    %cst_101 = arith.constant 0.000000e+00 : f32
    %225 = vector.broadcast %cst_101 : f32 to vector<8x64xf32>
    %226 = arith.cmpf oge, %197, %225 : vector<8x64xf32>
    %cst_102 = arith.constant 0.000000e+00 : f32
    %227 = vector.broadcast %cst_102 : f32 to vector<8x64xf32>
    %228 = arith.subf %227, %224 : vector<8x64xf32>
    %229 = arith.select %226, %224, %228 : vector<8x64xi1>, vector<8x64xf32>
    %cst_103 = arith.constant 1.000000e+00 : f32
    %230 = vector.broadcast %cst_103 : f32 to vector<8x64xf32>
    %231 = arith.addf %230, %229 : vector<8x64xf32>
    %232 = arith.mulf %195, %231 : vector<8x64xf32>
    %c0_104 = arith.constant 0 : index
    %c0_105 = arith.constant 0 : index
    %c0_106 = arith.constant 0 : index
    %233 = vector.load %arg22[%c0_104, %c0_105, %c0_106] : memref<2x64x32xbf16, #tpu.memory_space<vmem>>, vector<1x64x32xbf16>
    %234 = vector.shape_cast %233 : vector<1x64x32xbf16> to vector<64x32xbf16>
    %235 = arith.truncf %232 : vector<8x64xf32> to vector<8x64xbf16>
    %cst_107 = arith.constant dense<0.000000e+00> : vector<8x32xf32>
    %236 = tpu.matmul %235, %234, %cst_107 {dimension_numbers = #tpu.dot_dimension_numbers<[1], [0], [0], [1], [0, 0, 1, 1], [], []>} : vector<8x64xbf16>, vector<64x32xbf16>, vector<8x32xf32> -> vector<8x32xf32>
    %c0_108 = arith.constant 0 : index
    %c0_109 = arith.constant 0 : index
    %c0_110 = arith.constant 0 : index
    %237 = vector.load %arg23[%c0_108, %c0_109, %c0_110] : memref<2x1x32xf32, #tpu.memory_space<vmem>>, vector<1x1x32xf32>
    %238 = vector.shape_cast %237 : vector<1x1x32xf32> to vector<1x32xf32>
    %239 = vector.broadcast %238 : vector<1x32xf32> to vector<8x32xf32>
    %240 = arith.addf %236, %239 : vector<8x32xf32>
    %241 = arith.addf %185, %240 : vector<8x32xf32>
    %c0_111 = arith.constant 0 : index
    %c0_112 = arith.constant 0 : index
    %c0_113 = arith.constant 0 : index
    %242 = vector.load %arg24[%c0_111, %c0_112, %c0_113] : memref<2x1x32xf32, #tpu.memory_space<vmem>>, vector<1x1x32xf32>
    %243 = vector.shape_cast %242 : vector<1x1x32xf32> to vector<1x32xf32>
    %c0_114 = arith.constant 0 : index
    %c0_115 = arith.constant 0 : index
    %c0_116 = arith.constant 0 : index
    %244 = vector.load %arg25[%c0_114, %c0_115, %c0_116] : memref<2x1x32xf32, #tpu.memory_space<vmem>>, vector<1x1x32xf32>
    %245 = vector.shape_cast %244 : vector<1x1x32xf32> to vector<1x32xf32>
    %cst_117 = arith.constant dense<0.000000e+00> : vector<8xf32>
    %246 = vector.multi_reduction <add>, %241, %cst_117 [1] : vector<8x32xf32> to vector<8xf32>
    %247 = vector.shape_cast %246 : vector<8xf32> to vector<8x1xf32>
    %cst_118 = arith.constant 3.200000e+01 : f32
    %248 = vector.broadcast %cst_118 : f32 to vector<8x1xf32>
    %249 = arith.divf %247, %248 : vector<8x1xf32>
    %250 = vector.broadcast %249 : vector<8x1xf32> to vector<8x32xf32>
    %251 = arith.subf %241, %250 : vector<8x32xf32>
    %252 = arith.mulf %251, %251 : vector<8x32xf32>
    %cst_119 = arith.constant dense<0.000000e+00> : vector<8xf32>
    %253 = vector.multi_reduction <add>, %252, %cst_119 [1] : vector<8x32xf32> to vector<8xf32>
    %254 = vector.shape_cast %253 : vector<8xf32> to vector<8x1xf32>
    %cst_120 = arith.constant 3.200000e+01 : f32
    %255 = vector.broadcast %cst_120 : f32 to vector<8x1xf32>
    %256 = arith.divf %254, %255 : vector<8x1xf32>
    %257 = vector.broadcast %249 : vector<8x1xf32> to vector<8x32xf32>
    %258 = arith.subf %241, %257 : vector<8x32xf32>
    %cst_121 = arith.constant 9.99999974E-6 : f32
    %259 = vector.broadcast %cst_121 : f32 to vector<8x1xf32>
    %260 = arith.addf %256, %259 : vector<8x1xf32>
    %261 = math.rsqrt %260 : vector<8x1xf32>
    %262 = vector.broadcast %261 : vector<8x1xf32> to vector<8x32xf32>
    %263 = arith.mulf %258, %262 : vector<8x32xf32>
    %264 = vector.broadcast %243 : vector<1x32xf32> to vector<8x32xf32>
    %265 = arith.mulf %263, %264 : vector<8x32xf32>
    %266 = vector.broadcast %245 : vector<1x32xf32> to vector<8x32xf32>
    %267 = arith.addf %265, %266 : vector<8x32xf32>
    %c1 = arith.constant 1 : index
    %c0_122 = arith.constant 0 : index
    %c0_123 = arith.constant 0 : index
    %268 = vector.load %arg6[%c1, %c0_122, %c0_123] : memref<2x32x96xbf16, #tpu.memory_space<vmem>>, vector<1x32x96xbf16>
    %269 = vector.shape_cast %268 : vector<1x32x96xbf16> to vector<32x96xbf16>
    %270 = arith.truncf %267 : vector<8x32xf32> to vector<8x32xbf16>
    %cst_124 = arith.constant dense<0.000000e+00> : vector<8x96xf32>
    %271 = tpu.matmul %270, %269, %cst_124 {dimension_numbers = #tpu.dot_dimension_numbers<[1], [0], [0], [1], [0, 0, 1, 1], [], []>} : vector<8x32xbf16>, vector<32x96xbf16>, vector<8x96xf32> -> vector<8x96xf32>
    %c1_125 = arith.constant 1 : index
    %c0_126 = arith.constant 0 : index
    %c0_127 = arith.constant 0 : index
    %272 = vector.load %arg7[%c1_125, %c0_126, %c0_127] : memref<2x1x96xf32, #tpu.memory_space<vmem>>, vector<1x1x96xf32>
    %273 = vector.shape_cast %272 : vector<1x1x96xf32> to vector<1x96xf32>
    %274 = vector.broadcast %273 : vector<1x96xf32> to vector<8x96xf32>
    %275 = arith.addf %271, %274 : vector<8x96xf32>
    %276 = vector.extract_strided_slice %275 {offsets = [0, 0], sizes = [8, 32], strides = [1, 1]} : vector<8x96xf32> to vector<8x32xf32>
    %277 = vector.extract_strided_slice %275 {offsets = [0, 32], sizes = [8, 32], strides = [1, 1]} : vector<8x96xf32> to vector<8x32xf32>
    %278 = vector.extract_strided_slice %275 {offsets = [0, 64], sizes = [8, 32], strides = [1, 1]} : vector<8x96xf32> to vector<8x32xf32>
    %279 = vector.shape_cast %276 : vector<8x32xf32> to vector<8x4x8xf32>
    %280 = tpu.transpose %279, [1, 0, 2] : vector<8x4x8xf32> -> vector<4x8x8xf32>
    %281 = arith.truncf %280 : vector<4x8x8xf32> to vector<4x8x8xbf16>
    %282 = vector.shape_cast %277 : vector<8x32xf32> to vector<8x4x8xf32>
    %283 = tpu.transpose %282, [1, 0, 2] : vector<8x4x8xf32> -> vector<4x8x8xf32>
    %284 = arith.truncf %283 : vector<4x8x8xf32> to vector<4x8x8xbf16>
    %285 = vector.shape_cast %278 : vector<8x32xf32> to vector<8x4x8xf32>
    %286 = tpu.transpose %285, [1, 0, 2] : vector<8x4x8xf32> -> vector<4x8x8xf32>
    %287 = arith.truncf %286 : vector<4x8x8xf32> to vector<4x8x8xbf16>
    "tpu.trace_start"() <{level = 10 : i32, message = "hqd,hkd->hqk"}> : () -> ()
    %cst_128 = arith.constant dense<0.000000e+00> : vector<4x8x8xf32>
    %288 = tpu.matmul %281, %284, %cst_128 {dimension_numbers = #tpu.dot_dimension_numbers<[2], [2], [1], [1], [0, 0, 0, 1, 1, 1], [0], [0]>} : vector<4x8x8xbf16>, vector<4x8x8xbf16>, vector<4x8x8xf32> -> vector<4x8x8xf32>
    "tpu.trace_stop"() : () -> ()
    %cst_129 = arith.constant 0.353553385 : f32
    %289 = vector.broadcast %cst_129 : f32 to vector<4x8x8xf32>
    %290 = arith.mulf %288, %289 : vector<4x8x8xf32>
    %291 = tpu.iota {dimensions = array<i32: 1>} : vector<4x8x8xi32>
    %292 = tpu.iota {dimensions = array<i32: 2>} : vector<4x8x8xi32>
    %293 = arith.cmpi sge, %291, %292 : vector<4x8x8xi32>
    %cst_130 = arith.constant -1.000000e+09 : f32
    %294 = vector.broadcast %cst_130 : f32 to vector<4x8x8xf32>
    %295 = arith.select %293, %290, %294 : vector<4x8x8xi1>, vector<4x8x8xf32>
    %cst_131 = arith.constant dense<0xFF800000> : vector<4x8xf32>
    %296 = vector.multi_reduction <maximumf>, %295, %cst_131 [2] : vector<4x8x8xf32> to vector<4x8xf32>
    %297 = vector.shape_cast %296 : vector<4x8xf32> to vector<4x8x1xf32>
    %298 = vector.broadcast %297 : vector<4x8x1xf32> to vector<4x8x8xf32>
    %299 = arith.subf %295, %298 : vector<4x8x8xf32>
    %300 = math.exp %299 : vector<4x8x8xf32>
    %cst_132 = arith.constant dense<0.000000e+00> : vector<4x8xf32>
    %301 = vector.multi_reduction <add>, %300, %cst_132 [2] : vector<4x8x8xf32> to vector<4x8xf32>
    %302 = vector.shape_cast %301 : vector<4x8xf32> to vector<4x8x1xf32>
    %303 = tpu.reciprocal %302 {approx = true} : vector<4x8x1xf32> -> vector<4x8x1xf32>
    %304 = vector.broadcast %303 : vector<4x8x1xf32> to vector<4x8x8xf32>
    %305 = arith.mulf %300, %304 : vector<4x8x8xf32>
    %306 = arith.truncf %305 : vector<4x8x8xf32> to vector<4x8x8xbf16>
    "tpu.trace_start"() <{level = 10 : i32, message = "hqk,hkd->hqd"}> : () -> ()
    %cst_133 = arith.constant dense<0.000000e+00> : vector<4x8x8xf32>
    %307 = tpu.matmul %306, %287, %cst_133 {dimension_numbers = #tpu.dot_dimension_numbers<[2], [1], [1], [2], [0, 0, 0, 1, 1, 2], [0], [0]>} : vector<4x8x8xbf16>, vector<4x8x8xbf16>, vector<4x8x8xf32> -> vector<4x8x8xf32>
    "tpu.trace_stop"() : () -> ()
    %308 = tpu.transpose %307, [1, 0, 2] : vector<4x8x8xf32> -> vector<8x4x8xf32>
    %309 = vector.shape_cast %308 : vector<8x4x8xf32> to vector<8x32xf32>
    %c1_134 = arith.constant 1 : index
    %c0_135 = arith.constant 0 : index
    %c0_136 = arith.constant 0 : index
    %310 = vector.load %arg8[%c1_134, %c0_135, %c0_136] : memref<2x32x32xbf16, #tpu.memory_space<vmem>>, vector<1x32x32xbf16>
    %311 = vector.shape_cast %310 : vector<1x32x32xbf16> to vector<32x32xbf16>
    %312 = arith.truncf %309 : vector<8x32xf32> to vector<8x32xbf16>
    %cst_137 = arith.constant dense<0.000000e+00> : vector<8x32xf32>
    %313 = tpu.matmul %312, %311, %cst_137 {dimension_numbers = #tpu.dot_dimension_numbers<[1], [0], [0], [1], [0, 0, 1, 1], [], []>} : vector<8x32xbf16>, vector<32x32xbf16>, vector<8x32xf32> -> vector<8x32xf32>
    %c1_138 = arith.constant 1 : index
    %c0_139 = arith.constant 0 : index
    %c0_140 = arith.constant 0 : index
    %314 = vector.load %arg9[%c1_138, %c0_139, %c0_140] : memref<2x1x32xf32, #tpu.memory_space<vmem>>, vector<1x1x32xf32>
    %315 = vector.shape_cast %314 : vector<1x1x32xf32> to vector<1x32xf32>
    %316 = vector.broadcast %315 : vector<1x32xf32> to vector<8x32xf32>
    %317 = arith.addf %313, %316 : vector<8x32xf32>
    %318 = arith.addf %267, %317 : vector<8x32xf32>
    %c1_141 = arith.constant 1 : index
    %c0_142 = arith.constant 0 : index
    %c0_143 = arith.constant 0 : index
    %319 = vector.load %arg10[%c1_141, %c0_142, %c0_143] : memref<2x1x32xf32, #tpu.memory_space<vmem>>, vector<1x1x32xf32>
    %320 = vector.shape_cast %319 : vector<1x1x32xf32> to vector<1x32xf32>
    %c1_144 = arith.constant 1 : index
    %c0_145 = arith.constant 0 : index
    %c0_146 = arith.constant 0 : index
    %321 = vector.load %arg11[%c1_144, %c0_145, %c0_146] : memref<2x1x32xf32, #tpu.memory_space<vmem>>, vector<1x1x32xf32>
    %322 = vector.shape_cast %321 : vector<1x1x32xf32> to vector<1x32xf32>
    %cst_147 = arith.constant dense<0.000000e+00> : vector<8xf32>
    %323 = vector.multi_reduction <add>, %318, %cst_147 [1] : vector<8x32xf32> to vector<8xf32>
    %324 = vector.shape_cast %323 : vector<8xf32> to vector<8x1xf32>
    %cst_148 = arith.constant 3.200000e+01 : f32
    %325 = vector.broadcast %cst_148 : f32 to vector<8x1xf32>
    %326 = arith.divf %324, %325 : vector<8x1xf32>
    %327 = vector.broadcast %326 : vector<8x1xf32> to vector<8x32xf32>
    %328 = arith.subf %318, %327 : vector<8x32xf32>
    %329 = arith.mulf %328, %328 : vector<8x32xf32>
    %cst_149 = arith.constant dense<0.000000e+00> : vector<8xf32>
    %330 = vector.multi_reduction <add>, %329, %cst_149 [1] : vector<8x32xf32> to vector<8xf32>
    %331 = vector.shape_cast %330 : vector<8xf32> to vector<8x1xf32>
    %cst_150 = arith.constant 3.200000e+01 : f32
    %332 = vector.broadcast %cst_150 : f32 to vector<8x1xf32>
    %333 = arith.divf %331, %332 : vector<8x1xf32>
    %334 = vector.broadcast %326 : vector<8x1xf32> to vector<8x32xf32>
    %335 = arith.subf %318, %334 : vector<8x32xf32>
    %cst_151 = arith.constant 9.99999974E-6 : f32
    %336 = vector.broadcast %cst_151 : f32 to vector<8x1xf32>
    %337 = arith.addf %333, %336 : vector<8x1xf32>
    %338 = math.rsqrt %337 : vector<8x1xf32>
    %339 = vector.broadcast %338 : vector<8x1xf32> to vector<8x32xf32>
    %340 = arith.mulf %335, %339 : vector<8x32xf32>
    %341 = vector.broadcast %320 : vector<1x32xf32> to vector<8x32xf32>
    %342 = arith.mulf %340, %341 : vector<8x32xf32>
    %343 = vector.broadcast %322 : vector<1x32xf32> to vector<8x32xf32>
    %344 = arith.addf %342, %343 : vector<8x32xf32>
    %c1_152 = arith.constant 1 : index
    %c0_153 = arith.constant 0 : index
    %c0_154 = arith.constant 0 : index
    %345 = vector.load %arg12[%c1_152, %c0_153, %c0_154] : memref<2x32x32xbf16, #tpu.memory_space<vmem>>, vector<1x32x32xbf16>
    %346 = vector.shape_cast %345 : vector<1x32x32xbf16> to vector<32x32xbf16>
    %347 = arith.truncf %344 : vector<8x32xf32> to vector<8x32xbf16>
    %cst_155 = arith.constant dense<0.000000e+00> : vector<8x32xf32>
    %348 = tpu.matmul %347, %346, %cst_155 {dimension_numbers = #tpu.dot_dimension_numbers<[1], [0], [0], [1], [0, 0, 1, 1], [], []>} : vector<8x32xbf16>, vector<32x32xbf16>, vector<8x32xf32> -> vector<8x32xf32>
    %c1_156 = arith.constant 1 : index
    %c0_157 = arith.constant 0 : index
    %c0_158 = arith.constant 0 : index
    %349 = vector.load %arg13[%c1_156, %c0_157, %c0_158] : memref<2x1x32xf32, #tpu.memory_space<vmem>>, vector<1x1x32xf32>
    %350 = vector.shape_cast %349 : vector<1x1x32xf32> to vector<1x32xf32>
    %351 = vector.broadcast %350 : vector<1x32xf32> to vector<8x32xf32>
    %352 = arith.addf %348, %351 : vector<8x32xf32>
    %c1_159 = arith.constant 1 : index
    %c0_160 = arith.constant 0 : index
    %c0_161 = arith.constant 0 : index
    %353 = vector.load %arg14[%c1_159, %c0_160, %c0_161] : memref<2x32x64xbf16, #tpu.memory_space<vmem>>, vector<1x32x64xbf16>
    %354 = vector.shape_cast %353 : vector<1x32x64xbf16> to vector<32x64xbf16>
    %355 = arith.truncf %29 : vector<8x32xf32> to vector<8x32xbf16>
    %cst_162 = arith.constant dense<0.000000e+00> : vector<8x64xf32>
    %356 = tpu.matmul %355, %354, %cst_162 {dimension_numbers = #tpu.dot_dimension_numbers<[1], [0], [0], [1], [0, 0, 1, 1], [], []>} : vector<8x32xbf16>, vector<32x64xbf16>, vector<8x64xf32> -> vector<8x64xf32>
    %c1_163 = arith.constant 1 : index
    %c0_164 = arith.constant 0 : index
    %c0_165 = arith.constant 0 : index
    %357 = vector.load %arg15[%c1_163, %c0_164, %c0_165] : memref<2x1x64xf32, #tpu.memory_space<vmem>>, vector<1x1x64xf32>
    %358 = vector.shape_cast %357 : vector<1x1x64xf32> to vector<1x64xf32>
    %359 = vector.broadcast %358 : vector<1x64xf32> to vector<8x64xf32>
    %360 = arith.addf %356, %359 : vector<8x64xf32>
    %361 = vector.extract_strided_slice %360 {offsets = [0, 0], sizes = [8, 32], strides = [1, 1]} : vector<8x64xf32> to vector<8x32xf32>
    %362 = vector.extract_strided_slice %360 {offsets = [0, 32], sizes = [8, 32], strides = [1, 1]} : vector<8x64xf32> to vector<8x32xf32>
    %363 = vector.shape_cast %352 : vector<8x32xf32> to vector<8x4x8xf32>
    %364 = tpu.transpose %363, [1, 0, 2] : vector<8x4x8xf32> -> vector<4x8x8xf32>
    %365 = arith.truncf %364 : vector<4x8x8xf32> to vector<4x8x8xbf16>
    %366 = vector.shape_cast %361 : vector<8x32xf32> to vector<8x4x8xf32>
    %367 = tpu.transpose %366, [1, 0, 2] : vector<8x4x8xf32> -> vector<4x8x8xf32>
    %368 = arith.truncf %367 : vector<4x8x8xf32> to vector<4x8x8xbf16>
    %369 = vector.shape_cast %362 : vector<8x32xf32> to vector<8x4x8xf32>
    %370 = tpu.transpose %369, [1, 0, 2] : vector<8x4x8xf32> -> vector<4x8x8xf32>
    %371 = arith.truncf %370 : vector<4x8x8xf32> to vector<4x8x8xbf16>
    "tpu.trace_start"() <{level = 10 : i32, message = "hqd,hkd->hqk"}> : () -> ()
    %cst_166 = arith.constant dense<0.000000e+00> : vector<4x8x8xf32>
    %372 = tpu.matmul %365, %368, %cst_166 {dimension_numbers = #tpu.dot_dimension_numbers<[2], [2], [1], [1], [0, 0, 0, 1, 1, 1], [0], [0]>} : vector<4x8x8xbf16>, vector<4x8x8xbf16>, vector<4x8x8xf32> -> vector<4x8x8xf32>
    "tpu.trace_stop"() : () -> ()
    %cst_167 = arith.constant 0.353553385 : f32
    %373 = vector.broadcast %cst_167 : f32 to vector<4x8x8xf32>
    %374 = arith.mulf %372, %373 : vector<4x8x8xf32>
    %cst_168 = arith.constant dense<0xFF800000> : vector<4x8xf32>
    %375 = vector.multi_reduction <maximumf>, %374, %cst_168 [2] : vector<4x8x8xf32> to vector<4x8xf32>
    %376 = vector.shape_cast %375 : vector<4x8xf32> to vector<4x8x1xf32>
    %377 = vector.broadcast %376 : vector<4x8x1xf32> to vector<4x8x8xf32>
    %378 = arith.subf %374, %377 : vector<4x8x8xf32>
    %379 = math.exp %378 : vector<4x8x8xf32>
    %cst_169 = arith.constant dense<0.000000e+00> : vector<4x8xf32>
    %380 = vector.multi_reduction <add>, %379, %cst_169 [2] : vector<4x8x8xf32> to vector<4x8xf32>
    %381 = vector.shape_cast %380 : vector<4x8xf32> to vector<4x8x1xf32>
    %382 = tpu.reciprocal %381 {approx = true} : vector<4x8x1xf32> -> vector<4x8x1xf32>
    %383 = vector.broadcast %382 : vector<4x8x1xf32> to vector<4x8x8xf32>
    %384 = arith.mulf %379, %383 : vector<4x8x8xf32>
    %385 = arith.truncf %384 : vector<4x8x8xf32> to vector<4x8x8xbf16>
    "tpu.trace_start"() <{level = 10 : i32, message = "hqk,hkd->hqd"}> : () -> ()
    %cst_170 = arith.constant dense<0.000000e+00> : vector<4x8x8xf32>
    %386 = tpu.matmul %385, %371, %cst_170 {dimension_numbers = #tpu.dot_dimension_numbers<[2], [1], [1], [2], [0, 0, 0, 1, 1, 2], [0], [0]>} : vector<4x8x8xbf16>, vector<4x8x8xbf16>, vector<4x8x8xf32> -> vector<4x8x8xf32>
    "tpu.trace_stop"() : () -> ()
    %387 = tpu.transpose %386, [1, 0, 2] : vector<4x8x8xf32> -> vector<8x4x8xf32>
    %388 = vector.shape_cast %387 : vector<8x4x8xf32> to vector<8x32xf32>
    %c1_171 = arith.constant 1 : index
    %c0_172 = arith.constant 0 : index
    %c0_173 = arith.constant 0 : index
    %389 = vector.load %arg16[%c1_171, %c0_172, %c0_173] : memref<2x32x32xbf16, #tpu.memory_space<vmem>>, vector<1x32x32xbf16>
    %390 = vector.shape_cast %389 : vector<1x32x32xbf16> to vector<32x32xbf16>
    %391 = arith.truncf %388 : vector<8x32xf32> to vector<8x32xbf16>
    %cst_174 = arith.constant dense<0.000000e+00> : vector<8x32xf32>
    %392 = tpu.matmul %391, %390, %cst_174 {dimension_numbers = #tpu.dot_dimension_numbers<[1], [0], [0], [1], [0, 0, 1, 1], [], []>} : vector<8x32xbf16>, vector<32x32xbf16>, vector<8x32xf32> -> vector<8x32xf32>
    %c1_175 = arith.constant 1 : index
    %c0_176 = arith.constant 0 : index
    %c0_177 = arith.constant 0 : index
    %393 = vector.load %arg17[%c1_175, %c0_176, %c0_177] : memref<2x1x32xf32, #tpu.memory_space<vmem>>, vector<1x1x32xf32>
    %394 = vector.shape_cast %393 : vector<1x1x32xf32> to vector<1x32xf32>
    %395 = vector.broadcast %394 : vector<1x32xf32> to vector<8x32xf32>
    %396 = arith.addf %392, %395 : vector<8x32xf32>
    %397 = arith.addf %344, %396 : vector<8x32xf32>
    %c1_178 = arith.constant 1 : index
    %c0_179 = arith.constant 0 : index
    %c0_180 = arith.constant 0 : index
    %398 = vector.load %arg18[%c1_178, %c0_179, %c0_180] : memref<2x1x32xf32, #tpu.memory_space<vmem>>, vector<1x1x32xf32>
    %399 = vector.shape_cast %398 : vector<1x1x32xf32> to vector<1x32xf32>
    %c1_181 = arith.constant 1 : index
    %c0_182 = arith.constant 0 : index
    %c0_183 = arith.constant 0 : index
    %400 = vector.load %arg19[%c1_181, %c0_182, %c0_183] : memref<2x1x32xf32, #tpu.memory_space<vmem>>, vector<1x1x32xf32>
    %401 = vector.shape_cast %400 : vector<1x1x32xf32> to vector<1x32xf32>
    %cst_184 = arith.constant dense<0.000000e+00> : vector<8xf32>
    %402 = vector.multi_reduction <add>, %397, %cst_184 [1] : vector<8x32xf32> to vector<8xf32>
    %403 = vector.shape_cast %402 : vector<8xf32> to vector<8x1xf32>
    %cst_185 = arith.constant 3.200000e+01 : f32
    %404 = vector.broadcast %cst_185 : f32 to vector<8x1xf32>
    %405 = arith.divf %403, %404 : vector<8x1xf32>
    %406 = vector.broadcast %405 : vector<8x1xf32> to vector<8x32xf32>
    %407 = arith.subf %397, %406 : vector<8x32xf32>
    %408 = arith.mulf %407, %407 : vector<8x32xf32>
    %cst_186 = arith.constant dense<0.000000e+00> : vector<8xf32>
    %409 = vector.multi_reduction <add>, %408, %cst_186 [1] : vector<8x32xf32> to vector<8xf32>
    %410 = vector.shape_cast %409 : vector<8xf32> to vector<8x1xf32>
    %cst_187 = arith.constant 3.200000e+01 : f32
    %411 = vector.broadcast %cst_187 : f32 to vector<8x1xf32>
    %412 = arith.divf %410, %411 : vector<8x1xf32>
    %413 = vector.broadcast %405 : vector<8x1xf32> to vector<8x32xf32>
    %414 = arith.subf %397, %413 : vector<8x32xf32>
    %cst_188 = arith.constant 9.99999974E-6 : f32
    %415 = vector.broadcast %cst_188 : f32 to vector<8x1xf32>
    %416 = arith.addf %412, %415 : vector<8x1xf32>
    %417 = math.rsqrt %416 : vector<8x1xf32>
    %418 = vector.broadcast %417 : vector<8x1xf32> to vector<8x32xf32>
    %419 = arith.mulf %414, %418 : vector<8x32xf32>
    %420 = vector.broadcast %399 : vector<1x32xf32> to vector<8x32xf32>
    %421 = arith.mulf %419, %420 : vector<8x32xf32>
    %422 = vector.broadcast %401 : vector<1x32xf32> to vector<8x32xf32>
    %423 = arith.addf %421, %422 : vector<8x32xf32>
    %c1_189 = arith.constant 1 : index
    %c0_190 = arith.constant 0 : index
    %c0_191 = arith.constant 0 : index
    %424 = vector.load %arg20[%c1_189, %c0_190, %c0_191] : memref<2x32x64xbf16, #tpu.memory_space<vmem>>, vector<1x32x64xbf16>
    %425 = vector.shape_cast %424 : vector<1x32x64xbf16> to vector<32x64xbf16>
    %426 = arith.truncf %423 : vector<8x32xf32> to vector<8x32xbf16>
    %cst_192 = arith.constant dense<0.000000e+00> : vector<8x64xf32>
    %427 = tpu.matmul %426, %425, %cst_192 {dimension_numbers = #tpu.dot_dimension_numbers<[1], [0], [0], [1], [0, 0, 1, 1], [], []>} : vector<8x32xbf16>, vector<32x64xbf16>, vector<8x64xf32> -> vector<8x64xf32>
    %c1_193 = arith.constant 1 : index
    %c0_194 = arith.constant 0 : index
    %c0_195 = arith.constant 0 : index
    %428 = vector.load %arg21[%c1_193, %c0_194, %c0_195] : memref<2x1x64xf32, #tpu.memory_space<vmem>>, vector<1x1x64xf32>
    %429 = vector.shape_cast %428 : vector<1x1x64xf32> to vector<1x64xf32>
    %430 = vector.broadcast %429 : vector<1x64xf32> to vector<8x64xf32>
    %431 = arith.addf %427, %430 : vector<8x64xf32>
    %cst_196 = arith.constant 5.000000e-01 : f32
    %432 = vector.broadcast %cst_196 : f32 to vector<8x64xf32>
    %433 = arith.mulf %432, %431 : vector<8x64xf32>
    %cst_197 = arith.constant 0.707106769 : f32
    %434 = vector.broadcast %cst_197 : f32 to vector<8x64xf32>
    %435 = arith.mulf %431, %434 : vector<8x64xf32>
    %436 = math.absf %435 : vector<8x64xf32>
    %cst_198 = arith.constant 0.327591091 : f32
    %437 = vector.broadcast %cst_198 : f32 to vector<8x64xf32>
    %438 = arith.mulf %437, %436 : vector<8x64xf32>
    %cst_199 = arith.constant 1.000000e+00 : f32
    %439 = vector.broadcast %cst_199 : f32 to vector<8x64xf32>
    %440 = arith.addf %439, %438 : vector<8x64xf32>
    %441 = tpu.reciprocal %440 {approx = true} : vector<8x64xf32> -> vector<8x64xf32>
    %cst_200 = arith.constant 1.06140542 : f32
    %442 = vector.broadcast %cst_200 : f32 to vector<8x64xf32>
    %443 = arith.mulf %442, %441 : vector<8x64xf32>
    %cst_201 = arith.constant -1.45315206 : f32
    %444 = vector.broadcast %cst_201 : f32 to vector<8x64xf32>
    %445 = arith.addf %443, %444 : vector<8x64xf32>
    %446 = arith.mulf %445, %441 : vector<8x64xf32>
    %cst_202 = arith.constant 1.42141378 : f32
    %447 = vector.broadcast %cst_202 : f32 to vector<8x64xf32>
    %448 = arith.addf %446, %447 : vector<8x64xf32>
    %449 = arith.mulf %448, %441 : vector<8x64xf32>
    %cst_203 = arith.constant -0.284496725 : f32
    %450 = vector.broadcast %cst_203 : f32 to vector<8x64xf32>
    %451 = arith.addf %449, %450 : vector<8x64xf32>
    %452 = arith.mulf %451, %441 : vector<8x64xf32>
    %cst_204 = arith.constant 0.254829586 : f32
    %453 = vector.broadcast %cst_204 : f32 to vector<8x64xf32>
    %454 = arith.addf %452, %453 : vector<8x64xf32>
    %455 = arith.mulf %454, %441 : vector<8x64xf32>
    %cst_205 = arith.constant 0.000000e+00 : f32
    %456 = vector.broadcast %cst_205 : f32 to vector<8x64xf32>
    %457 = arith.subf %456, %436 : vector<8x64xf32>
    %458 = arith.mulf %457, %436 : vector<8x64xf32>
    %459 = math.exp %458 : vector<8x64xf32>
    %460 = arith.mulf %455, %459 : vector<8x64xf32>
    %cst_206 = arith.constant 1.000000e+00 : f32
    %461 = vector.broadcast %cst_206 : f32 to vector<8x64xf32>
    %462 = arith.subf %461, %460 : vector<8x64xf32>
    %cst_207 = arith.constant 0.000000e+00 : f32
    %463 = vector.broadcast %cst_207 : f32 to vector<8x64xf32>
    %464 = arith.cmpf oge, %435, %463 : vector<8x64xf32>
    %cst_208 = arith.constant 0.000000e+00 : f32
    %465 = vector.broadcast %cst_208 : f32 to vector<8x64xf32>
    %466 = arith.subf %465, %462 : vector<8x64xf32>
    %467 = arith.select %464, %462, %466 : vector<8x64xi1>, vector<8x64xf32>
    %cst_209 = arith.constant 1.000000e+00 : f32
    %468 = vector.broadcast %cst_209 : f32 to vector<8x64xf32>
    %469 = arith.addf %468, %467 : vector<8x64xf32>
    %470 = arith.mulf %433, %469 : vector<8x64xf32>
    %c1_210 = arith.constant 1 : index
    %c0_211 = arith.constant 0 : index
    %c0_212 = arith.constant 0 : index
    %471 = vector.load %arg22[%c1_210, %c0_211, %c0_212] : memref<2x64x32xbf16, #tpu.memory_space<vmem>>, vector<1x64x32xbf16>
    %472 = vector.shape_cast %471 : vector<1x64x32xbf16> to vector<64x32xbf16>
    %473 = arith.truncf %470 : vector<8x64xf32> to vector<8x64xbf16>
    %cst_213 = arith.constant dense<0.000000e+00> : vector<8x32xf32>
    %474 = tpu.matmul %473, %472, %cst_213 {dimension_numbers = #tpu.dot_dimension_numbers<[1], [0], [0], [1], [0, 0, 1, 1], [], []>} : vector<8x64xbf16>, vector<64x32xbf16>, vector<8x32xf32> -> vector<8x32xf32>
    %c1_214 = arith.constant 1 : index
    %c0_215 = arith.constant 0 : index
    %c0_216 = arith.constant 0 : index
    %475 = vector.load %arg23[%c1_214, %c0_215, %c0_216] : memref<2x1x32xf32, #tpu.memory_space<vmem>>, vector<1x1x32xf32>
    %476 = vector.shape_cast %475 : vector<1x1x32xf32> to vector<1x32xf32>
    %477 = vector.broadcast %476 : vector<1x32xf32> to vector<8x32xf32>
    %478 = arith.addf %474, %477 : vector<8x32xf32>
    %479 = arith.addf %423, %478 : vector<8x32xf32>
    %c1_217 = arith.constant 1 : index
    %c0_218 = arith.constant 0 : index
    %c0_219 = arith.constant 0 : index
    %480 = vector.load %arg24[%c1_217, %c0_218, %c0_219] : memref<2x1x32xf32, #tpu.memory_space<vmem>>, vector<1x1x32xf32>
    %481 = vector.shape_cast %480 : vector<1x1x32xf32> to vector<1x32xf32>
    %c1_220 = arith.constant 1 : index
    %c0_221 = arith.constant 0 : index
    %c0_222 = arith.constant 0 : index
    %482 = vector.load %arg25[%c1_220, %c0_221, %c0_222] : memref<2x1x32xf32, #tpu.memory_space<vmem>>, vector<1x1x32xf32>
    %483 = vector.shape_cast %482 : vector<1x1x32xf32> to vector<1x32xf32>
    %cst_223 = arith.constant dense<0.000000e+00> : vector<8xf32>
    %484 = vector.multi_reduction <add>, %479, %cst_223 [1] : vector<8x32xf32> to vector<8xf32>
    %485 = vector.shape_cast %484 : vector<8xf32> to vector<8x1xf32>
    %cst_224 = arith.constant 3.200000e+01 : f32
    %486 = vector.broadcast %cst_224 : f32 to vector<8x1xf32>
    %487 = arith.divf %485, %486 : vector<8x1xf32>
    %488 = vector.broadcast %487 : vector<8x1xf32> to vector<8x32xf32>
    %489 = arith.subf %479, %488 : vector<8x32xf32>
    %490 = arith.mulf %489, %489 : vector<8x32xf32>
    %cst_225 = arith.constant dense<0.000000e+00> : vector<8xf32>
    %491 = vector.multi_reduction <add>, %490, %cst_225 [1] : vector<8x32xf32> to vector<8xf32>
    %492 = vector.shape_cast %491 : vector<8xf32> to vector<8x1xf32>
    %cst_226 = arith.constant 3.200000e+01 : f32
    %493 = vector.broadcast %cst_226 : f32 to vector<8x1xf32>
    %494 = arith.divf %492, %493 : vector<8x1xf32>
    %495 = vector.broadcast %487 : vector<8x1xf32> to vector<8x32xf32>
    %496 = arith.subf %479, %495 : vector<8x32xf32>
    %cst_227 = arith.constant 9.99999974E-6 : f32
    %497 = vector.broadcast %cst_227 : f32 to vector<8x1xf32>
    %498 = arith.addf %494, %497 : vector<8x1xf32>
    %499 = math.rsqrt %498 : vector<8x1xf32>
    %500 = vector.broadcast %499 : vector<8x1xf32> to vector<8x32xf32>
    %501 = arith.mulf %496, %500 : vector<8x32xf32>
    %502 = vector.broadcast %481 : vector<1x32xf32> to vector<8x32xf32>
    %503 = arith.mulf %501, %502 : vector<8x32xf32>
    %504 = vector.broadcast %483 : vector<1x32xf32> to vector<8x32xf32>
    %505 = arith.addf %503, %504 : vector<8x32xf32>
    %c0_228 = arith.constant 0 : index
    %c0_229 = arith.constant 0 : index
    %c0_230 = arith.constant 0 : index
    %506 = vector.load %arg29[%c0_228, %c0_229, %c0_230] : memref<1x8x32xf32, #tpu.memory_space<vmem>>, vector<1x8x32xf32>
    %507 = vector.shape_cast %506 : vector<1x8x32xf32> to vector<8x32xf32>
    %508 = vector.shape_cast %505 : vector<8x32xf32> to vector<1x8x32xf32>
    tpu.vector_store %arg29[%c0_228, %c0_229, %c0_230], %508 {strides = array<i32>} : memref<1x8x32xf32, #tpu.memory_space<vmem>>, vector<1x8x32xf32>,
    %509 = arith.truncf %505 : vector<8x32xf32> to vector<8x32xbf16>
    %c0_231 = arith.constant 0 : index
    %c0_232 = arith.constant 0 : index
    %510 = vector.load %arg26[%c0_231, %c0_232] : memref<128x32xf32, #tpu.memory_space<vmem>>, vector<128x32xf32>
    %511 = arith.truncf %510 : vector<128x32xf32> to vector<128x32xbf16>
    %cst_233 = arith.constant dense<0.000000e+00> : vector<8x128xf32>
    %512 = tpu.matmul %509, %511, %cst_233 {dimension_numbers = #tpu.dot_dimension_numbers<[1], [1], [0], [0], [0, 0, 1, 0], [], []>} : vector<8x32xbf16>, vector<128x32xbf16>, vector<8x128xf32> -> vector<8x128xf32>
    %c0_234 = arith.constant 0 : index
    %c0_235 = arith.constant 0 : index
    %513 = vector.load %arg27[%c0_234, %c0_235] : memref<1x128xf32, #tpu.memory_space<vmem>>, vector<1x128xf32>
    %514 = vector.broadcast %513 : vector<1x128xf32> to vector<8x128xf32>
    %515 = arith.addf %512, %514 : vector<8x128xf32>
    %c0_236 = arith.constant 0 : index
    %c0_237 = arith.constant 0 : index
    %c0_238 = arith.constant 0 : index
    %516 = vector.load %arg28[%c0_236, %c0_237, %c0_238] : memref<1x8x128xf32, #tpu.memory_space<vmem>>, vector<1x8x128xf32>
    %517 = vector.shape_cast %516 : vector<1x8x128xf32> to vector<8x128xf32>
    %518 = vector.shape_cast %515 : vector<8x128xf32> to vector<1x8x128xf32>
    tpu.vector_store %arg28[%c0_236, %c0_237, %c0_238], %518 {strides = array<i32>} : memref<1x8x128xf32, #tpu.memory_space<vmem>>, vector<1x8x128xf32>,
    return
  }
  func.func @transform_0(%arg0: i32) -> (i32, i32, i32) {
    %c0_i32 = arith.constant 0 : i32
    %c0_i32_0 = arith.constant 0 : i32
    %c0_i32_1 = arith.constant 0 : i32
    return %arg0, %c0_i32, %c0_i32_0 : i32, i32, i32
  }
  func.func @transform_1(%arg0: i32) -> (i32, i32) {
    %c0_i32 = arith.constant 0 : i32
    %c0_i32_0 = arith.constant 0 : i32
    %c0_i32_1 = arith.constant 0 : i32
    return %c0_i32, %c0_i32_0 : i32, i32
  }
  func.func @transform_2(%arg0: i32) -> (i32, i32) {
    %c0_i32 = arith.constant 0 : i32
    %c0_i32_0 = arith.constant 0 : i32
    %c0_i32_1 = arith.constant 0 : i32
    return %c0_i32, %c0_i32_0 : i32, i32
  }
  func.func @transform_3(%arg0: i32) -> (i32, i32) {
    %c0_i32 = arith.constant 0 : i32
    %c0_i32_0 = arith.constant 0 : i32
    %c0_i32_1 = arith.constant 0 : i32
    return %c0_i32, %c0_i32_0 : i32, i32
  }
  func.func @transform_4(%arg0: i32) -> (i32, i32, i32) {
    %c0_i32 = arith.constant 0 : i32
    %c0_i32_0 = arith.constant 0 : i32
    %c0_i32_1 = arith.constant 0 : i32
    return %arg0, %c0_i32, %c0_i32_0 : i32, i32, i32
  }
  func.func @transform_5(%arg0: i32) -> (i32, i32, i32) {
    %c0_i32 = arith.constant 0 : i32
    %c0_i32_0 = arith.constant 0 : i32
    %c0_i32_1 = arith.constant 0 : i32
    %c0_i32_2 = arith.constant 0 : i32
    return %c0_i32, %c0_i32_0, %c0_i32_1 : i32, i32, i32
  }
  func.func @transform_6(%arg0: i32) -> (i32, i32, i32) {
    %c0_i32 = arith.constant 0 : i32
    %c0_i32_0 = arith.constant 0 : i32
    %c0_i32_1 = arith.constant 0 : i32
    %c0_i32_2 = arith.constant 0 : i32
    return %c0_i32, %c0_i32_0, %c0_i32_1 : i32, i32, i32
  }
  func.func @transform_7(%arg0: i32) -> (i32, i32, i32) {
    %c0_i32 = arith.constant 0 : i32
    %c0_i32_0 = arith.constant 0 : i32
    %c0_i32_1 = arith.constant 0 : i32
    %c0_i32_2 = arith.constant 0 : i32
    return %c0_i32, %c0_i32_0, %c0_i32_1 : i32, i32, i32
  }
  func.func @transform_8(%arg0: i32) -> (i32, i32, i32) {
    %c0_i32 = arith.constant 0 : i32
    %c0_i32_0 = arith.constant 0 : i32
    %c0_i32_1 = arith.constant 0 : i32
    %c0_i32_2 = arith.constant 0 : i32
    return %c0_i32, %c0_i32_0, %c0_i32_1 : i32, i32, i32
  }
  func.func @transform_9(%arg0: i32) -> (i32, i32, i32) {
    %c0_i32 = arith.constant 0 : i32
    %c0_i32_0 = arith.constant 0 : i32
    %c0_i32_1 = arith.constant 0 : i32
    %c0_i32_2 = arith.constant 0 : i32
    return %c0_i32, %c0_i32_0, %c0_i32_1 : i32, i32, i32
  }
  func.func @transform_10(%arg0: i32) -> (i32, i32, i32) {
    %c0_i32 = arith.constant 0 : i32
    %c0_i32_0 = arith.constant 0 : i32
    %c0_i32_1 = arith.constant 0 : i32
    %c0_i32_2 = arith.constant 0 : i32
    return %c0_i32, %c0_i32_0, %c0_i32_1 : i32, i32, i32
  }
  func.func @transform_11(%arg0: i32) -> (i32, i32, i32) {
    %c0_i32 = arith.constant 0 : i32
    %c0_i32_0 = arith.constant 0 : i32
    %c0_i32_1 = arith.constant 0 : i32
    %c0_i32_2 = arith.constant 0 : i32
    return %c0_i32, %c0_i32_0, %c0_i32_1 : i32, i32, i32
  }
  func.func @transform_12(%arg0: i32) -> (i32, i32, i32) {
    %c0_i32 = arith.constant 0 : i32
    %c0_i32_0 = arith.constant 0 : i32
    %c0_i32_1 = arith.constant 0 : i32
    %c0_i32_2 = arith.constant 0 : i32
    return %c0_i32, %c0_i32_0, %c0_i32_1 : i32, i32, i32
  }
  func.func @transform_13(%arg0: i32) -> (i32, i32, i32) {
    %c0_i32 = arith.constant 0 : i32
    %c0_i32_0 = arith.constant 0 : i32
    %c0_i32_1 = arith.constant 0 : i32
    %c0_i32_2 = arith.constant 0 : i32
    return %c0_i32, %c0_i32_0, %c0_i32_1 : i32, i32, i32
  }
  func.func @transform_14(%arg0: i32) -> (i32, i32, i32) {
    %c0_i32 = arith.constant 0 : i32
    %c0_i32_0 = arith.constant 0 : i32
    %c0_i32_1 = arith.constant 0 : i32
    %c0_i32_2 = arith.constant 0 : i32
    return %c0_i32, %c0_i32_0, %c0_i32_1 : i32, i32, i32
  }
  func.func @transform_15(%arg0: i32) -> (i32, i32, i32) {
    %c0_i32 = arith.constant 0 : i32
    %c0_i32_0 = arith.constant 0 : i32
    %c0_i32_1 = arith.constant 0 : i32
    %c0_i32_2 = arith.constant 0 : i32
    return %c0_i32, %c0_i32_0, %c0_i32_1 : i32, i32, i32
  }
  func.func @transform_16(%arg0: i32) -> (i32, i32, i32) {
    %c0_i32 = arith.constant 0 : i32
    %c0_i32_0 = arith.constant 0 : i32
    %c0_i32_1 = arith.constant 0 : i32
    %c0_i32_2 = arith.constant 0 : i32
    return %c0_i32, %c0_i32_0, %c0_i32_1 : i32, i32, i32
  }
  func.func @transform_17(%arg0: i32) -> (i32, i32, i32) {
    %c0_i32 = arith.constant 0 : i32
    %c0_i32_0 = arith.constant 0 : i32
    %c0_i32_1 = arith.constant 0 : i32
    %c0_i32_2 = arith.constant 0 : i32
    return %c0_i32, %c0_i32_0, %c0_i32_1 : i32, i32, i32
  }
  func.func @transform_18(%arg0: i32) -> (i32, i32, i32) {
    %c0_i32 = arith.constant 0 : i32
    %c0_i32_0 = arith.constant 0 : i32
    %c0_i32_1 = arith.constant 0 : i32
    %c0_i32_2 = arith.constant 0 : i32
    return %c0_i32, %c0_i32_0, %c0_i32_1 : i32, i32, i32
  }
  func.func @transform_19(%arg0: i32) -> (i32, i32, i32) {
    %c0_i32 = arith.constant 0 : i32
    %c0_i32_0 = arith.constant 0 : i32
    %c0_i32_1 = arith.constant 0 : i32
    %c0_i32_2 = arith.constant 0 : i32
    return %c0_i32, %c0_i32_0, %c0_i32_1 : i32, i32, i32
  }
  func.func @transform_20(%arg0: i32) -> (i32, i32, i32) {
    %c0_i32 = arith.constant 0 : i32
    %c0_i32_0 = arith.constant 0 : i32
    %c0_i32_1 = arith.constant 0 : i32
    %c0_i32_2 = arith.constant 0 : i32
    return %c0_i32, %c0_i32_0, %c0_i32_1 : i32, i32, i32
  }
  func.func @transform_21(%arg0: i32) -> (i32, i32, i32) {
    %c0_i32 = arith.constant 0 : i32
    %c0_i32_0 = arith.constant 0 : i32
    %c0_i32_1 = arith.constant 0 : i32
    %c0_i32_2 = arith.constant 0 : i32
    return %c0_i32, %c0_i32_0, %c0_i32_1 : i32, i32, i32
  }
  func.func @transform_22(%arg0: i32) -> (i32, i32, i32) {
    %c0_i32 = arith.constant 0 : i32
    %c0_i32_0 = arith.constant 0 : i32
    %c0_i32_1 = arith.constant 0 : i32
    %c0_i32_2 = arith.constant 0 : i32
    return %c0_i32, %c0_i32_0, %c0_i32_1 : i32, i32, i32
  }
  func.func @transform_23(%arg0: i32) -> (i32, i32, i32) {
    %c0_i32 = arith.constant 0 : i32
    %c0_i32_0 = arith.constant 0 : i32
    %c0_i32_1 = arith.constant 0 : i32
    %c0_i32_2 = arith.constant 0 : i32
    return %c0_i32, %c0_i32_0, %c0_i32_1 : i32, i32, i32
  }
  func.func @transform_24(%arg0: i32) -> (i32, i32, i32) {
    %c0_i32 = arith.constant 0 : i32
    %c0_i32_0 = arith.constant 0 : i32
    %c0_i32_1 = arith.constant 0 : i32
    %c0_i32_2 = arith.constant 0 : i32
    return %c0_i32, %c0_i32_0, %c0_i32_1 : i32, i32, i32
  }
  func.func @transform_25(%arg0: i32) -> (i32, i32) {
    %c0_i32 = arith.constant 0 : i32
    %c0_i32_0 = arith.constant 0 : i32
    %c0_i32_1 = arith.constant 0 : i32
    return %c0_i32, %c0_i32_0 : i32, i32
  }
  func.func @transform_26(%arg0: i32) -> (i32, i32) {
    %c0_i32 = arith.constant 0 : i32
    %c0_i32_0 = arith.constant 0 : i32
    %c0_i32_1 = arith.constant 0 : i32
    return %c0_i32, %c0_i32_0 : i32, i32
  }
  func.func @transform_27(%arg0: i32) -> (i32, i32, i32) {
    %c0_i32 = arith.constant 0 : i32
    %c0_i32_0 = arith.constant 0 : i32
    %c0_i32_1 = arith.constant 0 : i32
    return %arg0, %c0_i32, %c0_i32_0 : i32, i32, i32
  }
  func.func @transform_28(%arg0: i32) -> (i32, i32, i32) {
    %c0_i32 = arith.constant 0 : i32
    %c0_i32_0 = arith.constant 0 : i32
    %c0_i32_1 = arith.constant 0 : i32
    return %arg0, %c0_i32, %c0_i32_0 : i32, i32, i32
  }
}

</mosaic_0001>

<bundles_post_ra>
// kernel: bart_forward.2
= control target key start
LH: loop header
LB: loop body
LE: loop exit
PB: predicated region body
PF: predicated region fallthrough
CT: control target
= control target key end

     0   :  { %s2949_s21 = smov 0   ;;  %s3577_s0 = inlined_call_operand.vmem [shape: f32[2,8,32], index: 0, kind: input, shape index: {}]   ;;  %s3578_s1 = inlined_call_operand.vmem [shape: f32[8,32], index: 1, kind: input, shape index: {}]   ;;  %s3579_s2 = inlined_call_operand.vmem [shape: f32[1,32], index: 2, kind: input, shape index: {}]   ;;  %s3580_s3 = inlined_call_operand.vmem [shape: f32[1,32], index: 3, kind: input, shape index: {}]   ;;  %s3581_s4 = inlined_call_operand.vmem [shape: bf16[2,32,96], index: 4, kind: input, shape index: {}]   ;;  %s3582_s5 = inlined_call_operand.vmem [shape: f32[2,1,96], index: 5, kind: input, shape index: {}]   ;;  %s3583_s6 = inlined_call_operand.vmem [shape: bf16[2,32,32], index: 6, kind: input, shape index: {}]   ;;  %s3584_s7 = inlined_call_operand.vmem [shape: f32[2,1,32], index: 7, kind: input, shape index: {}]   ;;  %s3585_s8 = inlined_call_operand.vmem [shape: f32[2,1,32], index: 8, kind: input, shape index: {}]   ;;  %s3586_s9 = inlined_call_operand.vmem [shape: f32[2,1,32], index: 9, kind: input, shape index: {}]   ;;  %s3587_s10 = inlined_call_operand.vmem [shape: bf16[2,32,64], index: 10, kind: input, shape index: {}]   ;;  %s3588_s11 = inlined_call_operand.vmem [shape: f32[2,1,64], index: 11, kind: input, shape index: {}]   ;;  %s3589_s12 = inlined_call_operand.vmem [shape: bf16[2,64,32], index: 12, kind: input, shape index: {}]   ;;  %s3590_s13 = inlined_call_operand.vmem [shape: f32[2,1,32], index: 13, kind: input, shape index: {}]   ;;  %s3591_s14 = inlined_call_operand.vmem [shape: f32[2,1,32], index: 14, kind: input, shape index: {}]   ;;  %s3592_s15 = inlined_call_operand.vmem [shape: f32[2,1,32], index: 15, kind: input, shape index: {}]   ;;  %s3593_s16 = inlined_call_operand.vmem [shape: f32[2,8,32], index: 16, kind: output, shape index: {}]  }
   0x1   :  { %3597 = sst [smem:[#allocation2_spill]] %s3577_s0 }
   0x2 LB: > { %s2555_s22 = sadd.s32 4294967295, %s2851_s21   ;;  %p2559_p0 = scmp.ge.s32.totalorder %s2851_s21, 1  ;;  %s2851_s21 = sphi %s2949_s21, %s26_s21  }
   0x3   : > { %p461_p1 = scmp.lt.s32.totalorder %s2851_s21, 3 }
   0x5   : > { %p462_p2 = pnand %p2559_p0, %p461_p1 }
   0x6   : > { %p509_p3 = scmp.lt.s32.totalorder (!%p462_p2), %s2555_s22, 1  ;;  %s3598_s28 = sld [smem:[#allocation2_spill]] (!%p462_p2) }
   0x7   : > { %465 = sbr.rel (%p462_p2) target bundleno = 4381 (0x111d), region = 84  ;;  %s2856_s30 = smov (!%p462_p2), 112  }
   0x8   : > { %s2857_s0 = smov (!%p462_p2), 96   ;;  %s2860_s17 = smov (!%p462_p2), 64  }
   0x9   : > { %s3596_s18 = smov (!%p462_p2), 8   ;;  %s2862_s19 = smov (!%p462_p2), 16  }
   0xa   : > { %s3595_s20 = smov (!%p462_p2), 24  }
   0xc   : > { %s3603_s22 = smov (!%p509_p3, %s2555_s22), 1  ;;  %v519_v0 = vld [vmem:[%s3578_s1] sm:$0xff]  ;;  %vm523_vm0 = vcmask 261120   ;;  %v2853_v4 = vmov 32.0   ;;  %v2697_v16 = vld [vmem:[%s3581_s4 + $0x8] sm:$0xff]  ;;  %vm609_vm5 = vcmask 1047556  }
   0xd   : > { %s3594_s23 = sshll.u32 %s3603_s22, 3  ;;  %2793 = vrcp.f32 %v2853_v4  ;;  %591 = vmatpush.bf16.msra.mxu0 %v2697_v16  ;;  %v2696_v17 = vld [vmem:[%s3581_s4] sm:$0xff]  ;;  %v2858_v44 = vmov 1983009808   ;;  %v2859_v58 = vmov 1934713408  }
   0xe   : > { %s512_s29 = scalar_lea.vmem %s3598_s28, %s3594_s23  ;;  %v2775_v27 = vld [vmem:[%s3579_s2] ss:$0 sm:$0xff]  ;;  %s2854_s28 = smov 104   ;;  %v614_v45 = vunpack.c.l.s4 %v2858_v44  ;;  %v638_v59 = vunpack.c.l.s4 %v2859_v58  ;;  %vm975_vm6 = vcmask 64512   ;;  %vm1107_vm7 = vcmask 1043456  }
   0xf   : > { %v518_v1 = vld [vmem:[%s512_s29] sm:$0xff]  ;;  %s2855_s29 = smov 120   ;;  %vm1304_vm8 = vcmask 130048   ;;  %vm1306_vm9 = vcmask 195584   ;;  %vm1478_vm14 = vcmask 523264  }
  0x10   : > { %v520_v2 = vadd.f32 %v519_v0, %v518_v1  ;;  %v2776_v30 = vld [vmem:[%s3580_s3] ss:$0 sm:$0xff]  ;;  %v3007_v49 = vunpack.c.0.s8 %v614_v45  ;;  %v3017_v0 = vunpack.c.0.s8 %v638_v59 }
  0x11   : > { %592 = vmatpush.bf16.msra.mxu0 %v2696_v17  ;;  %v2777_v34 = vld [vmem:[%s3582_s5] ss:$0 sm:$0xff] }
  0x12   : > { %v524_v3 = vsel %vm523_vm0, %v520_v2, 0.0 }
  0x13   : > { %525 = vadd.xlane.f32.xlu0 %v524_v3  ;;  %v2794_v5 = vpop.eup %2793 }
  0x14   : > { %v528_v6 = vmul.f32 32.0, %v2794_v5  ;;  %vm532_vm1 = vweird.f32 %v2794_v5 }
  0x16   : > { %v529_v7 = vsub.f32 1.0, %v528_v6 }
  0x18   : > { %v530_v8 = vmul.f32 %v2794_v5, %v529_v7 }
  0x1a   : > { %v531_v9 = vadd.f32 %v2794_v5, %v530_v8 }
  0x1c   : > { %v2969_v10 = vsel %vm532_vm1, %v2794_v5, %v531_v9 }
  0x86   : > { %v526_v11 = vpop.xlane.xlu0 %525 }
  0x87   : > { %v534_v12 = vmul.f32 %v2969_v10, %v526_v11 }
  0x89   : > { %v535_v13 = vsub.f32 %v520_v2, %v534_v12 }
  0x8b   : > { %v536_v14 = vmul.f32 %v535_v13, %v535_v13 }
  0x8d   : > { %v537_v15 = vsel %vm523_vm0, %v536_v14, 0.0 }
  0x8e   : > { %538 = vadd.xlane.f32.xlu0 %v537_v15 }
 0x101   : > { %v539_v18 = vpop.xlane.xlu0 %538 }
 0x102   : > { %v540_v19 = vmul.f32 %v539_v18, %v2969_v10 }
 0x104   : > { %v541_v20 = vadd.f32 1e-05, %v540_v19 }
 0x106   : > { %2795 = vrsqrt.f32 %v541_v20  ;;  %vm548_vm3 = vweird.f32 %v541_v20 }
 0x10c   : > { %v2796_v21 = vpop.eup %2795 }
 0x10d   : > { %v543_v22 = vmul.f32 %v2796_v21, %v541_v20  ;;  %vm549_vm2 = vweird.f32 %v2796_v21 }
 0x10e   : > { %vm550_vm4 = vmor %vm548_vm3, %vm549_vm2 }
 0x10f   : > { %v544_v23 = vmul.f32 %v2796_v21, %v543_v22 }
 0x111   : > { %v545_v24 = vmul.f32 0.5, %v544_v23 }
 0x113   : > { %v546_v25 = vsub.f32 1.5, %v545_v24 }
 0x115   : > { %v547_v26 = vmul.f32 %v2796_v21, %v546_v25 }
 0x117   : > { %v551_v28 = vsel %vm550_vm4, %v2796_v21, %v547_v26 }
 0x118   : > { %v552_v29 = vmul.f32 %v551_v28, %v535_v13 }
 0x11a   : > { %v556_v31 = vmul.f32 %v2775_v27, %v552_v29 }
 0x11c   : > { %v2986_v32 = vadd.f32 %v2776_v30, %v556_v31 }
 0x11e   : > { %v565_v33 = vpack.c.bf16 %v2986_v32, %v2986_v32 }
 0x120   : > { %2570 = vmatmul.msk.bf16.vlgmr.msra.gmra.mxu0 %vm523_vm0, %v565_v33 }
 0x19d   : > { %v594_v35 = vpop.f32.mrf.mxu0 }
 0x19e   : > { %v595_v36 = vadd.f32 %v2777_v34, %v594_v35 }
 0x1a0   : > { %605 = vrot.lane.b32.xlu2 %v595_v36, %s2854_s28  ;;  %599 = vrot.lane.b32.xlu1 %v595_v36, %s2855_s29  ;;  %v611_v46 = vrot.slane %v595_v36, 4 }
 0x1a5   : > { %v596_v37 = vpop.f32.mrf.mxu0 }
 0x1a8   : > { %602 = vrot.lane.b32.xlu1 %v595_v36, %s2856_s30 }
 0x1fa   : > { %v606_v40 = vpop.permute.xlu2 %605 }
 0x1fb   : > { %v621_v53 = vrot.slane %v606_v40, 4 }
 0x212   : > { %v600_v38 = vpop.permute.xlu1 %599 }
 0x213   : > { %v2997_v39 = vpack.i.bf16 %v600_v38, %v595_v36  ;;  %v623_v50 = vrot.slane %v600_v38, 4  ;;  %v622_v54 = vsel %vm609_vm5, %v621_v53, %v600_v38 }
 0x214   : > { %v628_v60 = vperm.slane %v622_v54, %v3007_v49 }
 0x215   : > { %2736 = vrot.lane.b32.xlu2 %v2997_v39, %s2857_s0  ;;  %v624_v55 = vsel %vm609_vm5, %v606_v40, %v623_v50 }
 0x216   : > { %v632_v61 = vperm.slane %v624_v55, %v3007_v49  ;;  %v633_v1 = vrot.slane %v628_v60, 4 }
 0x218   : > { %v645_v2 = vrot.slane %v632_v61, 4 }
 0x21a   : > { %v603_v41 = vpop.permute.xlu1 %602 }
 0x21b   : > { %v3001_v42 = vpack.i.bf16 %v606_v40, %v603_v41  ;;  %v608_v43 = vrot.slane %v603_v41, 4  ;;  %v612_v48 = vsel %vm609_vm5, %v603_v41, %v611_v46 }
 0x21c   : > { %v620_v52 = vperm.slane %v612_v48, %v3007_v49 }
 0x21d   : > { %2741 = vrot.lane.b32.xlu0 %v3001_v42, %s2857_s0  ;;  %v610_v47 = vsel %vm609_vm5, %v608_v43, %v595_v36 }
 0x21e   : > { %v616_v51 = vperm.slane %v610_v47, %v3007_v49  ;;  %v647_v57 = vrot.slane %v620_v52, 4  ;;  %v646_v7 = vsel %vm609_vm5, %v645_v2, %v620_v52 }
 0x21f   : > { %v652_v12 = vperm.slane %v646_v7, %v3017_v0 }
 0x220   : > { %v635_v56 = vrot.slane %v616_v51, 4  ;;  %v648_v63 = vsel %vm609_vm5, %v632_v61, %v647_v57  ;;  %v634_v6 = vsel %vm609_vm5, %v633_v1, %v616_v51 }
 0x221   : > { %v656_v4 = vperm.slane %v648_v63, %v3017_v0  ;;  %v640_v11 = vperm.slane %v634_v6, %v3017_v0  ;;  %v661_v21 = vrot.slane %v652_v12, 4 }
 0x222   : > { %v636_v62 = vsel %vm609_vm5, %v628_v60, %v635_v56 }
 0x223   : > { %v644_v3 = vperm.slane %v636_v62, %v3017_v0  ;;  %v663_v14 = vrot.slane %v656_v4, 4  ;;  %v657_v20 = vrot.slane %v640_v11, 4  ;;  %v662_v41 = vsel %vm609_vm5, 0.0, %v661_v21 }
 0x225   : > { %v659_v13 = vrot.slane %v644_v3, 4  ;;  %v664_v22 = vsel %vm609_vm5, 0.0, %v663_v14  ;;  %v676_v28 = vsel %vm609_vm5, %v663_v14, %v652_v12  ;;  %v658_v43 = vsel %vm609_vm5, 0.0, %v657_v20 }
 0x226   : > { %v681_v31 = vrot.slane %v664_v22, 4  ;;  %v680_v50 = vperm.slane %v676_v28, %v3007_v49 }
 0x227   : > { %v660_v23 = vsel %vm609_vm5, 0.0, %v659_v13  ;;  %v665_v44 = vsel %vm609_vm5, %v659_v13, %v640_v11 }
 0x228   : > { %v670_v35 = vrot.slane %v660_v23, 4  ;;  %v682_v53 = vsel %vm609_vm5, %v681_v31, %v662_v41  ;;  %v669_v56 = vperm.slane %v665_v44, %v3007_v49  ;;  %v701_v3 = vrot.slane %v680_v50, 4 }
 0x229   : > { %v686_v62 = vperm.slane %v682_v53, %v3007_v49 }
 0x22a   : > { %v671_v57 = vsel %vm609_vm5, %v670_v35, %v658_v43  ;;  %v689_v7 = vrot.slane %v669_v56, 4 }
 0x22b   : > { %v675_v6 = vperm.slane %v671_v57, %v3007_v49  ;;  %v702_v23 = vsel %vm609_vm5, %v686_v62, %v701_v3 }
 0x22d   : > { %v690_v22 = vsel %vm609_vm5, %v675_v6, %v689_v7 }
 0x26f   : > { %v2737_v5 = vpop.permute.xlu2 %2736 }
 0x270   : > { %v2739_v8 = vunpack.i.h.bf16 %v2737_v5  ;;  %v2738_v9 = vunpack.i.l.bf16 %v2737_v5 }
 0x272   : > { %v749_v16 = vrot.slane %v2739_v8, 4  ;;  %v737_v17 = vrot.slane %v2738_v9, 4 }
 0x28f   : > { %v2742_v15 = vpop.permute.xlu0 %2741 }
 0x290   : > { %v2744_v18 = vunpack.i.h.bf16 %v2742_v15  ;;  %v2743_v19 = vunpack.i.l.bf16 %v2742_v15 }
 0x292   : > { %v747_v24 = vrot.slane %v2744_v18, 4  ;;  %v750_v25 = vsel %vm609_vm5, %v2744_v18, %v749_v16  ;;  %v735_v26 = vrot.slane %v2743_v19, 4  ;;  %v738_v27 = vsel %vm609_vm5, %v2743_v19, %v737_v17 }
 0x293   : > { %v758_v29 = vperm.slane %v750_v25, %v3007_v49  ;;  %v746_v30 = vperm.slane %v738_v27, %v3007_v49  ;;  %v699_v16 = vrot.slane %v686_v62, 4  ;;  %v687_v27 = vrot.slane %v675_v6, 4 }
 0x294   : > { %v748_v33 = vsel %vm609_vm5, %v747_v24, %v2739_v8  ;;  %v736_v34 = vsel %vm609_vm5, %v735_v26, %v2738_v9 }
 0x295   : > { %v754_v36 = vperm.slane %v748_v33, %v3007_v49  ;;  %v771_v37 = vrot.slane %v758_v29, 4  ;;  %v742_v38 = vperm.slane %v736_v34, %v3007_v49  ;;  %v773_v40 = vrot.slane %v746_v30, 4 }
 0x296   : > { %v710_v34 = vperm.slane %v702_v23, %v3017_v0  ;;  %v688_v41 = vsel %vm609_vm5, %v687_v27, %v669_v56 }
 0x297   : > { %v759_v45 = vrot.slane %v754_v36, 4  ;;  %v761_v46 = vrot.slane %v742_v38, 4  ;;  %v772_v47 = vsel %vm609_vm5, %v771_v37, %v746_v30  ;;  %v774_v48 = vsel %vm609_vm5, %v758_v29, %v773_v40 }
 0x298   : > { %v778_v51 = vperm.slane %v772_v47, %v3017_v0  ;;  %v782_v52 = vperm.slane %v774_v48, %v3017_v0  ;;  %v700_v29 = vsel %vm609_vm5, %v699_v16, %v680_v50  ;;  %v715_v50 = vrot.slane %v710_v34, 4 }
 0x299   : > { %v760_v54 = vsel %vm609_vm5, %v759_v45, %v742_v38  ;;  %v762_v55 = vsel %vm609_vm5, %v754_v36, %v761_v46  ;;  %v698_v38 = vperm.slane %v690_v22, %v3017_v0  ;;  %v706_v43 = vperm.slane %v700_v29, %v3017_v0 }
 0x29a   : > { %v766_v58 = vperm.slane %v760_v54, %v3017_v0  ;;  %v770_v59 = vperm.slane %v762_v55, %v3017_v0  ;;  %v787_v60 = vrot.slane %v778_v51, 4  ;;  %v789_v61 = vrot.slane %v782_v52, 4 }
 0x29b   : > { %v694_v54 = vperm.slane %v688_v41, %v3017_v0 }
 0x29c   : > { %v783_v63 = vrot.slane %v766_v58, 4  ;;  %v785_v1 = vrot.slane %v770_v59, 4  ;;  %v790_v2 = vsel %vm609_vm5, 0.0, %v789_v61  ;;  %v802_v5 = vsel %vm609_vm5, %v789_v61, %v778_v51 }
 0x29d   : > { %v807_v4 = vrot.slane %v790_v2, 4  ;;  %v788_v9 = vsel %vm609_vm5, 0.0, %v787_v60  ;;  %v806_v12 = vperm.slane %v802_v5, %v3007_v49  ;;  %v717_v59 = vrot.slane %v698_v38, 4 }
 0x29e   : > { %v786_v8 = vsel %vm609_vm5, 0.0, %v785_v1  ;;  %v791_v11 = vsel %vm609_vm5, %v785_v1, %v766_v58  ;;  %v784_v17 = vsel %vm609_vm5, 0.0, %v783_v63  ;;  %v711_v60 = vrot.slane %v706_v43, 4 }
 0x29f   : > { %v795_v13 = vperm.slane %v791_v11, %v3007_v49  ;;  %v796_v14 = vrot.slane %v786_v8, 4  ;;  %v808_v15 = vsel %vm609_vm5, %v807_v4, %v788_v9  ;;  %v827_v19 = vrot.slane %v806_v12, 4 }
 0x2a0   : > { %v812_v18 = vperm.slane %v808_v15, %v3007_v49  ;;  %v716_v1 = vsel %vm609_vm5, %v715_v50, %v698_v38  ;;  %v713_v2 = vrot.slane %v694_v54, 4  ;;  %v712_v4 = vsel %vm609_vm5, %v711_v60, %v694_v54 }
 0x2a1   : > { %v797_v20 = vsel %vm609_vm5, %v796_v14, %v784_v17  ;;  %v815_v21 = vrot.slane %v795_v13, 4  ;;  %v718_v5 = vsel %vm609_vm5, %v710_v34, %v717_v59  ;;  %v721_v6 = vpack.c.bf16 %v716_v1, %v716_v1 }
 0x2a2   : > { %v801_v24 = vperm.slane %v797_v20, %v3007_v49  ;;  %v828_v25 = vsel %vm609_vm5, %v812_v18, %v827_v19  ;;  %v825_v26 = vrot.slane %v812_v18, 4  ;;  %v714_v7 = vsel %vm609_vm5, %v706_v43, %v713_v2 }
 0x2a3   : > { %v836_v28 = vperm.slane %v828_v25, %v3017_v0  ;;  %v719_v8 = vpack.c.bf16 %v712_v4, %v712_v4  ;;  %v722_v9 = vpack.c.bf16 %v718_v5, %v718_v5  ;;  %v720_v11 = vpack.c.bf16 %v714_v7, %v714_v7 }
 0x2a4   : > { %v816_v30 = vsel %vm609_vm5, %v801_v24, %v815_v21  ;;  %v813_v31 = vrot.slane %v801_v24, 4  ;;  %v826_v33 = vsel %vm609_vm5, %v825_v26, %v806_v12 }
 0x2a5   : > { %v824_v35 = vperm.slane %v816_v30, %v3017_v0  ;;  %v841_v36 = vrot.slane %v836_v28, 4  ;;  %v832_v37 = vperm.slane %v826_v33, %v3017_v0 }
 0x2a6   : > { %v814_v40 = vsel %vm609_vm5, %v813_v31, %v795_v13 }
 0x2a7   : > { %v842_v44 = vsel %vm609_vm5, %v841_v36, %v824_v35  ;;  %v820_v45 = vperm.slane %v814_v40, %v3017_v0  ;;  %v837_v46 = vrot.slane %v832_v37, 4  ;;  %v843_v47 = vrot.slane %v824_v35, 4 }
 0x2a8   : > { %v847_v48 = vpack.c.bf16 %v842_v44, %v842_v44 }
 0x2a9   : > { %v838_v51 = vsel %vm609_vm5, %v837_v46, %v820_v45  ;;  %v844_v52 = vsel %vm609_vm5, %v836_v28, %v843_v47  ;;  %v839_v53 = vrot.slane %v820_v45, 4 }
 0x2aa   : > { %v1018_v55 = vsel %vm975_vm6, %v847_v48, 0  ;;  %v845_v56 = vpack.c.bf16 %v838_v51, %v838_v51  ;;  %v848_v57 = vpack.c.bf16 %v844_v52, %v844_v52 }
 0x2ab   : > { %1027 = vmatpush.bf16.xpose.msra.mxu3 %v1018_v55  ;;  %v840_v58 = vsel %vm609_vm5, %v832_v37, %v839_v53 }
 0x2ac   : > { %v980_v61 = vsel %vm975_vm6, %v845_v56, 0  ;;  %v1037_v62 = vsel %vm975_vm6, %v848_v57, 0  ;;  %v846_v63 = vpack.c.bf16 %v840_v58, %v840_v58 }
 0x2ad   : > { %989 = vmatpush.bf16.xpose.msra.mxu1 %v980_v61  ;;  %1046 = vmatpush.bf16.xpose.msrb.mxu0 %v1037_v62 }
 0x2ae   : > { %v999_v3 = vsel %vm975_vm6, %v846_v63, 0 }
 0x2af   : > { %1008 = vmatpush.bf16.xpose.msra.mxu2 %v999_v3 }
 0x2b2   : > { %2573 = vmatmul.msk.bf16.vlgmr.msra.gmra.mxu3 %vm975_vm6, %v721_v6 }
 0x2b4   : > { %2571 = vmatmul.msk.bf16.vlgmr.msra.gmra.mxu1 %vm975_vm6, %v719_v8  ;;  %2574 = vmatmul.msk.bf16.vlgmr.msrb.gmra.mxu0 %vm975_vm6, %v722_v9 }
 0x2b6   : > { %2572 = vmatmul.msk.bf16.vlgmr.msra.gmra.mxu2 %vm975_vm6, %v720_v11 }
 0x331   : > { %v991_v12 = vpop.f32.mrf.mxu1  ;;  %v1048_v13 = vpop.f32.mrf.mxu0 }
 0x332   : > { %v1052_v14 = vmul.f32 0.35355338, %v991_v12  ;;  %v1055_v15 = vmul.f32 0.35355338, %v1048_v13 }
 0x334   : > { %v1065_v16 = vsel %vm975_vm6, %v1055_v15, -inf  ;;  %v1056_v17 = vsel %vm975_vm6, %v1052_v14, -inf }
 0x335   : > { %1066 = vmax.xlane.f32.xlu2 %v1065_v16  ;;  %v1029_v18 = vpop.f32.mrf.mxu3  ;;  %1057 = vmax.xlane.f32.xlu0 %v1056_v17 }
 0x336   : > { %v1054_v19 = vmul.f32 0.35355338, %v1029_v18 }
 0x338   : > { %v1062_v20 = vsel %vm975_vm6, %v1054_v19, -inf }
 0x339   : > { %v1050_v21 = vpop.f32.mrf.mxu0  ;;  %1063 = vmax.xlane.f32.xlu1 %v1062_v20  ;;  %v993_v22 = vpop.f32.mrf.mxu1 }
 0x33a   : > { %v1010_v23 = vpop.f32.mrf.mxu2 }
 0x33b   : > { %v1053_v24 = vmul.f32 0.35355338, %v1010_v23 }
 0x33d   : > { %v1031_v25 = vpop.f32.mrf.mxu3  ;;  %v1059_v26 = vsel %vm975_vm6, %v1053_v24, -inf }
 0x33e   : > { %1060 = vmax.xlane.f32.xlu2 %v1059_v26 }
 0x342   : > { %v1012_v27 = vpop.f32.mrf.mxu2 }
 0x352   : > { %2746 = vrot.lane.b32.xlu1 %v2997_v39, %s2860_s17 }
 0x356   : > { %2751 = vrot.lane.b32.xlu2 %v3001_v42, %s2860_s17 }
 0x3a8   : > { %v1067_v28 = vpop.xlane.xlu2 %1066  ;;  %v1058_v31 = vpop.xlane.xlu0 %1057 }
 0x3a9   : > { %v1071_v29 = vsub.f32 %v1055_v15, %v1067_v28  ;;  %v1068_v35 = vsub.f32 %v1052_v14, %v1058_v31 }
 0x3ab   : > { %v1078_v30 = vmul.f32 1.442695, %v1071_v29  ;;  %v1072_v41 = vmul.f32 1.442695, %v1068_v35 }
 0x3ac   : > { %v1064_v33 = vpop.xlane.xlu1 %1063 }
 0x3ad   : > { %2797 = vpow2.f32 %v1078_v30  ;;  %v1070_v34 = vsub.f32 %v1054_v19, %v1064_v33 }
 0x3af   : > { %v1076_v36 = vmul.f32 1.442695, %v1070_v34 }
 0x3b1   : > { %2799 = vpow2.f32 %v1076_v36  ;;  %v1061_v37 = vpop.xlane.xlu2 %1060 }
 0x3b2   : > { %v1069_v38 = vsub.f32 %v1053_v24, %v1061_v37 }
 0x3b3   : > { %v3105_v40 = vpop.eup %2797 }
 0x3b4   : > { %v1074_v43 = vmul.f32 1.442695, %v1069_v38  ;;  %v1089_v39 = vsel %vm975_vm6, %v3105_v40, 0.0 }
 0x3b5   : > { %1090 = vadd.xlane.f32.xlu2 %v1089_v39 }
 0x3b6   : > { %2801 = vpow2.f32 %v1074_v43 }
 0x3b7   : > { %v3109_v42 = vpop.eup %2799  ;;  %2803 = vpow2.f32 %v1072_v41 }
 0x3b8   : > { %v1086_v44 = vsel %vm975_vm6, %v3109_v42, 0.0 }
 0x3b9   : > { %1087 = vadd.xlane.f32.xlu0 %v1086_v44  ;;  %v2752_v48 = vpop.permute.xlu2 %2751 }
 0x3ba   : > { %v2754_v51 = vunpack.i.h.bf16 %v2752_v48  ;;  %v2753_v52 = vunpack.i.l.bf16 %v2752_v48 }
 0x3bc   : > { %v3113_v45 = vpop.eup %2801  ;;  %v873_v54 = vrot.slane %v2754_v51, 4  ;;  %v861_v55 = vrot.slane %v2753_v52, 4 }
 0x3bd   : > { %v3115_v46 = vpop.eup %2803  ;;  %v1083_v47 = vsel %vm975_vm6, %v3113_v45, 0.0 }
 0x3be   : > { %1084 = vadd.xlane.f32.xlu1 %v1083_v47  ;;  %v1080_v50 = vsel %vm975_vm6, %v3115_v46, 0.0 }
 0x3c1   : > { %1081 = vadd.xlane.f32.xlu0 %v1080_v50 }
 0x3c4   : > { %v2747_v53 = vpop.permute.xlu1 %2746 }
 0x3c5   : > { %v2749_v56 = vunpack.i.h.bf16 %v2747_v53  ;;  %v2748_v57 = vunpack.i.l.bf16 %v2747_v53 }
 0x3c7   : > { %v875_v58 = vrot.slane %v2749_v56, 4  ;;  %v862_v59 = vsel %vm609_vm5, %v861_v55, %v2748_v57  ;;  %v863_v60 = vrot.slane %v2748_v57, 4  ;;  %v874_v61 = vsel %vm609_vm5, %v873_v54, %v2749_v56 }
 0x3c8   : > { %v868_v62 = vperm.slane %v862_v59, %v3007_v49  ;;  %v880_v63 = vperm.slane %v874_v61, %v3007_v49 }
 0x3c9   : > { %v864_v1 = vsel %vm609_vm5, %v2753_v52, %v863_v60  ;;  %v876_v2 = vsel %vm609_vm5, %v2754_v51, %v875_v58 }
 0x3ca   : > { %v872_v3 = vperm.slane %v864_v1, %v3007_v49  ;;  %v884_v4 = vperm.slane %v876_v2, %v3007_v49  ;;  %v885_v5 = vrot.slane %v880_v63, 4  ;;  %v887_v6 = vrot.slane %v868_v62, 4 }
 0x3cc   : > { %v886_v7 = vsel %vm609_vm5, %v885_v5, %v868_v62  ;;  %v888_v8 = vsel %vm609_vm5, %v880_v63, %v887_v6  ;;  %v897_v9 = vrot.slane %v884_v4, 4  ;;  %v899_v11 = vrot.slane %v872_v3, 4 }
 0x3cd   : > { %v892_v12 = vperm.slane %v886_v7, %v3017_v0  ;;  %v896_v13 = vperm.slane %v888_v8, %v3017_v0 }
 0x3ce   : > { %v898_v14 = vsel %vm609_vm5, %v897_v9, %v872_v3  ;;  %v900_v15 = vsel %vm609_vm5, %v884_v4, %v899_v11 }
 0x3cf   : > { %v904_v16 = vperm.slane %v898_v14, %v3017_v0  ;;  %v908_v17 = vperm.slane %v900_v15, %v3017_v0  ;;  %v909_v18 = vrot.slane %v892_v12, 4  ;;  %v911_v19 = vrot.slane %v896_v13, 4 }
 0x3d1   : > { %v912_v20 = vsel %vm609_vm5, 0.0, %v911_v19  ;;  %v913_v21 = vrot.slane %v904_v16, 4  ;;  %v915_v22 = vrot.slane %v908_v17, 4  ;;  %v917_v23 = vsel %vm609_vm5, %v911_v19, %v892_v12 }
 0x3d2   : > { %v922_v24 = vrot.slane %v912_v20, 4  ;;  %v910_v25 = vsel %vm609_vm5, 0.0, %v909_v18  ;;  %v921_v27 = vperm.slane %v917_v23, %v3007_v49 }
 0x3d3   : > { %v916_v26 = vsel %vm609_vm5, 0.0, %v915_v22  ;;  %v928_v28 = vsel %vm609_vm5, %v915_v22, %v904_v16  ;;  %v914_v33 = vsel %vm609_vm5, 0.0, %v913_v21 }
 0x3d4   : > { %v933_v29 = vrot.slane %v916_v26, 4  ;;  %v923_v30 = vsel %vm609_vm5, %v922_v24, %v910_v25  ;;  %v932_v31 = vperm.slane %v928_v28, %v3007_v49  ;;  %v941_v35 = vrot.slane %v921_v27, 4 }
 0x3d5   : > { %v927_v34 = vperm.slane %v923_v30, %v3007_v49 }
 0x3d6   : > { %v934_v36 = vsel %vm609_vm5, %v933_v29, %v914_v33  ;;  %v953_v37 = vrot.slane %v932_v31, 4 }
 0x3d7   : > { %v938_v38 = vperm.slane %v934_v36, %v3007_v49  ;;  %v942_v41 = vsel %vm609_vm5, %v927_v34, %v941_v35  ;;  %v939_v43 = vrot.slane %v927_v34, 4 }
 0x3d8   : > { %v950_v39 = vperm.slane %v942_v41, %v3017_v0 }
 0x3d9   : > { %v954_v44 = vsel %vm609_vm5, %v938_v38, %v953_v37  ;;  %v940_v47 = vsel %vm609_vm5, %v939_v43, %v921_v27  ;;  %v951_v48 = vrot.slane %v938_v38, 4 }
 0x3da   : > { %v962_v50 = vperm.slane %v954_v44, %v3017_v0  ;;  %v969_v51 = vrot.slane %v950_v39, 4  ;;  %v946_v52 = vperm.slane %v940_v47, %v3017_v0 }
 0x3db   : > { %v952_v53 = vsel %vm609_vm5, %v951_v48, %v932_v31 }
 0x3dc   : > { %v970_v54 = vsel %vm609_vm5, %v962_v50, %v969_v51  ;;  %v958_v55 = vperm.slane %v952_v53, %v3017_v0  ;;  %v965_v56 = vrot.slane %v946_v52, 4  ;;  %v967_v57 = vrot.slane %v962_v50, 4 }
 0x3dd   : > { %v974_v58 = vpack.c.bf16 %v970_v54, %v970_v54 }
 0x3de   : > { %v966_v59 = vsel %vm609_vm5, %v958_v55, %v965_v56  ;;  %v968_v60 = vsel %vm609_vm5, %v967_v57, %v950_v39  ;;  %v963_v61 = vrot.slane %v958_v55, 4 }
 0x3df   : > { %v1166_v62 = vsel %vm1107_vm7, %v974_v58, 0  ;;  %v972_v63 = vpack.c.bf16 %v966_v59, %v966_v59  ;;  %v973_v1 = vpack.c.bf16 %v968_v60, %v968_v60 }
 0x3e0   : > { %1175 = vmatpush.bf16.msra.mxu0 %v1166_v62  ;;  %v964_v2 = vsel %vm609_vm5, %v963_v61, %v946_v52 }
 0x3e1   : > { %v1128_v3 = vsel %vm1107_vm7, %v972_v63, 0  ;;  %v1147_v4 = vsel %vm1107_vm7, %v973_v1, 0  ;;  %v971_v5 = vpack.c.bf16 %v964_v2, %v964_v2 }
 0x3e2   : > { %1137 = vmatpush.bf16.msrb.mxu2 %v1128_v3  ;;  %1156 = vmatpush.bf16.msrb.mxu3 %v1147_v4 }
 0x3e3   : > { %v1109_v6 = vsel %vm1107_vm7, %v971_v5, 0 }
 0x3e4   : > { %1118 = vmatpush.bf16.msrb.mxu1 %v1109_v6 }
 0x428   : > { %v1091_v7 = vpop.xlane.xlu2 %1090 }
 0x429   : > { %2805 = vrcp.f32 %v1091_v7 }
 0x42c   : > { %v1088_v8 = vpop.xlane.xlu0 %1087 }
 0x42d   : > { %2807 = vrcp.f32 %v1088_v8 }
 0x42f   : > { %v2806_v9 = vpop.eup %2805 }
 0x430   : > { %v1099_v11 = vmul.f32 %v2806_v9, %v3105_v40 }
 0x431   : > { %v1085_v12 = vpop.xlane.xlu1 %1084 }
 0x432   : > { %v1103_v13 = vpack.c.bf16 %v1099_v11, %v1099_v11  ;;  %2809 = vrcp.f32 %v1085_v12 }
 0x433   : > { %v2808_v14 = vpop.eup %2807 }
 0x434   : > { %v1098_v15 = vmul.f32 %v2808_v14, %v3109_v42  ;;  %2578 = vmatmul.msk.bf16.vlgmr.msra.gmra.mxu0 %vm975_vm6, %v1103_v13  ;;  %v1082_v16 = vpop.xlane.xlu0 %1081 }
 0x435   : > { %2811 = vrcp.f32 %v1082_v16 }
 0x436   : > { %v1102_v17 = vpack.c.bf16 %v1098_v15, %v1098_v15 }
 0x438   : > { %v2810_v18 = vpop.eup %2809  ;;  %2577 = vmatmul.msk.bf16.vlgmr.msrb.gmra.mxu3 %vm975_vm6, %v1102_v17 }
 0x439   : > { %v1097_v19 = vmul.f32 %v2810_v18, %v3113_v45 }
 0x43b   : > { %v2812_v20 = vpop.eup %2811  ;;  %v1101_v21 = vpack.c.bf16 %v1097_v19, %v1097_v19 }
 0x43c   : > { %v1096_v40 = vmul.f32 %v2812_v20, %v3115_v46 }
 0x43d   : > { %2576 = vmatmul.msk.bf16.vlgmr.msrb.gmra.mxu2 %vm975_vm6, %v1101_v21 }
 0x43e   : > { %v1100_v22 = vpack.c.bf16 %v1096_v40, %v1096_v40 }
 0x440   : > { %2575 = vmatmul.msk.bf16.vlgmr.msrb.gmra.mxu1 %vm975_vm6, %v1100_v22 }
 0x4b1   : > { %v1177_v42 = vpop.f32.mrf.mxu0 }
 0x4b2   : > { %v1193_v29 = vrot.slane %v1177_v42, 4 }
 0x4b9   : > { %v1179_v23 = vpop.f32.mrf.mxu0 }
 0x4bb   : > { %v1158_v24 = vpop.f32.mrf.mxu3 }
 0x4bc   : > { %v1181_v25 = vrot.slane %v1158_v24, 4 }
 0x4bd   : > { %v1120_v26 = vpop.f32.mrf.mxu1 }
 0x4be   : > { %v1182_v27 = vsel %vm609_vm5, %v1181_v25, %v1120_v26  ;;  %v1183_v28 = vrot.slane %v1120_v26, 4 }
 0x4bf   : > { %v1188_v45 = vperm.slane %v1182_v27, %v3007_v49 }
 0x4c0   : > { %v1184_v30 = vsel %vm609_vm5, %v1158_v24, %v1183_v28  ;;  %v1139_v31 = vpop.f32.mrf.mxu2 }
 0x4c1   : > { %v1192_v46 = vperm.slane %v1184_v30, %v3007_v49  ;;  %v1207_v33 = vrot.slane %v1188_v45, 4  ;;  %v1194_v34 = vsel %vm609_vm5, %v1193_v29, %v1139_v31  ;;  %v1195_v35 = vrot.slane %v1139_v31, 4  ;;  %v2699_v31 = vld [vmem:[%s3583_s6 + $0x8] sm:$0xff] }
 0x4c2   : > { %v1200_v36 = vperm.slane %v1194_v34, %v3007_v49  ;;  %1338 = vmatpush.bf16.msra.mxu1 %v2699_v31 }
 0x4c3   : > { %v1219_v37 = vrot.slane %v1192_v46, 4  ;;  %v1196_v38 = vsel %vm609_vm5, %v1177_v42, %v1195_v35  ;;  %v1160_v41 = vpop.f32.mrf.mxu3 }
 0x4c4   : > { %v1204_v43 = vperm.slane %v1196_v38, %v3007_v49  ;;  %v1205_v39 = vrot.slane %v1200_v36, 4  ;;  %v1208_v44 = vsel %vm609_vm5, %v1200_v36, %v1207_v33 }
 0x4c5   : > { %v1216_v47 = vperm.slane %v1208_v44, %v3017_v0  ;;  %v1122_v48 = vpop.f32.mrf.mxu1 }
 0x4c6   : > { %v1206_v50 = vsel %vm609_vm5, %v1205_v39, %v1188_v45  ;;  %v1217_v51 = vrot.slane %v1204_v43, 4  ;;  %v1220_v52 = vsel %vm609_vm5, %v1204_v43, %v1219_v37  ;;  %v2778_v43 = vld [vmem:[%s3584_s7] ss:$0 sm:$0xff] }
 0x4c7   : > { %v1212_v53 = vperm.slane %v1206_v50, %v3017_v0  ;;  %v1228_v54 = vperm.slane %v1220_v52, %v3017_v0  ;;  %v1231_v55 = vrot.slane %v1216_v47, 4 }
 0x4c8   : > { %v1218_v56 = vsel %vm609_vm5, %v1217_v51, %v1192_v46  ;;  %v1141_v57 = vpop.f32.mrf.mxu2  ;;  %v2698_v46 = vld [vmem:[%s3583_s6] sm:$0xff] }
 0x4c9   : > { %v1224_v58 = vperm.slane %v1218_v56, %v3017_v0  ;;  %v1229_v59 = vrot.slane %v1212_v53, 4  ;;  %v1232_v60 = vsel %vm609_vm5, 0.0, %v1231_v55  ;;  %v1235_v61 = vrot.slane %v1228_v54, 4  ;;  %1339 = vmatpush.bf16.msra.mxu1 %v2698_v46  ;;  %v2701_v56 = vld [vmem:[%s3587_s10 + $0x8] sm:$0xff] }
 0x4ca   : > { %v1242_v62 = vrot.slane %v1232_v60, 4  ;;  %v1237_v3 = vsel %vm609_vm5, %v1231_v55, %v1212_v53  ;;  %1408 = vmatpush.bf16.msra.mxu2 %v2701_v56 }
 0x4cb   : > { %v1230_v63 = vsel %vm609_vm5, 0.0, %v1229_v59  ;;  %v1233_v1 = vrot.slane %v1224_v58, 4  ;;  %v1236_v2 = vsel %vm609_vm5, 0.0, %v1235_v61  ;;  %v1248_v6 = vsel %vm609_vm5, %v1235_v61, %v1224_v58 }
 0x4cc   : > { %v1243_v4 = vsel %vm609_vm5, %v1242_v62, %v1230_v63  ;;  %v1253_v5 = vrot.slane %v1236_v2, 4  ;;  %v1252_v9 = vperm.slane %v1248_v6, %v3007_v49  ;;  %v1241_v12 = vperm.slane %v1237_v3, %v3007_v49  ;;  %v2779_v3 = vld [vmem:[%s3585_s8] ss:$0 sm:$0xff] }
 0x4cd   : > { %v1234_v7 = vsel %vm609_vm5, 0.0, %v1233_v1  ;;  %v1247_v8 = vperm.slane %v1243_v4, %v3007_v49 }
 0x4ce   : > { %v1254_v11 = vsel %vm609_vm5, %v1253_v5, %v1234_v7  ;;  %v1273_v15 = vrot.slane %v1252_v9, 4  ;;  %v1261_v22 = vrot.slane %v1241_v12, 4  ;;  %v2780_v5 = vld [vmem:[%s3586_s9] ss:$0 sm:$0xff] }
 0x4cf   : > { %v1258_v13 = vperm.slane %v1254_v11, %v3007_v49  ;;  %v1259_v14 = vrot.slane %v1247_v8, 4  ;;  %v2781_v11 = vld [vmem:[%s3588_s11] ss:$0 sm:$0xff] }
 0x4d0   : > { %v1262_v26 = vsel %vm609_vm5, %v1247_v8, %v1261_v22 }
 0x4d1   : > { %v1260_v16 = vsel %vm609_vm5, %v1259_v14, %v1241_v12  ;;  %v1271_v17 = vrot.slane %v1258_v13, 4  ;;  %v1274_v20 = vsel %vm609_vm5, %v1258_v13, %v1273_v15  ;;  %v1270_v28 = vperm.slane %v1262_v26, %v3017_v0  ;;  %v2705_v14 = vld [vmem:[%s3589_s12 + $0x18] sm:$0xff] }
 0x4d2   : > { %v1266_v18 = vperm.slane %v1260_v16, %v3017_v0  ;;  %v1282_v24 = vperm.slane %v1274_v20, %v3017_v0  ;;  %1486 = vmatpush.bf16.msra.mxu3 %v2705_v14 }
 0x4d3   : > { %v1272_v19 = vsel %vm609_vm5, %v1271_v17, %v1252_v9  ;;  %v1289_v45 = vrot.slane %v1270_v28, 4  ;;  %v2704_v17 = vld [vmem:[%s3589_s12 + $0x10] sm:$0xff] }
 0x4d4   : > { %v1278_v21 = vperm.slane %v1272_v19, %v3017_v0  ;;  %v1285_v40 = vrot.slane %v1266_v18, 4  ;;  %v1287_v27 = vrot.slane %v1282_v24, 4 }
 0x4d5   : > { %v1290_v30 = vsel %vm609_vm5, %v1282_v24, %v1289_v45 }
 0x4d6   : > { %v1283_v42 = vrot.slane %v1278_v21, 4  ;;  %v1286_v23 = vsel %vm609_vm5, %v1278_v21, %v1285_v40  ;;  %v1288_v29 = vsel %vm609_vm5, %v1287_v27, %v1270_v28  ;;  %1487 = vmatpush.bf16.msra.mxu3 %v2704_v17  ;;  %v2703_v21 = vld [vmem:[%s3589_s12 + $0x8] sm:$0xff]  ;;  %v2702_v40 = vld [vmem:[%s3589_s12] sm:$0xff] }
 0x4d7   : > { %1292 = vrot.lane.b32.xlu0 %v1286_v23, %s3596_s18 }
 0x4d8   : > { %v1284_v25 = vsel %vm609_vm5, %v1283_v42, %v1266_v18 }
 0x4da   : > { %1488 = vmatpush.bf16.msra.mxu3 %v2703_v21 }
 0x4de   : > { %1489 = vmatpush.bf16.msra.mxu3 %v2702_v40 }
 0x4df   : > { %1296 = vrot.lane.b32.xlu0 %v1288_v29, %s2862_s19 }
 0x4e7   : > { %1300 = vrot.lane.b32.xlu0 %v1290_v30, %s3595_s20 }
 0x549   : > { %v1293_v33 = vpop.permute.xlu0 %1292 }
 0x54a   : > { %v1303_v35 = vsel %vm975_vm6, %v1284_v25, %v1293_v33 }
 0x551   : > { %v1297_v34 = vpop.permute.xlu0 %1296 }
 0x552   : > { %v1305_v36 = vsel %vm1304_vm8, %v1303_v35, %v1297_v34 }
 0x559   : > { %v1301_v37 = vpop.permute.xlu0 %1300 }
 0x55a   : > { %v1307_v38 = vsel %vm1306_vm9, %v1305_v36, %v1301_v37 }
 0x55b   : > { %v1312_v41 = vpack.c.bf16 %v1307_v38, %v1307_v38 }
 0x55d   : > { %2587 = vmatmul.msk.bf16.vlgmr.msra.gmra.mxu1 %vm523_vm0, %v1312_v41 }
 0x5da   : > { %v1341_v39 = vpop.f32.mrf.mxu1 }
 0x5db   : > { %v1342_v44 = vadd.f32 %v2778_v43, %v1341_v39 }
 0x5dd   : > { %v1345_v47 = vadd.f32 %v1342_v44, %v2986_v32  ;;  %v2700_v32 = vld [vmem:[%s3587_s10] sm:$0xff] }
 0x5de   : > { %1409 = vmatpush.bf16.msra.mxu2 %v2700_v32  ;;  %v2782_v44 = vld [vmem:[%s3590_s13] ss:$0 sm:$0xff] }
 0x5df   : > { %v1348_v48 = vsel %vm523_vm0, %v1345_v47, 0.0 }
 0x5e0   : > { %1349 = vadd.xlane.f32.xlu1 %v1348_v48 }
 0x5e2   : > { %v1343_v50 = vpop.f32.mrf.mxu1 }
 0x653   : > { %v1350_v51 = vpop.xlane.xlu1 %1349 }
 0x654   : > { %v1351_v52 = vmul.f32 %v1350_v51, %v2969_v10 }
 0x656   : > { %v1352_v53 = vsub.f32 %v1345_v47, %v1351_v52 }
 0x658   : > { %v1353_v54 = vmul.f32 %v1352_v53, %v1352_v53 }
 0x65a   : > { %v1354_v55 = vsel %vm523_vm0, %v1353_v54, 0.0 }
 0x65b   : > { %1355 = vadd.xlane.f32.xlu0 %v1354_v55 }
 0x6ce   : > { %v1356_v57 = vpop.xlane.xlu0 %1355 }
 0x6cf   : > { %v1357_v58 = vmul.f32 %v1356_v57, %v2969_v10  ;;  %v2707_v57 = vld [vmem:[%s3581_s4 + $0x18] sm:$0xff] }
 0x6d0   : > { %1560 = vmatpush.bf16.msrb.mxu0 %v2707_v57 }
 0x6d1   : > { %v1358_v59 = vadd.f32 1e-05, %v1357_v58  ;;  %v2706_v58 = vld [vmem:[%s3581_s4 + $0x10] sm:$0xff] }
 0x6d3   : > { %2813 = vrsqrt.f32 %v1358_v59  ;;  %vm1365_vm11 = vweird.f32 %v1358_v59 }
 0x6d4   : > { %1561 = vmatpush.bf16.msrb.mxu0 %v2706_v58 }
 0x6d9   : > { %v2814_v60 = vpop.eup %2813 }
 0x6da   : > { %v1360_v61 = vmul.f32 %v2814_v60, %v1358_v59  ;;  %vm1366_vm10 = vweird.f32 %v2814_v60 }
 0x6db   : > { %vm1367_vm12 = vmor %vm1365_vm11, %vm1366_vm10 }
 0x6dc   : > { %v1361_v62 = vmul.f32 %v2814_v60, %v1360_v61 }
 0x6de   : > { %v1362_v63 = vmul.f32 0.5, %v1361_v62 }
 0x6e0   : > { %v1363_v1 = vsub.f32 1.5, %v1362_v63 }
 0x6e2   : > { %v1364_v2 = vmul.f32 %v2814_v60, %v1363_v1 }
 0x6e4   : > { %v1368_v4 = vsel %vm1367_vm12, %v2814_v60, %v1364_v2 }
 0x6e5   : > { %v1369_v6 = vmul.f32 %v1368_v4, %v1352_v53 }
 0x6e7   : > { %v1373_v7 = vmul.f32 %v2779_v3, %v1369_v6 }
 0x6e9   : > { %v1377_v8 = vadd.f32 %v2780_v5, %v1373_v7  ;;  %v2783_v5 = vld [vmem:[%s3591_s14] ss:$0 sm:$0xff] }
 0x6ea   : > { %v2784_v7 = vld [vmem:[%s3592_s15] ss:$0 sm:$0xff] }
 0x6eb   : > { %v1382_v9 = vpack.c.bf16 %v1377_v8, %v1377_v8 }
 0x6ed   : > { %2596 = vmatmul.msk.bf16.vlgmr.msra.gmra.mxu2 %vm523_vm0, %v1382_v9 }
 0x770   : > { %v1411_v12 = vpop.f32.mrf.mxu2 }
 0x771   : > { %v1412_v13 = vadd.f32 %v2781_v11, %v1411_v12 }
 0x773   : > { %v1416_v15 = vmul.f32 0.70710677, %v1412_v13  ;;  %v1415_v38 = vmul.f32 0.5, %v1412_v13  ;;  %v2785_v13 = vld [vmem:[%s3582_s5 + $0x1] ss:$0 sm:$0xff] }
 0x775   : > { %v1417_v16 = vand.u32 2147483647, %v1416_v15  ;;  %vm1436_vm13 = vcmp.ge.f32.partialorder %v1416_v15, 0.0 }
 0x777   : > { %v1418_v18 = vmul.f32 0.3275911, %v1417_v16  ;;  %v1430_v42 = vsub.f32 0.0, %v1417_v16 }
 0x778   : > { %v1413_v19 = vpop.f32.mrf.mxu2 }
 0x779   : > { %v1419_v20 = vadd.f32 1.0, %v1418_v18  ;;  %v1431_v25 = vmul.f32 %v1430_v42, %v1417_v16 }
 0x77b   : > { %2815 = vrcp.f32 %v1419_v20  ;;  %v1432_v28 = vmul.f32 1.442695, %v1431_v25 }
 0x77d   : > { %2817 = vpow2.f32 %v1432_v28 }
 0x781   : > { %v2816_v22 = vpop.eup %2815 }
 0x782   : > { %v1421_v23 = vmul.f32 1.0614054, %v2816_v22 }
 0x783   : > { %v2818_v33 = vpop.eup %2817 }
 0x784   : > { %v1422_v24 = vadd.f32 -1.4531521, %v1421_v23 }
 0x786   : > { %v1423_v26 = vmul.f32 %v2816_v22, %v1422_v24 }
 0x788   : > { %v1424_v27 = vadd.f32 1.4214138, %v1423_v26 }
 0x78a   : > { %v1425_v29 = vmul.f32 %v2816_v22, %v1424_v27 }
 0x78c   : > { %v1426_v45 = vadd.f32 -0.28449672, %v1425_v29 }
 0x78e   : > { %v1427_v30 = vmul.f32 %v2816_v22, %v1426_v45 }
 0x790   : > { %v1428_v31 = vadd.f32 0.2548296, %v1427_v30 }
 0x792   : > { %v1429_v46 = vmul.f32 %v2816_v22, %v1428_v31 }
 0x794   : > { %v1434_v34 = vmul.f32 %v2818_v33, %v1429_v46 }
 0x796   : > { %v1435_v35 = vsub.f32 1.0, %v1434_v34 }
 0x798   : > { %v1437_v36 = vsub.f32 0.0, %v1435_v35 }
 0x79a   : > { %v1438_v37 = vsel %vm1436_vm13, %v1435_v35, %v1437_v36 }
 0x79b   : > { %v1439_v41 = vadd.f32 1.0, %v1438_v37 }
 0x79d   : > { %v1440_v43 = vmul.f32 %v1439_v41, %v1415_v38 }
 0x79f   : > { %v1449_v39 = vpack.c.bf16 %v1440_v43, %v1440_v43 }
 0x7a1   : > { %2613 = vmatmul.msk.bf16.vlgmr.msra.gmra.mxu3 %vm1478_vm14, %v1449_v39 }
 0x824   : > { %v1491_v47 = vpop.f32.mrf.mxu3 }
 0x825   : > { %v1492_v48 = vadd.f32 %v2782_v44, %v1491_v47 }
 0x827   : > { %v1495_v50 = vadd.f32 %v1492_v48, %v1377_v8 }
 0x829   : > { %v1498_v51 = vsel %vm523_vm0, %v1495_v50, 0.0 }
 0x82a   : > { %1499 = vadd.xlane.f32.xlu2 %v1498_v51 }
 0x82c   : > { %v1493_v52 = vpop.f32.mrf.mxu3 }
 0x89d   : > { %v1500_v53 = vpop.xlane.xlu2 %1499 }
 0x89e   : > { %v1501_v54 = vmul.f32 %v1500_v53, %v2969_v10 }
 0x8a0   : > { %v1502_v55 = vsub.f32 %v1495_v50, %v1501_v54 }
 0x8a2   : > { %v1503_v56 = vmul.f32 %v1502_v55, %v1502_v55 }
 0x8a4   : > { %v1504_v32 = vsel %vm523_vm0, %v1503_v56, 0.0 }
 0x8a5   : > { %1505 = vadd.xlane.f32.xlu1 %v1504_v32 }
 0x918   : > { %v1506_v59 = vpop.xlane.xlu1 %1505 }
 0x919   : > { %v1507_v60 = vmul.f32 %v1506_v59, %v2969_v10 }
 0x91b   : > { %v1508_v61 = vadd.f32 1e-05, %v1507_v60 }
 0x91d   : > { %2819 = vrsqrt.f32 %v1508_v61  ;;  %vm1515_vm1 = vweird.f32 %v1508_v61 }
 0x923   : > { %v2820_v62 = vpop.eup %2819 }
 0x924   : > { %v1510_v63 = vmul.f32 %v2820_v62, %v1508_v61  ;;  %vm1516_vm15 = vweird.f32 %v2820_v62 }
 0x925   : > { %vm1517_vm2 = vmor %vm1515_vm1, %vm1516_vm15 }
 0x926   : > { %v1511_v1 = vmul.f32 %v2820_v62, %v1510_v63 }
 0x928   : > { %v1512_v2 = vmul.f32 0.5, %v1511_v1 }
 0x92a   : > { %v1513_v3 = vsub.f32 1.5, %v1512_v2 }
 0x92c   : > { %v1514_v4 = vmul.f32 %v2820_v62, %v1513_v3 }
 0x92e   : > { %v1518_v6 = vsel %vm1517_vm2, %v2820_v62, %v1514_v4 }
 0x92f   : > { %v1519_v8 = vmul.f32 %v1518_v6, %v1502_v55 }
 0x931   : > { %v1523_v9 = vmul.f32 %v2783_v5, %v1519_v8 }
 0x933   : > { %v3282_v11 = vadd.f32 %v2784_v7, %v1523_v9 }
 0x935   : > { %v1533_v12 = vpack.c.bf16 %v3282_v11, %v3282_v11 }
 0x937   : > { %2627 = vmatmul.msk.bf16.vlgmr.msrb.gmra.mxu0 %vm523_vm0, %v1533_v12 }
 0x9b4   : > { %v1563_v14 = vpop.f32.mrf.mxu0 }
 0x9b5   : > { %v1564_v15 = vadd.f32 %v2785_v13, %v1563_v14 }
 0x9b7   : > { %1571 = vrot.lane.b32.xlu1 %v1564_v15, %s2856_s30  ;;  %1568 = vrot.lane.b32.xlu2 %v1564_v15, %s2855_s29  ;;  %v1579_v22 = vrot.slane %v1564_v15, 4  ;;  %s3600_s29 = smov 24  }
 0x9bc   : > { %v1565_v16 = vpop.f32.mrf.mxu0 }
 0x9bf   : > { %1574 = vrot.lane.b32.xlu2 %v1564_v15, %s2854_s28  ;;  %s3599_s28 = smov 8  }
 0xa11   : > { %v1569_v17 = vpop.permute.xlu2 %1568 }
 0xa12   : > { %v3293_v18 = vpack.i.bf16 %v1569_v17, %v1564_v15  ;;  %v1591_v27 = vrot.slane %v1569_v17, 4 }
 0xa14   : > { %2756 = vrot.lane.b32.xlu1 %v3293_v18, %s2857_s0 }
 0xa19   : > { %v1575_v19 = vpop.permute.xlu2 %1574 }
 0xa1a   : > { %v1589_v24 = vrot.slane %v1575_v19, 4  ;;  %v1592_v29 = vsel %vm609_vm5, %v1575_v19, %v1591_v27 }
 0xa1b   : > { %v1600_v46 = vperm.slane %v1592_v29, %v3007_v49 }
 0xa1c   : > { %v1590_v28 = vsel %vm609_vm5, %v1589_v24, %v1569_v17 }
 0xa1d   : > { %v1596_v31 = vperm.slane %v1590_v28, %v3007_v49  ;;  %v1613_v38 = vrot.slane %v1600_v46, 4 }
 0xa1f   : > { %v1601_v37 = vrot.slane %v1596_v31, 4 }
 0xa29   : > { %v1572_v20 = vpop.permute.xlu1 %1571 }
 0xa2a   : > { %v3297_v21 = vpack.i.bf16 %v1575_v19, %v1572_v20  ;;  %v1577_v40 = vrot.slane %v1572_v20, 4  ;;  %v1580_v23 = vsel %vm609_vm5, %v1572_v20, %v1579_v22 }
 0xa2b   : > { %v1588_v26 = vperm.slane %v1580_v23, %v3007_v49 }
 0xa2c   : > { %2761 = vrot.lane.b32.xlu2 %v3297_v21, %s2857_s0  ;;  %v1578_v42 = vsel %vm609_vm5, %v1577_v40, %v1564_v15 }
 0xa2d   : > { %v1584_v25 = vperm.slane %v1578_v42, %v3007_v49  ;;  %v1615_v30 = vrot.slane %v1588_v26, 4  ;;  %v1614_v43 = vsel %vm609_vm5, %v1613_v38, %v1588_v26 }
 0xa2e   : > { %v1620_v48 = vperm.slane %v1614_v43, %v3017_v0 }
 0xa2f   : > { %v1603_v45 = vrot.slane %v1584_v25, 4  ;;  %v1616_v34 = vsel %vm609_vm5, %v1600_v46, %v1615_v30  ;;  %v1602_v41 = vsel %vm609_vm5, %v1601_v37, %v1584_v25 }
 0xa30   : > { %v1624_v36 = vperm.slane %v1616_v34, %v3017_v0  ;;  %v1608_v47 = vperm.slane %v1602_v41, %v3017_v0  ;;  %v1629_v58 = vrot.slane %v1620_v48, 4 }
 0xa31   : > { %v1604_v33 = vsel %vm609_vm5, %v1596_v31, %v1603_v45 }
 0xa32   : > { %v1612_v35 = vperm.slane %v1604_v33, %v3017_v0  ;;  %v1631_v44 = vrot.slane %v1624_v36, 4  ;;  %v1625_v57 = vrot.slane %v1608_v47, 4  ;;  %v1630_v15 = vsel %vm609_vm5, 0.0, %v1629_v58 }
 0xa34   : > { %v1627_v39 = vrot.slane %v1612_v35, 4  ;;  %v1632_v51 = vsel %vm609_vm5, 0.0, %v1631_v44  ;;  %v1644_v2 = vsel %vm609_vm5, %v1631_v44, %v1620_v48  ;;  %v1626_v14 = vsel %vm609_vm5, 0.0, %v1625_v57 }
 0xa35   : > { %v1649_v3 = vrot.slane %v1632_v51, 4  ;;  %v1648_v42 = vperm.slane %v1644_v2, %v3007_v49 }
 0xa36   : > { %v1628_v50 = vsel %vm609_vm5, 0.0, %v1627_v39  ;;  %v1633_v63 = vsel %vm609_vm5, %v1627_v39, %v1608_v47 }
 0xa37   : > { %v1638_v1 = vrot.slane %v1628_v50, 4  ;;  %v1637_v40 = vperm.slane %v1633_v63, %v3007_v49  ;;  %v1650_v23 = vsel %vm609_vm5, %v1649_v3, %v1630_v15  ;;  %v1669_v37 = vrot.slane %v1648_v42, 4 }
 0xa38   : > { %v1654_v35 = vperm.slane %v1650_v23, %v3007_v49 }
 0xa39   : > { %v1639_v22 = vsel %vm609_vm5, %v1638_v1, %v1626_v14  ;;  %v1657_v43 = vrot.slane %v1637_v40, 4 }
 0xa3a   : > { %v1643_v36 = vperm.slane %v1639_v22, %v3007_v49 }
 0xa86   : > { %v2757_v52 = vpop.permute.xlu1 %2756  ;;  %v2762_v53 = vpop.permute.xlu2 %2761 }
 0xa87   : > { %v2759_v54 = vunpack.i.h.bf16 %v2757_v52  ;;  %v2758_v55 = vunpack.i.l.bf16 %v2757_v52  ;;  %v2764_v56 = vunpack.i.h.bf16 %v2762_v53  ;;  %v2763_v32 = vunpack.i.l.bf16 %v2762_v53 }
 0xa89   : > { %v1717_v59 = vrot.slane %v2759_v54, 4  ;;  %v1705_v60 = vrot.slane %v2758_v55, 4  ;;  %v1715_v61 = vrot.slane %v2764_v56, 4  ;;  %v1703_v62 = vrot.slane %v2763_v32, 4 }
 0xa8b   : > { %v1716_v4 = vsel %vm609_vm5, %v1715_v61, %v2759_v54  ;;  %v1718_v5 = vsel %vm609_vm5, %v2764_v56, %v1717_v59  ;;  %v1704_v6 = vsel %vm609_vm5, %v1703_v62, %v2758_v55  ;;  %v1706_v7 = vsel %vm609_vm5, %v2763_v32, %v1705_v60 }
 0xa8c   : > { %v1722_v8 = vperm.slane %v1716_v4, %v3007_v49  ;;  %v1726_v9 = vperm.slane %v1718_v5, %v3007_v49  ;;  %v1710_v12 = vperm.slane %v1704_v6, %v3007_v49  ;;  %v1714_v13 = vperm.slane %v1706_v7, %v3007_v49 }
 0xa8d   : > { %v1667_v54 = vrot.slane %v1654_v35, 4  ;;  %v1655_v32 = vrot.slane %v1643_v36, 4  ;;  %v1658_v61 = vsel %vm609_vm5, %v1643_v36, %v1657_v43  ;;  %v1670_v62 = vsel %vm609_vm5, %v1654_v35, %v1669_v37 }
 0xa8e   : > { %v1727_v16 = vrot.slane %v1722_v8, 4  ;;  %v1739_v17 = vrot.slane %v1726_v9, 4  ;;  %v1729_v19 = vrot.slane %v1710_v12, 4  ;;  %v1741_v20 = vrot.slane %v1714_v13, 4 }
 0xa8f   : > { %v1656_v6 = vsel %vm609_vm5, %v1655_v32, %v1637_v40  ;;  %v1668_v7 = vsel %vm609_vm5, %v1667_v54, %v1648_v42 }
 0xa90   : > { %v1728_v24 = vsel %vm609_vm5, %v1727_v16, %v1710_v12  ;;  %v1730_v25 = vsel %vm609_vm5, %v1722_v8, %v1729_v19  ;;  %v1740_v26 = vsel %vm609_vm5, %v1739_v17, %v1714_v13  ;;  %v1742_v27 = vsel %vm609_vm5, %v1726_v9, %v1741_v20 }
 0xa91   : > { %v1734_v28 = vperm.slane %v1728_v24, %v3017_v0  ;;  %v1738_v29 = vperm.slane %v1730_v25, %v3017_v0  ;;  %v1746_v45 = vperm.slane %v1740_v26, %v3017_v0  ;;  %v1750_v30 = vperm.slane %v1742_v27, %v3017_v0 }
 0xa92   : > { %v1666_v12 = vperm.slane %v1658_v61, %v3017_v0  ;;  %v1678_v13 = vperm.slane %v1670_v62, %v3017_v0  ;;  %v1662_v19 = vperm.slane %v1656_v6, %v3017_v0  ;;  %v1674_v20 = vperm.slane %v1668_v7, %v3017_v0 }
 0xa93   : > { %v1751_v31 = vrot.slane %v1734_v28, 4  ;;  %v1753_v46 = vrot.slane %v1738_v29, 4  ;;  %v1755_v33 = vrot.slane %v1746_v45, 4  ;;  %v1757_v34 = vrot.slane %v1750_v30, 4 }
 0xa94   : > { %v1685_v29 = vrot.slane %v1666_v12, 4 }
 0xa95   : > { %v1754_v38 = vsel %vm609_vm5, 0.0, %v1753_v46  ;;  %v1758_v41 = vsel %vm609_vm5, 0.0, %v1757_v34  ;;  %v1770_v44 = vsel %vm609_vm5, %v1757_v34, %v1746_v45  ;;  %v1759_v48 = vsel %vm609_vm5, %v1753_v46, %v1734_v28 }
 0xa96   : > { %v1764_v39 = vrot.slane %v1754_v38, 4  ;;  %v1775_v47 = vrot.slane %v1758_v41, 4  ;;  %v1752_v50 = vsel %vm609_vm5, 0.0, %v1751_v31  ;;  %v1756_v51 = vsel %vm609_vm5, 0.0, %v1755_v33 }
 0xa97   : > { %v1774_v52 = vperm.slane %v1770_v44, %v3007_v49  ;;  %v1763_v53 = vperm.slane %v1759_v48, %v3007_v49  ;;  %v1683_v28 = vrot.slane %v1678_v13, 4  ;;  %v1679_v33 = vrot.slane %v1674_v20, 4 }
 0xa98   : > { %v1765_v55 = vsel %vm609_vm5, %v1764_v39, %v1752_v50  ;;  %v1776_v56 = vsel %vm609_vm5, %v1775_v47, %v1756_v51  ;;  %v1681_v34 = vrot.slane %v1662_v19, 4  ;;  %v1686_v38 = vsel %vm609_vm5, %v1678_v13, %v1685_v29 }
 0xa99   : > { %v1769_v57 = vperm.slane %v1765_v55, %v3007_v49  ;;  %v1780_v58 = vperm.slane %v1776_v56, %v3007_v49  ;;  %v1783_v59 = vrot.slane %v1763_v53, 4  ;;  %v1795_v60 = vrot.slane %v1774_v52, 4 }
 0xa9a   : > { %v1684_v37 = vsel %vm609_vm5, %v1683_v28, %v1666_v12  ;;  %v1680_v41 = vsel %vm609_vm5, %v1679_v33, %v1662_v19  ;;  %v1682_v43 = vsel %vm609_vm5, %v1674_v20, %v1681_v34  ;;  %v1690_v44 = vpack.c.bf16 %v1686_v38, %v1686_v38 }
 0xa9b   : > { %v1784_v63 = vsel %vm609_vm5, %v1769_v57, %v1783_v59  ;;  %v1796_v1 = vsel %vm609_vm5, %v1780_v58, %v1795_v60  ;;  %v1781_v2 = vrot.slane %v1769_v57, 4  ;;  %v1793_v3 = vrot.slane %v1780_v58, 4 }
 0xa9c   : > { %v1792_v4 = vperm.slane %v1784_v63, %v3017_v0  ;;  %v1804_v5 = vperm.slane %v1796_v1, %v3017_v0  ;;  %v1689_v39 = vpack.c.bf16 %v1684_v37, %v1684_v37  ;;  %v1687_v47 = vpack.c.bf16 %v1680_v41, %v1680_v41 }
 0xa9d   : > { %v1782_v8 = vsel %vm609_vm5, %v1781_v2, %v1763_v53  ;;  %v1794_v9 = vsel %vm609_vm5, %v1793_v3, %v1774_v52  ;;  %v1688_v48 = vpack.c.bf16 %v1682_v43, %v1682_v43 }
 0xa9e   : > { %v1809_v14 = vrot.slane %v1804_v5, 4  ;;  %v1811_v15 = vrot.slane %v1792_v4, 4  ;;  %v1788_v16 = vperm.slane %v1782_v8, %v3017_v0  ;;  %v1800_v17 = vperm.slane %v1794_v9, %v3017_v0 }
 0xaa0   : > { %v1810_v40 = vsel %vm609_vm5, %v1809_v14, %v1792_v4  ;;  %v1812_v22 = vsel %vm609_vm5, %v1804_v5, %v1811_v15  ;;  %v1805_v42 = vrot.slane %v1800_v17, 4  ;;  %v1807_v23 = vrot.slane %v1788_v16, 4 }
 0xaa1   : > { %v1815_v24 = vpack.c.bf16 %v1810_v40, %v1810_v40  ;;  %v1816_v25 = vpack.c.bf16 %v1812_v22, %v1812_v22 }
 0xaa2   : > { %v1806_v26 = vsel %vm609_vm5, %v1805_v42, %v1788_v16  ;;  %v1808_v27 = vsel %vm609_vm5, %v1800_v17, %v1807_v23 }
 0xaa3   : > { %v1985_v45 = vsel %vm975_vm6, %v1815_v24, 0  ;;  %v2004_v30 = vsel %vm975_vm6, %v1816_v25, 0  ;;  %v1813_v31 = vpack.c.bf16 %v1806_v26, %v1806_v26  ;;  %v1814_v46 = vpack.c.bf16 %v1808_v27, %v1808_v27 }
 0xaa4   : > { %1994 = vmatpush.bf16.xpose.msrb.mxu3 %v1985_v45  ;;  %2013 = vmatpush.bf16.xpose.msra.mxu0 %v2004_v30 }
 0xaa5   : > { %v1947_v35 = vsel %vm975_vm6, %v1813_v31, 0  ;;  %v1966_v36 = vsel %vm975_vm6, %v1814_v46, 0 }
 0xaa6   : > { %1956 = vmatpush.bf16.xpose.msrb.mxu1 %v1947_v35  ;;  %1975 = vmatpush.bf16.xpose.msrb.mxu2 %v1966_v36 }
 0xaab   : > { %2630 = vmatmul.msk.bf16.vlgmr.msrb.gmra.mxu3 %vm975_vm6, %v1689_v39  ;;  %2631 = vmatmul.msk.bf16.vlgmr.msra.gmra.mxu0 %vm975_vm6, %v1690_v44 }
 0xaad   : > { %2628 = vmatmul.msk.bf16.vlgmr.msrb.gmra.mxu1 %vm975_vm6, %v1687_v47  ;;  %2629 = vmatmul.msk.bf16.vlgmr.msrb.gmra.mxu2 %vm975_vm6, %v1688_v48 }
 0xb28   : > { %v2015_v50 = vpop.f32.mrf.mxu0 }
 0xb29   : > { %v2022_v61 = vmul.f32 0.35355338, %v2015_v50 }
 0xb2a   : > { %v1958_v51 = vpop.f32.mrf.mxu1 }
 0xb2b   : > { %v2019_v52 = vmul.f32 0.35355338, %v1958_v51  ;;  %v2032_v1 = vsel %vm975_vm6, %v2022_v61, -inf }
 0xb2d   : > { %v2023_v53 = vsel %vm975_vm6, %v2019_v52, -inf }
 0xb2e   : > { %v1996_v54 = vpop.f32.mrf.mxu3  ;;  %2024 = vmax.xlane.f32.xlu2 %v2023_v53 }
 0xb2f   : > { %v2021_v55 = vmul.f32 0.35355338, %v1996_v54 }
 0xb30   : > { %v1977_v56 = vpop.f32.mrf.mxu2  ;;  %v2017_v32 = vpop.f32.mrf.mxu0 }
 0xb31   : > { %v2020_v57 = vmul.f32 0.35355338, %v1977_v56  ;;  %v2029_v58 = vsel %vm975_vm6, %v2021_v55, -inf }
 0xb32   : > { %2030 = vmax.xlane.f32.xlu0 %v2029_v58  ;;  %v1960_v59 = vpop.f32.mrf.mxu1 }
 0xb33   : > { %v2026_v60 = vsel %vm975_vm6, %v2020_v57, -inf }
 0xb34   : > { %2027 = vmax.xlane.f32.xlu1 %v2026_v60 }
 0xb36   : > { %v1998_v62 = vpop.f32.mrf.mxu3 }
 0xb38   : > { %v1979_v63 = vpop.f32.mrf.mxu2 }
 0xb3a   : > { %2033 = vmax.xlane.f32.xlu0 %v2032_v1 }
 0xb4e   : > { %2766 = vrot.lane.b32.xlu0 %v3293_v18, %s2860_s17 }
 0xb56   : > { %2771 = vrot.lane.b32.xlu0 %v3297_v21, %s2860_s17 }
 0xba1   : > { %v2025_v2 = vpop.xlane.xlu2 %2024 }
 0xba2   : > { %v2035_v3 = vsub.f32 %v2019_v52, %v2025_v2 }
 0xba4   : > { %v2039_v4 = vmul.f32 1.442695, %v2035_v3 }
 0xba5   : > { %v2031_v5 = vpop.xlane.xlu0 %2030 }
 0xba6   : > { %2821 = vpow2.f32 %v2039_v4  ;;  %v2037_v6 = vsub.f32 %v2021_v55, %v2031_v5 }
 0xba7   : > { %v2028_v7 = vpop.xlane.xlu1 %2027 }
 0xba8   : > { %v2043_v8 = vmul.f32 1.442695, %v2037_v6  ;;  %v2036_v9 = vsub.f32 %v2020_v57, %v2028_v7 }
 0xbaa   : > { %2823 = vpow2.f32 %v2043_v8  ;;  %v2041_v12 = vmul.f32 1.442695, %v2036_v9 }
 0xbac   : > { %v3397_v13 = vpop.eup %2821  ;;  %2825 = vpow2.f32 %v2041_v12 }
 0xbad   : > { %v2034_v14 = vpop.xlane.xlu0 %2033  ;;  %v2047_v18 = vsel %vm975_vm6, %v3397_v13, 0.0 }
 0xbae   : > { %v2038_v15 = vsub.f32 %v2022_v61, %v2034_v14  ;;  %2048 = vadd.xlane.f32.xlu2 %v2047_v18 }
 0xbb0   : > { %v3401_v21 = vpop.eup %2823  ;;  %v2045_v16 = vmul.f32 1.442695, %v2038_v15 }
 0xbb1   : > { %v2053_v17 = vsel %vm975_vm6, %v3401_v21, 0.0 }
 0xbb2   : > { %v3405_v19 = vpop.eup %2825  ;;  %2827 = vpow2.f32 %v2045_v16  ;;  %2054 = vadd.xlane.f32.xlu0 %v2053_v17 }
 0xbb3   : > { %v2050_v20 = vsel %vm975_vm6, %v3405_v19, 0.0 }
 0xbb4   : > { %2051 = vadd.xlane.f32.xlu1 %v2050_v20 }
 0xbb8   : > { %v3409_v40 = vpop.eup %2827 }
 0xbb9   : > { %v2056_v22 = vsel %vm975_vm6, %v3409_v40, 0.0 }
 0xbbc   : > { %2057 = vadd.xlane.f32.xlu1 %v2056_v22 }
 0xbc0   : > { %v2767_v42 = vpop.permute.xlu0 %2766 }
 0xbc1   : > { %v2769_v23 = vunpack.i.h.bf16 %v2767_v42  ;;  %v2768_v24 = vunpack.i.l.bf16 %v2767_v42 }
 0xbc3   : > { %v1843_v26 = vrot.slane %v2769_v23, 4  ;;  %v1831_v27 = vrot.slane %v2768_v24, 4 }
 0xbc8   : > { %v2772_v25 = vpop.permute.xlu0 %2771 }
 0xbc9   : > { %v2774_v28 = vunpack.i.h.bf16 %v2772_v25  ;;  %v2773_v29 = vunpack.i.l.bf16 %v2772_v25 }
 0xbcb   : > { %v1841_v45 = vrot.slane %v2774_v28, 4  ;;  %v1829_v30 = vrot.slane %v2773_v29, 4  ;;  %v1832_v31 = vsel %vm609_vm5, %v2773_v29, %v1831_v27  ;;  %v1844_v46 = vsel %vm609_vm5, %v2774_v28, %v1843_v26 }
 0xbcc   : > { %v1840_v33 = vperm.slane %v1832_v31, %v3007_v49  ;;  %v1852_v34 = vperm.slane %v1844_v46, %v3007_v49 }
 0xbcd   : > { %v1830_v35 = vsel %vm609_vm5, %v1829_v30, %v2768_v24  ;;  %v1842_v36 = vsel %vm609_vm5, %v1841_v45, %v2769_v23 }
 0xbce   : > { %v1836_v37 = vperm.slane %v1830_v35, %v3007_v49  ;;  %v1848_v38 = vperm.slane %v1842_v36, %v3007_v49  ;;  %v1865_v41 = vrot.slane %v1852_v34, 4  ;;  %v1867_v43 = vrot.slane %v1840_v33, 4 }
 0xbd0   : > { %v1853_v39 = vrot.slane %v1848_v38, 4  ;;  %v1855_v44 = vrot.slane %v1836_v37, 4  ;;  %v1866_v47 = vsel %vm609_vm5, %v1865_v41, %v1840_v33  ;;  %v1868_v48 = vsel %vm609_vm5, %v1852_v34, %v1867_v43 }
 0xbd1   : > { %v1872_v50 = vperm.slane %v1866_v47, %v3017_v0  ;;  %v1876_v51 = vperm.slane %v1868_v48, %v3017_v0 }
 0xbd2   : > { %v1854_v52 = vsel %vm609_vm5, %v1853_v39, %v1836_v37  ;;  %v1856_v53 = vsel %vm609_vm5, %v1848_v38, %v1855_v44 }
 0xbd3   : > { %v1860_v54 = vperm.slane %v1854_v52, %v3017_v0  ;;  %v1864_v55 = vperm.slane %v1856_v53, %v3017_v0  ;;  %v1881_v56 = vrot.slane %v1872_v50, 4  ;;  %v1883_v32 = vrot.slane %v1876_v51, 4 }
 0xbd5   : > { %v1877_v57 = vrot.slane %v1860_v54, 4  ;;  %v1879_v58 = vrot.slane %v1864_v55, 4  ;;  %v1884_v59 = vsel %vm609_vm5, 0.0, %v1883_v32  ;;  %v1896_v60 = vsel %vm609_vm5, %v1883_v32, %v1872_v50 }
 0xbd6   : > { %v1901_v61 = vrot.slane %v1884_v59, 4  ;;  %v1882_v63 = vsel %vm609_vm5, 0.0, %v1881_v56  ;;  %v1900_v1 = vperm.slane %v1896_v60, %v3007_v49 }
 0xbd7   : > { %v1880_v62 = vsel %vm609_vm5, 0.0, %v1879_v58  ;;  %v1885_v2 = vsel %vm609_vm5, %v1879_v58, %v1860_v54  ;;  %v1878_v6 = vsel %vm609_vm5, 0.0, %v1877_v57 }
 0xbd8   : > { %v1890_v3 = vrot.slane %v1880_v62, 4  ;;  %v1889_v4 = vperm.slane %v1885_v2, %v3007_v49  ;;  %v1902_v5 = vsel %vm609_vm5, %v1901_v61, %v1882_v63  ;;  %v1921_v8 = vrot.slane %v1900_v1, 4 }
 0xbd9   : > { %v1906_v7 = vperm.slane %v1902_v5, %v3007_v49 }
 0xbda   : > { %v1891_v9 = vsel %vm609_vm5, %v1890_v3, %v1878_v6  ;;  %v1909_v12 = vrot.slane %v1889_v4, 4 }
 0xbdb   : > { %v1895_v14 = vperm.slane %v1891_v9, %v3007_v49  ;;  %v1922_v18 = vsel %vm609_vm5, %v1906_v7, %v1921_v8  ;;  %v1919_v15 = vrot.slane %v1906_v7, 4 }
 0xbdc   : > { %v1930_v16 = vperm.slane %v1922_v18, %v3017_v0 }
 0xbdd   : > { %v1910_v17 = vsel %vm609_vm5, %v1895_v14, %v1909_v12  ;;  %v1907_v20 = vrot.slane %v1895_v14, 4  ;;  %v1920_v22 = vsel %vm609_vm5, %v1919_v15, %v1900_v1 }
 0xbde   : > { %v1918_v42 = vperm.slane %v1910_v17, %v3017_v0  ;;  %v1935_v23 = vrot.slane %v1930_v16, 4  ;;  %v1926_v24 = vperm.slane %v1920_v22, %v3017_v0 }
 0xbdf   : > { %v1908_v25 = vsel %vm609_vm5, %v1907_v20, %v1889_v4 }
 0xbe0   : > { %v1936_v26 = vsel %vm609_vm5, %v1935_v23, %v1918_v42  ;;  %v1914_v27 = vperm.slane %v1908_v25, %v3017_v0  ;;  %v1931_v28 = vrot.slane %v1926_v24, 4  ;;  %v1937_v29 = vrot.slane %v1918_v42, 4 }
 0xbe1   : > { %v1941_v45 = vpack.c.bf16 %v1936_v26, %v1936_v26 }
 0xbe2   : > { %v1932_v30 = vsel %vm609_vm5, %v1931_v28, %v1914_v27  ;;  %v1938_v31 = vsel %vm609_vm5, %v1930_v16, %v1937_v29  ;;  %v1933_v46 = vrot.slane %v1914_v27, 4 }
 0xbe3   : > { %v2113_v33 = vsel %vm1107_vm7, %v1941_v45, 0  ;;  %v1939_v34 = vpack.c.bf16 %v1932_v30, %v1932_v30  ;;  %v1942_v35 = vpack.c.bf16 %v1938_v31, %v1938_v31 }
 0xbe4   : > { %2122 = vmatpush.bf16.msra.mxu3 %v2113_v33  ;;  %v1934_v36 = vsel %vm609_vm5, %v1926_v24, %v1933_v46 }
 0xbe5   : > { %v2075_v37 = vsel %vm1107_vm7, %v1939_v34, 0  ;;  %v2132_v38 = vsel %vm1107_vm7, %v1942_v35, 0  ;;  %v1940_v41 = vpack.c.bf16 %v1934_v36, %v1934_v36 }
 0xbe6   : > { %2084 = vmatpush.bf16.msra.mxu1 %v2075_v37  ;;  %2141 = vmatpush.bf16.msrb.mxu0 %v2132_v38 }
 0xbe7   : > { %v2094_v43 = vsel %vm1107_vm7, %v1940_v41, 0 }
 0xbe8   : > { %2103 = vmatpush.bf16.msra.mxu2 %v2094_v43 }
 0xc21   : > { %v2049_v39 = vpop.xlane.xlu2 %2048 }
 0xc22   : > { %2829 = vrcp.f32 %v2049_v39 }
 0xc25   : > { %v2055_v44 = vpop.xlane.xlu0 %2054 }
 0xc26   : > { %2831 = vrcp.f32 %v2055_v44 }
 0xc27   : > { %v2052_v47 = vpop.xlane.xlu1 %2051 }
 0xc28   : > { %v2830_v48 = vpop.eup %2829  ;;  %2833 = vrcp.f32 %v2052_v47 }
 0xc29   : > { %v2063_v50 = vmul.f32 %v2830_v48, %v3397_v13 }
 0xc2b   : > { %v2067_v51 = vpack.c.bf16 %v2063_v50, %v2063_v50 }
 0xc2c   : > { %v2832_v52 = vpop.eup %2831 }
 0xc2d   : > { %v2065_v53 = vmul.f32 %v2832_v52, %v3401_v21  ;;  %2632 = vmatmul.msk.bf16.vlgmr.msra.gmra.mxu1 %vm975_vm6, %v2067_v51 }
 0xc2e   : > { %v2834_v54 = vpop.eup %2833 }
 0xc2f   : > { %v2069_v55 = vpack.c.bf16 %v2065_v53, %v2065_v53  ;;  %v2064_v56 = vmul.f32 %v2834_v54, %v3405_v19  ;;  %v2058_v32 = vpop.xlane.xlu1 %2057 }
 0xc30   : > { %2835 = vrcp.f32 %v2058_v32 }
 0xc31   : > { %v2068_v57 = vpack.c.bf16 %v2064_v56, %v2064_v56  ;;  %2634 = vmatmul.msk.bf16.vlgmr.msra.gmra.mxu3 %vm975_vm6, %v2069_v55 }
 0xc33   : > { %2633 = vmatmul.msk.bf16.vlgmr.msra.gmra.mxu2 %vm975_vm6, %v2068_v57 }
 0xc36   : > { %v2836_v58 = vpop.eup %2835 }
 0xc37   : > { %v2066_v13 = vmul.f32 %v2836_v58, %v3409_v40 }
 0xc39   : > { %v2070_v59 = vpack.c.bf16 %v2066_v13, %v2066_v13 }
 0xc3b   : > { %2635 = vmatmul.msk.bf16.vlgmr.msrb.gmra.mxu0 %vm975_vm6, %v2070_v59 }
 0xcaa   : > { %v2086_v21 = vpop.f32.mrf.mxu1 }
 0xcab   : > { %v2149_v61 = vrot.slane %v2086_v21, 4 }
 0xcb2   : > { %v2088_v60 = vpop.f32.mrf.mxu1 }
 0xcb4   : > { %v2124_v62 = vpop.f32.mrf.mxu3 }
 0xcb5   : > { %v2147_v63 = vrot.slane %v2124_v62, 4  ;;  %v2150_v19 = vsel %vm609_vm5, %v2124_v62, %v2149_v61 }
 0xcb6   : > { %v2158_v1 = vperm.slane %v2150_v19, %v3007_v49  ;;  %v2105_v2 = vpop.f32.mrf.mxu2 }
 0xcb7   : > { %v2148_v3 = vsel %vm609_vm5, %v2147_v63, %v2086_v21  ;;  %v2161_v4 = vrot.slane %v2105_v2, 4 }
 0xcb8   : > { %v2154_v5 = vperm.slane %v2148_v3, %v3007_v49  ;;  %v2143_v6 = vpop.f32.mrf.mxu0  ;;  %v2185_v8 = vrot.slane %v2158_v1, 4 }
 0xcb9   : > { %v2159_v40 = vrot.slane %v2143_v6, 4  ;;  %v2162_v7 = vsel %vm609_vm5, %v2143_v6, %v2161_v4  ;;  %v2709_v4 = vld [vmem:[%s3583_s6 + $0x18] sm:$0xff] }
 0xcba   : > { %v2170_v9 = vperm.slane %v2162_v7, %v3007_v49  ;;  %v2173_v14 = vrot.slane %v2154_v5, 4  ;;  %2304 = vmatpush.bf16.msrb.mxu1 %v2709_v4 }
 0xcbb   : > { %v2160_v12 = vsel %vm609_vm5, %v2159_v40, %v2105_v2 }
 0xcbc   : > { %v2166_v18 = vperm.slane %v2160_v12, %v3007_v49  ;;  %v2183_v15 = vrot.slane %v2170_v9, 4  ;;  %v2186_v16 = vsel %vm609_vm5, %v2170_v9, %v2185_v8  ;;  %v2126_v17 = vpop.f32.mrf.mxu3 }
 0xcbd   : > { %v2194_v20 = vperm.slane %v2186_v16, %v3017_v0 }
 0xcbe   : > { %v2171_v22 = vrot.slane %v2166_v18, 4  ;;  %v2174_v42 = vsel %vm609_vm5, %v2166_v18, %v2173_v14  ;;  %v2184_v23 = vsel %vm609_vm5, %v2183_v15, %v2158_v1  ;;  %v2107_v24 = vpop.f32.mrf.mxu2  ;;  %v2786_v14 = vld [vmem:[%s3584_s7 + $0x1] ss:$0 sm:$0xff] }
 0xcbf   : > { %v2182_v25 = vperm.slane %v2174_v42, %v3017_v0  ;;  %v2190_v26 = vperm.slane %v2184_v23, %v3017_v0  ;;  %v2201_v27 = vrot.slane %v2194_v20, 4 }
 0xcc0   : > { %v2172_v28 = vsel %vm609_vm5, %v2171_v22, %v2154_v5  ;;  %v2145_v29 = vpop.f32.mrf.mxu0 }
 0xcc1   : > { %v2178_v45 = vperm.slane %v2172_v28, %v3017_v0  ;;  %v2197_v30 = vrot.slane %v2182_v25, 4  ;;  %v2199_v31 = vrot.slane %v2190_v26, 4  ;;  %v2202_v46 = vsel %vm609_vm5, 0.0, %v2201_v27 }
 0xcc2   : > { %v2214_v33 = vsel %vm609_vm5, %v2201_v27, %v2190_v26  ;;  %v2219_v34 = vrot.slane %v2202_v46, 4  ;;  %v2711_v26 = vld [vmem:[%s3587_s10 + $0x18] sm:$0xff] }
 0xcc3   : > { %v2195_v35 = vrot.slane %v2178_v45, 4  ;;  %v2198_v36 = vsel %vm609_vm5, 0.0, %v2197_v30  ;;  %v2200_v37 = vsel %vm609_vm5, 0.0, %v2199_v31  ;;  %v2218_v38 = vperm.slane %v2214_v33, %v3007_v49  ;;  %2378 = vmatpush.bf16.msrb.mxu2 %v2711_v26 }
 0xcc4   : > { %v2208_v41 = vrot.slane %v2198_v36, 4  ;;  %v2203_v43 = vsel %vm609_vm5, %v2197_v30, %v2178_v45  ;;  %v2220_v39 = vsel %vm609_vm5, %v2219_v34, %v2200_v37  ;;  %v2788_v37 = vld [vmem:[%s3586_s9 + $0x1] ss:$0 sm:$0xff] }
 0xcc5   : > { %v2196_v44 = vsel %vm609_vm5, 0.0, %v2195_v35  ;;  %v2207_v47 = vperm.slane %v2203_v43, %v3007_v49  ;;  %v2224_v48 = vperm.slane %v2220_v39, %v3007_v49  ;;  %v2239_v50 = vrot.slane %v2218_v38, 4  ;;  %v2787_v35 = vld [vmem:[%s3585_s8 + $0x1] ss:$0 sm:$0xff] }
 0xcc6   : > { %v2209_v51 = vsel %vm609_vm5, %v2208_v41, %v2196_v44  ;;  %v2789_v44 = vld [vmem:[%s3588_s11 + $0x1] ss:$0 sm:$0xff] }
 0xcc7   : > { %v2213_v52 = vperm.slane %v2209_v51, %v3007_v49  ;;  %v2227_v53 = vrot.slane %v2207_v47, 4  ;;  %v2240_v54 = vsel %vm609_vm5, %v2224_v48, %v2239_v50  ;;  %v2237_v55 = vrot.slane %v2224_v48, 4  ;;  %v2715_v50 = vld [vmem:[%s3589_s12 + $0x38] sm:$0xff] }
 0xcc8   : > { %v2248_v56 = vperm.slane %v2240_v54, %v3017_v0  ;;  %2457 = vmatpush.bf16.msrb.mxu3 %v2715_v50 }
 0xcc9   : > { %v2228_v32 = vsel %vm609_vm5, %v2213_v52, %v2227_v53  ;;  %v2225_v57 = vrot.slane %v2213_v52, 4  ;;  %v2238_v58 = vsel %vm609_vm5, %v2237_v55, %v2218_v38  ;;  %v2714_v53 = vld [vmem:[%s3589_s12 + $0x30] sm:$0xff] }
 0xcca   : > { %v2236_v13 = vperm.slane %v2228_v32, %v3017_v0  ;;  %v2253_v59 = vrot.slane %v2248_v56, 4  ;;  %v2244_v21 = vperm.slane %v2238_v58, %v3017_v0  ;;  %v2713_v32 = vld [vmem:[%s3589_s12 + $0x28] sm:$0xff] }
 0xccb   : > { %v2226_v60 = vsel %vm609_vm5, %v2225_v57, %v2207_v47  ;;  %v2712_v57 = vld [vmem:[%s3589_s12 + $0x20] sm:$0xff] }
 0xccc   : > { %v2254_v49 = vsel %vm609_vm5, %v2253_v59, %v2236_v13  ;;  %v2232_v61 = vperm.slane %v2226_v60, %v3017_v0  ;;  %v2249_v62 = vrot.slane %v2244_v21, 4  ;;  %v2255_v2 = vrot.slane %v2236_v13, 4  ;;  %v2708_v0 = vld [vmem:[%s3583_s6 + $0x10] sm:$0xff]  ;;  %2458 = vmatpush.bf16.msrb.mxu3 %v2714_v53 }
 0xccd   : > { %2262 = vrot.lane.b32.xlu1 %v2254_v49, %s2862_s19  ;;  %2305 = vmatpush.bf16.msrb.mxu1 %v2708_v0  ;;  %s3601_s19 = sshll.u32 %s3603_s22, 3 }
 0xcce   : > { %v2251_v63 = vrot.slane %v2232_v61, 4  ;;  %v2250_v19 = vsel %vm609_vm5, %v2249_v62, %v2232_v61  ;;  %v2256_v3 = vsel %vm609_vm5, %v2248_v56, %v2255_v2  ;;  %s516_s27 = scalar_lea.vmem %s3593_s16, %s3601_s19 }
 0xcd0   : > { %v2252_v1 = vsel %vm609_vm5, %v2244_v21, %v2251_v63  ;;  %2459 = vmatpush.bf16.msrb.mxu3 %v2713_v32 }
 0xcd1   : > { %2258 = vrot.lane.b32.xlu2 %v2252_v1, %s3599_s28 }
 0xcd4   : > { %2460 = vmatpush.bf16.msrb.mxu3 %v2712_v57 }
 0xcd9   : > { %2266 = vrot.lane.b32.xlu2 %v2256_v3, %s3600_s29 }
 0xd2b   : > { %v2259_v5 = vpop.permute.xlu2 %2258 }
 0xd2c   : > { %v2269_v6 = vsel %vm975_vm6, %v2250_v19, %v2259_v5 }
 0xd33   : > { %v2267_v7 = vpop.permute.xlu2 %2266 }
 0xd3f   : > { %v2263_v40 = vpop.permute.xlu1 %2262 }
 0xd40   : > { %v2270_v8 = vsel %vm1304_vm8, %v2269_v6, %v2263_v40 }
 0xd41   : > { %v2271_v9 = vsel %vm1306_vm9, %v2270_v8, %v2267_v7 }
 0xd42   : > { %v2277_v12 = vpack.c.bf16 %v2271_v9, %v2271_v9 }
 0xd44   : > { %2649 = vmatmul.msk.bf16.vlgmr.msrb.gmra.mxu1 %vm523_vm0, %v2277_v12 }
 0xdc1   : > { %v2307_v18 = vpop.f32.mrf.mxu1 }
 0xdc2   : > { %v2308_v15 = vadd.f32 %v2786_v14, %v2307_v18  ;;  %v2790_v14 = vld [vmem:[%s3590_s13 + $0x1] ss:$0 sm:$0xff] }
 0xdc4   : > { %v2311_v16 = vadd.f32 %v2308_v15, %v3282_v11  ;;  %v2710_v11 = vld [vmem:[%s3587_s10 + $0x10] sm:$0xff] }
 0xdc5   : > { %2379 = vmatpush.bf16.msrb.mxu2 %v2710_v11 }
 0xdc6   : > { %v2316_v17 = vsel %vm523_vm0, %v2311_v16, 0.0 }
 0xdc7   : > { %2317 = vadd.xlane.f32.xlu1 %v2316_v17 }
 0xdc9   : > { %v2309_v20 = vpop.f32.mrf.mxu1 }
 0xe3a   : > { %v2318_v22 = vpop.xlane.xlu1 %2317 }
 0xe3b   : > { %v2319_v42 = vmul.f32 %v2318_v22, %v2969_v10 }
 0xe3d   : > { %v2320_v23 = vsub.f32 %v2311_v16, %v2319_v42 }
 0xe3f   : > { %v2321_v24 = vmul.f32 %v2320_v23, %v2320_v23 }
 0xe41   : > { %v2322_v25 = vsel %vm523_vm0, %v2321_v24, 0.0 }
 0xe42   : > { %2323 = vadd.xlane.f32.xlu0 %v2322_v25 }
 0xeb5   : > { %v2324_v27 = vpop.xlane.xlu0 %2323 }
 0xeb6   : > { %v2325_v28 = vmul.f32 %v2324_v27, %v2969_v10 }
 0xeb8   : > { %v2326_v29 = vadd.f32 1e-05, %v2325_v28 }
 0xeba   : > { %2837 = vrsqrt.f32 %v2326_v29  ;;  %vm2333_vm4 = vweird.f32 %v2326_v29 }
 0xec0   : > { %v2838_v45 = vpop.eup %2837 }
 0xec1   : > { %v2328_v30 = vmul.f32 %v2838_v45, %v2326_v29  ;;  %vm2334_vm3 = vweird.f32 %v2838_v45 }
 0xec2   : > { %vm2335_vm5 = vmor %vm2333_vm4, %vm2334_vm3 }
 0xec3   : > { %v2329_v31 = vmul.f32 %v2838_v45, %v2328_v30 }
 0xec5   : > { %v2330_v46 = vmul.f32 0.5, %v2329_v31 }
 0xec7   : > { %v2331_v33 = vsub.f32 1.5, %v2330_v46 }
 0xec9   : > { %v2332_v34 = vmul.f32 %v2838_v45, %v2331_v33  ;;  %v2791_v33 = vld [vmem:[%s3591_s14 + $0x1] ss:$0 sm:$0xff] }
 0xecb   : > { %v2336_v36 = vsel %vm2335_vm5, %v2838_v45, %v2332_v34 }
 0xecc   : > { %v2337_v38 = vmul.f32 %v2336_v36, %v2320_v23 }
 0xece   : > { %v2341_v41 = vmul.f32 %v2787_v35, %v2337_v38 }
 0xed0   : > { %v2345_v43 = vadd.f32 %v2788_v37, %v2341_v41 }
 0xed2   : > { %v2351_v39 = vpack.c.bf16 %v2345_v43, %v2345_v43 }
 0xed4   : > { %2665 = vmatmul.msk.bf16.vlgmr.msrb.gmra.mxu2 %vm523_vm0, %v2351_v39 }
 0xf57   : > { %v2381_v47 = vpop.f32.mrf.mxu2 }
 0xf58   : > { %v2382_v48 = vadd.f32 %v2789_v44, %v2381_v47 }
 0xf5a   : > { %v2386_v51 = vmul.f32 0.70710677, %v2382_v48  ;;  %v2385_v7 = vmul.f32 0.5, %v2382_v48 }
 0xf5c   : > { %v2387_v52 = vand.u32 2147483647, %v2386_v51  ;;  %vm2406_vm6 = vcmp.ge.f32.partialorder %v2386_v51, 0.0 }
 0xf5e   : > { %v2388_v54 = vmul.f32 0.3275911, %v2387_v52  ;;  %v2400_v13 = vsub.f32 0.0, %v2387_v52 }
 0xf5f   : > { %v2383_v55 = vpop.f32.mrf.mxu2 }
 0xf60   : > { %v2389_v56 = vadd.f32 1.0, %v2388_v54  ;;  %v2401_v60 = vmul.f32 %v2400_v13, %v2387_v52 }
 0xf62   : > { %2839 = vrcp.f32 %v2389_v56  ;;  %v2402_v62 = vmul.f32 1.442695, %v2401_v60 }
 0xf64   : > { %2841 = vpow2.f32 %v2402_v62 }
 0xf68   : > { %v2840_v58 = vpop.eup %2839 }
 0xf69   : > { %v2391_v59 = vmul.f32 1.0614054, %v2840_v58 }
 0xf6a   : > { %v2842_v4 = vpop.eup %2841 }
 0xf6b   : > { %v2392_v21 = vadd.f32 -1.4531521, %v2391_v59 }
 0xf6d   : > { %v2393_v49 = vmul.f32 %v2840_v58, %v2392_v21 }
 0xf6f   : > { %v2394_v61 = vadd.f32 1.4214138, %v2393_v49 }
 0xf71   : > { %v2395_v63 = vmul.f32 %v2840_v58, %v2394_v61 }
 0xf73   : > { %v2396_v19 = vadd.f32 -0.28449672, %v2395_v63 }
 0xf75   : > { %v2397_v1 = vmul.f32 %v2840_v58, %v2396_v19 }
 0xf77   : > { %v2398_v2 = vadd.f32 0.2548296, %v2397_v1 }
 0xf79   : > { %v2399_v3 = vmul.f32 %v2840_v58, %v2398_v2 }
 0xf7b   : > { %v2404_v0 = vmul.f32 %v2842_v4, %v2399_v3 }
 0xf7d   : > { %v2405_v5 = vsub.f32 1.0, %v2404_v0 }
 0xf7f   : > { %v2407_v6 = vsub.f32 0.0, %v2405_v5 }
 0xf81   : > { %v2408_v40 = vsel %vm2406_vm6, %v2405_v5, %v2407_v6 }
 0xf82   : > { %v2409_v8 = vadd.f32 1.0, %v2408_v40 }
 0xf84   : > { %v2410_v9 = vmul.f32 %v2409_v8, %v2385_v7 }
 0xf86   : > { %v2420_v12 = vpack.c.bf16 %v2410_v9, %v2410_v9 }
 0xf88   : > { %2691 = vmatmul.msk.bf16.vlgmr.msrb.gmra.mxu3 %vm1478_vm14, %v2420_v12 }
0x100b   : > { %v2462_v18 = vpop.f32.mrf.mxu3 }
0x100c   : > { %v2463_v15 = vadd.f32 %v2790_v14, %v2462_v18 }
0x100e   : > { %v2466_v16 = vadd.f32 %v2463_v15, %v2345_v43 }
0x1010   : > { %v2471_v17 = vsel %vm523_vm0, %v2466_v16, 0.0 }
0x1011   : > { %2472 = vadd.xlane.f32.xlu2 %v2471_v17 }
0x1013   : > { %v2464_v20 = vpop.f32.mrf.mxu3 }
0x1084   : > { %v2473_v22 = vpop.xlane.xlu2 %2472 }
0x1085   : > { %v2474_v42 = vmul.f32 %v2473_v22, %v2969_v10 }
0x1087   : > { %v2475_v23 = vsub.f32 %v2466_v16, %v2474_v42 }
0x1089   : > { %v2476_v24 = vmul.f32 %v2475_v23, %v2475_v23 }
0x108b   : > { %v2477_v25 = vsel %vm523_vm0, %v2476_v24, 0.0 }
0x108c   : > { %2478 = vadd.xlane.f32.xlu0 %v2477_v25 }
0x10ff   : > { %v2479_v26 = vpop.xlane.xlu0 %2478 }
0x1100   : > { %v2480_v11 = vmul.f32 %v2479_v26, %v2969_v10  ;;  %v2792_v10 = vld [vmem:[%s3592_s15 + $0x1] ss:$0 sm:$0xff] }
0x1102   : > { %v2481_v27 = vadd.f32 1e-05, %v2480_v11 }
0x1104   : > { %2843 = vrsqrt.f32 %v2481_v27  ;;  %vm2488_vm8 = vweird.f32 %v2481_v27 }
0x110a   : > { %v2844_v28 = vpop.eup %2843 }
0x110b   : > { %v2483_v29 = vmul.f32 %v2844_v28, %v2481_v27  ;;  %vm2489_vm7 = vweird.f32 %v2844_v28 }
0x110c   : > { %vm2490_vm9 = vmor %vm2488_vm8, %vm2489_vm7 }
0x110d   : > { %v2484_v45 = vmul.f32 %v2844_v28, %v2483_v29 }
0x110f   : > { %v2485_v30 = vmul.f32 0.5, %v2484_v45 }
0x1111   : > { %v2486_v31 = vsub.f32 1.5, %v2485_v30 }
0x1113   : > { %v2487_v46 = vmul.f32 %v2844_v28, %v2486_v31 }
0x1115   : > { %v2491_v34 = vsel %vm2490_vm9, %v2844_v28, %v2487_v46 }
0x1116   : > { %v2492_v35 = vmul.f32 %v2491_v34, %v2475_v23 }
0x1118   : > { %v2496_v36 = vmul.f32 %v2791_v33, %v2492_v35 }
0x111a   : > { %v2500_v37 = vadd.f32 %v2792_v10, %v2496_v36 }
0x111c   : > { %2501 = vst.msk [vmem:[%s516_s27] sm:$0xff] %vm523_vm0, %v2500_v37 }
0x111d PF: > { %s26_s21 = sadd.s32 1, %s2851_s21  }
0x111e   : > { %p23_p4 = scmp.ge.s32.totalorder %s26_s21, 4  }
0x1120   :  { %25 = sbr.rel (!%p23_p4) target bundleno = 2 (0x2), region = 126 }

// kernel: bart_forward.3
= control target key start
LH: loop header
LB: loop body
LE: loop exit
PB: predicated region body
PF: predicated region fallthrough
CT: control target
= control target key end

     0   :  { %s6890_s0 = inlined_call_operand.vmem [shape: f32[2,8,32], index: 0, kind: input, shape index: {}]   ;;  %s6891_s1 = inlined_call_operand.vmem [shape: f32[8,32], index: 1, kind: input, shape index: {}]   ;;  %s6892_s2 = inlined_call_operand.vmem [shape: f32[1,32], index: 2, kind: input, shape index: {}]   ;;  %s6893_s3 = inlined_call_operand.vmem [shape: f32[1,32], index: 3, kind: input, shape index: {}]   ;;  %s6894_s4 = inlined_call_operand.vmem [shape: f32[2,8,32], index: 4, kind: input, shape index: {}]   ;;  %s6895_s5 = inlined_call_operand.vmem [shape: bf16[2,32,96], index: 5, kind: input, shape index: {}]   ;;  %s6896_s6 = inlined_call_operand.vmem [shape: f32[2,1,96], index: 6, kind: input, shape index: {}]   ;;  %s6897_s7 = inlined_call_operand.vmem [shape: bf16[2,32,32], index: 7, kind: input, shape index: {}]   ;;  %s6898_s8 = inlined_call_operand.vmem [shape: f32[2,1,32], index: 8, kind: input, shape index: {}]   ;;  %s6899_s9 = inlined_call_operand.vmem [shape: f32[2,1,32], index: 9, kind: input, shape index: {}]   ;;  %s6900_s10 = inlined_call_operand.vmem [shape: f32[2,1,32], index: 10, kind: input, shape index: {}]   ;;  %s6901_s11 = inlined_call_operand.vmem [shape: bf16[2,32,32], index: 11, kind: input, shape index: {}]   ;;  %s6902_s12 = inlined_call_operand.vmem [shape: f32[2,1,32], index: 12, kind: input, shape index: {}]   ;;  %s6903_s13 = inlined_call_operand.vmem [shape: bf16[2,32,64], index: 13, kind: input, shape index: {}]   ;;  %s6904_s14 = inlined_call_operand.vmem [shape: f32[2,1,64], index: 14, kind: input, shape index: {}]   ;;  %s6905_s15 = inlined_call_operand.vmem [shape: bf16[2,32,32], index: 15, kind: input, shape index: {}]   ;;  %s6906_s16 = inlined_call_operand.vmem [shape: f32[2,1,32], index: 16, kind: input, shape index: {}]   ;;  %s6907_s17 = inlined_call_operand.vmem [shape: f32[2,1,32], index: 17, kind: input, shape index: {}]   ;;  %s6908_s18 = inlined_call_operand.vmem [shape: f32[2,1,32], index: 18, kind: input, shape index: {}]   ;;  %s6909_s19 = inlined_call_operand.vmem [shape: bf16[2,32,64], index: 19, kind: input, shape index: {}]   ;;  %s6910_s20 = inlined_call_operand.vmem [shape: f32[2,1,64], index: 20, kind: input, shape index: {}]   ;;  %s6911_s21 = inlined_call_operand.vmem [shape: bf16[2,64,32], index: 21, kind: input, shape index: {}]   ;;  %s6912_s22 = inlined_call_operand.vmem [shape: f32[2,1,32], index: 22, kind: input, shape index: {}]   ;;  %s6913_s23 = inlined_call_operand.vmem [shape: f32[2,1,32], index: 23, kind: input, shape index: {}]   ;;  %s6914_s24 = inlined_call_operand.vmem [shape: f32[2,1,32], index: 24, kind: input, shape index: {}]   ;;  %s6915_s25 = inlined_call_operand.vmem [shape: f32[128,32], index: 25, kind: input, shape index: {}]   ;;  %s6916_s26 = inlined_call_operand.vmem [shape: f32[1,128], index: 26, kind: input, shape index: {}]   ;;  %s6917_s27 = inlined_call_operand.hbm [shape: f32[2,8,128], index: 27, kind: output, shape index: {0}]   ;;  %s6918_s28 = inlined_call_operand.hbm [shape: f32[2,8,32], index: 28, kind: output, shape index: {1}]  }
   0x1   :  { %6965 = sst [smem:[#allocation17_spill]] %s6890_s0 }
   0x2   :  { %6966 = sst [smem:[#allocation18_spill]] %s6891_s1 }
   0x3   :  { %6967 = sst [smem:[#allocation19_spill]] %s6892_s2 }
   0x4   :  { %6968 = sst [smem:[#allocation20_spill]] %s6893_s3 }
   0x5   :  { %6969 = sst [smem:[#allocation21_spill]] %s6894_s4 }
   0x6   :  { %6970 = sst [smem:[#allocation22_spill]] %s6895_s5 }
   0x7   :  { %6971 = sst [smem:[#allocation23_spill]] %s6896_s6 }
   0x8   :  { %6972 = sst [smem:[#allocation24_spill]] %s6897_s7 }
   0x9   :  { %6973 = sst [smem:[#allocation25_spill]] %s6898_s8 }
   0xa   :  { %6974 = sst [smem:[#allocation26_spill]] %s6899_s9 }
   0xb   :  { %6975 = sst [smem:[#allocation27_spill]] %s6900_s10 }
   0xc   :  { %6976 = sst [smem:[#allocation28_spill]] %s6901_s11 }
   0xd   :  { %6977 = sst [smem:[#allocation29_spill]] %s6902_s12 }
   0xe   :  { %6978 = sst [smem:[#allocation30_spill]] %s6903_s13 }
   0xf   :  { %6979 = sst [smem:[#allocation31_spill]] %s6906_s16 }
  0x10   :  { %6980 = sst [smem:[#allocation32_spill]] %s6908_s18 }
  0x11   :  { %6981 = sst [smem:[#allocation33_spill]] %s6909_s19 }
  0x12   :  { %6982 = sst [smem:[#allocation34_spill]] %s6915_s25 }
  0x13   :  { %6983 = sst [smem:[#allocation35_spill]] %s6916_s26 }
  0x14   :  { %6984 = sst [smem:[#allocation36_spill]] %s6917_s27 }
  0x15   :  { %6985 = sst [smem:[#allocation37_spill]] %s6918_s28 }
  0x16   :  { %34 = vsyncpa [#allocation3], 0 }
  0x17   :  { %36 = vsyncpa [#allocation3 + $0x1], 0 }
  0x18   :  { %37 = vsyncpa [#allocation5], 0 }
  0x19   :  { %39 = vsyncpa [#allocation5 + $0x1], 0  ;;  %s5525_s8 = smov 0   ;;  %s5527_s5 = smov 0  }
  0x1a   :  { %s5529_s9 = smov 0   ;;  %s5531_s30 = smov 0  }
  0x1b LB: > { %6986 = sst [smem:[#allocation8_spill]] %s5355_s8  ;;  %s5546_s3 = sadd.s32 4294967295, %s5367_s30   ;;  %s5367_s30 = sphi %s5531_s30, %s7044_s30   ;;  %s5363_s9 = sphi %s5529_s9, %s7047_s9   ;;  %s5359_s5 = sphi %s5527_s5, %s7046_s5   ;;  %s5355_s8 = sphi %s5525_s8, %s7045_s8  }
  0x1c   : > { %6987 = sst [smem:[#allocation9_spill]] %s5359_s5  ;;  %s4775_s6 = sadd.s32 4294967294, %s5367_s30  }
  0x1d   : > { %6988 = sst [smem:[#allocation10_spill]] %s5363_s9  ;;  %s5550_s10 = sadd.s32 1, %s5367_s30  }
  0x1e   : > { %6989 = sst [smem:[#allocation11_spill]] %s5367_s30  ;;  %s629_s0 = sadd.s32 1, %s5363_s9 }
  0x1f   : > { %6990 = sst [smem:[#allocation12_spill]] %s5546_s3  ;;  %s626_s11 = ssub.s32 %s5367_s30, %s5550_s10 }
  0x20   : > { %6991 = sst [smem:[#allocation13_spill]] %s5550_s10  ;;  %p639_p0 = scmp.ne.s32.totalorder %s5363_s9, %s5359_s5 }
  0x21   : > { %p627_p1 = scmp.eq.s32.totalorder %s626_s11, 0  ;;  %p640_p2 = scmp.eq.s32.totalorder %s5546_s3, 1 }
  0x22   : > { %p645_p3 = scmp.ne.s32.totalorder %s5359_s5, %s5355_s8  ;;  %p646_p4 = scmp.eq.s32.totalorder %s4775_s6, 1 }
  0x23   : > { %s5561_s29 = scalar_select %p627_p1, %s5363_s9, %s629_s0  }
  0x24   : > { %p5563_p5 = por %p640_p2, %p639_p0  ;;  %p5567_p6 = por %p646_p4, %p645_p3 }
  0x25   : > { %6992 = sst [smem:[#allocation14_spill]] %s5561_s29  ;;  %p4778_p7 = scmp.ge.s32.totalorder %s5367_s30, 1 }
  0x26   : > { %s6993_s2 = scalar_select %p5563_p5, 1, 0 }
  0x27   : > { %s6995_s7 = scalar_select %p5567_p6, 1, 0 }
  0x28   : > { %6994 = sst [smem:[#allocation15_spill]] %s6993_s2  ;;  %p779_p8 = scmp.lt.s32.totalorder %s5367_s30, 3 }
  0x29   : > { %6996 = sst [smem:[#allocation16_spill]] %s6995_s7 }
  0x2a   : > { %p780_p9 = pnand %p4778_p7, %p779_p8 }
  0x2b   : > { %p861_p10 = scmp.lt.s32.totalorder (!%p780_p9), %s5546_s3, 1  ;;  %s6997_s0 = sld [smem:[#allocation18_spill]] (!%p780_p9) }
  0x2c   : > { %783 = sbr.rel (%p780_p9) target bundleno = 7402 (0x1cea), region = 128  ;;  %s6998_s9 = sld [smem:[#allocation17_spill]] (!%p780_p9) }
  0x2d   : > { %s6999_s29 = sld [smem:[#allocation22_spill]] (!%p780_p9)  ;;  %s6947_s11 = smov (!%p780_p9), 112  }
  0x2e   : > { %s7001_s6 = sld [smem:[#allocation20_spill]] (!%p780_p9)  ;;  %s6937_s7 = smov (!%p780_p9), 16  }
  0x2f   : > { %s7002_s8 = sld [smem:[#allocation23_spill]] (!%p780_p9)  ;;  %s6941_s4 = smov (!%p780_p9), 24  }
  0x30   : > { %s7011_s13 = sld [smem:[#allocation30_spill]] (!%p780_p9)  ;;  %s7023_s27 = smov (!%p780_p9), 16  }
  0x31   : > { %s5575_s12 = scalar_select %p861_p10, %s5546_s3, 1  ;;  %v871_v0 = vld [vmem:[%s6997_s0] sm:$0xff]  ;;  %vm875_vm0 = vcmask 261120   ;;  %v5369_v4 = vmov 32.0   ;;  %v5374_v43 = vmov 1983009808  }
  0x32   : > { %5185 = vrcp.f32 %v5369_v4  ;;  %s6945_s0 = smov 120   ;;  %v967_v44 = vunpack.c.l.s4 %v5374_v43  ;;  %vm962_vm5 = vcmask 1047556   ;;  %v5375_v56 = vmov 1934713408   ;;  %s7024_s28 = smov 8  }
  0x33   : > { %s6930_s1 = sshll.u32 %s5575_s12, 3  ;;  %v5010_v16 = vld [vmem:[%s6999_s29 + $0x8] sm:$0xff]  ;;  %v5009_v17 = vld [vmem:[%s6999_s29] sm:$0xff]  ;;  %v991_v57 = vunpack.c.l.s4 %v5375_v56  ;;  %vm1328_vm6 = vcmask 64512   ;;  %vm1469_vm8 = vcmask 1043456   ;;  %vm1666_vm9 = vcmask 130048  }
  0x34   : > { %s864_s10 = scalar_lea.vmem %s6998_s9, %s6930_s1  ;;  %944 = vmatpush.bf16.msra.mxu0 %v5010_v16  ;;  %s7000_s9 = sld [smem:[#allocation19_spill]]  ;;  %v5157_v30 = vld [vmem:[%s7001_s6] ss:$0 sm:$0xff]  ;;  %v5623_v49 = vunpack.c.0.s8 %v967_v44  ;;  %vm1668_vm10 = vcmask 195584  }
  0x35   : > { %v870_v1 = vld [vmem:[%s864_s10] sm:$0xff]  ;;  %s7003_s26 = smov %s7002_s8  ;;  %s6935_s10 = smov 96   ;;  %v5633_v63 = vunpack.c.0.s8 %v991_v57 }
  0x36   : > { %v872_v2 = vadd.f32 %v871_v0, %v870_v1  ;;  %v5158_v34 = vld [vmem:[%s7002_s8] ss:$0 sm:$0xff]  ;;  %s6933_s8 = smov 64   ;;  %s6943_s1 = smov 8  }
  0x37   : > { %s7016_s6 = smov 104   ;;  %s7026_s16 = sld [smem:[#allocation31_spill]] }
  0x38   : > { %v876_v3 = vsel %vm875_vm0, %v872_v2, 0.0  ;;  %v5186_v5 = vpop.eup %5185  ;;  %945 = vmatpush.bf16.msra.mxu0 %v5009_v17  ;;  %s7027_s19 = sld [smem:[#allocation33_spill]] }
  0x39   : > { %877 = vadd.xlane.f32.xlu0 %v876_v3  ;;  %v880_v6 = vmul.f32 32.0, %v5186_v5  ;;  %vm884_vm1 = vweird.f32 %v5186_v5  ;;  %s7028_s18 = sld [smem:[#allocation32_spill]] }
  0x3a   : > { %v5156_v27 = vld [vmem:[%s7000_s9] ss:$0 sm:$0xff]  ;;  %s6939_s9 = smov 104   ;;  %s7031_s3 = sld [smem:[#allocation33_spill]] }
  0x3b   : > { %v881_v7 = vsub.f32 1.0, %v880_v6  ;;  %s7034_s5 = sld [smem:[#allocation9_spill]] }
  0x3d   : > { %v882_v8 = vmul.f32 %v5186_v5, %v881_v7 }
  0x3f   : > { %v883_v9 = vadd.f32 %v5186_v5, %v882_v8 }
  0x41   : > { %v5587_v10 = vsel %vm884_vm1, %v5186_v5, %v883_v9  ;;  %s6830_s2 = sand.u32 1, %s7034_s5   ;;  %s7037_s5 = sld [smem:[#allocation37_spill]] }
  0xac   : > { %v878_v11 = vpop.xlane.xlu0 %877 }
  0xad   : > { %v886_v12 = vmul.f32 %v5587_v10, %v878_v11 }
  0xaf   : > { %v887_v13 = vsub.f32 %v872_v2, %v886_v12 }
  0xb1   : > { %v888_v14 = vmul.f32 %v887_v13, %v887_v13 }
  0xb3   : > { %v889_v15 = vsel %vm875_vm0, %v888_v14, 0.0 }
  0xb4   : > { %890 = vadd.xlane.f32.xlu0 %v889_v15 }
 0x127   : > { %v891_v18 = vpop.xlane.xlu0 %890 }
 0x128   : > { %v892_v19 = vmul.f32 %v891_v18, %v5587_v10 }
 0x12a   : > { %v893_v20 = vadd.f32 1e-05, %v892_v19 }
 0x12c   : > { %5187 = vrsqrt.f32 %v893_v20  ;;  %vm900_vm3 = vweird.f32 %v893_v20 }
 0x132   : > { %v5188_v21 = vpop.eup %5187 }
 0x133   : > { %v895_v22 = vmul.f32 %v5188_v21, %v893_v20  ;;  %vm901_vm2 = vweird.f32 %v5188_v21 }
 0x134   : > { %vm902_vm4 = vmor %vm900_vm3, %vm901_vm2  ;;  %vm2687_vm3 = vcmask 523264  }
 0x135   : > { %v896_v23 = vmul.f32 %v5188_v21, %v895_v22 }
 0x137   : > { %v897_v24 = vmul.f32 0.5, %v896_v23 }
 0x139   : > { %v898_v25 = vsub.f32 1.5, %v897_v24 }
 0x13b   : > { %v899_v26 = vmul.f32 %v5188_v21, %v898_v25 }
 0x13d   : > { %v903_v28 = vsel %vm902_vm4, %v5188_v21, %v899_v26 }
 0x13e   : > { %v904_v29 = vmul.f32 %v903_v28, %v887_v13 }
 0x140   : > { %v908_v31 = vmul.f32 %v5156_v27, %v904_v29 }
 0x142   : > { %v5604_v32 = vadd.f32 %v5157_v30, %v908_v31 }
 0x144   : > { %v918_v33 = vpack.c.bf16 %v5604_v32, %v5604_v32 }
 0x146   : > { %4791 = vmatmul.msk.bf16.vlgmr.msra.gmra.mxu0 %vm875_vm0, %v918_v33 }
 0x1c3   : > { %v947_v35 = vpop.f32.mrf.mxu0 }
 0x1c4   : > { %v948_v36 = vadd.f32 %v5158_v34, %v947_v35 }
 0x1c6   : > { %952 = vrot.lane.b32.xlu2 %v948_v36, %s6945_s0  ;;  %955 = vrot.lane.b32.xlu1 %v948_v36, %s6947_s11  ;;  %v964_v46 = vrot.slane %v948_v36, 4  ;;  %s7010_s11 = sld [smem:[#allocation21_spill]] }
 0x1cb   : > { %v949_v37 = vpop.f32.mrf.mxu0 }
 0x1ce   : > { %958 = vrot.lane.b32.xlu1 %v948_v36, %s6939_s9  ;;  %s7007_s9 = sld [smem:[#allocation25_spill]] }
 0x220   : > { %v953_v40 = vpop.permute.xlu2 %952 }
 0x221   : > { %v976_v48 = vrot.slane %v953_v40, 4 }
 0x238   : > { %v956_v38 = vpop.permute.xlu1 %955 }
 0x239   : > { %v5615_v39 = vpack.i.bf16 %v948_v36, %v956_v38  ;;  %v961_v45 = vrot.slane %v956_v38, 4  ;;  %v965_v50 = vsel %vm962_vm5, %v956_v38, %v964_v46 }
 0x23a   : > { %v973_v54 = vperm.slane %v965_v50, %v5623_v49 }
 0x23b   : > { %5097 = vrot.lane.b32.xlu2 %v5615_v39, %s6935_s10  ;;  %v963_v51 = vsel %vm962_vm5, %v961_v45, %v948_v36 }
 0x23c   : > { %v969_v55 = vperm.slane %v963_v51, %v5623_v49  ;;  %v1000_v60 = vrot.slane %v973_v54, 4 }
 0x23e   : > { %v988_v62 = vrot.slane %v969_v55, 4 }
 0x240   : > { %v959_v41 = vpop.permute.xlu1 %958 }
 0x241   : > { %v5619_v42 = vpack.i.bf16 %v953_v40, %v959_v41  ;;  %v974_v47 = vrot.slane %v959_v41, 4  ;;  %v977_v52 = vsel %vm962_vm5, %v959_v41, %v976_v48 }
 0x242   : > { %v985_v58 = vperm.slane %v977_v52, %v5623_v49 }
 0x243   : > { %5102 = vrot.lane.b32.xlu0 %v5619_v42, %s6935_s10  ;;  %v975_v53 = vsel %vm962_vm5, %v974_v47, %v953_v40  ;;  %s7006_s10 = sld [smem:[#allocation24_spill]] }
 0x244   : > { %v981_v59 = vperm.slane %v975_v53, %v5623_v49  ;;  %v998_v0 = vrot.slane %v985_v58, 4  ;;  %v1001_v2 = vsel %vm962_vm5, %v985_v58, %v1000_v60 }
 0x245   : > { %v1009_v7 = vperm.slane %v1001_v2, %v5633_v63 }
 0x246   : > { %v986_v1 = vrot.slane %v981_v59, 4  ;;  %v989_v3 = vsel %vm962_vm5, %v981_v59, %v988_v62  ;;  %v999_v6 = vsel %vm962_vm5, %v998_v0, %v973_v54 }
 0x247   : > { %v997_v9 = vperm.slane %v989_v3, %v5633_v63  ;;  %v1005_v13 = vperm.slane %v999_v6, %v5633_v63  ;;  %v1016_v15 = vrot.slane %v1009_v7, 4 }
 0x248   : > { %v987_v8 = vsel %vm962_vm5, %v986_v1, %v969_v55 }
 0x249   : > { %v993_v14 = vperm.slane %v987_v8, %v5633_v63  ;;  %v1012_v16 = vrot.slane %v997_v9, 4  ;;  %v1014_v19 = vrot.slane %v1005_v13, 4  ;;  %v1017_v22 = vsel %vm962_vm5, 0.0, %v1016_v15 }
 0x24a   : > { %v1034_v33 = vrot.slane %v1017_v22, 4  ;;  %v1029_v44 = vsel %vm962_vm5, %v1016_v15, %v1005_v13 }
 0x24b   : > { %v1010_v21 = vrot.slane %v993_v14, 4  ;;  %v1013_v25 = vsel %vm962_vm5, 0.0, %v1012_v16  ;;  %v1015_v30 = vsel %vm962_vm5, 0.0, %v1014_v19  ;;  %v1018_v31 = vsel %vm962_vm5, %v1012_v16, %v993_v14 }
 0x24c   : > { %v1023_v35 = vrot.slane %v1013_v25, 4  ;;  %v1022_v45 = vperm.slane %v1018_v31, %v5623_v49  ;;  %v1035_v54 = vsel %vm962_vm5, %v1034_v33, %v1015_v30 }
 0x24d   : > { %v1011_v34 = vsel %vm962_vm5, 0.0, %v1010_v21  ;;  %v1039_v0 = vperm.slane %v1035_v54, %v5623_v49 }
 0x24e   : > { %v1024_v53 = vsel %vm962_vm5, %v1023_v35, %v1011_v34  ;;  %v1042_v1 = vrot.slane %v1022_v45, 4 }
 0x24f   : > { %v1028_v62 = vperm.slane %v1024_v53, %v5623_v49 }
 0x295   : > { %v5098_v61 = vpop.permute.xlu2 %5097 }
 0x296   : > { %v5100_v4 = vunpack.i.h.bf16 %v5098_v61  ;;  %v5099_v5 = vunpack.i.l.bf16 %v5098_v61  ;;  %v1033_v61 = vperm.slane %v1029_v44, %v5623_v49 }
 0x298   : > { %v1090_v11 = vrot.slane %v5100_v4, 4  ;;  %v1088_v12 = vrot.slane %v5099_v5, 4 }
 0x29a   : > { %v1089_v17 = vsel %vm962_vm5, %v1088_v12, %v5100_v4  ;;  %v1091_v18 = vsel %vm962_vm5, %v5099_v5, %v1090_v11 }
 0x29b   : > { %v1095_v26 = vperm.slane %v1089_v17, %v5623_v49  ;;  %v1099_v27 = vperm.slane %v1091_v18, %v5623_v49  ;;  %v1040_v17 = vrot.slane %v1028_v62, 4  ;;  %v1052_v18 = vrot.slane %v1039_v0, 4 }
 0x29d   : > { %v1114_v38 = vrot.slane %v1095_v26, 4  ;;  %v1126_v40 = vrot.slane %v1099_v27, 4  ;;  %v1041_v30 = vsel %vm962_vm5, %v1040_v17, %v1022_v45  ;;  %v1053_v31 = vsel %vm962_vm5, %v1052_v18, %v1033_v61 }
 0x29e   : > { %v1059_v44 = vperm.slane %v1053_v31, %v5633_v63 }
 0x2b5   : > { %v5103_v20 = vpop.permute.xlu0 %5102 }
 0x2b6   : > { %v5105_v23 = vunpack.i.h.bf16 %v5103_v20  ;;  %v5104_v24 = vunpack.i.l.bf16 %v5103_v20 }
 0x2b8   : > { %v1102_v28 = vrot.slane %v5105_v23, 4  ;;  %v1100_v29 = vrot.slane %v5104_v24, 4 }
 0x2ba   : > { %v1101_v36 = vsel %vm962_vm5, %v1100_v29, %v5105_v23  ;;  %v1103_v37 = vsel %vm962_vm5, %v5104_v24, %v1102_v28  ;;  %v1043_v23 = vsel %vm962_vm5, %v1028_v62, %v1042_v1 }
 0x2bb   : > { %v1107_v41 = vperm.slane %v1101_v36, %v5623_v49  ;;  %v1111_v43 = vperm.slane %v1103_v37, %v5623_v49  ;;  %v1051_v35 = vperm.slane %v1043_v23, %v5633_v63  ;;  %v1054_v36 = vrot.slane %v1033_v61, 4 }
 0x2bd   : > { %v1112_v46 = vrot.slane %v1107_v41, 4  ;;  %v1115_v47 = vsel %vm962_vm5, %v1107_v41, %v1114_v38  ;;  %v1124_v48 = vrot.slane %v1111_v43, 4  ;;  %v1127_v50 = vsel %vm962_vm5, %v1111_v43, %v1126_v40 }
 0x2be   : > { %v1123_v51 = vperm.slane %v1115_v47, %v5633_v63  ;;  %v1135_v52 = vperm.slane %v1127_v50, %v5633_v63  ;;  %v1047_v43 = vperm.slane %v1041_v30, %v5633_v63 }
 0x2bf   : > { %v1113_v55 = vsel %vm962_vm5, %v1112_v46, %v1095_v26  ;;  %v1125_v56 = vsel %vm962_vm5, %v1124_v48, %v1099_v27 }
 0x2c0   : > { %v1119_v57 = vperm.slane %v1113_v55, %v5633_v63  ;;  %v1131_v58 = vperm.slane %v1125_v56, %v5633_v63  ;;  %v1138_v59 = vrot.slane %v1123_v51, 4  ;;  %v1142_v60 = vrot.slane %v1135_v52, 4 }
 0x2c1   : > { %v1055_v51 = vsel %vm962_vm5, %v1039_v0, %v1054_v36  ;;  %v1070_v55 = vrot.slane %v1051_v35, 4  ;;  %v1066_v61 = vrot.slane %v1047_v43, 4 }
 0x2c2   : > { %v1136_v2 = vrot.slane %v1119_v57, 4  ;;  %v1139_v3 = vsel %vm962_vm5, 0.0, %v1138_v59  ;;  %v1140_v4 = vrot.slane %v1131_v58, 4  ;;  %v1143_v5 = vsel %vm962_vm5, 0.0, %v1142_v60 }
 0x2c3   : > { %v1149_v6 = vrot.slane %v1139_v3, 4  ;;  %v1160_v7 = vrot.slane %v1143_v5, 4  ;;  %v1144_v8 = vsel %vm962_vm5, %v1138_v59, %v1119_v57  ;;  %v1155_v9 = vsel %vm962_vm5, %v1142_v60, %v1131_v58 }
 0x2c4   : > { %v1137_v11 = vsel %vm962_vm5, 0.0, %v1136_v2  ;;  %v1141_v12 = vsel %vm962_vm5, 0.0, %v1140_v4  ;;  %v1148_v13 = vperm.slane %v1144_v8, %v5623_v49  ;;  %v1159_v14 = vperm.slane %v1155_v9, %v5623_v49 }
 0x2c5   : > { %v1150_v15 = vsel %vm962_vm5, %v1149_v6, %v1137_v11  ;;  %v1161_v16 = vsel %vm962_vm5, %v1160_v7, %v1141_v12  ;;  %v1063_v59 = vperm.slane %v1055_v51, %v5633_v63  ;;  %v1064_v60 = vrot.slane %v1059_v44, 4 }
 0x2c6   : > { %v1154_v19 = vperm.slane %v1150_v15, %v5623_v49  ;;  %v1165_v20 = vperm.slane %v1161_v16, %v5623_v49  ;;  %v1168_v21 = vrot.slane %v1148_v13, 4  ;;  %v1180_v22 = vrot.slane %v1159_v14, 4 }
 0x2c7   : > { %v1071_v2 = vsel %vm962_vm5, %v1063_v59, %v1070_v55  ;;  %v1065_v3 = vsel %vm962_vm5, %v1064_v60, %v1047_v43  ;;  %v1067_v4 = vsel %vm962_vm5, %v1059_v44, %v1066_v61  ;;  %v1068_v8 = vrot.slane %v1063_v59, 4 }
 0x2c8   : > { %v1169_v24 = vsel %vm962_vm5, %v1154_v19, %v1168_v21  ;;  %v1181_v25 = vsel %vm962_vm5, %v1165_v20, %v1180_v22  ;;  %v1166_v26 = vrot.slane %v1154_v19, 4  ;;  %v1178_v27 = vrot.slane %v1165_v20, 4 }
 0x2c9   : > { %v1177_v28 = vperm.slane %v1169_v24, %v5633_v63  ;;  %v1189_v29 = vperm.slane %v1181_v25, %v5633_v63  ;;  %v1075_v5 = vpack.c.bf16 %v1071_v2, %v1071_v2  ;;  %v1072_v6 = vpack.c.bf16 %v1065_v3, %v1065_v3 }
 0x2ca   : > { %v1167_v33 = vsel %vm962_vm5, %v1166_v26, %v1148_v13  ;;  %v1179_v34 = vsel %vm962_vm5, %v1178_v27, %v1159_v14  ;;  %v1073_v7 = vpack.c.bf16 %v1067_v4, %v1067_v4  ;;  %v1069_v9 = vsel %vm962_vm5, %v1068_v8, %v1051_v35 }
 0x2cb   : > { %v1196_v37 = vrot.slane %v1177_v28, 4  ;;  %v1173_v38 = vperm.slane %v1167_v33, %v5633_v63  ;;  %v1185_v40 = vperm.slane %v1179_v34, %v5633_v63  ;;  %v1194_v41 = vrot.slane %v1189_v29, 4 }
 0x2cc   : > { %v1074_v11 = vpack.c.bf16 %v1069_v9, %v1069_v9  ;;  %v1409_v12 = vlaneseq }
 0x2cd   : > { %v1197_v45 = vsel %vm962_vm5, %v1189_v29, %v1196_v37  ;;  %v1190_v46 = vrot.slane %v1185_v40, 4  ;;  %v1192_v47 = vrot.slane %v1173_v38, 4  ;;  %v1195_v48 = vsel %vm962_vm5, %v1194_v41, %v1177_v28 }
 0x2ce   : > { %v1201_v50 = vpack.c.bf16 %v1197_v45, %v1197_v45  ;;  %v1200_v54 = vpack.c.bf16 %v1195_v48, %v1195_v48  ;;  %v1410_v13 = vshrl.u32 %v1409_v12, 7  ;;  %v1412_v14 = vand.u32 127, %v1409_v12 }
 0x2cf   : > { %v1191_v52 = vsel %vm962_vm5, %v1190_v46, %v1173_v38  ;;  %v1193_v53 = vsel %vm962_vm5, %v1185_v40, %v1192_v47 }
 0x2d0   : > { %v1390_v56 = vsel %vm1328_vm6, %v1201_v50, 0  ;;  %v1198_v57 = vpack.c.bf16 %v1191_v52, %v1191_v52  ;;  %v1199_v58 = vpack.c.bf16 %v1193_v53, %v1193_v53  ;;  %v1371_v0 = vsel %vm1328_vm6, %v1200_v54, 0 }
 0x2d1   : > { %1399 = vmatpush.bf16.xpose.msrb.mxu0 %v1390_v56  ;;  %vm5715_vm7 = vcmp.ge.s32.totalorder %v1410_v13, %v1412_v14 }
 0x2d2   : > { %v1333_v62 = vsel %vm1328_vm6, %v1198_v57, 0  ;;  %v1352_v1 = vsel %vm1328_vm6, %v1199_v58, 0 }
 0x2d3   : > { %1342 = vmatpush.bf16.xpose.msra.mxu1 %v1333_v62  ;;  %1361 = vmatpush.bf16.xpose.msra.mxu3 %v1352_v1 }
 0x2d8   : > { %4795 = vmatmul.msk.bf16.vlgmr.msrb.gmra.mxu0 %vm1328_vm6, %v1075_v5 }
 0x2da   : > { %4792 = vmatmul.msk.bf16.vlgmr.msra.gmra.mxu1 %vm1328_vm6, %v1072_v6  ;;  %4793 = vmatmul.msk.bf16.vlgmr.msra.gmra.mxu3 %vm1328_vm6, %v1073_v7 }
 0x2db   : > { %1380 = vmatpush.bf16.xpose.msrb.mxu3 %v1371_v0 }
 0x2ea   : > { %4794 = vmatmul.msk.bf16.vlgmr.msrb.gmra.mxu3 %vm1328_vm6, %v1074_v11 }
 0x355   : > { %v1401_v15 = vpop.f32.mrf.mxu0 }
 0x356   : > { %v1408_v17 = vmul.f32 0.35355338, %v1401_v15 }
 0x357   : > { %v1344_v18 = vpop.f32.mrf.mxu1 }
 0x358   : > { %v1405_v19 = vmul.f32 0.35355338, %v1344_v18  ;;  %v1417_v20 = vsel %vm5715_vm7, %v1408_v17, -1e+09 }
 0x359   : > { %v1427_v21 = vsel %vm1328_vm6, %v1417_v20, -inf }
 0x35a   : > { %1428 = vmax.xlane.f32.xlu2 %v1427_v21  ;;  %v1414_v22 = vsel %vm5715_vm7, %v1405_v19, -1e+09 }
 0x35b   : > { %v1418_v23 = vsel %vm1328_vm6, %v1414_v22, -inf }
 0x35c   : > { %1419 = vmax.xlane.f32.xlu0 %v1418_v23 }
 0x35d   : > { %v1363_v24 = vpop.f32.mrf.mxu3  ;;  %v1403_v25 = vpop.f32.mrf.mxu0 }
 0x35e   : > { %v1406_v26 = vmul.f32 0.35355338, %v1363_v24 }
 0x35f   : > { %v1346_v27 = vpop.f32.mrf.mxu1 }
 0x360   : > { %v1415_v28 = vsel %vm5715_vm7, %v1406_v26, -1e+09 }
 0x361   : > { %v1421_v29 = vsel %vm1328_vm6, %v1415_v28, -inf }
 0x362   : > { %1422 = vmax.xlane.f32.xlu1 %v1421_v29 }
 0x365   : > { %v1365_v30 = vpop.f32.mrf.mxu3 }
 0x36d   : > { %v1382_v31 = vpop.f32.mrf.mxu3 }
 0x36e   : > { %v1407_v33 = vmul.f32 0.35355338, %v1382_v31 }
 0x370   : > { %v1416_v34 = vsel %vm5715_vm7, %v1407_v33, -1e+09 }
 0x371   : > { %v1424_v35 = vsel %vm1328_vm6, %v1416_v34, -inf }
 0x372   : > { %1425 = vmax.xlane.f32.xlu2 %v1424_v35 }
 0x375   : > { %v1384_v36 = vpop.f32.mrf.mxu3 }
 0x37b   : > { %5107 = vrot.lane.b32.xlu1 %v5615_v39, %s6933_s8 }
 0x38a   : > { %5112 = vrot.lane.b32.xlu2 %v5619_v42, %s6933_s8  ;;  %s7015_s8 = smov 120  }
 0x3cd   : > { %v1429_v37 = vpop.xlane.xlu2 %1428 }
 0x3ce   : > { %v1433_v38 = vsub.f32 %v1417_v20, %v1429_v37 }
 0x3cf   : > { %v1420_v41 = vpop.xlane.xlu0 %1419 }
 0x3d0   : > { %v1440_v40 = vmul.f32 1.442695, %v1433_v38  ;;  %v1430_v46 = vsub.f32 %v1414_v22, %v1420_v41 }
 0x3d2   : > { %5189 = vpow2.f32 %v1440_v40  ;;  %v1434_v39 = vmul.f32 1.442695, %v1430_v46 }
 0x3d5   : > { %v1423_v43 = vpop.xlane.xlu1 %1422 }
 0x3d6   : > { %v1431_v44 = vsub.f32 %v1415_v28, %v1423_v43 }
 0x3d8   : > { %v5735_v45 = vpop.eup %5189  ;;  %v1436_v47 = vmul.f32 1.442695, %v1431_v44 }
 0x3d9   : > { %v1451_v48 = vsel %vm1328_vm6, %v5735_v45, 0.0 }
 0x3da   : > { %5191 = vpow2.f32 %v1436_v47  ;;  %1452 = vadd.xlane.f32.xlu2 %v1451_v48 }
 0x3db   : > { %5193 = vpow2.f32 %v1434_v39 }
 0x3e0   : > { %v5739_v50 = vpop.eup %5191 }
 0x3e1   : > { %v1445_v42 = vsel %vm1328_vm6, %v5739_v50, 0.0  ;;  %v5743_v52 = vpop.eup %5193 }
 0x3e2   : > { %1446 = vadd.xlane.f32.xlu0 %v1445_v42  ;;  %v1442_v55 = vsel %vm1328_vm6, %v5743_v52, 0.0 }
 0x3e5   : > { %v1426_v51 = vpop.xlane.xlu2 %1425 }
 0x3e6   : > { %v1432_v53 = vsub.f32 %v1416_v34, %v1426_v51 }
 0x3e8   : > { %v1438_v54 = vmul.f32 1.442695, %v1432_v53 }
 0x3ea   : > { %5195 = vpow2.f32 %v1438_v54  ;;  %1443 = vadd.xlane.f32.xlu0 %v1442_v55 }
 0x3ed   : > { %v5108_v56 = vpop.permute.xlu1 %5107  ;;  %v5113_v57 = vpop.permute.xlu2 %5112 }
 0x3ee   : > { %v5110_v58 = vunpack.i.h.bf16 %v5108_v56  ;;  %v5109_v59 = vunpack.i.l.bf16 %v5108_v56  ;;  %v5115_v60 = vunpack.i.h.bf16 %v5113_v57  ;;  %v5114_v61 = vunpack.i.l.bf16 %v5113_v57 }
 0x3f0   : > { %v5747_v62 = vpop.eup %5195  ;;  %v1216_v1 = vrot.slane %v5110_v58, 4  ;;  %v1214_v0 = vrot.slane %v5109_v59, 4  ;;  %v1228_v2 = vrot.slane %v5115_v60, 4  ;;  %v1226_v3 = vrot.slane %v5114_v61, 4 }
 0x3f1   : > { %v1448_v4 = vsel %vm1328_vm6, %v5747_v62, 0.0 }
 0x3f2   : > { %v1215_v5 = vsel %vm962_vm5, %v1214_v0, %v5110_v58  ;;  %v1217_v6 = vsel %vm962_vm5, %v5109_v59, %v1216_v1  ;;  %v1227_v7 = vsel %vm962_vm5, %v1226_v3, %v5115_v60  ;;  %v1229_v8 = vsel %vm962_vm5, %v5114_v61, %v1228_v2  ;;  %1449 = vadd.xlane.f32.xlu1 %v1448_v4 }
 0x3f3   : > { %v1221_v9 = vperm.slane %v1215_v5, %v5623_v49  ;;  %v1225_v11 = vperm.slane %v1217_v6, %v5623_v49  ;;  %v1233_v12 = vperm.slane %v1227_v7, %v5623_v49  ;;  %v1237_v13 = vperm.slane %v1229_v8, %v5623_v49 }
 0x3f5   : > { %v1240_v14 = vrot.slane %v1221_v9, 4  ;;  %v1252_v15 = vrot.slane %v1225_v11, 4  ;;  %v1238_v17 = vrot.slane %v1233_v12, 4  ;;  %v1250_v18 = vrot.slane %v1237_v13, 4 }
 0x3f7   : > { %v1239_v19 = vsel %vm962_vm5, %v1238_v17, %v1221_v9  ;;  %v1241_v20 = vsel %vm962_vm5, %v1233_v12, %v1240_v14  ;;  %v1251_v21 = vsel %vm962_vm5, %v1250_v18, %v1225_v11  ;;  %v1253_v22 = vsel %vm962_vm5, %v1237_v13, %v1252_v15 }
 0x3f8   : > { %v1245_v23 = vperm.slane %v1239_v19, %v5633_v63  ;;  %v1249_v24 = vperm.slane %v1241_v20, %v5633_v63  ;;  %v1257_v25 = vperm.slane %v1251_v21, %v5633_v63  ;;  %v1261_v26 = vperm.slane %v1253_v22, %v5633_v63 }
 0x3fa   : > { %v1262_v27 = vrot.slane %v1245_v23, 4  ;;  %v1264_v28 = vrot.slane %v1249_v24, 4  ;;  %v1266_v29 = vrot.slane %v1257_v25, 4  ;;  %v1268_v30 = vrot.slane %v1261_v26, 4 }
 0x3fc   : > { %v1265_v31 = vsel %vm962_vm5, 0.0, %v1264_v28  ;;  %v1269_v33 = vsel %vm962_vm5, 0.0, %v1268_v30  ;;  %v1270_v34 = vsel %vm962_vm5, %v1264_v28, %v1245_v23  ;;  %v1281_v36 = vsel %vm962_vm5, %v1268_v30, %v1257_v25 }
 0x3fd   : > { %v1275_v35 = vrot.slane %v1265_v31, 4  ;;  %v1286_v37 = vrot.slane %v1269_v33, 4  ;;  %v1263_v38 = vsel %vm962_vm5, 0.0, %v1262_v27  ;;  %v1267_v40 = vsel %vm962_vm5, 0.0, %v1266_v29 }
 0x3fe   : > { %v1285_v41 = vperm.slane %v1281_v36, %v5623_v49  ;;  %v1274_v43 = vperm.slane %v1270_v34, %v5623_v49 }
 0x3ff   : > { %v1276_v44 = vsel %vm962_vm5, %v1275_v35, %v1263_v38  ;;  %v1287_v46 = vsel %vm962_vm5, %v1286_v37, %v1267_v40 }
 0x400   : > { %v1280_v47 = vperm.slane %v1276_v44, %v5623_v49  ;;  %v1291_v48 = vperm.slane %v1287_v46, %v5623_v49  ;;  %v1294_v39 = vrot.slane %v1274_v43, 4  ;;  %v1306_v42 = vrot.slane %v1285_v41, 4 }
 0x402   : > { %v1295_v51 = vsel %vm962_vm5, %v1280_v47, %v1294_v39  ;;  %v1307_v53 = vsel %vm962_vm5, %v1291_v48, %v1306_v42  ;;  %v1292_v54 = vrot.slane %v1280_v47, 4  ;;  %v1304_v55 = vrot.slane %v1291_v48, 4 }
 0x403   : > { %v1303_v56 = vperm.slane %v1295_v51, %v5633_v63  ;;  %v1315_v57 = vperm.slane %v1307_v53, %v5633_v63 }
 0x404   : > { %v1293_v58 = vsel %vm962_vm5, %v1292_v54, %v1274_v43  ;;  %v1305_v59 = vsel %vm962_vm5, %v1304_v55, %v1285_v41 }
 0x405   : > { %v1320_v60 = vrot.slane %v1315_v57, 4  ;;  %v1299_v61 = vperm.slane %v1293_v58, %v5633_v63  ;;  %v1311_v1 = vperm.slane %v1305_v59, %v5633_v63  ;;  %v1322_v0 = vrot.slane %v1303_v56, 4 }
 0x407   : > { %v1321_v2 = vsel %vm962_vm5, %v1320_v60, %v1303_v56  ;;  %v1316_v3 = vrot.slane %v1311_v1, 4  ;;  %v1318_v4 = vrot.slane %v1299_v61, 4  ;;  %v1323_v5 = vsel %vm962_vm5, %v1315_v57, %v1322_v0 }
 0x408   : > { %v1326_v6 = vpack.c.bf16 %v1321_v2, %v1321_v2  ;;  %v1327_v9 = vpack.c.bf16 %v1323_v5, %v1323_v5 }
 0x409   : > { %v1317_v7 = vsel %vm962_vm5, %v1316_v3, %v1299_v61  ;;  %v1319_v8 = vsel %vm962_vm5, %v1311_v1, %v1318_v4 }
 0x40a   : > { %v1509_v11 = vsel %vm1469_vm8, %v1326_v6, 0  ;;  %v1324_v12 = vpack.c.bf16 %v1317_v7, %v1317_v7  ;;  %v1325_v13 = vpack.c.bf16 %v1319_v8, %v1319_v8  ;;  %v1528_v17 = vsel %vm1469_vm8, %v1327_v9, 0 }
 0x40b   : > { %1518 = vmatpush.bf16.msra.mxu3 %v1509_v11 }
 0x40c   : > { %v1471_v14 = vsel %vm1469_vm8, %v1324_v12, 0  ;;  %v1490_v15 = vsel %vm1469_vm8, %v1325_v13, 0 }
 0x40d   : > { %1480 = vmatpush.bf16.msrb.mxu1 %v1471_v14  ;;  %1499 = vmatpush.bf16.msra.mxu0 %v1490_v15 }
 0x411   : > { %1537 = vmatpush.bf16.msrb.mxu0 %v1528_v17 }
 0x44d   : > { %v1453_v22 = vpop.xlane.xlu2 %1452 }
 0x455   : > { %v1447_v18 = vpop.xlane.xlu0 %1446 }
 0x456   : > { %5197 = vrcp.f32 %v1447_v18 }
 0x45c   : > { %v5198_v19 = vpop.eup %5197 }
 0x45d   : > { %v1459_v20 = vmul.f32 %v5198_v19, %v5739_v50  ;;  %v1444_v21 = vpop.xlane.xlu0 %1443 }
 0x45e   : > { %5199 = vrcp.f32 %v1444_v21 }
 0x45f   : > { %v1463_v23 = vpack.c.bf16 %v1459_v20, %v1459_v20  ;;  %5201 = vrcp.f32 %v1453_v22 }
 0x461   : > { %4797 = vmatmul.msk.bf16.vlgmr.msra.gmra.mxu0 %vm1328_vm6, %v1463_v23 }
 0x464   : > { %v5200_v24 = vpop.eup %5199 }
 0x465   : > { %v1458_v25 = vmul.f32 %v5200_v24, %v5743_v52  ;;  %v1450_v26 = vpop.xlane.xlu1 %1449  ;;  %v5202_v28 = vpop.eup %5201 }
 0x466   : > { %5203 = vrcp.f32 %v1450_v26  ;;  %v1461_v29 = vmul.f32 %v5202_v28, %v5735_v45 }
 0x467   : > { %v1462_v27 = vpack.c.bf16 %v1458_v25, %v1458_v25 }
 0x468   : > { %v1465_v31 = vpack.c.bf16 %v1461_v29, %v1461_v29 }
 0x469   : > { %4796 = vmatmul.msk.bf16.vlgmr.msrb.gmra.mxu1 %vm1328_vm6, %v1462_v27 }
 0x46c   : > { %v5204_v30 = vpop.eup %5203 }
 0x46d   : > { %v1460_v50 = vmul.f32 %v5204_v30, %v5747_v62 }
 0x46f   : > { %v1464_v33 = vpack.c.bf16 %v1460_v50, %v1460_v50 }
 0x471   : > { %4798 = vmatmul.msk.bf16.vlgmr.msra.gmra.mxu3 %vm1328_vm6, %v1464_v33  ;;  %4799 = vmatmul.msk.bf16.vlgmr.msrb.gmra.mxu0 %vm1328_vm6, %v1465_v31 }
 0x4de   : > { %v1501_v34 = vpop.f32.mrf.mxu0 }
 0x4df   : > { %v1557_v36 = vrot.slane %v1501_v34, 4 }
 0x4e6   : > { %v1482_v35 = vpop.f32.mrf.mxu1  ;;  %v1503_v52 = vpop.f32.mrf.mxu0 }
 0x4e7   : > { %v1545_v62 = vrot.slane %v1482_v35, 4 }
 0x4ee   : > { %v1484_v37 = vpop.f32.mrf.mxu1  ;;  %v1539_v38 = vpop.f32.mrf.mxu0 }
 0x4ef   : > { %v1555_v40 = vrot.slane %v1539_v38, 4  ;;  %v1558_v41 = vsel %vm962_vm5, %v1539_v38, %v1557_v36 }
 0x4f0   : > { %v1566_v43 = vperm.slane %v1558_v41, %v5623_v49 }
 0x4f1   : > { %v1556_v45 = vsel %vm962_vm5, %v1555_v40, %v1501_v34 }
 0x4f2   : > { %v1562_v44 = vperm.slane %v1556_v45, %v5623_v49  ;;  %v1579_v39 = vrot.slane %v1566_v43, 4 }
 0x4f4   : > { %v1520_v46 = vpop.f32.mrf.mxu3  ;;  %v1567_v54 = vrot.slane %v1562_v44, 4 }
 0x4f5   : > { %v1543_v47 = vrot.slane %v1520_v46, 4  ;;  %v1546_v48 = vsel %vm962_vm5, %v1520_v46, %v1545_v62  ;;  %v5011_v46 = vld [vmem:[%s7006_s10] sm:$0xff] }
 0x4f6   : > { %v1554_v42 = vperm.slane %v1546_v48, %v5623_v49  ;;  %v1541_v51 = vpop.f32.mrf.mxu0 }
 0x4f7   : > { %v1544_v53 = vsel %vm962_vm5, %v1543_v47, %v1482_v35 }
 0x4f8   : > { %v1550_v55 = vperm.slane %v1544_v53, %v5623_v49  ;;  %v1580_v56 = vsel %vm962_vm5, %v1579_v39, %v1554_v42  ;;  %v1581_v57 = vrot.slane %v1554_v42, 4 }
 0x4f9   : > { %v1586_v58 = vperm.slane %v1580_v56, %v5633_v63 }
 0x4fa   : > { %v1568_v59 = vsel %vm962_vm5, %v1567_v54, %v1550_v55  ;;  %v1569_v60 = vrot.slane %v1550_v55, 4  ;;  %v1582_v61 = vsel %vm962_vm5, %v1566_v43, %v1581_v57  ;;  %v5159_v55 = vld [vmem:[%s7007_s9] ss:$0 sm:$0xff] }
 0x4fb   : > { %v1574_v1 = vperm.slane %v1568_v59, %v5633_v63  ;;  %v1590_v0 = vperm.slane %v1582_v61, %v5633_v63  ;;  %v1595_v5 = vrot.slane %v1586_v58, 4  ;;  %v5016_v61 = vld [vmem:[%s7011_s13 + $0x8] sm:$0xff] }
 0x4fc   : > { %v1570_v2 = vsel %vm962_vm5, %v1562_v44, %v1569_v60  ;;  %v1522_v3 = vpop.f32.mrf.mxu3  ;;  %v5012_v44 = vld [vmem:[%s7006_s10 + $0x8] sm:$0xff]  ;;  %1807 = vmatpush.bf16.msrb.mxu3 %v5016_v61 }
 0x4fd   : > { %v1578_v4 = vperm.slane %v1570_v2, %v5633_v63  ;;  %v1597_v6 = vrot.slane %v1590_v0, 4  ;;  %v1591_v7 = vrot.slane %v1574_v1, 4  ;;  %v1596_v15 = vsel %vm962_vm5, 0.0, %v1595_v5  ;;  %1700 = vmatpush.bf16.msra.mxu1 %v5012_v44  ;;  %v5015_v0 = vld [vmem:[%s7011_s13] sm:$0xff] }
 0x4ff   : > { %v1593_v8 = vrot.slane %v1578_v4, 4  ;;  %v1598_v9 = vsel %vm962_vm5, 0.0, %v1597_v6  ;;  %v1610_v11 = vsel %vm962_vm5, %v1597_v6, %v1586_v58  ;;  %v1592_v22 = vsel %vm962_vm5, 0.0, %v1591_v7 }
 0x500   : > { %v1614_v12 = vperm.slane %v1610_v11, %v5623_v49  ;;  %v1615_v13 = vrot.slane %v1598_v9, 4  ;;  %1808 = vmatpush.bf16.msrb.mxu3 %v5015_v0 }
 0x501   : > { %v1594_v14 = vsel %vm962_vm5, 0.0, %v1593_v8  ;;  %v1599_v17 = vsel %vm962_vm5, %v1593_v8, %v1574_v1  ;;  %1701 = vmatpush.bf16.msra.mxu1 %v5011_v46  ;;  %v5160_v8 = vld [vmem:[%s6904_s14] ss:$0 sm:$0xff] }
 0x502   : > { %v1616_v18 = vsel %vm962_vm5, %v1615_v13, %v1596_v15  ;;  %v1603_v19 = vperm.slane %v1599_v17, %v5623_v49  ;;  %v1604_v20 = vrot.slane %v1594_v14, 4  ;;  %v1635_v21 = vrot.slane %v1614_v12, 4 }
 0x503   : > { %v1620_v23 = vperm.slane %v1616_v18, %v5623_v49 }
 0x504   : > { %v1605_v24 = vsel %vm962_vm5, %v1604_v20, %v1592_v22  ;;  %v1623_v25 = vrot.slane %v1603_v19, 4 }
 0x505   : > { %v1609_v26 = vperm.slane %v1605_v24, %v5623_v49  ;;  %v1636_v27 = vsel %vm962_vm5, %v1620_v23, %v1635_v21  ;;  %v1633_v28 = vrot.slane %v1620_v23, 4 }
 0x506   : > { %v1644_v29 = vperm.slane %v1636_v27, %v5633_v63 }
 0x507   : > { %v1624_v30 = vsel %vm962_vm5, %v1609_v26, %v1623_v25  ;;  %v1621_v50 = vrot.slane %v1609_v26, 4  ;;  %v1634_v31 = vsel %vm962_vm5, %v1633_v28, %v1614_v12 }
 0x508   : > { %v1632_v33 = vperm.slane %v1624_v30, %v5633_v63  ;;  %v1649_v34 = vrot.slane %v1644_v29, 4  ;;  %v1640_v35 = vperm.slane %v1634_v31, %v5633_v63 }
 0x509   : > { %v1622_v52 = vsel %vm962_vm5, %v1621_v50, %v1603_v19 }
 0x50a   : > { %v1650_v36 = vsel %vm962_vm5, %v1649_v34, %v1632_v33  ;;  %v1628_v37 = vperm.slane %v1622_v52, %v5633_v63  ;;  %v1645_v38 = vrot.slane %v1640_v35, 4  ;;  %v1651_v43 = vrot.slane %v1632_v33, 4 }
 0x50b   : > { %1658 = vrot.lane.b32.xlu0 %v1650_v36, %s6937_s7  ;;  %s7008_s7 = smov %s7007_s9  ;;  %s7014_s9 = smov 112  }
 0x50c   : > { %v1646_v40 = vsel %vm962_vm5, %v1645_v38, %v1628_v37  ;;  %v1647_v41 = vrot.slane %v1628_v37, 4  ;;  %v1652_v62 = vsel %vm962_vm5, %v1644_v29, %v1651_v43 }
 0x50e   : > { %v1648_v45 = vsel %vm962_vm5, %v1640_v35, %v1647_v41 }
 0x513   : > { %1654 = vrot.lane.b32.xlu0 %v1648_v45, %s6943_s1  ;;  %s7022_s1 = smov 96  }
 0x51b   : > { %1662 = vrot.lane.b32.xlu0 %v1652_v62, %s6941_s4  ;;  %s7009_s4 = sshll.u32 %s5575_s12, 3 }
 0x51c   : > { %s868_s30 = scalar_lea.vmem %s7010_s11, %s7009_s4  ;;  %s7019_s4 = sld [smem:[#allocation27_spill]] }
 0x51d   : > { %v913_v1 = vld [vmem:[%s868_s30] sm:$0xff]  ;;  %s7012_s30 = sld [smem:[#allocation28_spill]] }
 0x522   : > { %v5162_v27 = vld [vmem:[%s7019_s4] ss:$0 sm:$0xff] }
 0x523   : > { %s7013_s12 = smov %s7012_s30  ;;  %v5014_v7 = vld [vmem:[%s7012_s30 + $0x8] sm:$0xff]  ;;  %s7017_s30 = sld [smem:[#allocation26_spill]] }
 0x524   : > { %1770 = vmatpush.bf16.msra.mxu2 %v5014_v7  ;;  %v5013_v9 = vld [vmem:[%s7013_s12] sm:$0xff] }
 0x528   : > { %1771 = vmatpush.bf16.msra.mxu2 %v5013_v9 }
 0x529   : > { %s7018_s0 = smov %s7017_s30  ;;  %v5161_v24 = vld [vmem:[%s7017_s30] ss:$0 sm:$0xff]  ;;  %s7020_s30 = sld [smem:[#allocation29_spill]] }
 0x52f   : > { %s7021_s11 = smov %s7020_s30 }
 0x57d   : > { %v1659_v47 = vpop.permute.xlu0 %1658 }
 0x585   : > { %v1655_v48 = vpop.permute.xlu0 %1654 }
 0x586   : > { %v1665_v39 = vsel %vm1328_vm6, %v1646_v40, %v1655_v48 }
 0x587   : > { %v1667_v51 = vsel %vm1666_vm9, %v1665_v39, %v1659_v47 }
 0x58d   : > { %v1663_v42 = vpop.permute.xlu0 %1662 }
 0x58e   : > { %v1669_v53 = vsel %vm1668_vm10, %v1667_v51, %v1663_v42 }
 0x58f   : > { %v1674_v54 = vpack.c.bf16 %v1669_v53, %v1669_v53 }
 0x591   : > { %4808 = vmatmul.msk.bf16.vlgmr.msra.gmra.mxu1 %vm875_vm0, %v1674_v54 }
 0x60e   : > { %v1703_v56 = vpop.f32.mrf.mxu1 }
 0x60f   : > { %v1704_v57 = vadd.f32 %v5159_v55, %v1703_v56 }
 0x611   : > { %v1707_v58 = vadd.f32 %v1704_v57, %v5604_v32  ;;  %v5872_v32 = vpack.c.bf16 %v913_v1, %v913_v1 }
 0x613   : > { %v1710_v59 = vsel %vm875_vm0, %v1707_v58, 0.0  ;;  %4826 = vmatmul.msk.bf16.vlgmr.msrb.gmra.mxu3 %vm875_vm0, %v5872_v32 }
 0x614   : > { %1711 = vadd.xlane.f32.xlu1 %v1710_v59 }
 0x616   : > { %v1705_v60 = vpop.f32.mrf.mxu1 }
 0x687   : > { %v1712_v2 = vpop.xlane.xlu1 %1711 }
 0x688   : > { %v1713_v3 = vmul.f32 %v1712_v2, %v5587_v10 }
 0x68a   : > { %v1714_v4 = vsub.f32 %v1707_v58, %v1713_v3 }
 0x68c   : > { %v1715_v5 = vmul.f32 %v1714_v4, %v1714_v4 }
 0x68e   : > { %v1716_v6 = vsel %vm875_vm0, %v1715_v5, 0.0 }
 0x68f   : > { %1717 = vadd.xlane.f32.xlu0 %v1716_v6 }
 0x696   : > { %v1810_v11 = vpop.f32.mrf.mxu3 }
 0x697   : > { %v5887_v12 = vadd.f32 %v5160_v8, %v1810_v11 }
 0x699   : > { %1942 = vrot.lane.b32.xlu1 %v5887_v12, %s7014_s9  ;;  %1939 = vrot.lane.b32.xlu2 %v5887_v12, %s7015_s8  ;;  %v1950_v37 = vrot.slane %v5887_v12, 4 }
 0x69e   : > { %v1812_v15 = vpop.f32.mrf.mxu3 }
 0x6a1   : > { %1945 = vrot.lane.b32.xlu2 %v5887_v12, %s7016_s6 }
 0x6f3   : > { %v5907_v50 = vpop.permute.xlu2 %1939 }
 0x6f4   : > { %v1962_v31 = vrot.slane %v5907_v50, 4 }
 0x6fb   : > { %v5910_v33 = vpop.permute.xlu2 %1945 }
 0x6fc   : > { %v1960_v34 = vrot.slane %v5910_v33, 4  ;;  %v1963_v35 = vsel %vm962_vm5, %v5910_v33, %v1962_v31 }
 0x6fd   : > { %v1971_v36 = vperm.slane %v1963_v35, %v5623_v49 }
 0x6fe   : > { %v1961_v52 = vsel %vm962_vm5, %v1960_v34, %v5907_v50 }
 0x6ff   : > { %v1967_v38 = vperm.slane %v1961_v52, %v5623_v49  ;;  %v1984_v41 = vrot.slane %v1971_v36, 4 }
 0x701   : > { %v1972_v46 = vrot.slane %v1967_v38, 4 }
 0x702   : > { %v1718_v13 = vpop.xlane.xlu0 %1717 }
 0x703   : > { %v1719_v14 = vmul.f32 %v1718_v13, %v5587_v10 }
 0x705   : > { %v1720_v17 = vadd.f32 1e-05, %v1719_v14 }
 0x707   : > { %5205 = vrsqrt.f32 %v1720_v17  ;;  %vm1727_vm12 = vweird.f32 %v1720_v17 }
 0x70b   : > { %v5920_v40 = vpop.permute.xlu1 %1942 }
 0x70c   : > { %v1948_v45 = vrot.slane %v5920_v40, 4  ;;  %v1951_v43 = vsel %vm962_vm5, %v5920_v40, %v1950_v37 }
 0x70d   : > { %v5206_v18 = vpop.eup %5205  ;;  %v1959_v62 = vperm.slane %v1951_v43, %v5623_v49 }
 0x70e   : > { %v1722_v19 = vmul.f32 %v5206_v18, %v1720_v17  ;;  %vm1728_vm11 = vweird.f32 %v5206_v18  ;;  %v1949_v44 = vsel %vm962_vm5, %v1948_v45, %v5887_v12 }
 0x70f   : > { %vm1729_vm13 = vmor %vm1727_vm12, %vm1728_vm11  ;;  %v1955_v47 = vperm.slane %v1949_v44, %v5623_v49  ;;  %v1986_v48 = vrot.slane %v1959_v62, 4  ;;  %v1985_v39 = vsel %vm962_vm5, %v1984_v41, %v1959_v62 }
 0x710   : > { %v1723_v20 = vmul.f32 %v5206_v18, %v1722_v19  ;;  %v1991_v42 = vperm.slane %v1985_v39, %v5633_v63 }
 0x711   : > { %v1974_v51 = vrot.slane %v1955_v47, 4  ;;  %v1987_v53 = vsel %vm962_vm5, %v1971_v36, %v1986_v48  ;;  %v1973_v54 = vsel %vm962_vm5, %v1972_v46, %v1955_v47 }
 0x712   : > { %v1724_v21 = vmul.f32 0.5, %v1723_v20  ;;  %v1995_v55 = vperm.slane %v1987_v53, %v5633_v63  ;;  %v2000_v57 = vrot.slane %v1991_v42, 4  ;;  %v1979_v60 = vperm.slane %v1973_v54, %v5633_v63 }
 0x713   : > { %v1975_v56 = vsel %vm962_vm5, %v1967_v38, %v1974_v51 }
 0x714   : > { %v1725_v22 = vsub.f32 1.5, %v1724_v21  ;;  %v1983_v58 = vperm.slane %v1975_v56, %v5633_v63  ;;  %v2002_v59 = vrot.slane %v1995_v55, 4  ;;  %v2001_v0 = vsel %vm962_vm5, 0.0, %v2000_v57 }
 0x715   : > { %v1996_v3 = vrot.slane %v1979_v60, 4 }
 0x716   : > { %v1726_v23 = vmul.f32 %v5206_v18, %v1725_v22  ;;  %v1998_v61 = vrot.slane %v1983_v58, 4  ;;  %v2003_v1 = vsel %vm962_vm5, 0.0, %v2002_v59  ;;  %v2015_v7 = vsel %vm962_vm5, %v2002_v59, %v1991_v42  ;;  %v5163_v42 = vld [vmem:[%s7020_s30] ss:$0 sm:$0xff]  ;;  %s7025_s30 = smov 24  }
 0x717   : > { %v2020_v2 = vrot.slane %v2003_v1, 4  ;;  %v1997_v8 = vsel %vm962_vm5, 0.0, %v1996_v3  ;;  %v2019_v11 = vperm.slane %v2015_v7, %v5623_v49 }
 0x718   : > { %v1730_v25 = vsel %vm1729_vm13, %v5206_v18, %v1726_v23  ;;  %v2004_v17 = vsel %vm962_vm5, %v1998_v61, %v1979_v60 }
 0x719   : > { %v1731_v26 = vmul.f32 %v1730_v25, %v1714_v4  ;;  %v1999_v4 = vsel %vm962_vm5, 0.0, %v1998_v61  ;;  %v2021_v5 = vsel %vm962_vm5, %v2020_v2, %v2001_v0  ;;  %v2008_v18 = vperm.slane %v2004_v17, %v5623_v49 }
 0x71a   : > { %v2009_v6 = vrot.slane %v1999_v4, 4  ;;  %v2025_v9 = vperm.slane %v2021_v5, %v5623_v49  ;;  %v2040_v21 = vrot.slane %v2019_v11, 4 }
 0x71b   : > { %v1735_v28 = vmul.f32 %v5161_v24, %v1731_v26  ;;  %v2028_v24 = vrot.slane %v2008_v18, 4 }
 0x71c   : > { %v2010_v13 = vsel %vm962_vm5, %v2009_v6, %v1997_v8  ;;  %v2038_v15 = vrot.slane %v2025_v9, 4  ;;  %v2041_v25 = vsel %vm962_vm5, %v2025_v9, %v2040_v21 }
 0x71d   : > { %v5902_v29 = vadd.f32 %v5162_v27, %v1735_v28  ;;  %v2014_v14 = vperm.slane %v2010_v13, %v5623_v49  ;;  %v2049_v28 = vperm.slane %v2041_v25, %v5633_v63 }
 0x71e   : > { %v2039_v20 = vsel %vm962_vm5, %v2038_v15, %v2019_v11 }
 0x71f   : > { %v1744_v30 = vpack.c.bf16 %v5902_v29, %v5902_v29  ;;  %v2026_v19 = vrot.slane %v2014_v14, 4  ;;  %v2045_v22 = vperm.slane %v2039_v20, %v5633_v63  ;;  %v2054_v52 = vrot.slane %v2049_v28, 4 }
 0x721   : > { %4817 = vmatmul.msk.bf16.vlgmr.msra.gmra.mxu2 %vm875_vm0, %v1744_v30  ;;  %v2027_v23 = vsel %vm962_vm5, %v2026_v19, %v2008_v18  ;;  %v2050_v27 = vrot.slane %v2045_v22, 4  ;;  %v2029_v30 = vsel %vm962_vm5, %v2014_v14, %v2028_v24 }
 0x722   : > { %v2033_v26 = vperm.slane %v2027_v23, %v5633_v63  ;;  %v2037_v35 = vperm.slane %v2029_v30, %v5633_v63 }
 0x724   : > { %v2051_v31 = vsel %vm962_vm5, %v2050_v27, %v2033_v26  ;;  %v2052_v34 = vrot.slane %v2033_v26, 4  ;;  %v2055_v38 = vsel %vm962_vm5, %v2054_v52, %v2037_v35  ;;  %v2056_v41 = vrot.slane %v2037_v35, 4 }
 0x725   : > { %v2058_v36 = vpack.c.bf16 %v2051_v31, %v2051_v31  ;;  %v2060_v62 = vpack.c.bf16 %v2055_v38, %v2055_v38 }
 0x726   : > { %v2053_v37 = vsel %vm962_vm5, %v2045_v22, %v2052_v34  ;;  %v2057_v44 = vsel %vm962_vm5, %v2049_v28, %v2056_v41 }
 0x727   : > { %v2192_v45 = vsel %vm1328_vm6, %v2058_v36, 0  ;;  %v2059_v43 = vpack.c.bf16 %v2053_v37, %v2053_v37  ;;  %v2230_v47 = vsel %vm1328_vm6, %v2060_v62, 0  ;;  %v2061_v48 = vpack.c.bf16 %v2057_v44, %v2057_v44 }
 0x728   : > { %2201 = vmatpush.bf16.xpose.msra.mxu0 %v2192_v45  ;;  %2239 = vmatpush.bf16.xpose.msrb.mxu2 %v2230_v47 }
 0x729   : > { %v2211_v46 = vsel %vm1328_vm6, %v2059_v43, 0  ;;  %v2249_v39 = vsel %vm1328_vm6, %v2061_v48, 0 }
 0x72a   : > { %2220 = vmatpush.bf16.xpose.msrb.mxu1 %v2211_v46  ;;  %2258 = vmatpush.bf16.xpose.msra.mxu3 %v2249_v39 }
 0x7a4   : > { %v1773_v51 = vpop.f32.mrf.mxu2 }
 0x7a5   : > { %v1774_v53 = vadd.f32 %v5163_v42, %v1773_v51 }
 0x7a7   : > { %1818 = vrot.lane.b32.xlu2 %v1774_v53, %s7014_s9  ;;  %1815 = vrot.lane.b32.xlu1 %v1774_v53, %s7015_s8  ;;  %v1826_v58 = vrot.slane %v1774_v53, 4 }
 0x7ac   : > { %v1775_v54 = vpop.f32.mrf.mxu2 }
 0x7af   : > { %1821 = vrot.lane.b32.xlu1 %v1774_v53, %s7016_s6 }
 0x801   : > { %v1819_v55 = vpop.permute.xlu2 %1818 }
 0x802   : > { %v1824_v57 = vrot.slane %v1819_v55, 4  ;;  %v1827_v59 = vsel %vm962_vm5, %v1819_v55, %v1826_v58 }
 0x803   : > { %v1835_v61 = vperm.slane %v1827_v59, %v5623_v49 }
 0x804   : > { %v1825_v60 = vsel %vm962_vm5, %v1824_v57, %v1774_v53 }
 0x805   : > { %v1831_v0 = vperm.slane %v1825_v60, %v5623_v49  ;;  %v1862_v5 = vrot.slane %v1835_v61, 4 }
 0x807   : > { %v1850_v8 = vrot.slane %v1831_v0, 4 }
 0x819   : > { %v1816_v56 = vpop.permute.xlu1 %1815 }
 0x81a   : > { %v1838_v1 = vrot.slane %v1816_v56, 4 }
 0x821   : > { %v1822_v2 = vpop.permute.xlu1 %1821 }
 0x822   : > { %v1836_v3 = vrot.slane %v1822_v2, 4  ;;  %v1839_v4 = vsel %vm962_vm5, %v1822_v2, %v1838_v1 }
 0x823   : > { %v1847_v6 = vperm.slane %v1839_v4, %v5623_v49 }
 0x824   : > { %v1837_v7 = vsel %vm962_vm5, %v1836_v3, %v1816_v56 }
 0x825   : > { %v1843_v9 = vperm.slane %v1837_v7, %v5623_v49  ;;  %v1860_v11 = vrot.slane %v1847_v6, 4  ;;  %v1863_v13 = vsel %vm962_vm5, %v1847_v6, %v1862_v5 }
 0x826   : > { %v1871_v14 = vperm.slane %v1863_v13, %v5633_v63 }
 0x827   : > { %v1848_v15 = vrot.slane %v1843_v9, 4  ;;  %v1851_v17 = vsel %vm962_vm5, %v1843_v9, %v1850_v8  ;;  %v1861_v18 = vsel %vm962_vm5, %v1860_v11, %v1835_v61 }
 0x828   : > { %v1859_v19 = vperm.slane %v1851_v17, %v5633_v63  ;;  %v1867_v20 = vperm.slane %v1861_v18, %v5633_v63  ;;  %v1878_v21 = vrot.slane %v1871_v14, 4 }
 0x829   : > { %v1849_v22 = vsel %vm962_vm5, %v1848_v15, %v1831_v0 }
 0x82a   : > { %v1855_v23 = vperm.slane %v1849_v22, %v5633_v63  ;;  %v1874_v24 = vrot.slane %v1859_v19, 4  ;;  %v1876_v25 = vrot.slane %v1867_v20, 4  ;;  %v1879_v26 = vsel %vm962_vm5, 0.0, %v1878_v21 }
 0x82b   : > { %v1891_v27 = vsel %vm962_vm5, %v1878_v21, %v1867_v20  ;;  %v1896_v28 = vrot.slane %v1879_v26, 4 }
 0x82c   : > { %v1872_v30 = vrot.slane %v1855_v23, 4  ;;  %v1875_v31 = vsel %vm962_vm5, 0.0, %v1874_v24  ;;  %v1877_v34 = vsel %vm962_vm5, 0.0, %v1876_v25  ;;  %v1880_v35 = vsel %vm962_vm5, %v1874_v24, %v1855_v23 }
 0x82d   : > { %v1884_v52 = vperm.slane %v1880_v35, %v5623_v49  ;;  %v1885_v36 = vrot.slane %v1875_v31, 4  ;;  %v1895_v37 = vperm.slane %v1891_v27, %v5623_v49  ;;  %v1897_v38 = vsel %vm962_vm5, %v1896_v28, %v1877_v34 }
 0x82e   : > { %v1873_v41 = vsel %vm962_vm5, 0.0, %v1872_v30  ;;  %v1901_v45 = vperm.slane %v1897_v38, %v5623_v49  ;;  %v5116_v25 = vpack.i.bf16 %v5907_v50, %v5887_v12  ;;  %v5121_v28 = vpack.i.bf16 %v5910_v33, %v5920_v40 }
 0x82f   : > { %v1916_v43 = vrot.slane %v1895_v37, 4  ;;  %v1886_v62 = vsel %vm962_vm5, %v1885_v36, %v1873_v41  ;;  %v1904_v44 = vrot.slane %v1884_v52, 4 }
 0x830   : > { %v1914_v46 = vrot.slane %v1901_v45, 4  ;;  %v1890_v47 = vperm.slane %v1886_v62, %v5623_v49 }
 0x831   : > { %v1917_v48 = vsel %vm962_vm5, %v1901_v45, %v1916_v43 }
 0x832   : > { %v1915_v39 = vsel %vm962_vm5, %v1914_v46, %v1895_v37  ;;  %v1902_v42 = vrot.slane %v1890_v47, 4  ;;  %v1905_v51 = vsel %vm962_vm5, %v1890_v47, %v1904_v44  ;;  %v1925_v53 = vperm.slane %v1917_v48, %v5633_v63 }
 0x833   : > { %v1913_v54 = vperm.slane %v1905_v51, %v5633_v63  ;;  %v1921_v55 = vperm.slane %v1915_v39, %v5633_v63 }
 0x834   : > { %v1930_v56 = vrot.slane %v1925_v53, 4  ;;  %v1903_v57 = vsel %vm962_vm5, %v1902_v42, %v1884_v52 }
 0x835   : > { %v1932_v58 = vrot.slane %v1913_v54, 4  ;;  %v1909_v59 = vperm.slane %v1903_v57, %v5633_v63  ;;  %v1926_v60 = vrot.slane %v1921_v55, 4 }
 0x836   : > { %v1931_v61 = vsel %vm962_vm5, %v1930_v56, %v1913_v54 }
 0x837   : > { %v1936_v1 = vpack.c.bf16 %v1931_v61, %v1931_v61  ;;  %v1927_v0 = vsel %vm962_vm5, %v1926_v60, %v1909_v59  ;;  %v1933_v2 = vsel %vm962_vm5, %v1925_v53, %v1932_v58  ;;  %v1928_v3 = vrot.slane %v1909_v59, 4 }
 0x838   : > { %v1934_v4 = vpack.c.bf16 %v1927_v0, %v1927_v0  ;;  %v1937_v5 = vpack.c.bf16 %v1933_v2, %v1933_v2 }
 0x839   : > { %4829 = vmatmul.msk.bf16.vlgmr.msrb.gmra.mxu2 %vm1328_vm6, %v1936_v1  ;;  %v1929_v6 = vsel %vm962_vm5, %v1921_v55, %v1928_v3 }
 0x83a   : > { %4827 = vmatmul.msk.bf16.vlgmr.msra.gmra.mxu0 %vm1328_vm6, %v1934_v4  ;;  %4830 = vmatmul.msk.bf16.vlgmr.msra.gmra.mxu3 %vm1328_vm6, %v1937_v5  ;;  %v1935_v7 = vpack.c.bf16 %v1929_v6, %v1929_v6 }
 0x83c   : > { %4828 = vmatmul.msk.bf16.vlgmr.msrb.gmra.mxu1 %vm1328_vm6, %v1935_v7 }
 0x8b7   : > { %v2203_v8 = vpop.f32.mrf.mxu0 }
 0x8b8   : > { %v2264_v9 = vmul.f32 0.35355338, %v2203_v8 }
 0x8b9   : > { %v2222_v11 = vpop.f32.mrf.mxu1 }
 0x8ba   : > { %v2265_v13 = vmul.f32 0.35355338, %v2222_v11  ;;  %v2268_v14 = vsel %vm1328_vm6, %v2264_v9, -inf }
 0x8bb   : > { %2269 = vmax.xlane.f32.xlu1 %v2268_v14 }
 0x8bc   : > { %v2241_v15 = vpop.f32.mrf.mxu2  ;;  %v2271_v17 = vsel %vm1328_vm6, %v2265_v13, -inf }
 0x8bd   : > { %v2266_v18 = vmul.f32 0.35355338, %v2241_v15  ;;  %v2260_v19 = vpop.f32.mrf.mxu3  ;;  %2272 = vmax.xlane.f32.xlu0 %v2271_v17 }
 0x8be   : > { %v2267_v26 = vmul.f32 0.35355338, %v2260_v19 }
 0x8bf   : > { %v2274_v20 = vsel %vm1328_vm6, %v2266_v18, -inf  ;;  %v2205_v21 = vpop.f32.mrf.mxu0 }
 0x8c0   : > { %2275 = vmax.xlane.f32.xlu2 %v2274_v20  ;;  %v2277_v27 = vsel %vm1328_vm6, %v2267_v26, -inf }
 0x8c1   : > { %v2224_v22 = vpop.f32.mrf.mxu1 }
 0x8c4   : > { %v2243_v23 = vpop.f32.mrf.mxu2 }
 0x8c5   : > { %v2262_v24 = vpop.f32.mrf.mxu3 }
 0x8d1   : > { %5117 = vrot.lane.b32.xlu0 %v5116_v25, %s7022_s1 }
 0x8fb   : > { %2278 = vmax.xlane.f32.xlu0 %v2277_v27 }
 0x90f   : > { %5122 = vrot.lane.b32.xlu0 %v5121_v28, %s7022_s1 }
 0x92e   : > { %v2270_v30 = vpop.xlane.xlu1 %2269 }
 0x92f   : > { %v2280_v31 = vsub.f32 %v2264_v9, %v2270_v30 }
 0x930   : > { %v2273_v35 = vpop.xlane.xlu0 %2272 }
 0x931   : > { %v2284_v34 = vmul.f32 1.442695, %v2280_v31  ;;  %v2281_v37 = vsub.f32 %v2265_v13, %v2273_v35 }
 0x933   : > { %5207 = vpow2.f32 %v2284_v34  ;;  %v2276_v52 = vpop.xlane.xlu2 %2275  ;;  %v2286_v38 = vmul.f32 1.442695, %v2281_v37 }
 0x934   : > { %v2282_v36 = vsub.f32 %v2266_v18, %v2276_v52 }
 0x936   : > { %v2288_v12 = vmul.f32 1.442695, %v2282_v36 }
 0x938   : > { %5209 = vpow2.f32 %v2288_v12 }
 0x939   : > { %v6025_v50 = vpop.eup %5207  ;;  %5211 = vpow2.f32 %v2286_v38 }
 0x93a   : > { %v2292_v41 = vsel %vm1328_vm6, %v6025_v50, 0.0 }
 0x93b   : > { %2293 = vadd.xlane.f32.xlu1 %v2292_v41 }
 0x93e   : > { %v6029_v33 = vpop.eup %5209 }
 0x93f   : > { %v2298_v40 = vsel %vm1328_vm6, %v6029_v33, 0.0  ;;  %v6033_v45 = vpop.eup %5211 }
 0x940   : > { %2299 = vadd.xlane.f32.xlu2 %v2298_v40  ;;  %v2295_v43 = vsel %vm1328_vm6, %v6033_v45, 0.0 }
 0x943   : > { %v5118_v62 = vpop.permute.xlu0 %5117 }
 0x944   : > { %v5120_v42 = vunpack.i.h.bf16 %v5118_v62  ;;  %v5119_v51 = vunpack.i.l.bf16 %v5118_v62 }
 0x946   : > { %v2088_v54 = vrot.slane %v5120_v42, 4  ;;  %v2076_v55 = vrot.slane %v5119_v51, 4 }
 0x948   : > { %2296 = vadd.xlane.f32.xlu2 %v2295_v43 }
 0x96e   : > { %v2279_v44 = vpop.xlane.xlu0 %2278 }
 0x96f   : > { %v2283_v46 = vsub.f32 %v2267_v26, %v2279_v44 }
 0x971   : > { %v2290_v47 = vmul.f32 1.442695, %v2283_v46 }
 0x973   : > { %5213 = vpow2.f32 %v2290_v47 }
 0x979   : > { %v6037_v48 = vpop.eup %5213 }
 0x97a   : > { %v2301_v39 = vsel %vm1328_vm6, %v6037_v48, 0.0 }
 0x97b   : > { %2302 = vadd.xlane.f32.xlu0 %v2301_v39 }
 0x981   : > { %v5123_v53 = vpop.permute.xlu0 %5122 }
 0x982   : > { %v5125_v56 = vunpack.i.h.bf16 %v5123_v53  ;;  %v5124_v57 = vunpack.i.l.bf16 %v5123_v53 }
 0x984   : > { %v2086_v58 = vrot.slane %v5125_v56, 4  ;;  %v2074_v59 = vrot.slane %v5124_v57, 4  ;;  %v2077_v60 = vsel %vm962_vm5, %v5124_v57, %v2076_v55  ;;  %v2089_v61 = vsel %vm962_vm5, %v5125_v56, %v2088_v54 }
 0x985   : > { %v2085_v1 = vperm.slane %v2077_v60, %v5623_v49  ;;  %v2097_v0 = vperm.slane %v2089_v61, %v5623_v49 }
 0x986   : > { %v2075_v2 = vsel %vm962_vm5, %v2074_v59, %v5119_v51  ;;  %v2087_v3 = vsel %vm962_vm5, %v2086_v58, %v5120_v42 }
 0x987   : > { %v2081_v4 = vperm.slane %v2075_v2, %v5623_v49  ;;  %v2093_v5 = vperm.slane %v2087_v3, %v5623_v49  ;;  %v2110_v6 = vrot.slane %v2097_v0, 4  ;;  %v2112_v7 = vrot.slane %v2085_v1, 4 }
 0x989   : > { %v2098_v8 = vrot.slane %v2093_v5, 4  ;;  %v2100_v9 = vrot.slane %v2081_v4, 4  ;;  %v2111_v11 = vsel %vm962_vm5, %v2110_v6, %v2085_v1  ;;  %v2113_v13 = vsel %vm962_vm5, %v2097_v0, %v2112_v7 }
 0x98a   : > { %v2117_v14 = vperm.slane %v2111_v11, %v5633_v63  ;;  %v2121_v15 = vperm.slane %v2113_v13, %v5633_v63 }
 0x98b   : > { %v2099_v17 = vsel %vm962_vm5, %v2098_v8, %v2081_v4  ;;  %v2101_v18 = vsel %vm962_vm5, %v2093_v5, %v2100_v9 }
 0x98c   : > { %v2105_v19 = vperm.slane %v2099_v17, %v5633_v63  ;;  %v2109_v20 = vperm.slane %v2101_v18, %v5633_v63  ;;  %v2126_v21 = vrot.slane %v2117_v14, 4  ;;  %v2128_v22 = vrot.slane %v2121_v15, 4 }
 0x98e   : > { %v2122_v23 = vrot.slane %v2105_v19, 4  ;;  %v2124_v24 = vrot.slane %v2109_v20, 4  ;;  %v2129_v25 = vsel %vm962_vm5, 0.0, %v2128_v22  ;;  %v2141_v26 = vsel %vm962_vm5, %v2128_v22, %v2117_v14 }
 0x98f   : > { %v2146_v27 = vrot.slane %v2129_v25, 4  ;;  %v2127_v30 = vsel %vm962_vm5, 0.0, %v2126_v21  ;;  %v2145_v31 = vperm.slane %v2141_v26, %v5623_v49 }
 0x990   : > { %v2125_v28 = vsel %vm962_vm5, 0.0, %v2124_v24  ;;  %v2130_v34 = vsel %vm962_vm5, %v2124_v24, %v2105_v19  ;;  %v2123_v37 = vsel %vm962_vm5, 0.0, %v2122_v23 }
 0x991   : > { %v2135_v35 = vrot.slane %v2125_v28, 4  ;;  %v2134_v52 = vperm.slane %v2130_v34, %v5623_v49  ;;  %v2147_v36 = vsel %vm962_vm5, %v2146_v27, %v2127_v30  ;;  %v2166_v38 = vrot.slane %v2145_v31, 4 }
 0x992   : > { %v2151_v12 = vperm.slane %v2147_v36, %v5623_v49 }
 0x993   : > { %v2136_v41 = vsel %vm962_vm5, %v2135_v35, %v2123_v37  ;;  %v2154_v40 = vrot.slane %v2134_v52, 4 }
 0x994   : > { %v2140_v43 = vperm.slane %v2136_v41, %v5623_v49  ;;  %v2167_v62 = vsel %vm962_vm5, %v2151_v12, %v2166_v38  ;;  %v2164_v44 = vrot.slane %v2151_v12, 4 }
 0x995   : > { %v2175_v46 = vperm.slane %v2167_v62, %v5633_v63 }
 0x996   : > { %v2155_v47 = vsel %vm962_vm5, %v2140_v43, %v2154_v40  ;;  %v2152_v39 = vrot.slane %v2140_v43, 4  ;;  %v2165_v42 = vsel %vm962_vm5, %v2164_v44, %v2145_v31 }
 0x997   : > { %v2163_v51 = vperm.slane %v2155_v47, %v5633_v63  ;;  %v2180_v53 = vrot.slane %v2175_v46, 4  ;;  %v2171_v54 = vperm.slane %v2165_v42, %v5633_v63 }
 0x998   : > { %v2153_v55 = vsel %vm962_vm5, %v2152_v39, %v2134_v52 }
 0x999   : > { %v2181_v56 = vsel %vm962_vm5, %v2180_v53, %v2163_v51  ;;  %v2159_v57 = vperm.slane %v2153_v55, %v5633_v63  ;;  %v2176_v58 = vrot.slane %v2171_v54, 4  ;;  %v2182_v59 = vrot.slane %v2163_v51, 4 }
 0x99a   : > { %v2186_v60 = vpack.c.bf16 %v2181_v56, %v2181_v56 }
 0x99b   : > { %v2177_v61 = vsel %vm962_vm5, %v2176_v58, %v2159_v57  ;;  %v2183_v1 = vsel %vm962_vm5, %v2175_v46, %v2182_v59  ;;  %v2178_v0 = vrot.slane %v2159_v57, 4 }
 0x99c   : > { %v2358_v2 = vsel %vm1469_vm8, %v2186_v60, 0  ;;  %v2184_v3 = vpack.c.bf16 %v2177_v61, %v2177_v61  ;;  %v2187_v4 = vpack.c.bf16 %v2183_v1, %v2183_v1 }
 0x99d   : > { %2367 = vmatpush.bf16.msra.mxu2 %v2358_v2  ;;  %v2179_v5 = vsel %vm962_vm5, %v2171_v54, %v2178_v0 }
 0x99e   : > { %v2320_v6 = vsel %vm1469_vm8, %v2184_v3, 0  ;;  %v2377_v7 = vsel %vm1469_vm8, %v2187_v4, 0  ;;  %v2185_v8 = vpack.c.bf16 %v2179_v5, %v2179_v5 }
 0x99f   : > { %2329 = vmatpush.bf16.msrb.mxu0 %v2320_v6  ;;  %2386 = vmatpush.bf16.msrb.mxu3 %v2377_v7 }
 0x9a0   : > { %v2339_v9 = vsel %vm1469_vm8, %v2185_v8, 0 }
 0x9a1   : > { %2348 = vmatpush.bf16.msra.mxu1 %v2339_v9 }
 0x9ae   : > { %v2294_v11 = vpop.xlane.xlu1 %2293 }
 0x9af   : > { %5215 = vrcp.f32 %v2294_v11 }
 0x9b3   : > { %v2300_v13 = vpop.xlane.xlu2 %2299 }
 0x9b4   : > { %5217 = vrcp.f32 %v2300_v13 }
 0x9b5   : > { %v5216_v14 = vpop.eup %5215 }
 0x9b6   : > { %v2308_v15 = vmul.f32 %v5216_v14, %v6025_v50 }
 0x9b8   : > { %v2312_v17 = vpack.c.bf16 %v2308_v15, %v2308_v15 }
 0x9ba   : > { %v5218_v18 = vpop.eup %5217  ;;  %4831 = vmatmul.msk.bf16.vlgmr.msrb.gmra.mxu0 %vm1328_vm6, %v2312_v17 }
 0x9bb   : > { %v2310_v19 = vmul.f32 %v5218_v18, %v6029_v33  ;;  %v2297_v20 = vpop.xlane.xlu2 %2296 }
 0x9bc   : > { %5219 = vrcp.f32 %v2297_v20 }
 0x9bd   : > { %v2314_v21 = vpack.c.bf16 %v2310_v19, %v2310_v19 }
 0x9bf   : > { %4833 = vmatmul.msk.bf16.vlgmr.msra.gmra.mxu2 %vm1328_vm6, %v2314_v21 }
 0x9c2   : > { %v5220_v22 = vpop.eup %5219 }
 0x9c3   : > { %v2309_v23 = vmul.f32 %v5220_v22, %v6033_v45 }
 0x9c5   : > { %v2313_v24 = vpack.c.bf16 %v2309_v23, %v2309_v23 }
 0x9c7   : > { %4832 = vmatmul.msk.bf16.vlgmr.msra.gmra.mxu1 %vm1328_vm6, %v2313_v24 }
 0x9ee   : > { %v2303_v25 = vpop.xlane.xlu0 %2302 }
 0x9ef   : > { %5221 = vrcp.f32 %v2303_v25 }
 0x9f5   : > { %v5222_v50 = vpop.eup %5221 }
 0x9f6   : > { %v2311_v26 = vmul.f32 %v5222_v50, %v6037_v48 }
 0x9f8   : > { %v2315_v27 = vpack.c.bf16 %v2311_v26, %v2311_v26 }
 0x9fa   : > { %4834 = vmatmul.msk.bf16.vlgmr.msrb.gmra.mxu3 %vm1328_vm6, %v2315_v27 }
 0xa37   : > { %v2331_v33 = vpop.f32.mrf.mxu0 }
 0xa38   : > { %v2394_v52 = vrot.slane %v2331_v33, 4 }
 0xa3f   : > { %v2333_v28 = vpop.f32.mrf.mxu0 }
 0xa42   : > { %v2369_v30 = vpop.f32.mrf.mxu2 }
 0xa43   : > { %v2392_v36 = vrot.slane %v2369_v30, 4  ;;  %v2395_v45 = vsel %vm962_vm5, %v2369_v30, %v2394_v52 }
 0xa44   : > { %v2350_v31 = vpop.f32.mrf.mxu1  ;;  %v2403_v12 = vperm.slane %v2395_v45, %v5623_v49 }
 0xa45   : > { %v2393_v37 = vsel %vm962_vm5, %v2392_v36, %v2331_v33  ;;  %v2406_v38 = vrot.slane %v2350_v31, 4 }
 0xa46   : > { %v2399_v48 = vperm.slane %v2393_v37, %v5623_v49  ;;  %v2430_v62 = vrot.slane %v2403_v12, 4 }
 0xa48   : > { %v2418_v47 = vrot.slane %v2399_v48, 4 }
 0xa4a   : > { %v2371_v34 = vpop.f32.mrf.mxu2 }
 0xa4c   : > { %v2352_v35 = vpop.f32.mrf.mxu1 }
 0xa7d   : > { %v2388_v41 = vpop.f32.mrf.mxu3 }
 0xa7e   : > { %v2404_v40 = vrot.slane %v2388_v41, 4  ;;  %v2407_v43 = vsel %vm962_vm5, %v2388_v41, %v2406_v38  ;;  %v5017_v41 = vld [vmem:[%s6905_s15] sm:$0xff] }
 0xa7f   : > { %v2415_v44 = vperm.slane %v2407_v43, %v5623_v49 }
 0xa80   : > { %v2405_v46 = vsel %vm962_vm5, %v2404_v40, %v2350_v31 }
 0xa81   : > { %v2411_v39 = vperm.slane %v2405_v46, %v5623_v49  ;;  %v2428_v42 = vrot.slane %v2415_v44, 4  ;;  %v2431_v51 = vsel %vm962_vm5, %v2415_v44, %v2430_v62 }
 0xa82   : > { %v2439_v53 = vperm.slane %v2431_v51, %v5633_v63 }
 0xa83   : > { %v2416_v54 = vrot.slane %v2411_v39, 4  ;;  %v2419_v55 = vsel %vm962_vm5, %v2411_v39, %v2418_v47  ;;  %v2429_v56 = vsel %vm962_vm5, %v2428_v42, %v2403_v12  ;;  %v5164_v42 = vld [vmem:[%s7026_s16] ss:$0 sm:$0xff]  ;;  %s7038_s16 = smov %s7037_s5 }
 0xa84   : > { %v2427_v57 = vperm.slane %v2419_v55, %v5633_v63  ;;  %v2435_v58 = vperm.slane %v2429_v56, %v5633_v63  ;;  %v2446_v59 = vrot.slane %v2439_v53, 4 }
 0xa85   : > { %v2417_v60 = vsel %vm962_vm5, %v2416_v54, %v2399_v48  ;;  %v2390_v61 = vpop.f32.mrf.mxu3  ;;  %v5018_v48 = vld [vmem:[%s6905_s15 + $0x8] sm:$0xff] }
 0xa86   : > { %v2423_v1 = vperm.slane %v2417_v60, %v5633_v63  ;;  %v2442_v0 = vrot.slane %v2427_v57, 4  ;;  %v2444_v2 = vrot.slane %v2435_v58, 4  ;;  %v2447_v3 = vsel %vm962_vm5, 0.0, %v2446_v59  ;;  %2547 = vmatpush.bf16.msra.mxu0 %v5018_v48 }
 0xa87   : > { %v2459_v4 = vsel %vm962_vm5, %v2446_v59, %v2435_v58  ;;  %v2464_v5 = vrot.slane %v2447_v3, 4 }
 0xa88   : > { %v2440_v6 = vrot.slane %v2423_v1, 4  ;;  %v2443_v7 = vsel %vm962_vm5, 0.0, %v2442_v0  ;;  %v2445_v8 = vsel %vm962_vm5, 0.0, %v2444_v2  ;;  %v2463_v9 = vperm.slane %v2459_v4, %v5623_v49 }
 0xa89   : > { %v2453_v11 = vrot.slane %v2443_v7, 4  ;;  %v2448_v13 = vsel %vm962_vm5, %v2442_v0, %v2423_v1  ;;  %v2465_v14 = vsel %vm962_vm5, %v2464_v5, %v2445_v8  ;;  %v5020_v1 = vld [vmem:[%s7027_s19 + $0x8] sm:$0xff] }
 0xa8a   : > { %v2441_v15 = vsel %vm962_vm5, 0.0, %v2440_v6  ;;  %v2452_v17 = vperm.slane %v2448_v13, %v5623_v49  ;;  %v2469_v18 = vperm.slane %v2465_v14, %v5623_v49  ;;  %v2484_v19 = vrot.slane %v2463_v9, 4  ;;  %2548 = vmatpush.bf16.msra.mxu0 %v5017_v41  ;;  %2617 = vmatpush.bf16.msrb.mxu1 %v5020_v1  ;;  %v5166_v14 = vld [vmem:[%s7028_s18] ss:$0 sm:$0xff] }
 0xa8b   : > { %v2454_v20 = vsel %vm962_vm5, %v2453_v11, %v2441_v15  ;;  %v5165_v11 = vld [vmem:[%s6907_s17] ss:$0 sm:$0xff] }
 0xa8c   : > { %v2458_v21 = vperm.slane %v2454_v20, %v5623_v49  ;;  %v2472_v22 = vrot.slane %v2452_v17, 4  ;;  %v2485_v23 = vsel %vm962_vm5, %v2469_v18, %v2484_v19  ;;  %v2482_v24 = vrot.slane %v2469_v18, 4  ;;  %v5167_v20 = vld [vmem:[%s6910_s20] ss:$0 sm:$0xff] }
 0xa8d   : > { %v2493_v25 = vperm.slane %v2485_v23, %v5633_v63  ;;  %v5024_v23 = vld [vmem:[%s6911_s21 + $0x18] sm:$0xff] }
 0xa8e   : > { %v2473_v50 = vsel %vm962_vm5, %v2458_v21, %v2472_v22  ;;  %v2470_v26 = vrot.slane %v2458_v21, 4  ;;  %v2483_v27 = vsel %vm962_vm5, %v2482_v24, %v2463_v9  ;;  %2695 = vmatpush.bf16.msrb.mxu2 %v5024_v23 }
 0xa8f   : > { %v2481_v33 = vperm.slane %v2473_v50, %v5633_v63  ;;  %v2498_v28 = vrot.slane %v2493_v25, 4  ;;  %v2489_v30 = vperm.slane %v2483_v27, %v5633_v63  ;;  %v5023_v50 = vld [vmem:[%s6911_s21 + $0x10] sm:$0xff] }
 0xa90   : > { %v2471_v31 = vsel %vm962_vm5, %v2470_v26, %v2452_v17 }
 0xa91   : > { %v2499_v34 = vsel %vm962_vm5, %v2498_v28, %v2481_v33  ;;  %v2477_v35 = vperm.slane %v2471_v31, %v5633_v63  ;;  %v2494_v52 = vrot.slane %v2489_v30, 4  ;;  %v2500_v12 = vrot.slane %v2481_v33, 4  ;;  %v5022_v28 = vld [vmem:[%s6911_s21 + $0x8] sm:$0xff] }
 0xa92   : > { %2507 = vrot.lane.b32.xlu2 %v2499_v34, %s7023_s27  ;;  %2696 = vmatpush.bf16.msrb.mxu2 %v5023_v50 }
 0xa93   : > { %v2496_v36 = vrot.slane %v2477_v35, 4  ;;  %v2495_v45 = vsel %vm962_vm5, %v2494_v52, %v2477_v35  ;;  %v2501_v38 = vsel %vm962_vm5, %v2493_v25, %v2500_v12 }
 0xa95   : > { %v2497_v37 = vsel %vm962_vm5, %v2489_v30, %v2496_v36  ;;  %v5021_v30 = vld [vmem:[%s6911_s21] sm:$0xff] }
 0xa96   : > { %2503 = vrot.lane.b32.xlu1 %v2497_v37, %s7024_s28  ;;  %2697 = vmatpush.bf16.msrb.mxu2 %v5022_v28 }
 0xa9a   : > { %2698 = vmatpush.bf16.msrb.mxu2 %v5021_v30 }
 0xa9e   : > { %2511 = vrot.lane.b32.xlu1 %v2501_v38, %s7025_s30 }
 0xaec   : > { %v2508_v62 = vpop.permute.xlu2 %2507 }
 0xb08   : > { %v2504_v40 = vpop.permute.xlu1 %2503 }
 0xb09   : > { %v2514_v43 = vsel %vm1328_vm6, %v2495_v45, %v2504_v40 }
 0xb0a   : > { %v2515_v46 = vsel %vm1666_vm9, %v2514_v43, %v2508_v62 }
 0xb10   : > { %v2512_v44 = vpop.permute.xlu1 %2511 }
 0xb11   : > { %v2516_v47 = vsel %vm1668_vm10, %v2515_v46, %v2512_v44 }
 0xb12   : > { %v2521_v39 = vpack.c.bf16 %v2516_v47, %v2516_v47 }
 0xb14   : > { %4843 = vmatmul.msk.bf16.vlgmr.msra.gmra.mxu0 %vm875_vm0, %v2521_v39 }
 0xb91   : > { %v2550_v51 = vpop.f32.mrf.mxu0 }
 0xb92   : > { %v2551_v53 = vadd.f32 %v5164_v42, %v2550_v51 }
 0xb94   : > { %v2554_v54 = vadd.f32 %v2551_v53, %v5902_v29  ;;  %v5019_v29 = vld [vmem:[%s7027_s19] sm:$0xff]  ;;  %s7029_s19 = smov 64  }
 0xb95   : > { %2618 = vmatpush.bf16.msrb.mxu1 %v5019_v29 }
 0xb96   : > { %v2557_v55 = vsel %vm875_vm0, %v2554_v54, 0.0 }
 0xb97   : > { %2558 = vadd.xlane.f32.xlu2 %v2557_v55  ;;  %v5168_v55 = vld [vmem:[%s6912_s22] ss:$0 sm:$0xff] }
 0xb99   : > { %v2552_v56 = vpop.f32.mrf.mxu0 }
 0xc0a   : > { %v2559_v57 = vpop.xlane.xlu2 %2558 }
 0xc0b   : > { %v2560_v58 = vmul.f32 %v2559_v57, %v5587_v10 }
 0xc0d   : > { %v2561_v59 = vsub.f32 %v2554_v54, %v2560_v58 }
 0xc0f   : > { %v2562_v60 = vmul.f32 %v2561_v59, %v2561_v59 }
 0xc11   : > { %v2563_v61 = vsel %vm875_vm0, %v2562_v60, 0.0 }
 0xc12   : > { %2564 = vadd.xlane.f32.xlu1 %v2563_v61 }
 0xc85   : > { %v2565_v0 = vpop.xlane.xlu1 %2564 }
 0xc86   : > { %v2566_v2 = vmul.f32 %v2565_v0, %v5587_v10 }
 0xc88   : > { %v2567_v3 = vadd.f32 1e-05, %v2566_v2 }
 0xc8a   : > { %5223 = vrsqrt.f32 %v2567_v3  ;;  %vm2574_vm15 = vweird.f32 %v2567_v3 }
 0xc90   : > { %v5224_v4 = vpop.eup %5223 }
 0xc91   : > { %v2569_v5 = vmul.f32 %v5224_v4, %v2567_v3  ;;  %vm2575_vm14 = vweird.f32 %v5224_v4  ;;  %v5026_v3 = vld [vmem:[%s6999_s29 + $0x18] sm:$0xff] }
 0xc92   : > { %vm2576_vm1 = vmor %vm2574_vm15, %vm2575_vm14  ;;  %2769 = vmatpush.bf16.msra.mxu3 %v5026_v3 }
 0xc93   : > { %v2570_v6 = vmul.f32 %v5224_v4, %v2569_v5 }
 0xc95   : > { %v2571_v7 = vmul.f32 0.5, %v2570_v6 }
 0xc97   : > { %v2572_v8 = vsub.f32 1.5, %v2571_v7 }
 0xc99   : > { %v2573_v9 = vmul.f32 %v5224_v4, %v2572_v8 }
 0xc9b   : > { %v2577_v13 = vsel %vm2576_vm1, %v5224_v4, %v2573_v9  ;;  %v5025_v4 = vld [vmem:[%s6999_s29 + $0x10] sm:$0xff] }
 0xc9c   : > { %v2578_v15 = vmul.f32 %v2577_v13, %v2561_v59  ;;  %2770 = vmatpush.bf16.msra.mxu3 %v5025_v4 }
 0xc9e   : > { %v2582_v17 = vmul.f32 %v5165_v11, %v2578_v15 }
 0xca0   : > { %v2586_v18 = vadd.f32 %v5166_v14, %v2582_v17  ;;  %v5169_v17 = vld [vmem:[%s6913_s23] ss:$0 sm:$0xff] }
 0xca2   : > { %v2591_v19 = vpack.c.bf16 %v2586_v18, %v2586_v18 }
 0xca4   : > { %4852 = vmatmul.msk.bf16.vlgmr.msrb.gmra.mxu1 %vm875_vm0, %v2591_v19  ;;  %v5170_v19 = vld [vmem:[%s6914_s24] ss:$0 sm:$0xff] }
 0xd21   : > { %v2620_v21 = vpop.f32.mrf.mxu1 }
 0xd22   : > { %v2621_v22 = vadd.f32 %v5167_v20, %v2620_v21 }
 0xd24   : > { %v2625_v24 = vmul.f32 0.70710677, %v2621_v22  ;;  %v2624_v42 = vmul.f32 0.5, %v2621_v22 }
 0xd26   : > { %v2626_v25 = vand.u32 2147483647, %v2625_v24  ;;  %vm2645_vm2 = vcmp.ge.f32.partialorder %v2625_v24, 0.0  ;;  %v5171_v24 = vld [vmem:[%s7003_s26 + $0x1] ss:$0 sm:$0xff] }
 0xd28   : > { %v2627_v26 = vmul.f32 0.3275911, %v2626_v25  ;;  %v2639_v34 = vsub.f32 0.0, %v2626_v25 }
 0xd29   : > { %v2622_v27 = vpop.f32.mrf.mxu1 }
 0xd2a   : > { %v2628_v33 = vadd.f32 1.0, %v2627_v26  ;;  %v2640_v36 = vmul.f32 %v2639_v34, %v2626_v25 }
 0xd2c   : > { %5225 = vrcp.f32 %v2628_v33  ;;  %v2641_v12 = vmul.f32 1.442695, %v2640_v36 }
 0xd2e   : > { %5227 = vpow2.f32 %v2641_v12 }
 0xd32   : > { %v5226_v31 = vpop.eup %5225 }
 0xd33   : > { %v2630_v35 = vmul.f32 1.0614054, %v5226_v31 }
 0xd34   : > { %v5228_v62 = vpop.eup %5227 }
 0xd35   : > { %v2631_v52 = vadd.f32 -1.4531521, %v2630_v35 }
 0xd37   : > { %v2632_v45 = vmul.f32 %v5226_v31, %v2631_v52 }
 0xd39   : > { %v2633_v37 = vadd.f32 1.4214138, %v2632_v45 }
 0xd3b   : > { %v2634_v38 = vmul.f32 %v5226_v31, %v2633_v37 }
 0xd3d   : > { %v2635_v48 = vadd.f32 -0.28449672, %v2634_v38 }
 0xd3f   : > { %v2636_v41 = vmul.f32 %v5226_v31, %v2635_v48 }
 0xd41   : > { %v2637_v40 = vadd.f32 0.2548296, %v2636_v41 }
 0xd43   : > { %v2638_v43 = vmul.f32 %v5226_v31, %v2637_v40 }
 0xd45   : > { %v2643_v44 = vmul.f32 %v5228_v62, %v2638_v43 }
 0xd47   : > { %v2644_v46 = vsub.f32 1.0, %v2643_v44 }
 0xd49   : > { %v2646_v47 = vsub.f32 0.0, %v2644_v46 }
 0xd4b   : > { %v2647_v39 = vsel %vm2645_vm2, %v2644_v46, %v2646_v47 }
 0xd4c   : > { %v2648_v51 = vadd.f32 1.0, %v2647_v39 }
 0xd4e   : > { %v2649_v53 = vmul.f32 %v2648_v51, %v2624_v42 }
 0xd50   : > { %v2658_v54 = vpack.c.bf16 %v2649_v53, %v2649_v53 }
 0xd52   : > { %4869 = vmatmul.msk.bf16.vlgmr.msrb.gmra.mxu2 %vm2687_vm3, %v2658_v54 }
 0xdd5   : > { %v2700_v56 = vpop.f32.mrf.mxu2 }
 0xdd6   : > { %v2701_v57 = vadd.f32 %v5168_v55, %v2700_v56 }
 0xdd8   : > { %v2704_v58 = vadd.f32 %v2701_v57, %v2586_v18 }
 0xdda   : > { %v2707_v59 = vsel %vm875_vm0, %v2704_v58, 0.0 }
 0xddb   : > { %2708 = vadd.xlane.f32.xlu0 %v2707_v59 }
 0xddd   : > { %v2702_v60 = vpop.f32.mrf.mxu2 }
 0xe4e   : > { %v2709_v61 = vpop.xlane.xlu0 %2708 }
 0xe4f   : > { %v2710_v1 = vmul.f32 %v2709_v61, %v5587_v10 }
 0xe51   : > { %v2711_v29 = vsub.f32 %v2704_v58, %v2710_v1 }
 0xe53   : > { %v2712_v0 = vmul.f32 %v2711_v29, %v2711_v29 }
 0xe55   : > { %v2713_v2 = vsel %vm875_vm0, %v2712_v0, 0.0 }
 0xe56   : > { %2714 = vadd.xlane.f32.xlu0 %v2713_v2 }
 0xec9   : > { %v2715_v5 = vpop.xlane.xlu0 %2714 }
 0xeca   : > { %v2716_v6 = vmul.f32 %v2715_v5, %v5587_v10 }
 0xecc   : > { %v2717_v7 = vadd.f32 1e-05, %v2716_v6 }
 0xece   : > { %5229 = vrsqrt.f32 %v2717_v7  ;;  %vm2724_vm11 = vweird.f32 %v2717_v7 }
 0xed4   : > { %v5230_v8 = vpop.eup %5229 }
 0xed5   : > { %v2719_v9 = vmul.f32 %v5230_v8, %v2717_v7  ;;  %vm2725_vm4 = vweird.f32 %v5230_v8 }
 0xed6   : > { %vm2726_vm12 = vmor %vm2724_vm11, %vm2725_vm4 }
 0xed7   : > { %v2720_v11 = vmul.f32 %v5230_v8, %v2719_v9 }
 0xed9   : > { %v2721_v13 = vmul.f32 0.5, %v2720_v11 }
 0xedb   : > { %v2722_v14 = vsub.f32 1.5, %v2721_v13 }
 0xedd   : > { %v2723_v15 = vmul.f32 %v5230_v8, %v2722_v14 }
 0xedf   : > { %v2727_v18 = vsel %vm2726_vm12, %v5230_v8, %v2723_v15 }
 0xee0   : > { %v2728_v20 = vmul.f32 %v2727_v18, %v2711_v29 }
 0xee2   : > { %v2732_v21 = vmul.f32 %v5169_v17, %v2728_v20 }
 0xee4   : > { %v6202_v22 = vadd.f32 %v5170_v19, %v2732_v21 }
 0xee6   : > { %v2742_v23 = vpack.c.bf16 %v6202_v22, %v6202_v22 }
 0xee8   : > { %4883 = vmatmul.msk.bf16.vlgmr.msra.gmra.mxu3 %vm875_vm0, %v2742_v23 }
 0xf6b   : > { %v2772_v25 = vpop.f32.mrf.mxu3 }
 0xf6c   : > { %v2773_v50 = vadd.f32 %v5171_v24, %v2772_v25 }
 0xf6e   : > { %2780 = vrot.lane.b32.xlu2 %v2773_v50, %s7014_s9  ;;  %2777 = vrot.lane.b32.xlu0 %v2773_v50, %s7015_s8  ;;  %v2788_v35 = vrot.slane %v2773_v50, 4 }
 0xf73   : > { %v2774_v26 = vpop.f32.mrf.mxu3 }
 0xf76   : > { %2783 = vrot.lane.b32.xlu0 %v2773_v50, %s7016_s6 }
 0xfc8   : > { %v2781_v28 = vpop.permute.xlu2 %2780 }
 0xfc9   : > { %v2786_v34 = vrot.slane %v2781_v28, 4  ;;  %v2789_v52 = vsel %vm962_vm5, %v2781_v28, %v2788_v35 }
 0xfca   : > { %v2797_v38 = vperm.slane %v2789_v52, %v5623_v49 }
 0xfcb   : > { %v2787_v37 = vsel %vm962_vm5, %v2786_v34, %v2773_v50 }
 0xfcc   : > { %v2793_v41 = vperm.slane %v2787_v37, %v5623_v49  ;;  %v2824_v43 = vrot.slane %v2797_v38, 4 }
 0xfce   : > { %v2812_v44 = vrot.slane %v2793_v41, 4 }
 0xfe0   : > { %v2778_v27 = vpop.permute.xlu0 %2777 }
 0xfe1   : > { %v6213_v33 = vpack.i.bf16 %v2778_v27, %v2773_v50  ;;  %v2800_v36 = vrot.slane %v2778_v27, 4 }
 0xfe3   : > { %5127 = vrot.lane.b32.xlu1 %v6213_v33, %s7022_s1 }
 0xfe8   : > { %v2784_v30 = vpop.permute.xlu0 %2783 }
 0xfe9   : > { %v6217_v31 = vpack.i.bf16 %v2784_v30, %v2781_v28  ;;  %v2798_v45 = vrot.slane %v2784_v30, 4  ;;  %v2801_v12 = vsel %vm962_vm5, %v2784_v30, %v2800_v36 }
 0xfea   : > { %v2809_v40 = vperm.slane %v2801_v12, %v5623_v49 }
 0xfeb   : > { %5132 = vrot.lane.b32.xlu0 %v6217_v31, %s7022_s1  ;;  %v2799_v48 = vsel %vm962_vm5, %v2798_v45, %v2778_v27 }
 0xfec   : > { %v2805_v62 = vperm.slane %v2799_v48, %v5623_v49  ;;  %v2822_v46 = vrot.slane %v2809_v40, 4  ;;  %v2825_v47 = vsel %vm962_vm5, %v2809_v40, %v2824_v43 }
 0xfed   : > { %v2833_v51 = vperm.slane %v2825_v47, %v5633_v63 }
 0xfee   : > { %v2810_v39 = vrot.slane %v2805_v62, 4  ;;  %v2813_v42 = vsel %vm962_vm5, %v2805_v62, %v2812_v44  ;;  %v2823_v53 = vsel %vm962_vm5, %v2822_v46, %v2797_v38 }
 0xfef   : > { %v2821_v54 = vperm.slane %v2813_v42, %v5633_v63  ;;  %v2829_v57 = vperm.slane %v2823_v53, %v5633_v63  ;;  %v2840_v58 = vrot.slane %v2833_v51, 4 }
 0xff0   : > { %v2811_v56 = vsel %vm962_vm5, %v2810_v39, %v2793_v41 }
 0xff1   : > { %v2817_v61 = vperm.slane %v2811_v56, %v5633_v63  ;;  %v2836_v1 = vrot.slane %v2821_v54, 4  ;;  %v2838_v29 = vrot.slane %v2829_v57, 4  ;;  %v2841_v0 = vsel %vm962_vm5, 0.0, %v2840_v58 }
 0xff2   : > { %v2853_v15 = vsel %vm962_vm5, %v2840_v58, %v2829_v57  ;;  %v2858_v17 = vrot.slane %v2841_v0, 4 }
 0xff3   : > { %v2834_v7 = vrot.slane %v2817_v61, 4  ;;  %v2837_v8 = vsel %vm962_vm5, 0.0, %v2836_v1  ;;  %v2839_v20 = vsel %vm962_vm5, 0.0, %v2838_v29  ;;  %v2842_v30 = vsel %vm962_vm5, %v2836_v1, %v2817_v61 }
 0xff4   : > { %v2847_v21 = vrot.slane %v2837_v8, 4  ;;  %v2857_v45 = vperm.slane %v2853_v15, %v5623_v49  ;;  %v2859_v37 = vsel %vm962_vm5, %v2858_v17, %v2839_v20  ;;  %v2846_v48 = vperm.slane %v2842_v30, %v5623_v49 }
 0xff5   : > { %v2835_v28 = vsel %vm962_vm5, 0.0, %v2834_v7  ;;  %v2863_v39 = vperm.slane %v2859_v37, %v5623_v49 }
 0xff6   : > { %v2848_v43 = vsel %vm962_vm5, %v2847_v21, %v2835_v28  ;;  %v2878_v42 = vrot.slane %v2857_v45, 4  ;;  %v2866_v58 = vrot.slane %v2846_v48, 4 }
 0xff7   : > { %v2852_v57 = vperm.slane %v2848_v43, %v5623_v49  ;;  %v2876_v29 = vrot.slane %v2863_v39, 4 }
 0xff9   : > { %v2864_v15 = vrot.slane %v2852_v57, 4 }
 0xffb   : > { %v2865_v30 = vsel %vm962_vm5, %v2864_v15, %v2846_v48 }
 0xffc   : > { %v2871_v43 = vperm.slane %v2865_v30, %v5633_v63 }
0x1055   : > { %v5128_v55 = vpop.permute.xlu1 %5127 }
0x1056   : > { %v5130_v59 = vunpack.i.h.bf16 %v5128_v55  ;;  %v5129_v60 = vunpack.i.l.bf16 %v5128_v55 }
0x1058   : > { %v2926_v3 = vrot.slane %v5130_v59, 4  ;;  %v2914_v4 = vrot.slane %v5129_v60, 4 }
0x105d   : > { %v5133_v2 = vpop.permute.xlu0 %5132 }
0x105e   : > { %v5135_v5 = vunpack.i.h.bf16 %v5133_v2  ;;  %v5134_v6 = vunpack.i.l.bf16 %v5133_v2 }
0x1060   : > { %v2924_v9 = vrot.slane %v5135_v5, 4  ;;  %v2927_v11 = vsel %vm962_vm5, %v5135_v5, %v2926_v3  ;;  %v2912_v13 = vrot.slane %v5134_v6, 4  ;;  %v2915_v14 = vsel %vm962_vm5, %v5134_v6, %v2914_v4 }
0x1061   : > { %v2935_v18 = vperm.slane %v2927_v11, %v5623_v49  ;;  %v2923_v19 = vperm.slane %v2915_v14, %v5623_v49 }
0x1062   : > { %v2925_v23 = vsel %vm962_vm5, %v2924_v9, %v5130_v59  ;;  %v2913_v24 = vsel %vm962_vm5, %v2912_v13, %v5129_v60  ;;  %v2879_v9 = vsel %vm962_vm5, %v2863_v39, %v2878_v42 }
0x1063   : > { %v2931_v25 = vperm.slane %v2925_v23, %v5623_v49  ;;  %v2948_v50 = vrot.slane %v2935_v18, 4  ;;  %v2919_v26 = vperm.slane %v2913_v24, %v5623_v49  ;;  %v2950_v27 = vrot.slane %v2923_v19, 4 }
0x1064   : > { %v2887_v24 = vperm.slane %v2879_v9, %v5633_v63 }
0x1065   : > { %v2936_v34 = vrot.slane %v2931_v25, 4  ;;  %v2938_v35 = vrot.slane %v2919_v26, 4  ;;  %v2949_v52 = vsel %vm962_vm5, %v2948_v50, %v2923_v19  ;;  %v2951_v36 = vsel %vm962_vm5, %v2935_v18, %v2950_v27 }
0x1066   : > { %v2955_v12 = vperm.slane %v2949_v52, %v5633_v63  ;;  %v2959_v38 = vperm.slane %v2951_v36, %v5633_v63  ;;  %v2867_v18 = vsel %vm962_vm5, %v2852_v57, %v2866_v58  ;;  %v2877_v19 = vsel %vm962_vm5, %v2876_v29, %v2857_v45 }
0x1067   : > { %v2937_v41 = vsel %vm962_vm5, %v2936_v34, %v2919_v26  ;;  %v2939_v40 = vsel %vm962_vm5, %v2931_v25, %v2938_v35  ;;  %v2875_v28 = vperm.slane %v2867_v18, %v5633_v63  ;;  %v2883_v34 = vperm.slane %v2877_v19, %v5633_v63 }
0x1068   : > { %v2943_v62 = vperm.slane %v2937_v41, %v5633_v63  ;;  %v2947_v44 = vperm.slane %v2939_v40, %v5633_v63  ;;  %v2964_v46 = vrot.slane %v2955_v12, 4  ;;  %v2966_v47 = vrot.slane %v2959_v38, 4 }
0x1069   : > { %v2894_v39 = vrot.slane %v2875_v28, 4 }
0x106a   : > { %v2960_v51 = vrot.slane %v2943_v62, 4  ;;  %v2962_v53 = vrot.slane %v2947_v44, 4  ;;  %v2967_v54 = vsel %vm962_vm5, 0.0, %v2966_v47  ;;  %v2979_v55 = vsel %vm962_vm5, %v2966_v47, %v2955_v12 }
0x106b   : > { %v2984_v56 = vrot.slane %v2967_v54, 4  ;;  %v2965_v60 = vsel %vm962_vm5, 0.0, %v2964_v46  ;;  %v2983_v61 = vperm.slane %v2979_v55, %v5623_v49  ;;  %v2892_v12 = vrot.slane %v2887_v24, 4 }
0x106c   : > { %v2963_v59 = vsel %vm962_vm5, 0.0, %v2962_v53  ;;  %v2968_v1 = vsel %vm962_vm5, %v2962_v53, %v2943_v62  ;;  %v2961_v4 = vsel %vm962_vm5, 0.0, %v2960_v51  ;;  %v2888_v47 = vrot.slane %v2883_v34, 4 }
0x106d   : > { %v2973_v0 = vrot.slane %v2963_v59, 4  ;;  %v2972_v2 = vperm.slane %v2968_v1, %v5623_v49  ;;  %v2985_v3 = vsel %vm962_vm5, %v2984_v56, %v2965_v60  ;;  %v3004_v6 = vrot.slane %v2983_v61, 4 }
0x106e   : > { %v2989_v5 = vperm.slane %v2985_v3, %v5623_v49  ;;  %v2893_v54 = vsel %vm962_vm5, %v2892_v12, %v2875_v28  ;;  %v2890_v55 = vrot.slane %v2871_v43, 4  ;;  %v2889_v57 = vsel %vm962_vm5, %v2888_v47, %v2871_v43 }
0x106f   : > { %v2974_v7 = vsel %vm962_vm5, %v2973_v0, %v2961_v4  ;;  %v2992_v8 = vrot.slane %v2972_v2, 4  ;;  %v2895_v58 = vsel %vm962_vm5, %v2887_v24, %v2894_v39  ;;  %v2898_v59 = vpack.c.bf16 %v2893_v54, %v2893_v54 }
0x1070   : > { %v2978_v11 = vperm.slane %v2974_v7, %v5623_v49  ;;  %v3005_v13 = vsel %vm962_vm5, %v2989_v5, %v3004_v6  ;;  %v3002_v14 = vrot.slane %v2989_v5, 4  ;;  %v2891_v60 = vsel %vm962_vm5, %v2883_v34, %v2890_v55 }
0x1071   : > { %v3013_v17 = vperm.slane %v3005_v13, %v5633_v63  ;;  %v2899_v1 = vpack.c.bf16 %v2895_v58, %v2895_v58  ;;  %v2897_v29 = vpack.c.bf16 %v2891_v60, %v2891_v60 }
0x1072   : > { %v2993_v20 = vsel %vm962_vm5, %v2978_v11, %v2992_v8  ;;  %v2990_v21 = vrot.slane %v2978_v11, 4  ;;  %v3003_v23 = vsel %vm962_vm5, %v3002_v14, %v2983_v61  ;;  %v2896_v61 = vpack.c.bf16 %v2889_v57, %v2889_v57 }
0x1073   : > { %v3001_v25 = vperm.slane %v2993_v20, %v5633_v63  ;;  %v3018_v50 = vrot.slane %v3013_v17, 4  ;;  %v3009_v26 = vperm.slane %v3003_v23, %v5633_v63 }
0x1074   : > { %v2991_v27 = vsel %vm962_vm5, %v2990_v21, %v2972_v2 }
0x1075   : > { %v3019_v35 = vsel %vm962_vm5, %v3018_v50, %v3001_v25  ;;  %v2997_v52 = vperm.slane %v2991_v27, %v5633_v63  ;;  %v3014_v36 = vrot.slane %v3009_v26, 4  ;;  %v3020_v45 = vrot.slane %v3001_v25, 4 }
0x1076   : > { %v3024_v37 = vpack.c.bf16 %v3019_v35, %v3019_v35 }
0x1077   : > { %v3015_v38 = vsel %vm962_vm5, %v3014_v36, %v2997_v52  ;;  %v3021_v41 = vsel %vm962_vm5, %v3013_v17, %v3020_v45  ;;  %v3016_v40 = vrot.slane %v2997_v52, 4 }
0x1078   : > { %v3194_v62 = vsel %vm1328_vm6, %v3024_v37, 0  ;;  %v3022_v48 = vpack.c.bf16 %v3015_v38, %v3015_v38  ;;  %v3025_v44 = vpack.c.bf16 %v3021_v41, %v3021_v41 }
0x1079   : > { %3203 = vmatpush.bf16.xpose.msra.mxu2 %v3194_v62  ;;  %v3017_v46 = vsel %vm962_vm5, %v3009_v26, %v3016_v40 }
0x107a   : > { %v3156_v42 = vsel %vm1328_vm6, %v3022_v48, 0  ;;  %v3213_v51 = vsel %vm1328_vm6, %v3025_v44, 0  ;;  %v3023_v53 = vpack.c.bf16 %v3017_v46, %v3017_v46 }
0x107b   : > { %3165 = vmatpush.bf16.xpose.msrb.mxu0 %v3156_v42  ;;  %3222 = vmatpush.bf16.xpose.msrb.mxu3 %v3213_v51 }
0x107c   : > { %v3175_v56 = vsel %vm1328_vm6, %v3023_v53, 0 }
0x107d   : > { %3184 = vmatpush.bf16.xpose.msra.mxu1 %v3175_v56 }
0x1080   : > { %4886 = vmatmul.msk.bf16.vlgmr.msra.gmra.mxu2 %vm1328_vm6, %v2898_v59 }
0x1082   : > { %4884 = vmatmul.msk.bf16.vlgmr.msrb.gmra.mxu0 %vm1328_vm6, %v2896_v61  ;;  %4887 = vmatmul.msk.bf16.vlgmr.msrb.gmra.mxu3 %vm1328_vm6, %v2899_v1 }
0x1084   : > { %4885 = vmatmul.msk.bf16.vlgmr.msra.gmra.mxu1 %vm1328_vm6, %v2897_v29 }
0x10ff   : > { %v3167_v0 = vpop.f32.mrf.mxu0 }
0x1100   : > { %v3228_v2 = vmul.f32 0.35355338, %v3167_v0 }
0x1101   : > { %v3186_v3 = vpop.f32.mrf.mxu1 }
0x1102   : > { %v3229_v4 = vmul.f32 0.35355338, %v3186_v3  ;;  %v3232_v5 = vsel %vm5715_vm7, %v3228_v2, -1e+09 }
0x1103   : > { %v3205_v6 = vpop.f32.mrf.mxu2  ;;  %v3236_v7 = vsel %vm1328_vm6, %v3232_v5, -inf }
0x1104   : > { %3237 = vmax.xlane.f32.xlu1 %v3236_v7  ;;  %v3233_v8 = vsel %vm5715_vm7, %v3229_v4, -1e+09  ;;  %v3230_v13 = vmul.f32 0.35355338, %v3205_v6 }
0x1105   : > { %v3224_v9 = vpop.f32.mrf.mxu3  ;;  %v3239_v11 = vsel %vm1328_vm6, %v3233_v8, -inf }
0x1106   : > { %v3231_v14 = vmul.f32 0.35355338, %v3224_v9  ;;  %3240 = vmax.xlane.f32.xlu0 %v3239_v11  ;;  %v3234_v20 = vsel %vm5715_vm7, %v3230_v13, -1e+09 }
0x1107   : > { %v3169_v15 = vpop.f32.mrf.mxu0  ;;  %v3242_v24 = vsel %vm1328_vm6, %v3234_v20, -inf }
0x1108   : > { %v3235_v17 = vsel %vm5715_vm7, %v3231_v14, -1e+09 }
0x1109   : > { %v3188_v18 = vpop.f32.mrf.mxu1  ;;  %v3245_v19 = vsel %vm1328_vm6, %v3235_v17, -inf }
0x110a   : > { %3246 = vmax.xlane.f32.xlu2 %v3245_v19 }
0x110b   : > { %v3207_v21 = vpop.f32.mrf.mxu2 }
0x110d   : > { %v3226_v23 = vpop.f32.mrf.mxu3 }
0x110e   : > { %3243 = vmax.xlane.f32.xlu0 %v3242_v24 }
0x1122   : > { %5137 = vrot.lane.b32.xlu2 %v6213_v33, %s7029_s19  ;;  %5142 = vrot.lane.b32.xlu0 %v6217_v31, %s7029_s19 }
0x1177   : > { %v3238_v25 = vpop.xlane.xlu1 %3237 }
0x1178   : > { %v3248_v50 = vsub.f32 %v3232_v5, %v3238_v25 }
0x1179   : > { %v3241_v26 = vpop.xlane.xlu0 %3240 }
0x117a   : > { %v3252_v27 = vmul.f32 1.442695, %v3248_v50  ;;  %v3249_v28 = vsub.f32 %v3233_v8, %v3241_v26 }
0x117c   : > { %5231 = vpow2.f32 %v3252_v27  ;;  %v3254_v30 = vmul.f32 1.442695, %v3249_v28 }
0x117d   : > { %v3247_v16 = vpop.xlane.xlu2 %3246 }
0x117e   : > { %5233 = vpow2.f32 %v3254_v30  ;;  %v3251_v45 = vsub.f32 %v3235_v17, %v3247_v16 }
0x1180   : > { %v3258_v12 = vmul.f32 1.442695, %v3251_v45 }
0x1181   : > { %v3244_v34 = vpop.xlane.xlu0 %3243 }
0x1182   : > { %v6325_v35 = vpop.eup %5231  ;;  %v3250_v52 = vsub.f32 %v3234_v20, %v3244_v34 }
0x1183   : > { %v3260_v36 = vsel %vm1328_vm6, %v6325_v35, 0.0 }
0x1184   : > { %v6329_v33 = vpop.eup %5233  ;;  %v3256_v31 = vmul.f32 1.442695, %v3250_v52  ;;  %3261 = vadd.xlane.f32.xlu0 %v3260_v36 }
0x1185   : > { %v3263_v37 = vsel %vm1328_vm6, %v6329_v33, 0.0  ;;  %v5138_v41 = vpop.permute.xlu2 %5137 }
0x1186   : > { %5235 = vpow2.f32 %v3256_v31  ;;  %3264 = vadd.xlane.f32.xlu2 %v3263_v37  ;;  %v5140_v43 = vunpack.i.h.bf16 %v5138_v41  ;;  %v5139_v62 = vunpack.i.l.bf16 %v5138_v41 }
0x1187   : > { %5237 = vpow2.f32 %v3258_v12 }
0x1188   : > { %v3052_v44 = vrot.slane %v5140_v43, 4  ;;  %v3040_v47 = vrot.slane %v5139_v62, 4 }
0x118c   : > { %v6333_v38 = vpop.eup %5235 }
0x118d   : > { %v3266_v40 = vsel %vm1328_vm6, %v6333_v38, 0.0  ;;  %v6337_v48 = vpop.eup %5237 }
0x118e   : > { %3267 = vadd.xlane.f32.xlu1 %v3266_v40  ;;  %v3269_v51 = vsel %vm1328_vm6, %v6337_v48, 0.0 }
0x1194   : > { %v5143_v46 = vpop.permute.xlu0 %5142 }
0x1195   : > { %v5145_v39 = vunpack.i.h.bf16 %v5143_v46  ;;  %v5144_v42 = vunpack.i.l.bf16 %v5143_v46 }
0x1196   : > { %3270 = vadd.xlane.f32.xlu1 %v3269_v51 }
0x1197   : > { %v3050_v53 = vrot.slane %v5145_v39, 4  ;;  %v3053_v54 = vsel %vm962_vm5, %v5145_v39, %v3052_v44  ;;  %v3038_v55 = vrot.slane %v5144_v42, 4  ;;  %v3041_v56 = vsel %vm962_vm5, %v5144_v42, %v3040_v47 }
0x1198   : > { %v3061_v57 = vperm.slane %v3053_v54, %v5623_v49  ;;  %v3049_v58 = vperm.slane %v3041_v56, %v5623_v49 }
0x1199   : > { %v3051_v59 = vsel %vm962_vm5, %v3050_v53, %v5140_v43  ;;  %v3039_v60 = vsel %vm962_vm5, %v3038_v55, %v5139_v62 }
0x119a   : > { %v3057_v61 = vperm.slane %v3051_v59, %v5623_v49  ;;  %v3074_v1 = vrot.slane %v3061_v57, 4  ;;  %v3045_v29 = vperm.slane %v3039_v60, %v5623_v49  ;;  %v3076_v0 = vrot.slane %v3049_v58, 4 }
0x119c   : > { %v3062_v2 = vrot.slane %v3057_v61, 4  ;;  %v3064_v3 = vrot.slane %v3045_v29, 4  ;;  %v3075_v4 = vsel %vm962_vm5, %v3074_v1, %v3049_v58  ;;  %v3077_v5 = vsel %vm962_vm5, %v3061_v57, %v3076_v0 }
0x119d   : > { %v3081_v6 = vperm.slane %v3075_v4, %v5633_v63  ;;  %v3085_v7 = vperm.slane %v3077_v5, %v5633_v63 }
0x119e   : > { %v3063_v8 = vsel %vm962_vm5, %v3062_v2, %v3045_v29  ;;  %v3065_v9 = vsel %vm962_vm5, %v3057_v61, %v3064_v3 }
0x119f   : > { %v3069_v11 = vperm.slane %v3063_v8, %v5633_v63  ;;  %v3073_v13 = vperm.slane %v3065_v9, %v5633_v63  ;;  %v3090_v14 = vrot.slane %v3081_v6, 4  ;;  %v3092_v15 = vrot.slane %v3085_v7, 4 }
0x11a1   : > { %v3086_v17 = vrot.slane %v3069_v11, 4  ;;  %v3088_v18 = vrot.slane %v3073_v13, 4  ;;  %v3093_v19 = vsel %vm962_vm5, 0.0, %v3092_v15  ;;  %v3105_v20 = vsel %vm962_vm5, %v3092_v15, %v3081_v6 }
0x11a2   : > { %v3110_v21 = vrot.slane %v3093_v19, 4  ;;  %v3091_v24 = vsel %vm962_vm5, 0.0, %v3090_v14  ;;  %v3109_v25 = vperm.slane %v3105_v20, %v5623_v49 }
0x11a3   : > { %v3089_v23 = vsel %vm962_vm5, 0.0, %v3088_v18  ;;  %v3094_v50 = vsel %vm962_vm5, %v3088_v18, %v3069_v11  ;;  %v3087_v30 = vsel %vm962_vm5, 0.0, %v3086_v17 }
0x11a4   : > { %v3099_v26 = vrot.slane %v3089_v23, 4  ;;  %v3098_v27 = vperm.slane %v3094_v50, %v5623_v49  ;;  %v3111_v28 = vsel %vm962_vm5, %v3110_v21, %v3091_v24  ;;  %v3130_v34 = vrot.slane %v3109_v25, 4 }
0x11a5   : > { %v3115_v16 = vperm.slane %v3111_v28, %v5623_v49 }
0x11a6   : > { %v3100_v52 = vsel %vm962_vm5, %v3099_v26, %v3087_v30  ;;  %v3118_v36 = vrot.slane %v3098_v27, 4 }
0x11a7   : > { %v3104_v45 = vperm.slane %v3100_v52, %v5623_v49  ;;  %v3131_v31 = vsel %vm962_vm5, %v3115_v16, %v3130_v34  ;;  %v3128_v37 = vrot.slane %v3115_v16, 4 }
0x11a8   : > { %v3139_v12 = vperm.slane %v3131_v31, %v5633_v63 }
0x11a9   : > { %v3119_v41 = vsel %vm962_vm5, %v3104_v45, %v3118_v36  ;;  %v3116_v40 = vrot.slane %v3104_v45, 4  ;;  %v3129_v43 = vsel %vm962_vm5, %v3128_v37, %v3109_v25 }
0x11aa   : > { %v3127_v62 = vperm.slane %v3119_v41, %v5633_v63  ;;  %v3144_v44 = vrot.slane %v3139_v12, 4  ;;  %v3135_v46 = vperm.slane %v3129_v43, %v5633_v63 }
0x11ab   : > { %v3117_v47 = vsel %vm962_vm5, %v3116_v40, %v3098_v27 }
0x11ac   : > { %v3145_v39 = vsel %vm962_vm5, %v3144_v44, %v3127_v62  ;;  %v3123_v42 = vperm.slane %v3117_v47, %v5633_v63  ;;  %v3140_v51 = vrot.slane %v3135_v46, 4  ;;  %v3146_v53 = vrot.slane %v3127_v62, 4 }
0x11ad   : > { %v3150_v54 = vpack.c.bf16 %v3145_v39, %v3145_v39 }
0x11ae   : > { %v3141_v55 = vsel %vm962_vm5, %v3140_v51, %v3123_v42  ;;  %v3147_v56 = vsel %vm962_vm5, %v3139_v12, %v3146_v53  ;;  %v3142_v57 = vrot.slane %v3123_v42, 4 }
0x11af   : > { %v3326_v58 = vsel %vm1469_vm8, %v3150_v54, 0  ;;  %v3148_v59 = vpack.c.bf16 %v3141_v55, %v3141_v55  ;;  %v3151_v60 = vpack.c.bf16 %v3147_v56, %v3147_v56 }
0x11b0   : > { %3335 = vmatpush.bf16.msrb.mxu2 %v3326_v58  ;;  %v3143_v61 = vsel %vm962_vm5, %v3135_v46, %v3142_v57 }
0x11b1   : > { %v3288_v1 = vsel %vm1469_vm8, %v3148_v59, 0  ;;  %v3345_v29 = vsel %vm1469_vm8, %v3151_v60, 0  ;;  %v3149_v0 = vpack.c.bf16 %v3143_v61, %v3143_v61 }
0x11b2   : > { %3297 = vmatpush.bf16.msra.mxu0 %v3288_v1  ;;  %3354 = vmatpush.bf16.msra.mxu3 %v3345_v29 }
0x11b3   : > { %v3307_v2 = vsel %vm1469_vm8, %v3149_v0, 0 }
0x11b4   : > { %3316 = vmatpush.bf16.msrb.mxu1 %v3307_v2 }
0x11f7   : > { %v3262_v3 = vpop.xlane.xlu0 %3261 }
0x11f8   : > { %5239 = vrcp.f32 %v3262_v3 }
0x11f9   : > { %v3265_v4 = vpop.xlane.xlu2 %3264 }
0x11fa   : > { %5241 = vrcp.f32 %v3265_v4 }
0x11fe   : > { %v5240_v5 = vpop.eup %5239 }
0x11ff   : > { %v3276_v6 = vmul.f32 %v5240_v5, %v6325_v35 }
0x1200   : > { %v5242_v7 = vpop.eup %5241 }
0x1201   : > { %v3280_v8 = vpack.c.bf16 %v3276_v6, %v3276_v6  ;;  %v3277_v9 = vmul.f32 %v5242_v7, %v6329_v33  ;;  %v3268_v11 = vpop.xlane.xlu1 %3267 }
0x1202   : > { %5243 = vrcp.f32 %v3268_v11 }
0x1203   : > { %v3281_v13 = vpack.c.bf16 %v3277_v9, %v3277_v9  ;;  %4888 = vmatmul.msk.bf16.vlgmr.msra.gmra.mxu0 %vm1328_vm6, %v3280_v8 }
0x1205   : > { %4889 = vmatmul.msk.bf16.vlgmr.msrb.gmra.mxu1 %vm1328_vm6, %v3281_v13 }
0x1208   : > { %v5244_v14 = vpop.eup %5243 }
0x1209   : > { %v3278_v15 = vmul.f32 %v5244_v14, %v6333_v38  ;;  %v3271_v17 = vpop.xlane.xlu1 %3270 }
0x120a   : > { %5245 = vrcp.f32 %v3271_v17 }
0x120b   : > { %v3282_v18 = vpack.c.bf16 %v3278_v15, %v3278_v15 }
0x120d   : > { %4890 = vmatmul.msk.bf16.vlgmr.msrb.gmra.mxu2 %vm1328_vm6, %v3282_v18 }
0x1210   : > { %v5246_v35 = vpop.eup %5245 }
0x1211   : > { %v3279_v19 = vmul.f32 %v5246_v35, %v6337_v48 }
0x1213   : > { %v3283_v20 = vpack.c.bf16 %v3279_v19, %v3279_v19 }
0x1215   : > { %4891 = vmatmul.msk.bf16.vlgmr.msra.gmra.mxu3 %vm1328_vm6, %v3283_v20 }
0x1280   : > { %v3299_v33 = vpop.f32.mrf.mxu0 }
0x1281   : > { %v3362_v50 = vrot.slane %v3299_v33, 4 }
0x1282   : > { %v3318_v21 = vpop.f32.mrf.mxu1 }
0x1283   : > { %v3374_v30 = vrot.slane %v3318_v21, 4 }
0x1288   : > { %v3301_v23 = vpop.f32.mrf.mxu0 }
0x128a   : > { %v3320_v24 = vpop.f32.mrf.mxu1 }
0x1290   : > { %v3337_v25 = vpop.f32.mrf.mxu2 }
0x1291   : > { %v3360_v26 = vrot.slane %v3337_v25, 4  ;;  %v3363_v38 = vsel %vm962_vm5, %v3337_v25, %v3362_v50 }
0x1292   : > { %v3371_v28 = vperm.slane %v3363_v38, %v5623_v49 }
0x1293   : > { %v3361_v27 = vsel %vm962_vm5, %v3360_v26, %v3299_v33 }
0x1294   : > { %v3367_v16 = vperm.slane %v3361_v27, %v5623_v49  ;;  %v3398_v45 = vrot.slane %v3371_v28, 4 }
0x1296   : > { %v3386_v12 = vrot.slane %v3367_v16, 4 }
0x1298   : > { %v3339_v48 = vpop.f32.mrf.mxu2  ;;  %v3356_v34 = vpop.f32.mrf.mxu3 }
0x1299   : > { %v3372_v52 = vrot.slane %v3356_v34, 4  ;;  %v3375_v36 = vsel %vm962_vm5, %v3356_v34, %v3374_v30  ;;  %v5027_v48 = vld [vmem:[%s7006_s10 + $0x10] sm:$0xff] }
0x129a   : > { %v3383_v31 = vperm.slane %v3375_v36, %v5623_v49 }
0x129b   : > { %v3373_v37 = vsel %vm962_vm5, %v3372_v52, %v3318_v21 }
0x129c   : > { %v3379_v41 = vperm.slane %v3373_v37, %v5623_v49  ;;  %v3396_v40 = vrot.slane %v3383_v31, 4  ;;  %v3399_v43 = vsel %vm962_vm5, %v3383_v31, %v3398_v45 }
0x129d   : > { %v3407_v62 = vperm.slane %v3399_v43, %v5633_v63 }
0x129e   : > { %v3384_v44 = vrot.slane %v3379_v41, 4  ;;  %v3387_v46 = vsel %vm962_vm5, %v3379_v41, %v3386_v12  ;;  %v3397_v47 = vsel %vm962_vm5, %v3396_v40, %v3371_v28  ;;  %v5172_v41 = vld [vmem:[%s7008_s7 + $0x1] ss:$0 sm:$0xff] }
0x129f   : > { %v3395_v39 = vperm.slane %v3387_v46, %v5633_v63  ;;  %v3403_v42 = vperm.slane %v3397_v47, %v5633_v63  ;;  %v3414_v51 = vrot.slane %v3407_v62, 4  ;;  %v5032_v47 = vld [vmem:[%s7011_s13 + $0x18] sm:$0xff] }
0x12a0   : > { %v3385_v53 = vsel %vm962_vm5, %v3384_v44, %v3367_v16  ;;  %v3358_v54 = vpop.f32.mrf.mxu3  ;;  %v5028_v16 = vld [vmem:[%s7006_s10 + $0x18] sm:$0xff]  ;;  %3626 = vmatpush.bf16.msra.mxu2 %v5032_v47 }
0x12a1   : > { %v3391_v55 = vperm.slane %v3385_v53, %v5633_v63  ;;  %v3410_v56 = vrot.slane %v3395_v39, 4  ;;  %v3412_v57 = vrot.slane %v3403_v42, 4  ;;  %v3415_v58 = vsel %vm962_vm5, 0.0, %v3414_v51  ;;  %3517 = vmatpush.bf16.msrb.mxu0 %v5028_v16  ;;  %v5031_v39 = vld [vmem:[%s7011_s13 + $0x10] sm:$0xff] }
0x12a2   : > { %v3427_v59 = vsel %vm962_vm5, %v3414_v51, %v3403_v42  ;;  %v3432_v60 = vrot.slane %v3415_v58, 4 }
0x12a3   : > { %v3408_v61 = vrot.slane %v3391_v55, 4  ;;  %v3411_v1 = vsel %vm962_vm5, 0.0, %v3410_v56  ;;  %v3413_v29 = vsel %vm962_vm5, 0.0, %v3412_v57  ;;  %v3431_v0 = vperm.slane %v3427_v59, %v5623_v49 }
0x12a4   : > { %v3421_v2 = vrot.slane %v3411_v1, 4  ;;  %v3416_v3 = vsel %vm962_vm5, %v3410_v56, %v3391_v55  ;;  %v3433_v4 = vsel %vm962_vm5, %v3432_v60, %v3413_v29  ;;  %3627 = vmatpush.bf16.msra.mxu2 %v5031_v39  ;;  %v5175_v55 = vld [vmem:[%s6904_s14 + $0x1] ss:$0 sm:$0xff]  ;;  %v5030_v56 = vld [vmem:[%s7013_s12 + $0x18] sm:$0xff] }
0x12a5   : > { %v3409_v5 = vsel %vm962_vm5, 0.0, %v3408_v61  ;;  %v3420_v6 = vperm.slane %v3416_v3, %v5623_v49  ;;  %v3437_v7 = vperm.slane %v3433_v4, %v5623_v49  ;;  %v3452_v8 = vrot.slane %v3431_v0, 4  ;;  %3518 = vmatpush.bf16.msrb.mxu0 %v5027_v48  ;;  %3591 = vmatpush.bf16.msra.mxu1 %v5030_v56 }
0x12a6   : > { %v3422_v9 = vsel %vm962_vm5, %v3421_v2, %v3409_v5 }
0x12a7   : > { %v3426_v11 = vperm.slane %v3422_v9, %v5623_v49  ;;  %v3440_v13 = vrot.slane %v3420_v6, 4  ;;  %v3453_v14 = vsel %vm962_vm5, %v3437_v7, %v3452_v8  ;;  %v3450_v15 = vrot.slane %v3437_v7, 4  ;;  %4935 = vmatmul.msk.bf16.vlgmr.msra.gmra.mxu2 %vm875_vm0, %v5872_v32  ;;  %v5029_v32 = vld [vmem:[%s7013_s12 + $0x10] sm:$0xff]  ;;  %v5174_v8 = vld [vmem:[%s7019_s4 + $0x1] ss:$0 sm:$0xff] }
0x12a8   : > { %v3461_v17 = vperm.slane %v3453_v14, %v5633_v63 }
0x12a9   : > { %v3441_v18 = vsel %vm962_vm5, %v3426_v11, %v3440_v13  ;;  %v3438_v35 = vrot.slane %v3426_v11, 4  ;;  %v3451_v19 = vsel %vm962_vm5, %v3450_v15, %v3431_v0  ;;  %3592 = vmatpush.bf16.msra.mxu1 %v5029_v32 }
0x12aa   : > { %v3449_v20 = vperm.slane %v3441_v18, %v5633_v63  ;;  %v3466_v33 = vrot.slane %v3461_v17, 4  ;;  %v3457_v21 = vperm.slane %v3451_v19, %v5633_v63 }
0x12ab   : > { %v3439_v23 = vsel %vm962_vm5, %v3438_v35, %v3420_v6  ;;  %v5173_v6 = vld [vmem:[%s7018_s0 + $0x1] ss:$0 sm:$0xff] }
0x12ac   : > { %v3467_v24 = vsel %vm962_vm5, %v3466_v33, %v3449_v20  ;;  %v3445_v25 = vperm.slane %v3439_v23, %v5633_v63  ;;  %v3462_v50 = vrot.slane %v3457_v21, 4  ;;  %v3468_v28 = vrot.slane %v3449_v20, 4 }
0x12ad   : > { %3475 = vrot.lane.b32.xlu1 %v3467_v24, %s7023_s27 }
0x12ae   : > { %v3463_v26 = vsel %vm962_vm5, %v3462_v50, %v3445_v25  ;;  %v3464_v38 = vrot.slane %v3445_v25, 4  ;;  %v3469_v30 = vsel %vm962_vm5, %v3461_v17, %v3468_v28 }
0x12b0   : > { %v3465_v27 = vsel %vm962_vm5, %v3457_v21, %v3464_v38 }
0x12b5   : > { %3471 = vrot.lane.b32.xlu1 %v3465_v27, %s7024_s28 }
0x12bd   : > { %3479 = vrot.lane.b32.xlu1 %v3469_v30, %s7025_s30 }
0x131f   : > { %v3476_v34 = vpop.permute.xlu1 %3475 }
0x1327   : > { %v3472_v52 = vpop.permute.xlu1 %3471 }
0x1328   : > { %v3482_v36 = vsel %vm1328_vm6, %v3463_v26, %v3472_v52 }
0x1329   : > { %v3483_v31 = vsel %vm1666_vm9, %v3482_v36, %v3476_v34 }
0x132a   : > { %v3629_v57 = vpop.f32.mrf.mxu2 }
0x132b   : > { %v6467_v58 = vadd.f32 %v5175_v55, %v3629_v57 }
0x132d   : > { %3758 = vrot.lane.b32.xlu1 %v6467_v58, %s7015_s8  ;;  %v3769_v17 = vrot.slane %v6467_v58, 4 }
0x132f   : > { %v3480_v45 = vpop.permute.xlu1 %3479 }
0x1330   : > { %v3484_v37 = vsel %vm1668_vm10, %v3483_v31, %v3480_v45 }
0x1331   : > { %v3490_v12 = vpack.c.bf16 %v3484_v37, %v3484_v37 }
0x1332   : > { %v3631_v60 = vpop.f32.mrf.mxu2 }
0x1333   : > { %4905 = vmatmul.msk.bf16.vlgmr.msrb.gmra.mxu0 %vm875_vm0, %v3490_v12 }
0x139f   : > { %v6494_v35 = vpop.permute.xlu1 %3758 }
0x13a0   : > { %v3781_v20 = vrot.slane %v6494_v35, 4 }
0x13b0   : > { %v3520_v40 = vpop.f32.mrf.mxu0 }
0x13b1   : > { %v3521_v43 = vadd.f32 %v5172_v41, %v3520_v40 }
0x13b3   : > { %v3524_v62 = vadd.f32 %v3521_v43, %v6202_v22 }
0x13b5   : > { %v3529_v44 = vsel %vm875_vm0, %v3524_v62, 0.0 }
0x13b6   : > { %3530 = vadd.xlane.f32.xlu0 %v3529_v44 }
0x13b8   : > { %v3522_v46 = vpop.f32.mrf.mxu0 }
0x13ca   : > { %3761 = vrot.lane.b32.xlu0 %v6467_v58, %s7014_s9 }
0x1429   : > { %v3531_v42 = vpop.xlane.xlu0 %3530 }
0x142a   : > { %v3532_v22 = vmul.f32 %v3531_v42, %v5587_v10 }
0x142c   : > { %v3533_v51 = vsub.f32 %v3524_v62, %v3532_v22 }
0x142e   : > { %v3534_v53 = vmul.f32 %v3533_v51, %v3533_v51 }
0x1430   : > { %v3535_v54 = vsel %vm875_vm0, %v3534_v53, 0.0 }
0x1431   : > { %3536 = vadd.xlane.f32.xlu2 %v3535_v54 }
0x143c   : > { %v6496_v19 = vpop.permute.xlu0 %3761 }
0x143d   : > { %v3767_v33 = vrot.slane %v6496_v19, 4  ;;  %v3770_v21 = vsel %vm962_vm5, %v6496_v19, %v3769_v17 }
0x143e   : > { %v3778_v23 = vperm.slane %v3770_v21, %v5623_v49 }
0x143f   : > { %v3768_v25 = vsel %vm962_vm5, %v3767_v33, %v6467_v58 }
0x1440   : > { %v3774_v38 = vperm.slane %v3768_v25, %v5623_v49  ;;  %v3805_v27 = vrot.slane %v3778_v23, 4 }
0x1442   : > { %v3793_v16 = vrot.slane %v3774_v38, 4 }
0x1449   : > { %3764 = vrot.lane.b32.xlu2 %v6467_v58, %s7016_s6 }
0x14a4   : > { %v3537_v59 = vpop.xlane.xlu2 %3536 }
0x14a5   : > { %v3538_v61 = vmul.f32 %v3537_v59, %v5587_v10 }
0x14a7   : > { %v3539_v1 = vadd.f32 1e-05, %v3538_v61 }
0x14a9   : > { %5247 = vrsqrt.f32 %v3539_v1  ;;  %vm3546_vm13 = vweird.f32 %v3539_v1 }
0x14ac   : > { %v6490_v15 = vpop.permute.xlu2 %3764 }
0x14ad   : > { %v3779_v18 = vrot.slane %v6490_v15, 4  ;;  %v3782_v50 = vsel %vm962_vm5, %v6490_v15, %v3781_v20 }
0x14ae   : > { %v3790_v28 = vperm.slane %v3782_v50, %v5623_v49 }
0x14af   : > { %v5248_v29 = vpop.eup %5247  ;;  %v3780_v24 = vsel %vm962_vm5, %v3779_v18, %v6494_v35 }
0x14b0   : > { %v3541_v0 = vmul.f32 %v5248_v29, %v3539_v1  ;;  %vm3547_vm7 = vweird.f32 %v5248_v29  ;;  %v3786_v26 = vperm.slane %v3780_v24, %v5623_v49  ;;  %v3803_v48 = vrot.slane %v3790_v28, 4 }
0x14b1   : > { %vm3548_vm14 = vmor %vm3546_vm13, %vm3547_vm7  ;;  %v3806_v34 = vsel %vm962_vm5, %v3790_v28, %v3805_v27 }
0x14b2   : > { %v3542_v2 = vmul.f32 %v5248_v29, %v3541_v0  ;;  %v3791_v30 = vrot.slane %v3786_v26, 4  ;;  %v3814_v36 = vperm.slane %v3806_v34, %v5633_v63  ;;  %v3794_v45 = vsel %vm962_vm5, %v3786_v26, %v3793_v16  ;;  %v5176_v16 = vld [vmem:[%s7021_s11 + $0x1] ss:$0 sm:$0xff] }
0x14b3   : > { %v3804_v37 = vsel %vm962_vm5, %v3803_v48, %v3778_v23  ;;  %v3802_v12 = vperm.slane %v3794_v45, %v5633_v63 }
0x14b4   : > { %v3543_v3 = vmul.f32 0.5, %v3542_v2  ;;  %v3792_v52 = vsel %vm962_vm5, %v3791_v30, %v3774_v38  ;;  %v3810_v41 = vperm.slane %v3804_v37, %v5633_v63  ;;  %v3821_v40 = vrot.slane %v3814_v36, 4 }
0x14b5   : > { %v3798_v31 = vperm.slane %v3792_v52, %v5633_v63  ;;  %v3817_v62 = vrot.slane %v3802_v12, 4 }
0x14b6   : > { %v3544_v4 = vsub.f32 1.5, %v3543_v3  ;;  %v3819_v44 = vrot.slane %v3810_v41, 4  ;;  %v3822_v46 = vsel %vm962_vm5, 0.0, %v3821_v40  ;;  %v3834_v47 = vsel %vm962_vm5, %v3821_v40, %v3810_v41 }
0x14b7   : > { %v3815_v43 = vrot.slane %v3798_v31, 4  ;;  %v3839_v39 = vrot.slane %v3822_v46, 4  ;;  %v3818_v22 = vsel %vm962_vm5, 0.0, %v3817_v62  ;;  %v3838_v55 = vperm.slane %v3834_v47, %v5623_v49 }
0x14b8   : > { %v3545_v5 = vmul.f32 %v5248_v29, %v3544_v4  ;;  %v3828_v53 = vrot.slane %v3818_v22, 4  ;;  %v3823_v60 = vsel %vm962_vm5, %v3817_v62, %v3798_v31 }
0x14b9   : > { %v3816_v42 = vsel %vm962_vm5, 0.0, %v3815_v43  ;;  %v3827_v61 = vperm.slane %v3823_v60, %v5623_v49  ;;  %v3859_v0 = vrot.slane %v3838_v55, 4 }
0x14ba   : > { %v3549_v7 = vsel %vm3548_vm14, %v5248_v29, %v3545_v5  ;;  %v3829_v57 = vsel %vm962_vm5, %v3828_v53, %v3816_v42 }
0x14bb   : > { %v3550_v9 = vmul.f32 %v3549_v7, %v3533_v51  ;;  %v3820_v51 = vsel %vm962_vm5, 0.0, %v3819_v44  ;;  %v3833_v32 = vperm.slane %v3829_v57, %v5623_v49  ;;  %v3847_v4 = vrot.slane %v3827_v61, 4 }
0x14bc   : > { %v3840_v54 = vsel %vm962_vm5, %v3839_v39, %v3820_v51 }
0x14bd   : > { %v3554_v11 = vmul.f32 %v5173_v6, %v3550_v9  ;;  %v3844_v56 = vperm.slane %v3840_v54, %v5623_v49  ;;  %v3845_v1 = vrot.slane %v3833_v32, 4  ;;  %v3848_v9 = vsel %vm962_vm5, %v3833_v32, %v3847_v4 }
0x14be   : > { %v3856_v17 = vperm.slane %v3848_v9, %v5633_v63 }
0x14bf   : > { %v6485_v13 = vadd.f32 %v5174_v8, %v3554_v11  ;;  %v3857_v59 = vrot.slane %v3844_v56, 4  ;;  %v3846_v3 = vsel %vm962_vm5, %v3845_v1, %v3827_v61  ;;  %v3860_v5 = vsel %vm962_vm5, %v3844_v56, %v3859_v0 }
0x14c0   : > { %v3852_v6 = vperm.slane %v3846_v3, %v5633_v63  ;;  %v3868_v8 = vperm.slane %v3860_v5, %v5633_v63  ;;  %v3875_v23 = vrot.slane %v3856_v17, 4 }
0x14c1   : > { %v3564_v14 = vpack.c.bf16 %v6485_v13, %v6485_v13  ;;  %v3858_v29 = vsel %vm962_vm5, %v3857_v59, %v3838_v55 }
0x14c2   : > { %v3864_v2 = vperm.slane %v3858_v29, %v5633_v63  ;;  %v3873_v18 = vrot.slane %v3868_v8, 4  ;;  %v3876_v26 = vsel %vm962_vm5, %v3868_v8, %v3875_v23 }
0x14c3   : > { %4921 = vmatmul.msk.bf16.vlgmr.msra.gmra.mxu1 %vm875_vm0, %v3564_v14  ;;  %v3871_v14 = vrot.slane %v3852_v6, 4  ;;  %v3880_v28 = vpack.c.bf16 %v3876_v26, %v3876_v26 }
0x14c4   : > { %v3869_v7 = vrot.slane %v3864_v2, 4  ;;  %v3874_v21 = vsel %vm962_vm5, %v3873_v18, %v3856_v17 }
0x14c5   : > { %v3872_v33 = vsel %vm962_vm5, %v3864_v2, %v3871_v14  ;;  %v3879_v50 = vpack.c.bf16 %v3874_v21, %v3874_v21  ;;  %v4068_v30 = vsel %vm1328_vm6, %v3880_v28, 0 }
0x14c6   : > { %v3870_v11 = vsel %vm962_vm5, %v3869_v7, %v3852_v6  ;;  %v3878_v25 = vpack.c.bf16 %v3872_v33, %v3872_v33  ;;  %4077 = vmatpush.bf16.xpose.msrb.mxu2 %v4068_v30 }
0x14c7   : > { %v3877_v20 = vpack.c.bf16 %v3870_v11, %v3870_v11  ;;  %v4049_v27 = vsel %vm1328_vm6, %v3879_v50, 0 }
0x14c8   : > { %v4030_v38 = vsel %vm1328_vm6, %v3878_v25, 0  ;;  %4058 = vmatpush.bf16.xpose.msrb.mxu1 %v4049_v27 }
0x14c9   : > { %v4011_v24 = vsel %vm1328_vm6, %v3877_v20, 0  ;;  %4039 = vmatpush.bf16.xpose.msra.mxu0 %v4030_v38 }
0x14ca   : > { %4020 = vmatpush.bf16.xpose.msrb.mxu3 %v4011_v24 }
0x1540   : > { %v3594_v48 = vpop.f32.mrf.mxu1 }
0x1541   : > { %v3595_v34 = vadd.f32 %v5176_v16, %v3594_v48 }
0x1543   : > { %3634 = vrot.lane.b32.xlu1 %v3595_v34, %s7015_s8  ;;  %v3645_v37 = vrot.slane %v3595_v34, 4  ;;  %s4779_s8 = sshll.u32 %s6830_s2, 3 }
0x1548   : > { %v3596_v52 = vpop.f32.mrf.mxu1 }
0x154b   : > { %3637 = vrot.lane.b32.xlu1 %v3595_v34, %s7014_s9  ;;  %s4642_s9 = scalar_lea.sflag [#allocation5], %s6830_s2 }
0x1553   : > { %3640 = vrot.lane.b32.xlu1 %v3595_v34, %s7016_s6  ;;  %s7032_s6 = sld [smem:[#allocation32_spill]] }
0x15b5   : > { %v3635_v36 = vpop.permute.xlu1 %3634 }
0x15b6   : > { %v3657_v43 = vrot.slane %v3635_v36, 4 }
0x15bd   : > { %v3638_v45 = vpop.permute.xlu1 %3637 }
0x15be   : > { %v3643_v31 = vrot.slane %v3638_v45, 4  ;;  %v3646_v12 = vsel %vm962_vm5, %v3638_v45, %v3645_v37 }
0x15bf   : > { %v3654_v40 = vperm.slane %v3646_v12, %v5623_v49 }
0x15c0   : > { %v3644_v41 = vsel %vm962_vm5, %v3643_v31, %v3595_v34 }
0x15c1   : > { %v3650_v62 = vperm.slane %v3644_v41, %v5623_v49  ;;  %v3681_v39 = vrot.slane %v3654_v40, 4 }
0x15c3   : > { %v3669_v51 = vrot.slane %v3650_v62, 4 }
0x15c5   : > { %v3641_v44 = vpop.permute.xlu1 %3640 }
0x15c6   : > { %v3655_v46 = vrot.slane %v3641_v44, 4  ;;  %v3658_v47 = vsel %vm962_vm5, %v3641_v44, %v3657_v43 }
0x15c7   : > { %v3666_v42 = vperm.slane %v3658_v47, %v5623_v49 }
0x15c8   : > { %v3656_v22 = vsel %vm962_vm5, %v3655_v46, %v3635_v36 }
0x15c9   : > { %v3662_v53 = vperm.slane %v3656_v22, %v5623_v49  ;;  %v3679_v54 = vrot.slane %v3666_v42, 4  ;;  %v3682_v55 = vsel %vm962_vm5, %v3666_v42, %v3681_v39 }
0x15ca   : > { %v3690_v56 = vperm.slane %v3682_v55, %v5633_v63 }
0x15cb   : > { %v3667_v57 = vrot.slane %v3662_v53, 4  ;;  %v3670_v32 = vsel %vm962_vm5, %v3662_v53, %v3669_v51  ;;  %v3680_v59 = vsel %vm962_vm5, %v3679_v54, %v3654_v40 }
0x15cc   : > { %v3678_v60 = vperm.slane %v3670_v32, %v5633_v63  ;;  %v3686_v61 = vperm.slane %v3680_v59, %v5633_v63  ;;  %v3697_v1 = vrot.slane %v3690_v56, 4 }
0x15cd   : > { %v3668_v29 = vsel %vm962_vm5, %v3667_v57, %v3650_v62 }
0x15ce   : > { %v3674_v0 = vperm.slane %v3668_v29, %v5633_v63  ;;  %v3693_v2 = vrot.slane %v3678_v60, 4  ;;  %v3695_v3 = vrot.slane %v3686_v61, 4  ;;  %v3698_v4 = vsel %vm962_vm5, 0.0, %v3697_v1 }
0x15cf   : > { %v3710_v5 = vsel %vm962_vm5, %v3697_v1, %v3686_v61  ;;  %v3715_v6 = vrot.slane %v3698_v4, 4  ;;  %v5146_v4 = vpack.i.bf16 %v6494_v35, %v6467_v58 }
0x15d0   : > { %v3691_v7 = vrot.slane %v3674_v0, 4  ;;  %v3694_v8 = vsel %vm962_vm5, 0.0, %v3693_v2  ;;  %v3696_v9 = vsel %vm962_vm5, 0.0, %v3695_v3  ;;  %v3699_v11 = vsel %vm962_vm5, %v3693_v2, %v3674_v0 }
0x15d1   : > { %v3703_v14 = vperm.slane %v3699_v11, %v5623_v49  ;;  %v3704_v17 = vrot.slane %v3694_v8, 4  ;;  %v3714_v18 = vperm.slane %v3710_v5, %v5623_v49  ;;  %v3716_v20 = vsel %vm962_vm5, %v3715_v6, %v3696_v9 }
0x15d2   : > { %v3692_v33 = vsel %vm962_vm5, 0.0, %v3691_v7  ;;  %v3720_v21 = vperm.slane %v3716_v20, %v5623_v49  ;;  %v5151_v3 = vpack.i.bf16 %v6490_v15, %v6496_v19 }
0x15d3   : > { %v3705_v23 = vsel %vm962_vm5, %v3704_v17, %v3692_v33  ;;  %v3723_v24 = vrot.slane %v3703_v14, 4  ;;  %v3735_v25 = vrot.slane %v3714_v18, 4 }
0x15d4   : > { %v3709_v50 = vperm.slane %v3705_v23, %v5623_v49  ;;  %v3733_v26 = vrot.slane %v3720_v21, 4 }
0x15d5   : > { %v3736_v38 = vsel %vm962_vm5, %v3720_v21, %v3735_v25 }
0x15d6   : > { %v3734_v27 = vsel %vm962_vm5, %v3733_v26, %v3714_v18  ;;  %v3724_v28 = vsel %vm962_vm5, %v3709_v50, %v3723_v24  ;;  %v3744_v30 = vperm.slane %v3736_v38, %v5633_v63  ;;  %v3721_v16 = vrot.slane %v3709_v50, 4 }
0x15d7   : > { %v3732_v48 = vperm.slane %v3724_v28, %v5633_v63  ;;  %v3740_v34 = vperm.slane %v3734_v27, %v5633_v63 }
0x15d8   : > { %v3749_v52 = vrot.slane %v3744_v30, 4  ;;  %v3722_v36 = vsel %vm962_vm5, %v3721_v16, %v3703_v14 }
0x15d9   : > { %v3728_v45 = vperm.slane %v3722_v36, %v5633_v63  ;;  %v3745_v31 = vrot.slane %v3740_v34, 4  ;;  %v3751_v37 = vrot.slane %v3732_v48, 4 }
0x15da   : > { %v3750_v12 = vsel %vm962_vm5, %v3749_v52, %v3732_v48 }
0x15db   : > { %v3755_v41 = vpack.c.bf16 %v3750_v12, %v3750_v12  ;;  %v3746_v40 = vsel %vm962_vm5, %v3745_v31, %v3728_v45  ;;  %v3752_v43 = vsel %vm962_vm5, %v3744_v30, %v3751_v37  ;;  %v3747_v62 = vrot.slane %v3728_v45, 4 }
0x15dc   : > { %v3753_v44 = vpack.c.bf16 %v3746_v40, %v3746_v40  ;;  %v3756_v46 = vpack.c.bf16 %v3752_v43, %v3752_v43 }
0x15dd   : > { %4938 = vmatmul.msk.bf16.vlgmr.msrb.gmra.mxu1 %vm1328_vm6, %v3755_v41  ;;  %v3748_v47 = vsel %vm962_vm5, %v3740_v34, %v3747_v62 }
0x15de   : > { %4936 = vmatmul.msk.bf16.vlgmr.msrb.gmra.mxu3 %vm1328_vm6, %v3753_v44  ;;  %4939 = vmatmul.msk.bf16.vlgmr.msrb.gmra.mxu2 %vm1328_vm6, %v3756_v46  ;;  %v3754_v39 = vpack.c.bf16 %v3748_v47, %v3748_v47 }
0x15e0   : > { %4937 = vmatmul.msk.bf16.vlgmr.msra.gmra.mxu0 %vm1328_vm6, %v3754_v39 }
0x165a   : > { %v4060_v42 = vpop.f32.mrf.mxu1 }
0x165b   : > { %v4085_v22 = vmul.f32 0.35355338, %v4060_v42 }
0x165d   : > { %v4093_v51 = vsel %vm1328_vm6, %v4085_v22, -inf  ;;  %v4041_v53 = vpop.f32.mrf.mxu0 }
0x165e   : > { %4094 = vmax.xlane.f32.xlu1 %v4093_v51  ;;  %v4084_v1 = vmul.f32 0.35355338, %v4041_v53 }
0x1660   : > { %v4090_v2 = vsel %vm1328_vm6, %v4084_v1, -inf }
0x1661   : > { %v4022_v54 = vpop.f32.mrf.mxu3  ;;  %v4079_v55 = vpop.f32.mrf.mxu2 }
0x1662   : > { %v4083_v56 = vmul.f32 0.35355338, %v4022_v54  ;;  %v4062_v57 = vpop.f32.mrf.mxu1  ;;  %v4086_v32 = vmul.f32 0.35355338, %v4079_v55 }
0x1664   : > { %v4096_v59 = vsel %vm1328_vm6, %v4086_v32, -inf  ;;  %v4087_v60 = vsel %vm1328_vm6, %v4083_v56, -inf }
0x1665   : > { %4097 = vmax.xlane.f32.xlu2 %v4096_v59  ;;  %v4043_v61 = vpop.f32.mrf.mxu0  ;;  %4088 = vmax.xlane.f32.xlu0 %v4087_v60 }
0x1669   : > { %v4024_v29 = vpop.f32.mrf.mxu3  ;;  %v4081_v0 = vpop.f32.mrf.mxu2 }
0x166d   : > { %4091 = vmax.xlane.f32.xlu0 %v4090_v2 }
0x1677   : > { %5152 = vrot.lane.b32.xlu1 %v5151_v3, %s7022_s1 }
0x167d   : > { %5147 = vrot.lane.b32.xlu2 %v5146_v4, %s7022_s1  ;;  %s7033_s1 = sld [smem:[#allocation34_spill]] }
0x16d1   : > { %v4095_v11 = vpop.xlane.xlu1 %4094 }
0x16d2   : > { %v4101_v20 = vsub.f32 %v4085_v22, %v4095_v11 }
0x16d4   : > { %v4107_v23 = vmul.f32 1.442695, %v4101_v20 }
0x16d8   : > { %v4089_v5 = vpop.xlane.xlu0 %4088  ;;  %v4098_v6 = vpop.xlane.xlu2 %4097 }
0x16d9   : > { %v4099_v7 = vsub.f32 %v4083_v56, %v4089_v5  ;;  %v4102_v9 = vsub.f32 %v4086_v32, %v4098_v6 }
0x16db   : > { %v4103_v8 = vmul.f32 1.442695, %v4099_v7  ;;  %v4109_v14 = vmul.f32 1.442695, %v4102_v9 }
0x16dd   : > { %5249 = vpow2.f32 %v4103_v8 }
0x16de   : > { %5251 = vpow2.f32 %v4109_v14 }
0x16e0   : > { %v4092_v17 = vpop.xlane.xlu0 %4091  ;;  %v5148_v33 = vpop.permute.xlu2 %5147 }
0x16e1   : > { %v4100_v18 = vsub.f32 %v4084_v1, %v4092_v17  ;;  %v5150_v35 = vunpack.i.h.bf16 %v5148_v33  ;;  %v5149_v21 = vunpack.i.l.bf16 %v5148_v33 }
0x16e3   : > { %v4105_v15 = vmul.f32 1.442695, %v4100_v18  ;;  %v6608_v19 = vpop.eup %5249  ;;  %v3907_v50 = vrot.slane %v5150_v35, 4  ;;  %v3895_v26 = vrot.slane %v5149_v21, 4 }
0x16e4   : > { %v4111_v58 = vsel %vm1328_vm6, %v6608_v19, 0.0  ;;  %v6612_v25 = vpop.eup %5251 }
0x16e5   : > { %5253 = vpow2.f32 %v4105_v15  ;;  %4112 = vadd.xlane.f32.xlu0 %v4111_v58  ;;  %v4120_v45 = vsel %vm1328_vm6, %v6612_v25, 0.0 }
0x16e6   : > { %5255 = vpow2.f32 %v4107_v23 }
0x16e9   : > { %v5153_v24 = vpop.permute.xlu1 %5152 }
0x16ea   : > { %v5155_v38 = vunpack.i.h.bf16 %v5153_v24  ;;  %v5154_v27 = vunpack.i.l.bf16 %v5153_v24 }
0x16eb   : > { %v6614_v28 = vpop.eup %5253 }
0x16ec   : > { %v3905_v30 = vrot.slane %v5155_v38, 4  ;;  %v3908_v16 = vsel %vm962_vm5, %v5155_v38, %v3907_v50  ;;  %v3893_v48 = vrot.slane %v5154_v27, 4  ;;  %v3896_v34 = vsel %vm962_vm5, %v5154_v27, %v3895_v26  ;;  %v6628_v44 = vpop.eup %5255 }
0x16ed   : > { %v3916_v52 = vperm.slane %v3908_v16, %v5623_v49  ;;  %v3904_v36 = vperm.slane %v3896_v34, %v5623_v49  ;;  %v4114_v31 = vsel %vm1328_vm6, %v6614_v28, 0.0  ;;  %4121 = vadd.xlane.f32.xlu0 %v4120_v45  ;;  %v4117_v59 = vsel %vm1328_vm6, %v6628_v44, 0.0 }
0x16ee   : > { %v3906_v37 = vsel %vm962_vm5, %v3905_v30, %v5150_v35  ;;  %v3894_v12 = vsel %vm962_vm5, %v3893_v48, %v5149_v21  ;;  %4115 = vadd.xlane.f32.xlu2 %v4114_v31 }
0x16ef   : > { %v3912_v41 = vperm.slane %v3906_v37, %v5623_v49  ;;  %v3929_v40 = vrot.slane %v3916_v52, 4  ;;  %v3900_v43 = vperm.slane %v3894_v12, %v5623_v49  ;;  %v3931_v62 = vrot.slane %v3904_v36, 4 }
0x16f1   : > { %v3917_v46 = vrot.slane %v3912_v41, 4  ;;  %v3919_v47 = vrot.slane %v3900_v43, 4  ;;  %v3930_v39 = vsel %vm962_vm5, %v3929_v40, %v3904_v36  ;;  %v3932_v42 = vsel %vm962_vm5, %v3916_v52, %v3931_v62 }
0x16f2   : > { %v3936_v22 = vperm.slane %v3930_v39, %v5633_v63  ;;  %v3940_v51 = vperm.slane %v3932_v42, %v5633_v63 }
0x16f3   : > { %v3918_v53 = vsel %vm962_vm5, %v3917_v46, %v3900_v43  ;;  %v3920_v54 = vsel %vm962_vm5, %v3912_v41, %v3919_v47 }
0x16f4   : > { %v3924_v55 = vperm.slane %v3918_v53, %v5633_v63  ;;  %v3928_v56 = vperm.slane %v3920_v54, %v5633_v63  ;;  %v3945_v57 = vrot.slane %v3936_v22, 4  ;;  %v3947_v32 = vrot.slane %v3940_v51, 4 }
0x16f5   : > { %4118 = vadd.xlane.f32.xlu0 %v4117_v59 }
0x16f6   : > { %v3941_v60 = vrot.slane %v3924_v55, 4  ;;  %v3943_v61 = vrot.slane %v3928_v56, 4  ;;  %v3948_v1 = vsel %vm962_vm5, 0.0, %v3947_v32  ;;  %v3960_v29 = vsel %vm962_vm5, %v3947_v32, %v3936_v22 }
0x16f7   : > { %v3965_v0 = vrot.slane %v3948_v1, 4  ;;  %v3946_v3 = vsel %vm962_vm5, 0.0, %v3945_v57  ;;  %v3964_v4 = vperm.slane %v3960_v29, %v5623_v49 }
0x16f8   : > { %v3944_v2 = vsel %vm962_vm5, 0.0, %v3943_v61  ;;  %v3949_v5 = vsel %vm962_vm5, %v3943_v61, %v3924_v55  ;;  %v3942_v9 = vsel %vm962_vm5, 0.0, %v3941_v60 }
0x16f9   : > { %v3954_v6 = vrot.slane %v3944_v2, 4  ;;  %v3953_v7 = vperm.slane %v3949_v5, %v5623_v49  ;;  %v3966_v8 = vsel %vm962_vm5, %v3965_v0, %v3946_v3  ;;  %v3985_v14 = vrot.slane %v3964_v4, 4 }
0x16fa   : > { %v3970_v11 = vperm.slane %v3966_v8, %v5623_v49 }
0x16fb   : > { %v3955_v17 = vsel %vm962_vm5, %v3954_v6, %v3942_v9  ;;  %v3973_v18 = vrot.slane %v3953_v7, 4 }
0x16fc   : > { %v3959_v20 = vperm.slane %v3955_v17, %v5623_v49  ;;  %v3986_v33 = vsel %vm962_vm5, %v3970_v11, %v3985_v14  ;;  %v3983_v15 = vrot.slane %v3970_v11, 4 }
0x16fd   : > { %v3994_v58 = vperm.slane %v3986_v33, %v5633_v63 }
0x16fe   : > { %v3974_v35 = vsel %vm962_vm5, %v3959_v20, %v3973_v18  ;;  %v3971_v21 = vrot.slane %v3959_v20, 4  ;;  %v3984_v23 = vsel %vm962_vm5, %v3983_v15, %v3964_v4 }
0x16ff   : > { %v3982_v24 = vperm.slane %v3974_v35, %v5633_v63  ;;  %v3999_v50 = vrot.slane %v3994_v58, 4  ;;  %v3990_v26 = vperm.slane %v3984_v23, %v5633_v63 }
0x1700   : > { %v3972_v38 = vsel %vm962_vm5, %v3971_v21, %v3953_v7 }
0x1701   : > { %v4000_v27 = vsel %vm962_vm5, %v3999_v50, %v3982_v24  ;;  %v3978_v30 = vperm.slane %v3972_v38, %v5633_v63  ;;  %v3995_v16 = vrot.slane %v3990_v26, 4  ;;  %v4001_v48 = vrot.slane %v3982_v24, 4 }
0x1702   : > { %v4005_v34 = vpack.c.bf16 %v4000_v27, %v4000_v27 }
0x1703   : > { %v3996_v52 = vsel %vm962_vm5, %v3995_v16, %v3978_v30  ;;  %v4002_v36 = vsel %vm962_vm5, %v3994_v58, %v4001_v48  ;;  %v3997_v45 = vrot.slane %v3978_v30, 4 }
0x1704   : > { %v4177_v31 = vsel %vm1469_vm8, %v4005_v34, 0  ;;  %v4003_v37 = vpack.c.bf16 %v3996_v52, %v3996_v52  ;;  %v4006_v12 = vpack.c.bf16 %v4002_v36, %v4002_v36 }
0x1705   : > { %4186 = vmatpush.bf16.msra.mxu1 %v4177_v31  ;;  %v3998_v41 = vsel %vm962_vm5, %v3990_v26, %v3997_v45 }
0x1706   : > { %v4139_v40 = vsel %vm1469_vm8, %v4003_v37, 0  ;;  %v4196_v43 = vsel %vm1469_vm8, %v4006_v12, 0  ;;  %v4004_v62 = vpack.c.bf16 %v3998_v41, %v3998_v41 }
0x1707   : > { %4148 = vmatpush.bf16.msra.mxu3 %v4139_v40  ;;  %4205 = vmatpush.bf16.msra.mxu2 %v4196_v43 }
0x1708   : > { %v4158_v46 = vsel %vm1469_vm8, %v4004_v62, 0 }
0x1709   : > { %4167 = vmatpush.bf16.msrb.mxu0 %v4158_v46 }
0x1758   : > { %v4113_v47 = vpop.xlane.xlu0 %4112 }
0x1759   : > { %5257 = vrcp.f32 %v4113_v47 }
0x175f   : > { %v5258_v39 = vpop.eup %5257 }
0x1760   : > { %v4127_v42 = vmul.f32 %v5258_v39, %v6608_v19  ;;  %v4122_v51 = vpop.xlane.xlu0 %4121 }
0x1761   : > { %v4116_v22 = vpop.xlane.xlu2 %4115 }
0x1762   : > { %5259 = vrcp.f32 %v4116_v22  ;;  %v4131_v53 = vpack.c.bf16 %v4127_v42, %v4127_v42 }
0x1763   : > { %5261 = vrcp.f32 %v4122_v51 }
0x1764   : > { %4940 = vmatmul.msk.bf16.vlgmr.msra.gmra.mxu3 %vm1328_vm6, %v4131_v53 }
0x1768   : > { %v5260_v54 = vpop.eup %5259  ;;  %v4119_v57 = vpop.xlane.xlu0 %4118 }
0x1769   : > { %v5262_v55 = vpop.eup %5261  ;;  %v4128_v56 = vmul.f32 %v5260_v54, %v6614_v28  ;;  %5263 = vrcp.f32 %v4119_v57 }
0x176a   : > { %v4130_v32 = vmul.f32 %v5262_v55, %v6612_v25 }
0x176b   : > { %v4132_v59 = vpack.c.bf16 %v4128_v56, %v4128_v56 }
0x176c   : > { %v4134_v60 = vpack.c.bf16 %v4130_v32, %v4130_v32 }
0x176d   : > { %4941 = vmatmul.msk.bf16.vlgmr.msrb.gmra.mxu0 %vm1328_vm6, %v4132_v59 }
0x176e   : > { %4943 = vmatmul.msk.bf16.vlgmr.msra.gmra.mxu2 %vm1328_vm6, %v4134_v60 }
0x176f   : > { %v5264_v19 = vpop.eup %5263 }
0x1770   : > { %v4129_v61 = vmul.f32 %v5264_v19, %v6628_v44 }
0x1772   : > { %v4133_v1 = vpack.c.bf16 %v4129_v61, %v4129_v61 }
0x1774   : > { %4942 = vmatmul.msk.bf16.vlgmr.msra.gmra.mxu1 %vm1328_vm6, %v4133_v1 }
0x17e7   : > { %v4150_v29 = vpop.f32.mrf.mxu3 }
0x17e8   : > { %v4213_v3 = vrot.slane %v4150_v29, 4 }
0x17ea   : > { %v4169_v0 = vpop.f32.mrf.mxu0 }
0x17eb   : > { %v4225_v2 = vrot.slane %v4169_v0, 4 }
0x17ef   : > { %v4152_v28 = vpop.f32.mrf.mxu3 }
0x17f1   : > { %v4207_v4 = vpop.f32.mrf.mxu2  ;;  %v4188_v7 = vpop.f32.mrf.mxu1 }
0x17f2   : > { %v4223_v25 = vrot.slane %v4207_v4, 4  ;;  %v4226_v5 = vsel %vm962_vm5, %v4207_v4, %v4225_v2  ;;  %v4171_v6 = vpop.f32.mrf.mxu0  ;;  %v4211_v9 = vrot.slane %v4188_v7, 4  ;;  %v4214_v11 = vsel %vm962_vm5, %v4188_v7, %v4213_v3  ;;  %v5034_v7 = vld [vmem:[%s6905_s15 + $0x18] sm:$0xff] }
0x17f3   : > { %v4234_v8 = vperm.slane %v4226_v5, %v5623_v49  ;;  %v4222_v14 = vperm.slane %v4214_v11, %v5623_v49  ;;  %4368 = vmatpush.bf16.msrb.mxu3 %v5034_v7 }
0x17f4   : > { %v4224_v44 = vsel %vm962_vm5, %v4223_v25, %v4169_v0  ;;  %v4212_v20 = vsel %vm962_vm5, %v4211_v9, %v4150_v29 }
0x17f5   : > { %v4230_v17 = vperm.slane %v4224_v44, %v5623_v49  ;;  %v4247_v18 = vrot.slane %v4234_v8, 4  ;;  %v4218_v33 = vperm.slane %v4212_v20, %v5623_v49  ;;  %v4249_v15 = vrot.slane %v4222_v14, 4 }
0x17f7   : > { %v4235_v58 = vrot.slane %v4230_v17, 4  ;;  %v4248_v35 = vsel %vm962_vm5, %v4247_v18, %v4222_v14  ;;  %v4237_v21 = vrot.slane %v4218_v33, 4  ;;  %v4250_v23 = vsel %vm962_vm5, %v4234_v8, %v4249_v15 }
0x17f8   : > { %v4254_v24 = vperm.slane %v4248_v35, %v5633_v63  ;;  %v4258_v26 = vperm.slane %v4250_v23, %v5633_v63 }
0x17f9   : > { %v4236_v50 = vsel %vm962_vm5, %v4235_v58, %v4218_v33  ;;  %v4209_v38 = vpop.f32.mrf.mxu2  ;;  %v4238_v27 = vsel %vm962_vm5, %v4230_v17, %v4237_v21  ;;  %v4190_v16 = vpop.f32.mrf.mxu1 }
0x17fa   : > { %v4242_v30 = vperm.slane %v4236_v50, %v5633_v63  ;;  %v4246_v48 = vperm.slane %v4238_v27, %v5633_v63  ;;  %v4263_v34 = vrot.slane %v4254_v24, 4  ;;  %v4265_v52 = vrot.slane %v4258_v26, 4  ;;  %v5036_v27 = vld [vmem:[%s7031_s3 + $0x18] sm:$0xff] }
0x17fb   : > { %4442 = vmatpush.bf16.msra.mxu0 %v5036_v27 }
0x17fc   : > { %v4259_v36 = vrot.slane %v4242_v30, 4  ;;  %v4261_v45 = vrot.slane %v4246_v48, 4  ;;  %v4266_v31 = vsel %vm962_vm5, 0.0, %v4265_v52  ;;  %v4278_v37 = vsel %vm962_vm5, %v4265_v52, %v4254_v24 }
0x17fd   : > { %v4282_v12 = vperm.slane %v4278_v37, %v5623_v49  ;;  %v4283_v41 = vrot.slane %v4266_v31, 4  ;;  %v4264_v43 = vsel %vm962_vm5, 0.0, %v4263_v34 }
0x17fe   : > { %v4262_v40 = vsel %vm962_vm5, 0.0, %v4261_v45  ;;  %v4267_v62 = vsel %vm962_vm5, %v4261_v45, %v4242_v30  ;;  %v4260_v22 = vsel %vm962_vm5, 0.0, %v4259_v36 }
0x17ff   : > { %v4284_v46 = vsel %vm962_vm5, %v4283_v41, %v4264_v43  ;;  %v4271_v47 = vperm.slane %v4267_v62, %v5623_v49  ;;  %v4272_v39 = vrot.slane %v4262_v40, 4  ;;  %v4303_v42 = vrot.slane %v4282_v12, 4  ;;  %v5179_v40 = vld [vmem:[%s7032_s6 + $0x1] ss:$0 sm:$0xff] }
0x1800   : > { %v4288_v51 = vperm.slane %v4284_v46, %v5623_v49 }
0x1801   : > { %v4273_v53 = vsel %vm962_vm5, %v4272_v39, %v4260_v22  ;;  %v4291_v54 = vrot.slane %v4271_v47, 4  ;;  %v5180_v39 = vld [vmem:[%s6910_s20 + $0x1] ss:$0 sm:$0xff] }
0x1802   : > { %v4277_v55 = vperm.slane %v4273_v53, %v5623_v49  ;;  %v4304_v56 = vsel %vm962_vm5, %v4288_v51, %v4303_v42  ;;  %v4301_v57 = vrot.slane %v4288_v51, 4  ;;  %v5040_v51 = vld [vmem:[%s6911_s21 + $0x38] sm:$0xff] }
0x1803   : > { %v4312_v32 = vperm.slane %v4304_v56, %v5633_v63  ;;  %4521 = vmatpush.bf16.msrb.mxu1 %v5040_v51  ;;  %v4572_v51 = vld [vmem:[%s7033_s1 + $0x28] sm:$0xff] }
0x1804   : > { %v4292_v59 = vsel %vm962_vm5, %v4277_v55, %v4291_v54  ;;  %v4289_v60 = vrot.slane %v4277_v55, 4  ;;  %v4302_v19 = vsel %vm962_vm5, %v4301_v57, %v4282_v12  ;;  %v5178_v12 = vld [vmem:[%s6907_s17 + $0x1] ss:$0 sm:$0xff]  ;;  %v5039_v55 = vld [vmem:[%s6911_s21 + $0x30] sm:$0xff] }
0x1805   : > { %v4300_v61 = vperm.slane %v4292_v59, %v5633_v63  ;;  %v4317_v1 = vrot.slane %v4312_v32, 4  ;;  %v4308_v29 = vperm.slane %v4302_v19, %v5633_v63  ;;  %v5038_v59 = vld [vmem:[%s6911_s21 + $0x28] sm:$0xff] }
0x1806   : > { %v4290_v0 = vsel %vm962_vm5, %v4289_v60, %v4271_v47  ;;  %v5037_v60 = vld [vmem:[%s6911_s21 + $0x20] sm:$0xff] }
0x1807   : > { %v4318_v2 = vsel %vm962_vm5, %v4317_v1, %v4300_v61  ;;  %v4296_v49 = vperm.slane %v4290_v0, %v5633_v63  ;;  %v4313_v28 = vrot.slane %v4308_v29, 4  ;;  %v4319_v5 = vrot.slane %v4300_v61, 4  ;;  %v5033_v63 = vld [vmem:[%s6905_s15 + $0x10] sm:$0xff]  ;;  %4522 = vmatpush.bf16.msrb.mxu1 %v5039_v55 }
0x1808   : > { %4326 = vrot.lane.b32.xlu0 %v4318_v2, %s7023_s27  ;;  %4369 = vmatpush.bf16.msrb.mxu3 %v5033_v63  ;;  %v4569_v55 = vld [vmem:[%s7033_s1 + $0x10] sm:$0xff]  ;;  %s860_s27 = scalar_lea.vmem [#allocation4], %s4779_s8 }
0x1809   : > { %v4315_v3 = vrot.slane %v4296_v49, 4  ;;  %v4314_v4 = vsel %vm962_vm5, %v4313_v28, %v4296_v49  ;;  %v4320_v6 = vsel %vm962_vm5, %v4312_v32, %v4319_v5  ;;  %s4668_s0 = sshll.u32 %s860_s27, 4  ;;  %s4669_s0 = int_to_ptr.vmem [resolvable:$true] %s4668_s0 }
0x180b   : > { %v4316_v25 = vsel %vm962_vm5, %v4308_v29, %v4315_v3  ;;  %4523 = vmatpush.bf16.msrb.mxu1 %v5038_v59  ;;  %v4567_v59 = vld [vmem:[%s7033_s1] sm:$0xff] }
0x180c   : > { %4322 = vrot.lane.b32.xlu1 %v4316_v25, %s7024_s28 }
0x180f   : > { %4524 = vmatpush.bf16.msrb.mxu1 %v5037_v60  ;;  %v4568_v60 = vld [vmem:[%s7033_s1 + $0x8] sm:$0xff] }
0x1814   : > { %4330 = vrot.lane.b32.xlu1 %v4320_v6, %s7025_s30  ;;  %s7030_s30 = sld [smem:[#allocation31_spill]] }
0x181a   : > { %v5177_v20 = vld [vmem:[%s7030_s30 + $0x1] ss:$0 sm:$0xff] }
0x187a   : > { %v4327_v11 = vpop.permute.xlu0 %4326 }
0x187e   : > { %v4323_v8 = vpop.permute.xlu1 %4322 }
0x187f   : > { %v4333_v9 = vsel %vm1328_vm6, %v4314_v4, %v4323_v8 }
0x1880   : > { %v4334_v14 = vsel %vm1666_vm9, %v4333_v9, %v4327_v11 }
0x1886   : > { %v4331_v44 = vpop.permute.xlu1 %4330 }
0x1887   : > { %v4335_v17 = vsel %vm1668_vm10, %v4334_v14, %v4331_v44 }
0x1888   : > { %v4341_v18 = vpack.c.bf16 %v4335_v17, %v4335_v17 }
0x188a   : > { %4957 = vmatmul.msk.bf16.vlgmr.msrb.gmra.mxu3 %vm875_vm0, %v4341_v18 }
0x190d   : > { %v4371_v33 = vpop.f32.mrf.mxu3 }
0x190e   : > { %v4372_v15 = vadd.f32 %v5177_v20, %v4371_v33  ;;  %v5181_v20 = vld [vmem:[%s6912_s22 + $0x1] ss:$0 sm:$0xff] }
0x1910   : > { %v4375_v58 = vadd.f32 %v4372_v15, %v6485_v13  ;;  %v5035_v13 = vld [vmem:[%s7031_s3 + $0x10] sm:$0xff]  ;;  %s7035_s3 = sld [smem:[#allocation12_spill]] }
0x1911   : > { %4443 = vmatpush.bf16.msra.mxu0 %v5035_v13 }
0x1912   : > { %v4380_v35 = vsel %vm875_vm0, %v4375_v58, 0.0 }
0x1913   : > { %4381 = vadd.xlane.f32.xlu1 %v4380_v35 }
0x1915   : > { %v4373_v21 = vpop.f32.mrf.mxu3 }
0x1916   : > { %s5005_s28 = sshll.u32 %s7035_s3, 3  ;;  %s5293_s3 = scalar_lea.hbm %s7038_s16, 16 }
0x1917   : > { %s4666_s19 = scalar_lea.hbm %s7037_s5, %s5005_s28 }
0x1918   : > { %s4670_s25 = sshll.u32 %s4666_s19, 4  ;;  %s4671_s25 = int_to_ptr.hbm [resolvable:$true] %s4670_s25 }
0x1986   : > { %v4382_v23 = vpop.xlane.xlu1 %4381 }
0x1987   : > { %v4383_v24 = vmul.f32 %v4382_v23, %v5587_v10  ;;  %v4581_v23 = vld [vmem:[%s7033_s1 + $0x70] sm:$0xff] }
0x1989   : > { %v4384_v50 = vsub.f32 %v4375_v58, %v4383_v24  ;;  %v4582_v24 = vld [vmem:[%s7033_s1 + $0x78] sm:$0xff] }
0x198b   : > { %v4385_v26 = vmul.f32 %v4384_v50, %v4384_v50 }
0x198d   : > { %v4386_v38 = vsel %vm875_vm0, %v4385_v26, 0.0  ;;  %v4579_v26 = vld [vmem:[%s7033_s1 + $0x60] sm:$0xff] }
0x198e   : > { %4387 = vadd.xlane.f32.xlu0 %v4386_v38  ;;  %v4580_v38 = vld [vmem:[%s7033_s1 + $0x68] sm:$0xff] }
0x198f   : > { %v4589_v13 = vpack.c.bf16 %v4580_v38, %v4579_v26 }
0x1a01   : > { %v4388_v30 = vpop.xlane.xlu0 %4387 }
0x1a02   : > { %v4389_v16 = vmul.f32 %v4388_v30, %v5587_v10  ;;  %v4617_v30 = vsel %vm875_vm0, %v4589_v13, 0 }
0x1a04   : > { %v4390_v48 = vadd.f32 1e-05, %v4389_v16  ;;  %v4577_v16 = vld [vmem:[%s7033_s1 + $0x50] sm:$0xff] }
0x1a06   : > { %5265 = vrsqrt.f32 %v4390_v48  ;;  %vm4397_vm6 = vweird.f32 %v4390_v48 }
0x1a0c   : > { %v5266_v34 = vpop.eup %5265 }
0x1a0d   : > { %v4392_v52 = vmul.f32 %v5266_v34, %v4390_v48  ;;  %vm4398_vm5 = vweird.f32 %v5266_v34  ;;  %v4578_v48 = vld [vmem:[%s7033_s1 + $0x58] sm:$0xff] }
0x1a0e   : > { %vm4399_vm8 = vmor %vm4397_vm6, %vm4398_vm5 }
0x1a0f   : > { %v4393_v36 = vmul.f32 %v5266_v34, %v4392_v52 }
0x1a11   : > { %v4394_v45 = vmul.f32 0.5, %v4393_v36  ;;  %v4575_v36 = vld [vmem:[%s7033_s1 + $0x40] sm:$0xff] }
0x1a13   : > { %v4395_v31 = vsub.f32 1.5, %v4394_v45  ;;  %v4576_v45 = vld [vmem:[%s7033_s1 + $0x48] sm:$0xff] }
0x1a15   : > { %v4396_v37 = vmul.f32 %v5266_v34, %v4395_v31  ;;  %v4587_v31 = vpack.c.bf16 %v4576_v45, %v4575_v36 }
0x1a17   : > { %v4400_v41 = vsel %vm4399_vm8, %v5266_v34, %v4396_v37  ;;  %v4588_v34 = vpack.c.bf16 %v4578_v48, %v4577_v16 }
0x1a18   : > { %v4401_v43 = vmul.f32 %v4400_v41, %v4384_v50  ;;  %v4590_v50 = vpack.c.bf16 %v4582_v24, %v4581_v23  ;;  %v4611_v41 = vsel %vm875_vm0, %v4587_v31, 0 }
0x1a19   : > { %v4614_v52 = vsel %vm875_vm0, %v4588_v34, 0 }
0x1a1a   : > { %v4405_v62 = vmul.f32 %v5178_v12, %v4401_v43  ;;  %v4620_v27 = vsel %vm875_vm0, %v4590_v50, 0  ;;  %v4574_v43 = vld [vmem:[%s7033_s1 + $0x38] sm:$0xff] }
0x1a1b   : > { %4622 = vmatpush.bf16.xpose.msrb.mxu2 %v4620_v27 }
0x1a1c   : > { %v4409_v46 = vadd.f32 %v5179_v40, %v4405_v62  ;;  %v4573_v40 = vld [vmem:[%s7033_s1 + $0x30] sm:$0xff] }
0x1a1e   : > { %v4415_v47 = vpack.c.bf16 %v4409_v46, %v4409_v46 }
0x1a20   : > { %4973 = vmatmul.msk.bf16.vlgmr.msra.gmra.mxu0 %vm875_vm0, %v4415_v47  ;;  %v4586_v47 = vpack.c.bf16 %v4574_v43, %v4573_v40 }
0x1a23   : > { %4623 = vmatpush.bf16.xpose.msrb.mxu2 %v4617_v30 }
0x1a2b   : > { %4624 = vmatpush.bf16.xpose.msrb.mxu2 %v4614_v52 }
0x1a33   : > { %4625 = vmatpush.bf16.xpose.msrb.mxu2 %v4611_v41 }
0x1a9d   : > { %v4445_v42 = vpop.f32.mrf.mxu0 }
0x1a9e   : > { %v4446_v22 = vadd.f32 %v5180_v39, %v4445_v42  ;;  %v4608_v42 = vsel %vm875_vm0, %v4586_v47, 0 }
0x1a9f   : > { %4626 = vmatpush.bf16.xpose.msrb.mxu2 %v4608_v42 }
0x1aa0   : > { %v4450_v53 = vmul.f32 0.70710677, %v4446_v22  ;;  %v4449_v44 = vmul.f32 0.5, %v4446_v22  ;;  %v4571_v22 = vld [vmem:[%s7033_s1 + $0x20] sm:$0xff] }
0x1aa2   : > { %v4451_v54 = vand.u32 2147483647, %v4450_v53  ;;  %vm4470_vm9 = vcmp.ge.f32.partialorder %v4450_v53, 0.0  ;;  %v4585_v53 = vpack.c.bf16 %v4572_v51, %v4571_v22 }
0x1aa4   : > { %v4452_v56 = vmul.f32 0.3275911, %v4451_v54  ;;  %v4464_v61 = vsub.f32 0.0, %v4451_v54 }
0x1aa5   : > { %v4447_v57 = vpop.f32.mrf.mxu0 }
0x1aa6   : > { %v4453_v32 = vadd.f32 1.0, %v4452_v56  ;;  %v4465_v0 = vmul.f32 %v4464_v61, %v4451_v54  ;;  %v4605_v54 = vsel %vm875_vm0, %v4585_v53, 0  ;;  %v4570_v56 = vld [vmem:[%s7033_s1 + $0x18] sm:$0xff]  ;;  %s5287_s1 = sshra.s32 %s4671_s25, 4  ;;  %s5288_s1 = int_to_ptr.hbm [resolvable:$true] %s5287_s1 }
0x1aa7   : > { %4627 = vmatpush.bf16.xpose.msrb.mxu2 %v4605_v54  ;;  %v4584_v57 = vpack.c.bf16 %v4570_v56, %v4569_v55  ;;  %s5289_s4 = scalar_lea.hbm %s5288_s1, 8  ;;  %p5294_p0 = scmp.lt.s32.totalorder %s5288_s1, %s7038_s16 }
0x1aa8   : > { %5267 = vrcp.f32 %v4453_v32  ;;  %v4466_v28 = vmul.f32 1.442695, %v4465_v0  ;;  %p5290_p11 = scmp.ne.s32.totalorder %s5288_s1, %s5289_s4  ;;  %p5295_p1 = scmp.lt.s32.totalorder %s5293_s3, %s5289_s4 }
0x1aa9   : > { %v4602_v32 = vsel %vm875_vm0, %v4584_v57, 0 }
0x1aaa   : > { %5269 = vpow2.f32 %v4466_v28  ;;  %p5291_p12 = pnand %p5290_p11, %p5563_p5  ;;  %p5296_p2 = por %p5295_p1, %p5294_p0 }
0x1aac   : > { %p5292_p13 = pneg %p5291_p12 }
0x1aae   : > { %v5268_v19 = vpop.eup %5267  ;;  %p5297_p3 = pnand %p5296_p2, %p5292_p13 }
0x1aaf   : > { %v4455_v1 = vmul.f32 1.0614054, %v5268_v19  ;;  %4628 = vmatpush.bf16.xpose.msrb.mxu2 %v4602_v32 }
0x1ab0   : > { %v5270_v7 = vpop.eup %5269 }
0x1ab1   : > { %v4456_v29 = vadd.f32 -1.4531521, %v4455_v1 }
0x1ab3   : > { %v4457_v2 = vmul.f32 %v5268_v19, %v4456_v29 }
0x1ab5   : > { %v4458_v49 = vadd.f32 1.4214138, %v4457_v2 }
0x1ab7   : > { %v4459_v3 = vmul.f32 %v5268_v19, %v4458_v49 }
0x1ab9   : > { %v4460_v4 = vadd.f32 -0.28449672, %v4459_v3 }
0x1abb   : > { %v4461_v25 = vmul.f32 %v5268_v19, %v4460_v4 }
0x1abd   : > { %v4462_v5 = vadd.f32 0.2548296, %v4461_v25 }
0x1abf   : > { %v4463_v6 = vmul.f32 %v5268_v19, %v4462_v5  ;;  %v4583_v19 = vpack.c.bf16 %v4568_v60, %v4567_v59  ;;  %v5182_v5 = vld [vmem:[%s6913_s23 + $0x1] ss:$0 sm:$0xff] }
0x1ac1   : > { %v4468_v63 = vmul.f32 %v5270_v7, %v4463_v6  ;;  %v4599_v61 = vsel %vm875_vm0, %v4583_v19, 0  ;;  %v5183_v6 = vld [vmem:[%s6914_s24 + $0x1] ss:$0 sm:$0xff] }
0x1ac2   : > { %4629 = vmatpush.bf16.xpose.msrb.mxu2 %v4599_v61 }
0x1ac3   : > { %v4469_v8 = vsub.f32 1.0, %v4468_v63 }
0x1ac5   : > { %v4471_v9 = vsub.f32 0.0, %v4469_v8 }
0x1ac7   : > { %v4472_v11 = vsel %vm4470_vm9, %v4469_v8, %v4471_v9 }
0x1ac8   : > { %v4473_v14 = vadd.f32 1.0, %v4472_v11 }
0x1aca   : > { %v4474_v17 = vmul.f32 %v4473_v14, %v4449_v44 }
0x1acc   : > { %v4484_v18 = vpack.c.bf16 %v4474_v17, %v4474_v17 }
0x1ace   : > { %4999 = vmatmul.msk.bf16.vlgmr.msrb.gmra.mxu1 %vm2687_vm3, %v4484_v18 }
0x1b4b   : > { %v4526_v33 = vpop.f32.mrf.mxu1 }
0x1b4c   : > { %v4527_v15 = vadd.f32 %v5181_v20, %v4526_v33 }
0x1b4e   : > { %v4530_v58 = vadd.f32 %v4527_v15, %v4409_v46 }
0x1b50   : > { %v4535_v35 = vsel %vm875_vm0, %v4530_v58, 0.0 }
0x1b51   : > { %4536 = vadd.xlane.f32.xlu2 %v4535_v35 }
0x1b53   : > { %v4528_v21 = vpop.f32.mrf.mxu1 }
0x1bc4   : > { %v4537_v37 = vpop.xlane.xlu2 %4536 }
0x1bc5   : > { %v4538_v12 = vmul.f32 %v4537_v37, %v5587_v10 }
0x1bc7   : > { %v4539_v62 = vsub.f32 %v4530_v58, %v4538_v12 }
0x1bc9   : > { %v4540_v46 = vmul.f32 %v4539_v62, %v4539_v62 }
0x1bcb   : > { %v4541_v39 = vsel %vm875_vm0, %v4540_v46, 0.0 }
0x1bcc   : > { %4542 = vadd.xlane.f32.xlu2 %v4541_v39 }
0x1c3f   : > { %v4543_v1 = vpop.xlane.xlu2 %4542 }
0x1c40   : > { %v4544_v29 = vmul.f32 %v4543_v1, %v5587_v10 }
0x1c42   : > { %v4545_v0 = vadd.f32 1e-05, %v4544_v29 }
0x1c44   : > { %5271 = vrsqrt.f32 %v4545_v0  ;;  %vm4552_vm15 = vweird.f32 %v4545_v0 }
0x1c4a   : > { %v5272_v2 = vpop.eup %5271 }
0x1c4b   : > { %v4547_v49 = vmul.f32 %v5272_v2, %v4545_v0  ;;  %vm4553_vm10 = vweird.f32 %v5272_v2 }
0x1c4c   : > { %vm4554_vm1 = vmor %vm4552_vm15, %vm4553_vm10 }
0x1c4d   : > { %v4548_v28 = vmul.f32 %v5272_v2, %v4547_v49 }
0x1c4f   : > { %v4549_v3 = vmul.f32 0.5, %v4548_v28 }
0x1c51   : > { %v4550_v4 = vsub.f32 1.5, %v4549_v3 }
0x1c53   : > { %v4551_v25 = vmul.f32 %v5272_v2, %v4550_v4 }
0x1c55   : > { %v4555_v10 = vsel %vm4554_vm1, %v5272_v2, %v4551_v25 }
0x1c56   : > { %v4556_v7 = vmul.f32 %v4555_v10, %v4539_v62 }
0x1c58   : > { %v4560_v63 = vmul.f32 %v5182_v5, %v4556_v7 }
0x1c5a   : > { %v4564_v8 = vadd.f32 %v5183_v6, %v4560_v63 }
0x1c5c   : > { %v4566_v9 = vpack.c.bf16 %v4564_v8, %v4564_v8  ;;  %4565 = vst.msk [vmem:[%s860_s27] sm:$0xff] %vm875_vm0, %v4564_v8 }
0x1c5e   : > { %5002 = vmatmul.msk.bf16.vlgmr.msrb.gmra.mxu2 %vm875_vm0, %v4566_v9 }
0x1c5f   : > { %5300 = shalt.err (!%p5297_p3)
}
0x1c60   : > { %5042 = dma.vmem_to_hbm [thread:$0]  (%p5563_p5), %s4669_s0, 128, %s4671_s25, %s4642_s9  }
0x1c61   : > { %s7039_s18 = sld [smem:[#allocation36_spill]]  ;;  %s853_s13 = scalar_lea.vmem [#allocation2], %s4779_s8 }
0x1c62   : > { %s7040_s7 = sld [smem:[#allocation35_spill]]  ;;  %s4654_s12 = sshll.u32 %s853_s13, 4  ;;  %s4655_s12 = int_to_ptr.vmem [resolvable:$true] %s4654_s12 }
0x1c63   : > { %s4637_s4 = scalar_lea.sflag [#allocation3], %s6830_s2 }
0x1c67   : > { %s4652_s5 = scalar_lea.hbm %s7039_s18, %s5005_s28  ;;  %s5321_s9 = scalar_lea.hbm %s7039_s18, 16 }
0x1c68   : > { %v5184_v11 = vld [vmem:[%s7040_s7] ss:$0 sm:$0xff]  ;;  %s4656_s11 = sshll.u32 %s4652_s5, 4  ;;  %s4657_s11 = int_to_ptr.hbm [resolvable:$true] %s4656_s11 }
0x1c69   : > { %s5315_s1 = sshra.s32 %s4657_s11, 4  ;;  %s5316_s1 = int_to_ptr.hbm [resolvable:$true] %s5315_s1 }
0x1c6a   : > { %s5317_s0 = scalar_lea.hbm %s5316_s1, 8  ;;  %p5322_p9 = scmp.lt.s32.totalorder %s5316_s1, %s7039_s18 }
0x1c6b   : > { %p5318_p4 = scmp.ne.s32.totalorder %s5316_s1, %s5317_s0  ;;  %p5323_p10 = scmp.lt.s32.totalorder %s5321_s9, %s5317_s0 }
0x1c6d   : > { %p5319_p7 = pnand %p5318_p4, %p5563_p5  ;;  %p5324_p11 = por %p5323_p10, %p5322_p9 }
0x1c6f   : > { %p5320_p8 = pneg %p5319_p7 }
0x1c71   : > { %p5325_p12 = pnand %p5324_p11, %p5320_p8 }
0x1ce1   : > { %v4631_v44 = vpop.f32.mrf.mxu2 }
0x1ce2   : > { %v4632_v14 = vadd.f32 %v5184_v11, %v4631_v44 }
0x1ce4   : > { %4635 = vst [vmem:[%s853_s13] sm:$0xff] %v4632_v14 }
0x1ce5   : > { %5328 = shalt.err (!%p5325_p12)
}
0x1ce6   : > { %5041 = dma.vmem_to_hbm [thread:$0]  (%p5563_p5), %s4655_s12, 128, %s4657_s11, %s4637_s4  }
0x1ce9   : > { %v4633_v17 = vpop.f32.mrf.mxu2 }
0x1cea PF: > { %s7041_s13 = sld [smem:[#allocation11_spill]] }
0x1ceb   : > { %s7042_s2 = sld [smem:[#allocation8_spill]] }
0x1cf0   : > { %p5052_p13 = scmp.ge.s32.totalorder %s7041_s13, 2 }
0x1cf1   : > { %s4682_s30 = sand.u32 1, %s7042_s2  }
0x1cf2   : > { %p5046_p0 = pnand %p5052_p13, %p5567_p6  ;;  %s4683_s5 = scalar_lea.sflag [#allocation3], %s4682_s30 }
0x1cf4   : > { %p5047_p1 = pneg %p5046_p0 }
0x1cf6   : > { %5346 = dma.done.wait (%p5047_p1), %s4683_s5, 128  }
0x1cf7   : > { %5348 = vsyncadd (%p5047_p1), %s4683_s5, 4294967168  ;;  %s4693_s19 = scalar_lea.sflag [#allocation5], %s4682_s30 }
0x1cf8   : > { %5350 = dma.done.wait (%p5047_p1), %s4693_s19, 128  }
0x1cf9   : > { %5352 = vsyncadd (%p5047_p1), %s4693_s19, 4294967168  ;;  %s7044_s30 = sld [smem:[#allocation13_spill]] }
0x1cfa   : > { %s7045_s8 = sld [smem:[#allocation9_spill]] }
0x1cfb   : > { %s7046_s5 = sld [smem:[#allocation10_spill]] }
0x1cfc   : > { %s7047_s9 = sld [smem:[#allocation14_spill]] }
0x1cff   : > { %p42_p5 = scmp.ge.s32.totalorder %s7044_s30, 4  }
0x1d01   :  { %44 = sbr.rel (!%p42_p5) target bundleno = 27 (0x1b), region = 203 }
0x1d06   :  { %4699 = vsyncpa [#allocation3], 1 }
0x1d07   :  { %4701 = vsyncpa [#allocation3 + $0x1], 1 }
0x1d08   :  { %4702 = vsyncpa [#allocation5], 1 }
0x1d09   :  { %4704 = vsyncpa [#allocation5 + $0x1], 1 }

</bundles_post_ra>
